<compile_context>
chip_gen: v7x
topology: tpu7x:2x2x1
jax: 0.10.0
libtpu: 0.0.40
codegen_flags: <defaults>
</compile_context>

<pallas_src>
import functools

import jax
import jax.numpy as jnp
import numpy as np
from jax.experimental import pallas as pl
from jax.experimental.pallas import tpu as pltpu

_EPS = 1e-5


# ----------------------------------------------------------------------------
# In-kernel helpers
# ----------------------------------------------------------------------------
def _zero_border(ref, h, w):
    """Zero only the 1-pixel halo of a (h+2, w+2, c) scratch (interior is
    fully overwritten every step -> no full-scratch re-zeroing)."""
    c = ref.shape[-1]
    zrow = jnp.zeros((1, w + 2, c), ref.dtype)
    ref[0:1, :, :] = zrow
    ref[h + 1:h + 2, :, :] = zrow
    zcol = jnp.zeros((h + 2, 1, c), ref.dtype)
    ref[:, 0:1, :] = zcol
    ref[:, w + 1:w + 2, :] = zcol


def _im2col_3x3(src_pad_ref, dst_ref, h, w, c):
    """dst[:, :, k*c:(k+1)*c] = src_pad[dh:dh+h, dw:dw+w, :] with k = dh*3+dw.
    Builds the (h, w, 9*c) patch slab for a single K = 9*c matmul."""
    # TODO(synk): the dw (sublane) shifts could ride the otherwise-idle XLU
    # via pltpu.roll instead of shifted-slice relayouts.
    for k in range(9):
        dh, dw = divmod(k, 3)
        dst_ref[:, :, k * c:(k + 1) * c] = src_pad_ref[dh:dh + h, dw:dw + w, :]


# ----------------------------------------------------------------------------
# Fused Pallas kernel: one grid step == one batch image.
# ----------------------------------------------------------------------------
def _fused_resblock_kernel(x_ref, w1_ref, t1_ref, w3a_ref, ta_ref,
                           w3b_ref, tb_ref, out_ref,
                           xpad_ref, pa_ref, hpad_ref, pb_ref, *,
                           H, W, Cin, Cout, acc_precision):
    """Refs:
      x_ref   : (1, H, W, Cin)        unpadded NHWC input tile
      w1_ref  : (Cin, Cout)           1x1 shortcut conv weight, BN scale folded
      t1_ref  : (1, Cout)             folded shortcut bias/BN shift (f32)
      w3a_ref : (9*Cin, Cout)         first 3x3 conv, taps concatenated along K
      ta_ref  : (1, Cout)
      w3b_ref : (9*Cout, Cout)        second 3x3 conv, taps concatenated along K
      tb_ref  : (1, Cout)
      out_ref : (1, H, W, Cout)       block output (NHWC)
      xpad_ref: (H+2, W+2, Cin)       VMEM: input with zero halo
      pa_ref  : (H, W, 9*Cin)         VMEM: im2col patches for conv #1
      hpad_ref: (H+2, W+2, Cout)      VMEM: intermediate act with zero halo
      pb_ref  : (H, W, 9*Cout)        VMEM: im2col patches for conv #2
    """
    m = H * W
    f32 = jnp.float32

    # ---- stage input with a zero 1-px halo (border-only zeroing) ----------
    _zero_border(xpad_ref, H, W)
    xpad_ref[1:H + 1, 1:W + 1, :] = x_ref[0].astype(xpad_ref.dtype)

    # ---- conv #1 (3x3, pad 1) as ONE matmul with K = 9*Cin ----------------
    _im2col_3x3(xpad_ref, pa_ref, H, W, Cin)
    pa = pa_ref[...].reshape(m, 9 * Cin)
    h1 = jnp.dot(pa, w3a_ref[...], preferred_element_type=f32,
                 precision=acc_precision)
    h1 = jnp.maximum(h1 + ta_ref[...], 0.0)         # folded BN + ReLU (f32)
    # TODO(synk): Dropout(p=0.25) is the identity here (eval-mode semantics).

    # ---- shortcut 1x1 conv: reuse the centre-tap (k=4) columns of `pa` -----
    val1 = jnp.dot(pa[:, 4 * Cin:5 * Cin], w1_ref[...],
                   preferred_element_type=f32, precision=acc_precision)
    val1 = val1 + t1_ref[...]

    # ---- stage h1 with a zero halo; interior fully overwritten ------------
    _zero_border(hpad_ref, H, W)
    hpad_ref[1:H + 1, 1:W + 1, :] = h1.reshape(H, W, Cout).astype(hpad_ref.dtype)

    # ---- conv #2 (3x3, pad 1) as ONE matmul with K = 9*Cout ---------------
    _im2col_3x3(hpad_ref, pb_ref, H, W, Cout)
    pb = pb_ref[...].reshape(m, 9 * Cout)
    val2 = jnp.dot(pb, w3b_ref[...], preferred_element_type=f32,
                   precision=acc_precision)
    val2 = jnp.maximum(val2 + tb_ref[...], 0.0)      # folded BN + ReLU (f32)

    # ---- residual add + final ReLU, single NHWC store ----------------------
    out = jnp.maximum(val2 + val1, 0.0)
    out_ref[0] = out.reshape(H, W, Cout).astype(out_ref.dtype)


# ----------------------------------------------------------------------------
# Wrapper: BN folding + tap-concatenated weight prep + pallas_call.
# ----------------------------------------------------------------------------
def _fold_bn(conv_bias, gamma, beta, mean, var):
    """Fold an eval-mode BatchNorm into the preceding conv:
       ((conv(x)+b) - mean)/sqrt(var+eps)*gamma + beta
         = conv(x)*s + ((b - mean)*s + beta),  s = gamma/sqrt(var+eps)."""
    s = gamma / jnp.sqrt(var + _EPS)
    shift = (conv_bias - mean) * s + beta
    return s, shift


def resblock_d1_forward(x, p, stride=1, compute_dtype=jnp.bfloat16,
                        out_dtype=jnp.float32, nhwc_input=False,
                        nchw_output=True):
    """Fused Pallas forward of ResBlock_d1 (eval mode).

    `x` is NCHW (PyTorch) unless nhwc_input=True.  Conv weights in `p` are
    PyTorch OIHW.  Output is NCHW unless nchw_output=False (NHWC, no final
    transpose)."""
    if stride != 1:
        # TODO(synk): stride>1 needs strided im2col windows (pl.ds(..., stride)).
        raise NotImplementedError("resblock_d1_forward: only stride=1 implemented")

    if nhwc_input:
        x_nhwc = x                    # kernel casts while staging into VMEM
    else:
        # One fused XLA transpose+cast pass (PyTorch NCHW interface); no pad.
        x_nhwc = jnp.transpose(x, (0, 2, 3, 1)).astype(compute_dtype)
    n, h, w, cin = x_nhwc.shape
    cout = p["w1"].shape[0]

    # ---- fold BN scale into conv weights; BN shift + conv bias together ----
    s1, t1 = _fold_bn(p["b1"], p["g1"], p["be1"], p["m1"], p["v1"])
    sa, ta = _fold_bn(p["b3a"], p["ga"], p["bea"], p["ma"], p["va"])
    sb, tb = _fold_bn(p["b3b"], p["gb"], p["beb"], p["mb"], p["vb"])

    # tap-major K layout: weight row (dh*3 + dw)*C + c  <->  patch col k*C + c
    w1m = (jnp.transpose(p["w1"][:, :, 0, 0], (1, 0)) * s1).astype(compute_dtype)
    w3am = (jnp.transpose(p["w3a"], (2, 3, 1, 0)).reshape(9 * cin, cout)
            * sa).astype(compute_dtype)
    w3bm = (jnp.transpose(p["w3b"], (2, 3, 1, 0)).reshape(9 * cout, cout)
            * sb).astype(compute_dtype)
    t1 = t1.reshape(1, cout).astype(jnp.float32)
    ta = ta.reshape(1, cout).astype(jnp.float32)
    tb = tb.reshape(1, cout).astype(jnp.float32)
    # TODO(synk): for Cout < 128, pad channels to the lane width in the wrapper
    # (better MXU N occupancy and unmasked lane stores on v6e/v7x).

    # ---- honest per-step VMEM estimate (patches, f32 temps, double buffers)
    isz = jnp.dtype(compute_dtype).itemsize
    in_isz = jnp.dtype(x_nhwc.dtype).itemsize
    out_isz = jnp.dtype(out_dtype).itemsize
    m = h * w
    weight_bytes = (9 * cin * cout + cin * cout + 9 * cout * cout) * isz + 3 * cout * 4
    vmem_est = (2 * m * cin * in_isz                       # input tile x2
                + 2 * m * cout * out_isz                   # output tile x2
                + 2 * weight_bytes                         # weights (x2 buffers)
                + (h + 2) * (w + 2) * (cin + cout) * isz   # xpad + hpad scratch
                + 2 * m * 9 * (cin + cout) * isz           # patch scratch + value
                + 6 * m * cout * 4)                        # f32 h1/val1/val2/out + slack
    budget_v7x = 44 * 2 ** 20                              # headroom inside 64 MiB
    assert vmem_est < budget_v7x, (
        f"per-step VMEM working set (~{vmem_est} B) exceeds the v7x-safe budget; "
        "add a second 'parallel' grid axis over output-row tiles (2-row input "
        "halo, recompute the h1 halo rows)")
    # TODO(synk): row tiling (second parallel grid axis) for v7x when N is
    # small/odd or the working set outgrows ~half of 64 MiB; on v5e/v6e
    # (128 MiB physical VMEM) prefer raising vmem_limit_bytes and keeping
    # whole-image tiles instead.
    vmem_limit = int(min(max(32 * 2 ** 20, vmem_est * 5 // 4), 48 * 2 ** 20))

    acc_precision = (jax.lax.Precision.HIGHEST
                     if jnp.dtype(compute_dtype) == jnp.dtype(jnp.float32)
                     else None)

    kernel = functools.partial(_fused_resblock_kernel, H=h, W=w,
                               Cin=cin, Cout=cout, acc_precision=acc_precision)

    out_nhwc = pl.pallas_call(
        kernel,
        out_shape=jax.ShapeDtypeStruct((n, h, w, cout), out_dtype),
        grid=(n,),  # one image per step; >= 2 steps feed both v7x TensorCores
        in_specs=[
            pl.BlockSpec((1, h, w, cin), lambda i: (i, 0, 0, 0)),
            pl.BlockSpec((cin, cout), lambda i: (0, 0)),        # resident weights
            pl.BlockSpec((1, cout), lambda i: (0, 0)),
            pl.BlockSpec((9 * cin, cout), lambda i: (0, 0)),
            pl.BlockSpec((1, cout), lambda i: (0, 0)),
            pl.BlockSpec((9 * cout, cout), lambda i: (0, 0)),
            pl.BlockSpec((1, cout), lambda i: (0, 0)),
        ],
        out_specs=pl.BlockSpec((1, h, w, cout), lambda i: (i, 0, 0, 0)),
        scratch_shapes=[
            pltpu.VMEM((h + 2, w + 2, cin), compute_dtype),     # xpad (input halo)
            pltpu.VMEM((h, w, 9 * cin), compute_dtype),         # im2col patches #1
            pltpu.VMEM((h + 2, w + 2, cout), compute_dtype),    # hpad (h1 halo)
            pltpu.VMEM((h, w, 9 * cout), compute_dtype),        # im2col patches #2
        ],
        compiler_params=pltpu.CompilerParams(
            dimension_semantics=("parallel",),
            vmem_limit_bytes=vmem_limit),
    )(x_nhwc, w1m, t1, w3am, ta, w3bm, tb)

    if not nchw_output:
        return out_nhwc  # NHWC, avoids the final HBM transpose round trip
    return jnp.transpose(out_nhwc, (0, 3, 1, 2))


# ----------------------------------------------------------------------------
# Pure-JAX reference (PyTorch-faithful, f32) for the correctness check.
# ----------------------------------------------------------------------------
def _ref_forward(x, p, stride=1):
    dn = ("NCHW", "OIHW", "NCHW")
    prec = jax.lax.Precision.HIGHEST

    def bn(y, g, be, mu, var):
        g, be, mu, var = (a[None, :, None, None] for a in (g, be, mu, var))
        return (y - mu) / jnp.sqrt(var + _EPS) * g + be

    val1 = jax.lax.conv_general_dilated(
        x, p["w1"], (stride, stride), "VALID", dimension_numbers=dn, precision=prec)
    val1 = bn(val1 + p["b1"][None, :, None, None], p["g1"], p["be1"], p["m1"], p["v1"])

    h = jax.lax.conv_general_dilated(
        x, p["w3a"], (stride, stride), ((1, 1), (1, 1)), dimension_numbers=dn,
        precision=prec)
    h = jnp.maximum(bn(h + p["b3a"][None, :, None, None],
                       p["ga"], p["bea"], p["ma"], p["va"]), 0.0)
    h = jax.lax.conv_general_dilated(
        h, p["w3b"], (1, 1), ((1, 1), (1, 1)), dimension_numbers=dn, precision=prec)
    val2 = jnp.maximum(bn(h + p["b3b"][None, :, None, None],
                          p["gb"], p["beb"], p["mb"], p["vb"]), 0.0)
    return jnp.maximum(val2 + val1, 0.0)


# ----------------------------------------------------------------------------
if __name__ == "__main__":
    key = jax.random.PRNGKey(0)
    ks = jax.random.split(key, 24)
    N, CIN, COUT, H, W = 2, 4, 8, 16, 16

    def nrm(k, shape, scale=0.2):
        return (scale * jax.random.normal(k, shape)).astype(jnp.float32)

    params = {
        # convs (PyTorch layout: OIHW)
        "w1": nrm(ks[0], (COUT, CIN, 1, 1)),
        "b1": nrm(ks[1], (COUT,), 0.1),
        "w3a": nrm(ks[2], (COUT, CIN, 3, 3)),
        "b3a": nrm(ks[3], (COUT,), 0.1),
        "w3b": nrm(ks[4], (COUT, COUT, 3, 3)),
        "b3b": nrm(ks[5], (COUT,), 0.1),
        # BatchNorm (shortcut)
        "g1": 1.0 + nrm(ks[6], (COUT,), 0.1), "be1": nrm(ks[7], (COUT,), 0.1),
        "m1": nrm(ks[8], (COUT,), 0.1),
        "v1": jax.random.uniform(ks[9], (COUT,), minval=0.5, maxval=1.5).astype(jnp.float32),
        # BatchNorm (res branch, first)
        "ga": 1.0 + nrm(ks[10], (COUT,), 0.1), "bea": nrm(ks[11], (COUT,), 0.1),
        "ma": nrm(ks[12], (COUT,), 0.1),
        "va": jax.random.uniform(ks[13], (COUT,), minval=0.5, maxval=1.5).astype(jnp.float32),
        # BatchNorm (res branch, second)
        "gb": 1.0 + nrm(ks[14], (COUT,), 0.1), "beb": nrm(ks[15], (COUT,), 0.1),
        "mb": nrm(ks[16], (COUT,), 0.1),
        "vb": jax.random.uniform(ks[17], (COUT,), minval=0.5, maxval=1.5).astype(jnp.float32),
    }

    x = jax.random.normal(ks[18], (N, CIN, H, W), jnp.float32)

    ref = jax.block_until_ready(_ref_forward(x, params, stride=1))

    # 1) Exact-lowering check: f32 operands + precision=HIGHEST in-kernel must
    #    match the HIGHEST-precision XLA reference tightly (verifies the fused
    #    K=9*C im2col matmuls, in-kernel halo, BN folding and tiling).
    out_f32 = jax.block_until_ready(
        resblock_d1_forward(x, params, stride=1, compute_dtype=jnp.float32))
    assert out_f32.shape == ref.shape == (N, COUT, H, W)
    np.testing.assert_allclose(np.asarray(out_f32), np.asarray(ref),
                               rtol=1e-4, atol=1e-4)

    # 2) Fast path: bf16 operands (MXU-native), f32 accumulation/epilogues.
    out_bf16 = jax.block_until_ready(
        resblock_d1_forward(x, params, stride=1, compute_dtype=jnp.bfloat16))
    assert out_bf16.shape == (N, COUT, H, W)
    np.testing.assert_allclose(np.asarray(out_bf16), np.asarray(ref),
                               rtol=5e-2, atol=5e-2)

    # 3) Zero-copy interface: NHWC in (no wrapper transpose/pad/cast passes),
    #    bf16 NHWC out (halved output writeback).
    x_nhwc = jnp.transpose(x, (0, 2, 3, 1))
    out_nhwc = jax.block_until_ready(
        resblock_d1_forward(x_nhwc, params, stride=1, compute_dtype=jnp.bfloat16,
                            out_dtype=jnp.bfloat16, nhwc_input=True,
                            nchw_output=False))
    assert out_nhwc.shape == (N, H, W, COUT) and out_nhwc.dtype == jnp.bfloat16
    np.testing.assert_allclose(np.asarray(out_nhwc.astype(jnp.float32)),
                               np.asarray(jnp.transpose(ref, (0, 2, 3, 1))),
                               rtol=5e-2, atol=5e-2)

    print("KERNEL_OK")
</pallas_src>

<mosaic_0001>
module attributes {stable_mosaic.version = 11 : i64} {
  func.func @_fused_resblock_kernel(%arg0: i32, %arg1: memref<1x16x16x4xf32, #tpu.memory_space<vmem>>, %arg2: memref<4x8xf32, #tpu.memory_space<vmem>>, %arg3: memref<1x8xf32, #tpu.memory_space<vmem>>, %arg4: memref<36x8xf32, #tpu.memory_space<vmem>>, %arg5: memref<1x8xf32, #tpu.memory_space<vmem>>, %arg6: memref<72x8xf32, #tpu.memory_space<vmem>>, %arg7: memref<1x8xf32, #tpu.memory_space<vmem>>, %arg8: memref<1x16x16x8xf32, #tpu.memory_space<vmem>>, %arg9: memref<18x18x4xf32, #tpu.memory_space<vmem>>, %arg10: memref<16x16x36xf32, #tpu.memory_space<vmem>>, %arg11: memref<18x18x8xf32, #tpu.memory_space<vmem>>, %arg12: memref<16x16x72xf32, #tpu.memory_space<vmem>>) attributes {dimension_semantics = [#tpu.dimension_semantics<parallel>], iteration_bounds = array<i64: 2>, scalar_prefetch = 0 : i64, scratch_operands = 4 : i64, tpu.core_type = #tpu.core_type<tc>, window_params = [{transform_indices = @transform_0, window_bounds = array<i64: 1, 16, 16, 4>}, {pipeline_mode = #tpu.pipeline_mode<synchronous>, transform_indices = @transform_1, window_bounds = array<i64: 4, 8>}, {pipeline_mode = #tpu.pipeline_mode<synchronous>, transform_indices = @transform_2, window_bounds = array<i64: 1, 8>}, {pipeline_mode = #tpu.pipeline_mode<synchronous>, transform_indices = @transform_3, window_bounds = array<i64: 36, 8>}, {pipeline_mode = #tpu.pipeline_mode<synchronous>, transform_indices = @transform_4, window_bounds = array<i64: 1, 8>}, {pipeline_mode = #tpu.pipeline_mode<synchronous>, transform_indices = @transform_5, window_bounds = array<i64: 72, 8>}, {pipeline_mode = #tpu.pipeline_mode<synchronous>, transform_indices = @transform_6, window_bounds = array<i64: 1, 8>}, {transform_indices = @transform_7, window_bounds = array<i64: 1, 16, 16, 8>}]} {
    %cst = arith.constant 0.000000e+00 : f32
    %0 = vector.broadcast %cst : f32 to vector<1x18x4xf32>
    %c0 = arith.constant 0 : index
    %c0_0 = arith.constant 0 : index
    %c0_1 = arith.constant 0 : index
    %1 = vector.load %arg9[%c0, %c0_0, %c0_1] : memref<18x18x4xf32, #tpu.memory_space<vmem>>, vector<1x18x4xf32>
    tpu.vector_store %arg9[%c0, %c0_0, %c0_1], %0 {strides = array<i32>} : memref<18x18x4xf32, #tpu.memory_space<vmem>>, vector<1x18x4xf32>,
    %c17 = arith.constant 17 : index
    %c0_2 = arith.constant 0 : index
    %c0_3 = arith.constant 0 : index
    %2 = vector.load %arg9[%c17, %c0_2, %c0_3] : memref<18x18x4xf32, #tpu.memory_space<vmem>>, vector<1x18x4xf32>
    tpu.vector_store %arg9[%c17, %c0_2, %c0_3], %0 {strides = array<i32>} : memref<18x18x4xf32, #tpu.memory_space<vmem>>, vector<1x18x4xf32>,
    %cst_4 = arith.constant 0.000000e+00 : f32
    %3 = vector.broadcast %cst_4 : f32 to vector<18x1x4xf32>
    %c0_5 = arith.constant 0 : index
    %c0_6 = arith.constant 0 : index
    %c0_7 = arith.constant 0 : index
    %4 = vector.load %arg9[%c0_5, %c0_6, %c0_7] : memref<18x18x4xf32, #tpu.memory_space<vmem>>, vector<18x1x4xf32>
    tpu.vector_store %arg9[%c0_5, %c0_6, %c0_7], %3 {strides = array<i32>} : memref<18x18x4xf32, #tpu.memory_space<vmem>>, vector<18x1x4xf32>,
    %c0_8 = arith.constant 0 : index
    %c17_9 = arith.constant 17 : index
    %c0_10 = arith.constant 0 : index
    %5 = vector.load %arg9[%c0_8, %c17_9, %c0_10] : memref<18x18x4xf32, #tpu.memory_space<vmem>>, vector<18x1x4xf32>
    tpu.vector_store %arg9[%c0_8, %c17_9, %c0_10], %3 {strides = array<i32>} : memref<18x18x4xf32, #tpu.memory_space<vmem>>, vector<18x1x4xf32>,
    %c0_11 = arith.constant 0 : index
    %c0_12 = arith.constant 0 : index
    %c0_13 = arith.constant 0 : index
    %c0_14 = arith.constant 0 : index
    %6 = vector.load %arg1[%c0_11, %c0_12, %c0_13, %c0_14] : memref<1x16x16x4xf32, #tpu.memory_space<vmem>>, vector<1x16x16x4xf32>
    %7 = vector.shape_cast %6 : vector<1x16x16x4xf32> to vector<16x16x4xf32>
    %c1 = arith.constant 1 : index
    %c1_15 = arith.constant 1 : index
    %c0_16 = arith.constant 0 : index
    %8 = vector.load %arg9[%c1, %c1_15, %c0_16] : memref<18x18x4xf32, #tpu.memory_space<vmem>>, vector<16x16x4xf32>
    tpu.vector_store %arg9[%c1, %c1_15, %c0_16], %7 {strides = array<i32>} : memref<18x18x4xf32, #tpu.memory_space<vmem>>, vector<16x16x4xf32>,
    %c0_17 = arith.constant 0 : index
    %c0_18 = arith.constant 0 : index
    %c0_19 = arith.constant 0 : index
    %9 = vector.load %arg9[%c0_17, %c0_18, %c0_19] : memref<18x18x4xf32, #tpu.memory_space<vmem>>, vector<16x16x4xf32>
    %c0_20 = arith.constant 0 : index
    %c0_21 = arith.constant 0 : index
    %c0_22 = arith.constant 0 : index
    %10 = vector.load %arg10[%c0_20, %c0_21, %c0_22] : memref<16x16x36xf32, #tpu.memory_space<vmem>>, vector<16x16x4xf32>
    tpu.vector_store %arg10[%c0_20, %c0_21, %c0_22], %9 {strides = array<i32>} : memref<16x16x36xf32, #tpu.memory_space<vmem>>, vector<16x16x4xf32>,
    %c0_23 = arith.constant 0 : index
    %c1_24 = arith.constant 1 : index
    %c0_25 = arith.constant 0 : index
    %11 = vector.load %arg9[%c0_23, %c1_24, %c0_25] : memref<18x18x4xf32, #tpu.memory_space<vmem>>, vector<16x16x4xf32>
    %c0_26 = arith.constant 0 : index
    %c0_27 = arith.constant 0 : index
    %c4 = arith.constant 4 : index
    %12 = vector.load %arg10[%c0_26, %c0_27, %c4] : memref<16x16x36xf32, #tpu.memory_space<vmem>>, vector<16x16x4xf32>
    tpu.vector_store %arg10[%c0_26, %c0_27, %c4], %11 {strides = array<i32>} : memref<16x16x36xf32, #tpu.memory_space<vmem>>, vector<16x16x4xf32>,
    %c0_28 = arith.constant 0 : index
    %c2 = arith.constant 2 : index
    %c0_29 = arith.constant 0 : index
    %13 = vector.load %arg9[%c0_28, %c2, %c0_29] : memref<18x18x4xf32, #tpu.memory_space<vmem>>, vector<16x16x4xf32>
    %c0_30 = arith.constant 0 : index
    %c0_31 = arith.constant 0 : index
    %c8 = arith.constant 8 : index
    %14 = vector.load %arg10[%c0_30, %c0_31, %c8] : memref<16x16x36xf32, #tpu.memory_space<vmem>>, vector<16x16x4xf32>
    tpu.vector_store %arg10[%c0_30, %c0_31, %c8], %13 {strides = array<i32>} : memref<16x16x36xf32, #tpu.memory_space<vmem>>, vector<16x16x4xf32>,
    %c1_32 = arith.constant 1 : index
    %c0_33 = arith.constant 0 : index
    %c0_34 = arith.constant 0 : index
    %15 = vector.load %arg9[%c1_32, %c0_33, %c0_34] : memref<18x18x4xf32, #tpu.memory_space<vmem>>, vector<16x16x4xf32>
    %c0_35 = arith.constant 0 : index
    %c0_36 = arith.constant 0 : index
    %c12 = arith.constant 12 : index
    %16 = vector.load %arg10[%c0_35, %c0_36, %c12] : memref<16x16x36xf32, #tpu.memory_space<vmem>>, vector<16x16x4xf32>
    tpu.vector_store %arg10[%c0_35, %c0_36, %c12], %15 {strides = array<i32>} : memref<16x16x36xf32, #tpu.memory_space<vmem>>, vector<16x16x4xf32>,
    %c1_37 = arith.constant 1 : index
    %c1_38 = arith.constant 1 : index
    %c0_39 = arith.constant 0 : index
    %17 = vector.load %arg9[%c1_37, %c1_38, %c0_39] : memref<18x18x4xf32, #tpu.memory_space<vmem>>, vector<16x16x4xf32>
    %c0_40 = arith.constant 0 : index
    %c0_41 = arith.constant 0 : index
    %c16 = arith.constant 16 : index
    %18 = vector.load %arg10[%c0_40, %c0_41, %c16] : memref<16x16x36xf32, #tpu.memory_space<vmem>>, vector<16x16x4xf32>
    tpu.vector_store %arg10[%c0_40, %c0_41, %c16], %17 {strides = array<i32>} : memref<16x16x36xf32, #tpu.memory_space<vmem>>, vector<16x16x4xf32>,
    %c1_42 = arith.constant 1 : index
    %c2_43 = arith.constant 2 : index
    %c0_44 = arith.constant 0 : index
    %19 = vector.load %arg9[%c1_42, %c2_43, %c0_44] : memref<18x18x4xf32, #tpu.memory_space<vmem>>, vector<16x16x4xf32>
    %c0_45 = arith.constant 0 : index
    %c0_46 = arith.constant 0 : index
    %c20 = arith.constant 20 : index
    %20 = vector.load %arg10[%c0_45, %c0_46, %c20] : memref<16x16x36xf32, #tpu.memory_space<vmem>>, vector<16x16x4xf32>
    tpu.vector_store %arg10[%c0_45, %c0_46, %c20], %19 {strides = array<i32>} : memref<16x16x36xf32, #tpu.memory_space<vmem>>, vector<16x16x4xf32>,
    %c2_47 = arith.constant 2 : index
    %c0_48 = arith.constant 0 : index
    %c0_49 = arith.constant 0 : index
    %21 = vector.load %arg9[%c2_47, %c0_48, %c0_49] : memref<18x18x4xf32, #tpu.memory_space<vmem>>, vector<16x16x4xf32>
    %c0_50 = arith.constant 0 : index
    %c0_51 = arith.constant 0 : index
    %c24 = arith.constant 24 : index
    %22 = vector.load %arg10[%c0_50, %c0_51, %c24] : memref<16x16x36xf32, #tpu.memory_space<vmem>>, vector<16x16x4xf32>
    tpu.vector_store %arg10[%c0_50, %c0_51, %c24], %21 {strides = array<i32>} : memref<16x16x36xf32, #tpu.memory_space<vmem>>, vector<16x16x4xf32>,
    %c2_52 = arith.constant 2 : index
    %c1_53 = arith.constant 1 : index
    %c0_54 = arith.constant 0 : index
    %23 = vector.load %arg9[%c2_52, %c1_53, %c0_54] : memref<18x18x4xf32, #tpu.memory_space<vmem>>, vector<16x16x4xf32>
    %c0_55 = arith.constant 0 : index
    %c0_56 = arith.constant 0 : index
    %c28 = arith.constant 28 : index
    %24 = vector.load %arg10[%c0_55, %c0_56, %c28] : memref<16x16x36xf32, #tpu.memory_space<vmem>>, vector<16x16x4xf32>
    tpu.vector_store %arg10[%c0_55, %c0_56, %c28], %23 {strides = array<i32>} : memref<16x16x36xf32, #tpu.memory_space<vmem>>, vector<16x16x4xf32>,
    %c2_57 = arith.constant 2 : index
    %c2_58 = arith.constant 2 : index
    %c0_59 = arith.constant 0 : index
    %25 = vector.load %arg9[%c2_57, %c2_58, %c0_59] : memref<18x18x4xf32, #tpu.memory_space<vmem>>, vector<16x16x4xf32>
    %c0_60 = arith.constant 0 : index
    %c0_61 = arith.constant 0 : index
    %c32 = arith.constant 32 : index
    %26 = vector.load %arg10[%c0_60, %c0_61, %c32] : memref<16x16x36xf32, #tpu.memory_space<vmem>>, vector<16x16x4xf32>
    tpu.vector_store %arg10[%c0_60, %c0_61, %c32], %25 {strides = array<i32>} : memref<16x16x36xf32, #tpu.memory_space<vmem>>, vector<16x16x4xf32>,
    %c0_62 = arith.constant 0 : index
    %c0_63 = arith.constant 0 : index
    %c0_64 = arith.constant 0 : index
    %27 = vector.load %arg10[%c0_62, %c0_63, %c0_64] : memref<16x16x36xf32, #tpu.memory_space<vmem>>, vector<16x16x36xf32>
    %28 = vector.shape_cast %27 : vector<16x16x36xf32> to vector<256x36xf32>
    %c0_65 = arith.constant 0 : index
    %c0_66 = arith.constant 0 : index
    %29 = vector.load %arg4[%c0_65, %c0_66] : memref<36x8xf32, #tpu.memory_space<vmem>>, vector<36x8xf32>
    %cst_67 = arith.constant dense<0.000000e+00> : vector<256x8xf32>
    %30 = tpu.matmul %28, %29, %cst_67 {dimension_numbers = #tpu.dot_dimension_numbers<[1], [0], [0], [1], [0, 0, 1, 1], [], []>, precision = #tpu.contract_precision<fp32>} : vector<256x36xf32>, vector<36x8xf32>, vector<256x8xf32> -> vector<256x8xf32>
    %c0_68 = arith.constant 0 : index
    %c0_69 = arith.constant 0 : index
    %31 = vector.load %arg5[%c0_68, %c0_69] : memref<1x8xf32, #tpu.memory_space<vmem>>, vector<1x8xf32>
    %32 = vector.broadcast %31 : vector<1x8xf32> to vector<256x8xf32>
    %33 = arith.addf %30, %32 : vector<256x8xf32>
    %cst_70 = arith.constant 0.000000e+00 : f32
    %34 = vector.broadcast %cst_70 : f32 to vector<256x8xf32>
    %35 = arith.maximumf %33, %34 : vector<256x8xf32>
    %36 = vector.extract_strided_slice %28 {offsets = [0, 16], sizes = [256, 4], strides = [1, 1]} : vector<256x36xf32> to vector<256x4xf32>
    %c0_71 = arith.constant 0 : index
    %c0_72 = arith.constant 0 : index
    %37 = vector.load %arg2[%c0_71, %c0_72] : memref<4x8xf32, #tpu.memory_space<vmem>>, vector<4x8xf32>
    %cst_73 = arith.constant dense<0.000000e+00> : vector<256x8xf32>
    %38 = tpu.matmul %36, %37, %cst_73 {dimension_numbers = #tpu.dot_dimension_numbers<[1], [0], [0], [1], [0, 0, 1, 1], [], []>, precision = #tpu.contract_precision<fp32>} : vector<256x4xf32>, vector<4x8xf32>, vector<256x8xf32> -> vector<256x8xf32>
    %c0_74 = arith.constant 0 : index
    %c0_75 = arith.constant 0 : index
    %39 = vector.load %arg3[%c0_74, %c0_75] : memref<1x8xf32, #tpu.memory_space<vmem>>, vector<1x8xf32>
    %40 = vector.broadcast %39 : vector<1x8xf32> to vector<256x8xf32>
    %41 = arith.addf %38, %40 : vector<256x8xf32>
    %cst_76 = arith.constant 0.000000e+00 : f32
    %42 = vector.broadcast %cst_76 : f32 to vector<1x18x8xf32>
    %c0_77 = arith.constant 0 : index
    %c0_78 = arith.constant 0 : index
    %c0_79 = arith.constant 0 : index
    %43 = vector.load %arg11[%c0_77, %c0_78, %c0_79] : memref<18x18x8xf32, #tpu.memory_space<vmem>>, vector<1x18x8xf32>
    tpu.vector_store %arg11[%c0_77, %c0_78, %c0_79], %42 {strides = array<i32>} : memref<18x18x8xf32, #tpu.memory_space<vmem>>, vector<1x18x8xf32>,
    %c17_80 = arith.constant 17 : index
    %c0_81 = arith.constant 0 : index
    %c0_82 = arith.constant 0 : index
    %44 = vector.load %arg11[%c17_80, %c0_81, %c0_82] : memref<18x18x8xf32, #tpu.memory_space<vmem>>, vector<1x18x8xf32>
    tpu.vector_store %arg11[%c17_80, %c0_81, %c0_82], %42 {strides = array<i32>} : memref<18x18x8xf32, #tpu.memory_space<vmem>>, vector<1x18x8xf32>,
    %cst_83 = arith.constant 0.000000e+00 : f32
    %45 = vector.broadcast %cst_83 : f32 to vector<18x1x8xf32>
    %c0_84 = arith.constant 0 : index
    %c0_85 = arith.constant 0 : index
    %c0_86 = arith.constant 0 : index
    %46 = vector.load %arg11[%c0_84, %c0_85, %c0_86] : memref<18x18x8xf32, #tpu.memory_space<vmem>>, vector<18x1x8xf32>
    tpu.vector_store %arg11[%c0_84, %c0_85, %c0_86], %45 {strides = array<i32>} : memref<18x18x8xf32, #tpu.memory_space<vmem>>, vector<18x1x8xf32>,
    %c0_87 = arith.constant 0 : index
    %c17_88 = arith.constant 17 : index
    %c0_89 = arith.constant 0 : index
    %47 = vector.load %arg11[%c0_87, %c17_88, %c0_89] : memref<18x18x8xf32, #tpu.memory_space<vmem>>, vector<18x1x8xf32>
    tpu.vector_store %arg11[%c0_87, %c17_88, %c0_89], %45 {strides = array<i32>} : memref<18x18x8xf32, #tpu.memory_space<vmem>>, vector<18x1x8xf32>,
    %48 = vector.shape_cast %35 : vector<256x8xf32> to vector<16x16x8xf32>
    %c1_90 = arith.constant 1 : index
    %c1_91 = arith.constant 1 : index
    %c0_92 = arith.constant 0 : index
    %49 = vector.load %arg11[%c1_90, %c1_91, %c0_92] : memref<18x18x8xf32, #tpu.memory_space<vmem>>, vector<16x16x8xf32>
    tpu.vector_store %arg11[%c1_90, %c1_91, %c0_92], %48 {strides = array<i32>} : memref<18x18x8xf32, #tpu.memory_space<vmem>>, vector<16x16x8xf32>,
    %c0_93 = arith.constant 0 : index
    %c0_94 = arith.constant 0 : index
    %c0_95 = arith.constant 0 : index
    %50 = vector.load %arg11[%c0_93, %c0_94, %c0_95] : memref<18x18x8xf32, #tpu.memory_space<vmem>>, vector<16x16x8xf32>
    %c0_96 = arith.constant 0 : index
    %c0_97 = arith.constant 0 : index
    %c0_98 = arith.constant 0 : index
    %51 = vector.load %arg12[%c0_96, %c0_97, %c0_98] : memref<16x16x72xf32, #tpu.memory_space<vmem>>, vector<16x16x8xf32>
    tpu.vector_store %arg12[%c0_96, %c0_97, %c0_98], %50 {strides = array<i32>} : memref<16x16x72xf32, #tpu.memory_space<vmem>>, vector<16x16x8xf32>,
    %c0_99 = arith.constant 0 : index
    %c1_100 = arith.constant 1 : index
    %c0_101 = arith.constant 0 : index
    %52 = vector.load %arg11[%c0_99, %c1_100, %c0_101] : memref<18x18x8xf32, #tpu.memory_space<vmem>>, vector<16x16x8xf32>
    %c0_102 = arith.constant 0 : index
    %c0_103 = arith.constant 0 : index
    %c8_104 = arith.constant 8 : index
    %53 = vector.load %arg12[%c0_102, %c0_103, %c8_104] : memref<16x16x72xf32, #tpu.memory_space<vmem>>, vector<16x16x8xf32>
    tpu.vector_store %arg12[%c0_102, %c0_103, %c8_104], %52 {strides = array<i32>} : memref<16x16x72xf32, #tpu.memory_space<vmem>>, vector<16x16x8xf32>,
    %c0_105 = arith.constant 0 : index
    %c2_106 = arith.constant 2 : index
    %c0_107 = arith.constant 0 : index
    %54 = vector.load %arg11[%c0_105, %c2_106, %c0_107] : memref<18x18x8xf32, #tpu.memory_space<vmem>>, vector<16x16x8xf32>
    %c0_108 = arith.constant 0 : index
    %c0_109 = arith.constant 0 : index
    %c16_110 = arith.constant 16 : index
    %55 = vector.load %arg12[%c0_108, %c0_109, %c16_110] : memref<16x16x72xf32, #tpu.memory_space<vmem>>, vector<16x16x8xf32>
    tpu.vector_store %arg12[%c0_108, %c0_109, %c16_110], %54 {strides = array<i32>} : memref<16x16x72xf32, #tpu.memory_space<vmem>>, vector<16x16x8xf32>,
    %c1_111 = arith.constant 1 : index
    %c0_112 = arith.constant 0 : index
    %c0_113 = arith.constant 0 : index
    %56 = vector.load %arg11[%c1_111, %c0_112, %c0_113] : memref<18x18x8xf32, #tpu.memory_space<vmem>>, vector<16x16x8xf32>
    %c0_114 = arith.constant 0 : index
    %c0_115 = arith.constant 0 : index
    %c24_116 = arith.constant 24 : index
    %57 = vector.load %arg12[%c0_114, %c0_115, %c24_116] : memref<16x16x72xf32, #tpu.memory_space<vmem>>, vector<16x16x8xf32>
    tpu.vector_store %arg12[%c0_114, %c0_115, %c24_116], %56 {strides = array<i32>} : memref<16x16x72xf32, #tpu.memory_space<vmem>>, vector<16x16x8xf32>,
    %c1_117 = arith.constant 1 : index
    %c1_118 = arith.constant 1 : index
    %c0_119 = arith.constant 0 : index
    %58 = vector.load %arg11[%c1_117, %c1_118, %c0_119] : memref<18x18x8xf32, #tpu.memory_space<vmem>>, vector<16x16x8xf32>
    %c0_120 = arith.constant 0 : index
    %c0_121 = arith.constant 0 : index
    %c32_122 = arith.constant 32 : index
    %59 = vector.load %arg12[%c0_120, %c0_121, %c32_122] : memref<16x16x72xf32, #tpu.memory_space<vmem>>, vector<16x16x8xf32>
    tpu.vector_store %arg12[%c0_120, %c0_121, %c32_122], %58 {strides = array<i32>} : memref<16x16x72xf32, #tpu.memory_space<vmem>>, vector<16x16x8xf32>,
    %c1_123 = arith.constant 1 : index
    %c2_124 = arith.constant 2 : index
    %c0_125 = arith.constant 0 : index
    %60 = vector.load %arg11[%c1_123, %c2_124, %c0_125] : memref<18x18x8xf32, #tpu.memory_space<vmem>>, vector<16x16x8xf32>
    %c0_126 = arith.constant 0 : index
    %c0_127 = arith.constant 0 : index
    %c40 = arith.constant 40 : index
    %61 = vector.load %arg12[%c0_126, %c0_127, %c40] : memref<16x16x72xf32, #tpu.memory_space<vmem>>, vector<16x16x8xf32>
    tpu.vector_store %arg12[%c0_126, %c0_127, %c40], %60 {strides = array<i32>} : memref<16x16x72xf32, #tpu.memory_space<vmem>>, vector<16x16x8xf32>,
    %c2_128 = arith.constant 2 : index
    %c0_129 = arith.constant 0 : index
    %c0_130 = arith.constant 0 : index
    %62 = vector.load %arg11[%c2_128, %c0_129, %c0_130] : memref<18x18x8xf32, #tpu.memory_space<vmem>>, vector<16x16x8xf32>
    %c0_131 = arith.constant 0 : index
    %c0_132 = arith.constant 0 : index
    %c48 = arith.constant 48 : index
    %63 = vector.load %arg12[%c0_131, %c0_132, %c48] : memref<16x16x72xf32, #tpu.memory_space<vmem>>, vector<16x16x8xf32>
    tpu.vector_store %arg12[%c0_131, %c0_132, %c48], %62 {strides = array<i32>} : memref<16x16x72xf32, #tpu.memory_space<vmem>>, vector<16x16x8xf32>,
    %c2_133 = arith.constant 2 : index
    %c1_134 = arith.constant 1 : index
    %c0_135 = arith.constant 0 : index
    %64 = vector.load %arg11[%c2_133, %c1_134, %c0_135] : memref<18x18x8xf32, #tpu.memory_space<vmem>>, vector<16x16x8xf32>
    %c0_136 = arith.constant 0 : index
    %c0_137 = arith.constant 0 : index
    %c56 = arith.constant 56 : index
    %65 = vector.load %arg12[%c0_136, %c0_137, %c56] : memref<16x16x72xf32, #tpu.memory_space<vmem>>, vector<16x16x8xf32>
    tpu.vector_store %arg12[%c0_136, %c0_137, %c56], %64 {strides = array<i32>} : memref<16x16x72xf32, #tpu.memory_space<vmem>>, vector<16x16x8xf32>,
    %c2_138 = arith.constant 2 : index
    %c2_139 = arith.constant 2 : index
    %c0_140 = arith.constant 0 : index
    %66 = vector.load %arg11[%c2_138, %c2_139, %c0_140] : memref<18x18x8xf32, #tpu.memory_space<vmem>>, vector<16x16x8xf32>
    %c0_141 = arith.constant 0 : index
    %c0_142 = arith.constant 0 : index
    %c64 = arith.constant 64 : index
    %67 = vector.load %arg12[%c0_141, %c0_142, %c64] : memref<16x16x72xf32, #tpu.memory_space<vmem>>, vector<16x16x8xf32>
    tpu.vector_store %arg12[%c0_141, %c0_142, %c64], %66 {strides = array<i32>} : memref<16x16x72xf32, #tpu.memory_space<vmem>>, vector<16x16x8xf32>,
    %c0_143 = arith.constant 0 : index
    %c0_144 = arith.constant 0 : index
    %c0_145 = arith.constant 0 : index
    %68 = vector.load %arg12[%c0_143, %c0_144, %c0_145] : memref<16x16x72xf32, #tpu.memory_space<vmem>>, vector<16x16x72xf32>
    %69 = vector.shape_cast %68 : vector<16x16x72xf32> to vector<256x72xf32>
    %c0_146 = arith.constant 0 : index
    %c0_147 = arith.constant 0 : index
    %70 = vector.load %arg6[%c0_146, %c0_147] : memref<72x8xf32, #tpu.memory_space<vmem>>, vector<72x8xf32>
    %cst_148 = arith.constant dense<0.000000e+00> : vector<256x8xf32>
    %71 = tpu.matmul %69, %70, %cst_148 {dimension_numbers = #tpu.dot_dimension_numbers<[1], [0], [0], [1], [0, 0, 1, 1], [], []>, precision = #tpu.contract_precision<fp32>} : vector<256x72xf32>, vector<72x8xf32>, vector<256x8xf32> -> vector<256x8xf32>
    %c0_149 = arith.constant 0 : index
    %c0_150 = arith.constant 0 : index
    %72 = vector.load %arg7[%c0_149, %c0_150] : memref<1x8xf32, #tpu.memory_space<vmem>>, vector<1x8xf32>
    %73 = vector.broadcast %72 : vector<1x8xf32> to vector<256x8xf32>
    %74 = arith.addf %71, %73 : vector<256x8xf32>
    %cst_151 = arith.constant 0.000000e+00 : f32
    %75 = vector.broadcast %cst_151 : f32 to vector<256x8xf32>
    %76 = arith.maximumf %74, %75 : vector<256x8xf32>
    %77 = arith.addf %76, %41 : vector<256x8xf32>
    %cst_152 = arith.constant 0.000000e+00 : f32
    %78 = vector.broadcast %cst_152 : f32 to vector<256x8xf32>
    %79 = arith.maximumf %77, %78 : vector<256x8xf32>
    %80 = vector.shape_cast %79 : vector<256x8xf32> to vector<16x16x8xf32>
    %c0_153 = arith.constant 0 : index
    %c0_154 = arith.constant 0 : index
    %c0_155 = arith.constant 0 : index
    %c0_156 = arith.constant 0 : index
    %81 = vector.load %arg8[%c0_153, %c0_154, %c0_155, %c0_156] : memref<1x16x16x8xf32, #tpu.memory_space<vmem>>, vector<1x16x16x8xf32>
    %82 = vector.shape_cast %81 : vector<1x16x16x8xf32> to vector<16x16x8xf32>
    %83 = vector.shape_cast %80 : vector<16x16x8xf32> to vector<1x16x16x8xf32>
    tpu.vector_store %arg8[%c0_153, %c0_154, %c0_155, %c0_156], %83 {strides = array<i32>} : memref<1x16x16x8xf32, #tpu.memory_space<vmem>>, vector<1x16x16x8xf32>,
    return
  }
  func.func @transform_0(%arg0: i32) -> (i32, i32, i32, i32) {
    %c0_i32 = arith.constant 0 : i32
    %c0_i32_0 = arith.constant 0 : i32
    %c0_i32_1 = arith.constant 0 : i32
    %c0_i32_2 = arith.constant 0 : i32
    return %arg0, %c0_i32, %c0_i32_0, %c0_i32_1 : i32, i32, i32, i32
  }
  func.func @transform_1(%arg0: i32) -> (i32, i32) {
    %c0_i32 = arith.constant 0 : i32
    %c0_i32_0 = arith.constant 0 : i32
    %c0_i32_1 = arith.constant 0 : i32
    return %c0_i32, %c0_i32_0 : i32, i32
  }
  func.func @transform_2(%arg0: i32) -> (i32, i32) {
    %c0_i32 = arith.constant 0 : i32
    %c0_i32_0 = arith.constant 0 : i32
    %c0_i32_1 = arith.constant 0 : i32
    return %c0_i32, %c0_i32_0 : i32, i32
  }
  func.func @transform_3(%arg0: i32) -> (i32, i32) {
    %c0_i32 = arith.constant 0 : i32
    %c0_i32_0 = arith.constant 0 : i32
    %c0_i32_1 = arith.constant 0 : i32
    return %c0_i32, %c0_i32_0 : i32, i32
  }
  func.func @transform_4(%arg0: i32) -> (i32, i32) {
    %c0_i32 = arith.constant 0 : i32
    %c0_i32_0 = arith.constant 0 : i32
    %c0_i32_1 = arith.constant 0 : i32
    return %c0_i32, %c0_i32_0 : i32, i32
  }
  func.func @transform_5(%arg0: i32) -> (i32, i32) {
    %c0_i32 = arith.constant 0 : i32
    %c0_i32_0 = arith.constant 0 : i32
    %c0_i32_1 = arith.constant 0 : i32
    return %c0_i32, %c0_i32_0 : i32, i32
  }
  func.func @transform_6(%arg0: i32) -> (i32, i32) {
    %c0_i32 = arith.constant 0 : i32
    %c0_i32_0 = arith.constant 0 : i32
    %c0_i32_1 = arith.constant 0 : i32
    return %c0_i32, %c0_i32_0 : i32, i32
  }
  func.func @transform_7(%arg0: i32) -> (i32, i32, i32, i32) {
    %c0_i32 = arith.constant 0 : i32
    %c0_i32_0 = arith.constant 0 : i32
    %c0_i32_1 = arith.constant 0 : i32
    %c0_i32_2 = arith.constant 0 : i32
    return %arg0, %c0_i32, %c0_i32_0, %c0_i32_1 : i32, i32, i32, i32
  }
}

</mosaic_0001>

<bundles_post_ra>
// kernel: tpu_custom_call.1
= control target key start
LH: loop header
LB: loop body
LE: loop exit
PB: predicated region body
PF: predicated region fallthrough
CT: control target
= control target key end

     0   :  { %s12385_s24 = smov 0   ;;  %s16485_s0 = inlined_call_operand.vmem [shape: f32[2,16,16,4], index: 0, kind: input, shape index: {}]   ;;  %s16486_s1 = inlined_call_operand.vmem [shape: f32[4,8], index: 1, kind: input, shape index: {}]   ;;  %s16487_s2 = inlined_call_operand.vmem [shape: f32[1,8], index: 2, kind: input, shape index: {}]   ;;  %s16488_s3 = inlined_call_operand.vmem [shape: f32[36,8], index: 3, kind: input, shape index: {}]   ;;  %s16489_s4 = inlined_call_operand.vmem [shape: f32[1,8], index: 4, kind: input, shape index: {}]   ;;  %s16490_s5 = inlined_call_operand.vmem [shape: f32[72,8], index: 5, kind: input, shape index: {}]   ;;  %s16491_s6 = inlined_call_operand.vmem [shape: f32[1,8], index: 6, kind: input, shape index: {}]   ;;  %s16492_s7 = inlined_call_operand.vmem [shape: f32[2,16,16,8], index: 7, kind: output, shape index: {}]  }
   0x1 LB: > { %s9824_s25 = sadd.s32 4294967295, %s12329_s24   ;;  %p9828_p0 = scmp.ge.s32.totalorder %s12329_s24, 1  ;;  %s12329_s24 = sphi %s12385_s24, %s17_s24  }
   0x2   : > { %p237_p1 = scmp.lt.s32.totalorder %s12329_s24, 3 }
   0x4   : > { %p238_p2 = pnand %p9828_p0, %p237_p1 }
   0x6   : > { %241 = sbr.rel (%p238_p2) target bundleno = 2343 (0x927), region = 48 }
   0xd   : > { %vm279_vm0 = vcmask 31744   ;;  %vm288_vm1 = vcmask 24576   ;;  %vm282_vm2 = vcmask 25600   ;;  %v16493_v0 = vmov 0.0   ;;  %p269_p3 = scmp.lt.s32.totalorder %s9824_s25, 1  ;;  %s12332_s30 = smov 8  }
   0xe   : > { %280 = vst.msk [vmem:[#allocation2] sm:$0xff] %vm279_vm0, %v16493_v0  ;;  %281 = vst.msk [vmem:[#allocation2 + $0x8] sm:$0xff] %vm279_vm0, %v16493_v0  ;;  %s12333_s8 = smov 4   ;;  %s12334_s9 = smov 12   ;;  %v12576_v38 = vld [vmem:[%s16488_s3] sm:$0xff]  ;;  %v12583_v39 = vld [vmem:[%s16488_s3 + $0x8] sm:$0xff] }
   0xf   : > { %285 = vst.msk [vmem:[#allocation2 + $0x198] sm:$0xff] %vm279_vm0, %v16493_v0  ;;  %286 = vst.msk [vmem:[#allocation2 + $0x1a0] sm:$0xff] %vm279_vm0, %v16493_v0  ;;  %s17470_s25 = smov (!%p269_p3, %s9824_s25), 1  ;;  %s12335_s10 = smov 16   ;;  %v2145_v40 = vand.u32 4294901760, %v12576_v38  ;;  %v2148_v41 = vand.u32 4294901760, %v12583_v39 }
  0x10   : > { %290 = vst.msk [vmem:[#allocation2 + $0x18] sm:$0x1] %vm288_vm1, %v16493_v0  ;;  %291 = vst.msk [vmem:[#allocation2 + $0x30] sm:$0x1] %vm288_vm1, %v16493_v0  ;;  %s9838_s26 = sshll.u32 %s17470_s25, 8  ;;  %s12336_s11 = smov 20  }
  0x11   : > { %292 = vst.msk [vmem:[#allocation2 + $0x48] sm:$0x1] %vm288_vm1, %v16493_v0  ;;  %293 = vst.msk [vmem:[#allocation2 + $0x60] sm:$0x1] %vm288_vm1, %v16493_v0  ;;  %s12489_s29 = scalar_lea.vmem %s16485_s0, %s9838_s26  ;;  %s12337_s12 = smov 24   ;;  %v12591_v42 = vpack.c.bf16 %v2148_v41, %v2145_v40  ;;  %v12596_v43 = vld [vmem:[%s16488_s3 + $0x10] sm:$0xff] }
  0x12   : > { %294 = vst.msk [vmem:[#allocation2 + $0x78] sm:$0x1] %vm288_vm1, %v16493_v0  ;;  %295 = vst.msk [vmem:[#allocation2 + $0x90] sm:$0x1] %vm288_vm1, %v16493_v0  ;;  %v325_v1 = vld [vmem:[%s12489_s29] sm:$0xff]  ;;  %v326_v2 = vld [vmem:[%s12489_s29 + $0x8] sm:$0xff]  ;;  %s16356_s20 = scalar_lea.vmem %s16492_s7, %s9838_s26 }
  0x13   : > { %296 = vst.msk [vmem:[#allocation2 + $0xa8] sm:$0x1] %vm288_vm1, %v16493_v0  ;;  %297 = vst.msk [vmem:[#allocation2 + $0xc0] sm:$0x1] %vm288_vm1, %v16493_v0  ;;  %v327_v3 = vld [vmem:[%s12489_s29 + $0x10] sm:$0xff]  ;;  %v328_v8 = vld [vmem:[%s12489_s29 + $0x18] sm:$0xff]  ;;  %11551 = vmatprep.subr.bf16.mxu0 %v12591_v42 }
  0x14   : > { %298 = vst.msk [vmem:[#allocation2 + $0xd8] sm:$0x1] %vm288_vm1, %v16493_v0  ;;  %299 = vst.msk [vmem:[#allocation2 + $0xf0] sm:$0x1] %vm288_vm1, %v16493_v0  ;;  %v329_v9 = vld [vmem:[%s12489_s29 + $0x20] sm:$0xff]  ;;  %v330_v10 = vld [vmem:[%s12489_s29 + $0x28] sm:$0xff]  ;;  %11553 = vmatpush3.bf16.msra.mxu0 %v12591_v42 }
  0x15   : > { %300 = vst.msk [vmem:[#allocation2 + $0x108] sm:$0x1] %vm288_vm1, %v16493_v0  ;;  %301 = vst.msk [vmem:[#allocation2 + $0x120] sm:$0x1] %vm288_vm1, %v16493_v0  ;;  %v647_v4 = vld [vmem:[#allocation2 + $0x2] sm:$0xff]  ;;  %v331_v11 = vld [vmem:[%s12489_s29 + $0x30] sm:$0xff] }
  0x16   : > { %302 = vst.msk [vmem:[#allocation2 + $0x138] sm:$0x1] %vm288_vm1, %v16493_v0  ;;  %303 = vst.msk [vmem:[#allocation2 + $0x150] sm:$0x1] %vm288_vm1, %v16493_v0  ;;  %v454_v5 = vld [vmem:[#allocation2 + $0x1] sm:$0xff]  ;;  %711 = vrot.lane.b32.xlu1 %v647_v4, %s12332_s30  ;;  %v332_v12 = vld [vmem:[%s12489_s29 + $0x38] sm:$0xff] }
  0x17   : > { %304 = vst.msk [vmem:[#allocation2 + $0x168] sm:$0x1] %vm288_vm1, %v16493_v0  ;;  %305 = vst.msk [vmem:[#allocation2 + $0x180] sm:$0x1] %vm288_vm1, %v16493_v0  ;;  %518 = vrot.lane.b32.xlu0 %v454_v5, %s12333_s8  ;;  %v391_v14 = vld [vmem:[#allocation2 + $0x8] sm:$0xff]  ;;  %v333_v15 = vld [vmem:[%s12489_s29 + $0x40] sm:$0xff] }
  0x18   : > { %308 = vst.msk [vmem:[#allocation2 + $0x29] sm:$0x1] %vm288_vm1, %v16493_v0  ;;  %309 = vst.msk [vmem:[#allocation2 + $0x41] sm:$0x1] %vm288_vm1, %v16493_v0  ;;  %v334_v16 = vld [vmem:[%s12489_s29 + $0x48] sm:$0xff]  ;;  %v335_v30 = vld [vmem:[%s12489_s29 + $0x50] sm:$0xff] }
  0x19   : > { %310 = vst.msk [vmem:[#allocation2 + $0x59] sm:$0x1] %vm288_vm1, %v16493_v0  ;;  %311 = vst.msk [vmem:[#allocation2 + $0x71] sm:$0x1] %vm288_vm1, %v16493_v0  ;;  %v336_v32 = vld [vmem:[%s12489_s29 + $0x58] sm:$0xff]  ;;  %s12338_s13 = smov 28  }
  0x1a   : > { %312 = vst.msk [vmem:[#allocation2 + $0x89] sm:$0x1] %vm288_vm1, %v16493_v0  ;;  %313 = vst.msk [vmem:[#allocation2 + $0xa1] sm:$0x1] %vm288_vm1, %v16493_v0  ;;  %s12339_s16 = smov 32   ;;  %v12601_v44 = vld [vmem:[%s16488_s3 + $0x18] sm:$0xff] }
  0x1b   : > { %314 = vst.msk [vmem:[#allocation2 + $0xb9] sm:$0x1] %vm288_vm1, %v16493_v0  ;;  %315 = vst.msk [vmem:[#allocation2 + $0xd1] sm:$0x1] %vm288_vm1, %v16493_v0  ;;  %v16516_v45 = vand.u32 4294901760, %v12596_v43  ;;  %v16513_v46 = vand.u32 4294901760, %v12601_v44 }
  0x1c   : > { %316 = vst.msk [vmem:[#allocation2 + $0xe9] sm:$0x1] %vm288_vm1, %v16493_v0  ;;  %317 = vst.msk [vmem:[#allocation2 + $0x101] sm:$0x1] %vm288_vm1, %v16493_v0  ;;  %v337_v49 = vld [vmem:[%s12489_s29 + $0x60] sm:$0xff]  ;;  %vm2140_vm3 = vcmask 1043456  }
  0x1d   : > { %318 = vst.msk [vmem:[#allocation2 + $0x119] sm:$0x1] %vm288_vm1, %v16493_v0  ;;  %319 = vst.msk [vmem:[#allocation2 + $0x131] sm:$0x1] %vm288_vm1, %v16493_v0  ;;  %v12613_v48 = vpack.c.bf16 %v16513_v46, %v16516_v45  ;;  %v2035_v50 = vld [vmem:[%s16488_s3 + $0x20] sm:$0xf] }
  0x1e   : > { %320 = vst.msk [vmem:[#allocation2 + $0x149] sm:$0x1] %vm288_vm1, %v16493_v0  ;;  %321 = vst.msk [vmem:[#allocation2 + $0x161] sm:$0x1] %vm288_vm1, %v16493_v0  ;;  %v12624_v51 = vsel %vm2140_vm3, %v2035_v50, 0  ;;  %v338_v54 = vld [vmem:[%s12489_s29 + $0x68] sm:$0xff] }
  0x1f   : > { %322 = vst.msk [vmem:[#allocation2 + $0x179] sm:$0x1] %vm288_vm1, %v16493_v0  ;;  %323 = vst.msk [vmem:[#allocation2 + $0x191] sm:$0x1] %vm288_vm1, %v16493_v0  ;;  %11555 = vmatprep.subr.bf16.mxu0 %v12613_v48  ;;  %v12628_v52 = vand.u32 4294901760, %v12624_v51  ;;  %v339_v60 = vld [vmem:[%s12489_s29 + $0x70] sm:$0xff] }
  0x20   : > { %283 = vst.msk [vmem:[#allocation2 + $0x10] sm:$0x3] %vm282_vm2, %v16493_v0  ;;  %287 = vst.msk [vmem:[#allocation2 + $0x1a8] sm:$0x3] %vm282_vm2, %v16493_v0  ;;  %11557 = vmatpush3.bf16.msra.mxu0 %v12613_v48  ;;  %v340_v62 = vld [vmem:[%s12489_s29 + $0x78] sm:$0xff]  ;;  %v341_v5 = vld [vmem:[%s12489_s29 + $0x80] sm:$0xff] }
  0x21   : > { %289 = vst.msk [vmem:[#allocation2] sm:$0x1] %vm288_vm1, %v16493_v0  ;;  %306 = vst.msk [vmem:[#allocation2 + $0x198] sm:$0x1] %vm288_vm1, %v16493_v0  ;;  %10514 = vmatprep.subr.mxu0 %v12628_v52  ;;  %vm614_vm4 = vcmask 64544   ;;  %vm807_vm5 = vcmask 97344  }
  0x22   : > { %307 = vst.msk [vmem:[#allocation2 + $0x11] sm:$0x1] %vm288_vm1, %v16493_v0  ;;  %324 = vst.msk [vmem:[#allocation2 + $0x1a9] sm:$0x1] %vm288_vm1, %v16493_v0  ;;  %vm1000_vm6 = vcmask 130144   ;;  %vm1193_vm7 = vcmask 162944  }
  0x23   : > { %358 = vst.msk [vmem:[#allocation2 + $0x19] sm:$0xff] %vm279_vm0, %v325_v1  ;;  %359 = vst.msk [vmem:[#allocation2 + $0x21] sm:$0xff] %vm279_vm0, %v326_v2  ;;  %vm1386_vm8 = vcmask 195744   ;;  %vm1580_vm9 = vcmask 228544   ;;  %vm1773_vm10 = vcmask 261344   ;;  %vm1966_vm11 = vcmask 294144  }
  0x24   : > { %360 = vst.msk [vmem:[#allocation2 + $0x31] sm:$0xff] %vm279_vm0, %v327_v3  ;;  %361 = vst.msk [vmem:[#allocation2 + $0x39] sm:$0xff] %vm279_vm0, %v328_v8  ;;  %10515 = vmatpush3.msra.mxu0 %v12628_v52  ;;  %vm2043_vm12 = vcmask 293888   ;;  %vm5925_vm13 = vcmask 64512   ;;  %vm5928_vm14 = vcmask 58368   ;;  %vm5934_vm15 = vcmask 57344  }
  0x25   : > { %362 = vst.msk [vmem:[#allocation2 + $0x49] sm:$0xff] %vm279_vm0, %v329_v9  ;;  %363 = vst.msk [vmem:[#allocation2 + $0x51] sm:$0xff] %vm279_vm0, %v330_v10  ;;  %vm6421_vm1 = vcmask 195712   ;;  %s12341_s22 = smov 40   ;;  %s12342_s23 = smov 64   ;;  %vm6614_vm2 = vcmask 261312  }
  0x26   : > { %364 = vst.msk [vmem:[#allocation2 + $0x61] sm:$0xff] %vm279_vm0, %v331_v11  ;;  %365 = vst.msk [vmem:[#allocation2 + $0x69] sm:$0xff] %vm279_vm0, %v332_v12  ;;  %v342_v11 = vld [vmem:[%s12489_s29 + $0x88] sm:$0xff]  ;;  %s12343_s27 = smov 56   ;;  %s12344_s28 = smov 48  }
  0x27   : > { %v455_v6 = vld [vmem:[#allocation2 + $0x9] sm:$0xff]  ;;  %423 = vst.msk [vmem:[#allocation3 + $0x8] sm:$0xff] %vm279_vm0, %v391_v14  ;;  %366 = vst.msk [vmem:[#allocation2 + $0x79] sm:$0xff] %vm279_vm0, %v333_v15 }
  0x28   : > { %v390_v13 = vld [vmem:[#allocation2] sm:$0xff]  ;;  %520 = vrot.lane.b32.xlu0 %v455_v6, %s12333_s8  ;;  %367 = vst.msk [vmem:[#allocation2 + $0x81] sm:$0xff] %vm279_vm0, %v334_v16  ;;  %368 = vst.msk [vmem:[#allocation2 + $0x91] sm:$0xff] %vm279_vm0, %v335_v30 }
  0x29   : > { %v648_v7 = vld [vmem:[#allocation2 + $0xa] sm:$0xff]  ;;  %422 = vst.msk [vmem:[#allocation3] sm:$0xff] %vm279_vm0, %v390_v13  ;;  %369 = vst.msk [vmem:[#allocation2 + $0x99] sm:$0xff] %vm279_vm0, %v336_v32 }
  0x2a   : > { %713 = vrot.lane.b32.xlu1 %v648_v7, %s12332_s30  ;;  %v841_v17 = vld [vmem:[#allocation2 + $0x20] sm:$0xff]  ;;  %v840_v18 = vld [vmem:[#allocation2 + $0x18] sm:$0xff]  ;;  %16925 = vst [vmem:[#allocation6_spill] sm:$0xff] %v12613_v48  ;;  %370 = vst.msk [vmem:[#allocation2 + $0xa9] sm:$0xff] %vm279_vm0, %v337_v49 }
  0x2b   : > { %424 = vst.msk [vmem:[#allocation3 + $0x10] sm:$0xff] %vm279_vm0, %v840_v18  ;;  %425 = vst.msk [vmem:[#allocation3 + $0x18] sm:$0xff] %vm279_vm0, %v841_v17  ;;  %v1420_v19 = vld [vmem:[#allocation2 + $0x30] sm:$0xff]  ;;  %v1421_v20 = vld [vmem:[#allocation2 + $0x38] sm:$0xff] }
  0x2c   : > { %904 = vrot.lane.b32.xlu0 %v840_v18, %s12334_s9  ;;  %v1033_v21 = vld [vmem:[#allocation2 + $0x19] sm:$0xff]  ;;  %426 = vst.msk [vmem:[#allocation3 + $0x20] sm:$0xff] %vm279_vm0, %v1420_v19  ;;  %427 = vst.msk [vmem:[#allocation3 + $0x28] sm:$0xff] %vm279_vm0, %v1421_v20  ;;  %v12523_v22 = vld [vmem:[#allocation2 + $0x48] sm:$0xff] }
  0x2d   : > { %v12525_v23 = vld [vmem:[#allocation2 + $0x50] sm:$0xff]  ;;  %428 = vst.msk [vmem:[#allocation3 + $0x30] sm:$0xff] %vm279_vm0, %v12523_v22  ;;  %v12533_v24 = vld [vmem:[#allocation2 + $0x60] sm:$0xff]  ;;  %v12535_v25 = vld [vmem:[#allocation2 + $0x68] sm:$0xff] }
  0x2e   : > { %906 = vrot.lane.b32.xlu1 %v841_v17, %s12334_s9  ;;  %429 = vst.msk [vmem:[#allocation3 + $0x38] sm:$0xff] %vm279_vm0, %v12525_v23  ;;  %v1034_v26 = vld [vmem:[#allocation2 + $0x21] sm:$0xff]  ;;  %430 = vst.msk [vmem:[#allocation3 + $0x40] sm:$0xff] %vm279_vm0, %v12533_v24  ;;  %v12541_v28 = vld [vmem:[#allocation2 + $0x78] sm:$0xff] }
  0x2f   : > { %v1226_v27 = vld [vmem:[#allocation2 + $0x1a] sm:$0xff]  ;;  %431 = vst.msk [vmem:[#allocation3 + $0x48] sm:$0xff] %vm279_vm0, %v12535_v25  ;;  %432 = vst.msk [vmem:[#allocation3 + $0x50] sm:$0xff] %vm279_vm0, %v12541_v28  ;;  %v1227_v31 = vld [vmem:[#allocation2 + $0x22] sm:$0xff] }
  0x30   : > { %1097 = vrot.lane.b32.xlu0 %v1033_v21, %s12335_s10  ;;  %v12543_v29 = vld [vmem:[#allocation2 + $0x80] sm:$0xff]  ;;  %v12558_v33 = vld [vmem:[#allocation2 + $0x90] sm:$0xff]  ;;  %v12565_v35 = vld [vmem:[#allocation2 + $0x98] sm:$0xff]  ;;  %16926 = vst [vmem:[#allocation7_spill] sm:$0xff] %v12628_v52 }
  0x31   : > { %433 = vst.msk [vmem:[#allocation3 + $0x58] sm:$0xff] %vm279_vm0, %v12543_v29  ;;  %434 = vst.msk [vmem:[#allocation3 + $0x60] sm:$0xff] %vm279_vm0, %v12558_v33  ;;  %v1613_v34 = vld [vmem:[#allocation2 + $0x31] sm:$0xff]  ;;  %v1614_v36 = vld [vmem:[#allocation2 + $0x39] sm:$0xff] }
  0x32   : > { %522 = vrot.lane.b32.xlu1 %v1033_v21, %s12333_s8  ;;  %435 = vst.msk [vmem:[#allocation3 + $0x68] sm:$0xff] %vm279_vm0, %v12565_v35  ;;  %v1806_v37 = vld [vmem:[#allocation2 + $0x32] sm:$0xff]  ;;  %v1807_v47 = vld [vmem:[#allocation2 + $0x3a] sm:$0xff]  ;;  %v12634_v53 = vld [vmem:[#allocation2 + $0xa8] sm:$0xff] }
  0x33   : > { %371 = vst.msk [vmem:[#allocation2 + $0xb1] sm:$0xff] %vm279_vm0, %v338_v54  ;;  %436 = vst.msk [vmem:[#allocation3 + $0x70] sm:$0xff] %vm279_vm0, %v12634_v53  ;;  %v1615_v55 = vld [vmem:[#allocation2 + $0x49] sm:$0xff]  ;;  %v1616_v57 = vld [vmem:[#allocation2 + $0x51] sm:$0xff] }
  0x34   : > { %1099 = vrot.lane.b32.xlu0 %v1034_v26, %s12335_s10  ;;  %v1808_v58 = vld [vmem:[#allocation2 + $0x4a] sm:$0xff]  ;;  %v1809_v59 = vld [vmem:[#allocation2 + $0x52] sm:$0xff]  ;;  %372 = vst.msk [vmem:[#allocation2 + $0xc1] sm:$0xff] %vm279_vm0, %v339_v60  ;;  %373 = vst.msk [vmem:[#allocation2 + $0xc9] sm:$0xff] %vm279_vm0, %v340_v62 }
  0x35   : > { %v1617_v63 = vld [vmem:[#allocation2 + $0x61] sm:$0xff]  ;;  %v1618_v2 = vld [vmem:[#allocation2 + $0x69] sm:$0xff]  ;;  %374 = vst.msk [vmem:[#allocation2 + $0xd9] sm:$0xff] %vm279_vm0, %v341_v5  ;;  %375 = vst.msk [vmem:[#allocation2 + $0xe1] sm:$0xff] %vm279_vm0, %v342_v11 }
  0x36   : > { %1290 = vrot.lane.b32.xlu1 %v1226_v27, %s12336_s11  ;;  %v1810_v3 = vld [vmem:[#allocation2 + $0x62] sm:$0xff]  ;;  %v1811_v4 = vld [vmem:[#allocation2 + $0x6a] sm:$0xff]  ;;  %v1619_v14 = vld [vmem:[#allocation2 + $0x79] sm:$0xff] }
  0x37   : > { %v1812_v21 = vld [vmem:[#allocation2 + $0x7a] sm:$0xff]  ;;  %v1621_v50 = vld [vmem:[#allocation2 + $0x91] sm:$0xff] }
  0x38   : > { %524 = vrot.lane.b32.xlu0 %v1034_v26, %s12333_s8  ;;  %v1813_v26 = vld [vmem:[#allocation2 + $0x82] sm:$0xff] }
  0x3a   : > { %715 = vrot.lane.b32.xlu1 %v1226_v27, %s12332_s30  ;;  %v12646_v56 = vld [vmem:[#allocation2 + $0xb0] sm:$0xff] }
  0x3b   : > { %437 = vst.msk [vmem:[#allocation3 + $0x78] sm:$0xff] %vm279_vm0, %v12646_v56  ;;  %v12666_v61 = vld [vmem:[#allocation2 + $0xc0] sm:$0xff]  ;;  %v12678_v1 = vld [vmem:[#allocation2 + $0xc8] sm:$0xff] }
  0x3c   : > { %1292 = vrot.lane.b32.xlu0 %v1227_v31, %s12336_s11  ;;  %438 = vst.msk [vmem:[#allocation3 + $0x80] sm:$0xff] %vm279_vm0, %v12666_v61  ;;  %439 = vst.msk [vmem:[#allocation3 + $0x88] sm:$0xff] %vm279_vm0, %v12678_v1  ;;  %v12701_v10 = vld [vmem:[#allocation2 + $0xd8] sm:$0xff]  ;;  %v12718_v17 = vld [vmem:[#allocation2 + $0xe0] sm:$0xff] }
  0x3d   : > { %440 = vst.msk [vmem:[#allocation3 + $0x90] sm:$0xff] %vm279_vm0, %v12701_v10  ;;  %441 = vst.msk [vmem:[#allocation3 + $0x98] sm:$0xff] %vm279_vm0, %v12718_v17 }
  0x3e   : > { %1484 = vrot.lane.b32.xlu1 %v1420_v19, %s12337_s12 }
  0x40   : > { %717 = vrot.lane.b32.xlu0 %v1227_v31, %s12332_s30 }
  0x42   : > { %908 = vrot.lane.b32.xlu1 %v1420_v19, %s12334_s9 }
  0x44   : > { %1486 = vrot.lane.b32.xlu0 %v1421_v20, %s12337_s12 }
  0x46   : > { %1677 = vrot.lane.b32.xlu1 %v1613_v34, %s12338_s13 }
  0x48   : > { %910 = vrot.lane.b32.xlu0 %v1421_v20, %s12334_s9  ;;  %v1620_v20 = vld [vmem:[#allocation2 + $0x81] sm:$0xff] }
  0x4a   : > { %1101 = vrot.lane.b32.xlu1 %v1613_v34, %s12335_s10 }
  0x4c   : > { %1679 = vrot.lane.b32.xlu0 %v1614_v36, %s12338_s13 }
  0x4e   : > { %1870 = vrot.lane.b32.xlu1 %v1806_v37, %s12339_s16 }
  0x50   : > { %526 = vrot.lane.b32.xlu0 %v1613_v34, %s12333_s8 }
  0x52   : > { %1103 = vrot.lane.b32.xlu1 %v1614_v36, %s12335_s10 }
  0x54   : > { %1294 = vrot.lane.b32.xlu0 %v1806_v37, %s12336_s11 }
  0x56   : > { %1872 = vrot.lane.b32.xlu1 %v1807_v47, %s12339_s16 }
  0x58   : > { %528 = vrot.lane.b32.xlu0 %v1614_v36, %s12333_s8 }
  0x5a   : > { %719 = vrot.lane.b32.xlu1 %v1806_v37, %s12332_s30  ;;  %v344_v37 = vld [vmem:[%s12489_s29 + $0x98] sm:$0xff] }
  0x5b   : > { %377 = vst.msk [vmem:[#allocation2 + $0xf9] sm:$0xff] %vm279_vm0, %v344_v37 }
  0x5c   : > { %1296 = vrot.lane.b32.xlu0 %v1807_v47, %s12336_s11 }
  0x5e   : > { %1488 = vrot.lane.b32.xlu1 %v12523_v22, %s12337_s12 }
  0x60   : > { %721 = vrot.lane.b32.xlu0 %v1807_v47, %s12332_s30 }
  0x62   : > { %912 = vrot.lane.b32.xlu1 %v12523_v22, %s12334_s9 }
  0x64   : > { %1490 = vrot.lane.b32.xlu0 %v12525_v23, %s12337_s12 }
  0x66   : > { %1681 = vrot.lane.b32.xlu1 %v1615_v55, %s12338_s13 }
  0x68   : > { %914 = vrot.lane.b32.xlu0 %v12525_v23, %s12334_s9 }
  0x6a   : > { %1105 = vrot.lane.b32.xlu1 %v1615_v55, %s12335_s10 }
  0x6c   : > { %1683 = vrot.lane.b32.xlu0 %v1616_v57, %s12338_s13 }
  0x6e   : > { %1874 = vrot.lane.b32.xlu1 %v1808_v58, %s12339_s16 }
  0x70   : > { %530 = vrot.lane.b32.xlu0 %v1615_v55, %s12333_s8 }
  0x72   : > { %1107 = vrot.lane.b32.xlu1 %v1616_v57, %s12335_s10 }
  0x74   : > { %1298 = vrot.lane.b32.xlu0 %v1808_v58, %s12336_s11 }
  0x76   : > { %1876 = vrot.lane.b32.xlu1 %v1809_v59, %s12339_s16 }
  0x78   : > { %532 = vrot.lane.b32.xlu0 %v1616_v57, %s12333_s8 }
  0x7a   : > { %723 = vrot.lane.b32.xlu1 %v1808_v58, %s12332_s30 }
  0x7c   : > { %1300 = vrot.lane.b32.xlu0 %v1809_v59, %s12336_s11 }
  0x7e   : > { %1492 = vrot.lane.b32.xlu1 %v12533_v24, %s12337_s12 }
  0x80   : > { %725 = vrot.lane.b32.xlu0 %v1809_v59, %s12332_s30 }
  0x82   : > { %916 = vrot.lane.b32.xlu1 %v12533_v24, %s12334_s9 }
  0x84   : > { %1494 = vrot.lane.b32.xlu0 %v12535_v25, %s12337_s12 }
  0x86   : > { %1685 = vrot.lane.b32.xlu1 %v1617_v63, %s12338_s13 }
  0x88   : > { %918 = vrot.lane.b32.xlu0 %v12535_v25, %s12334_s9  ;;  %v712_v6 = vpop.permute.xlu1 %711 }
  0x89   : > { %v519_v7 = vpop.permute.xlu0 %518 }
  0x8a   : > { %1109 = vrot.lane.b32.xlu1 %v1617_v63, %s12335_s10  ;;  %615 = vst.msk [vmem:[#allocation3] sm:$0xff] %vm614_vm4, %v519_v7 }
  0x8b   : > { %808 = vst.msk [vmem:[#allocation3] sm:$0xff] %vm807_vm5, %v712_v6 }
  0x8c   : > { %1687 = vrot.lane.b32.xlu0 %v1618_v2, %s12338_s13 }
  0x8e   : > { %1878 = vrot.lane.b32.xlu1 %v1810_v3, %s12339_s16 }
  0x90   : > { %534 = vrot.lane.b32.xlu0 %v1617_v63, %s12333_s8  ;;  %v1622_v63 = vld [vmem:[#allocation2 + $0x99] sm:$0xff] }
  0x92   : > { %1111 = vrot.lane.b32.xlu1 %v1618_v2, %s12335_s10 }
  0x94   : > { %1302 = vrot.lane.b32.xlu0 %v1810_v3, %s12336_s11 }
  0x96   : > { %1880 = vrot.lane.b32.xlu1 %v1811_v4, %s12339_s16 }
  0x98   : > { %536 = vrot.lane.b32.xlu0 %v1618_v2, %s12333_s8  ;;  %v1814_v2 = vld [vmem:[#allocation2 + $0x92] sm:$0xff] }
  0x9a   : > { %727 = vrot.lane.b32.xlu1 %v1810_v3, %s12332_s30  ;;  %v521_v9 = vpop.permute.xlu0 %520 }
  0x9b   : > { %616 = vst.msk [vmem:[#allocation3 + $0x8] sm:$0xff] %vm614_vm4, %v521_v9 }
  0x9c   : > { %v714_v8 = vpop.permute.xlu1 %713  ;;  %1304 = vrot.lane.b32.xlu0 %v1811_v4, %s12336_s11 }
  0x9d   : > { %809 = vst.msk [vmem:[#allocation3 + $0x8] sm:$0xff] %vm807_vm5, %v714_v8 }
  0x9e   : > { %1496 = vrot.lane.b32.xlu1 %v12541_v28, %s12337_s12  ;;  %v905_v13 = vpop.permute.xlu0 %904 }
  0x9f   : > { %1001 = vst.msk [vmem:[#allocation3] sm:$0xff] %vm1000_vm6, %v905_v13 }
  0xa0   : > { %v907_v12 = vpop.permute.xlu1 %906  ;;  %729 = vrot.lane.b32.xlu0 %v1811_v4, %s12332_s30 }
  0xa1   : > { %1002 = vst.msk [vmem:[#allocation3 + $0x8] sm:$0xff] %vm1000_vm6, %v907_v12 }
  0xa2   : > { %920 = vrot.lane.b32.xlu1 %v12541_v28, %s12334_s9  ;;  %v1098_v15 = vpop.permute.xlu0 %1097 }
  0xa3   : > { %1194 = vst.msk [vmem:[#allocation3] sm:$0xff] %vm1193_vm7, %v1098_v15 }
  0xa4   : > { %v523_v16 = vpop.permute.xlu1 %522  ;;  %1498 = vrot.lane.b32.xlu0 %v12543_v29, %s12337_s12 }
  0xa5   : > { %617 = vst.msk [vmem:[#allocation3 + $0x10] sm:$0xff] %vm614_vm4, %v523_v16 }
  0xa6   : > { %1689 = vrot.lane.b32.xlu1 %v1619_v14, %s12338_s13  ;;  %v1100_v18 = vpop.permute.xlu0 %1099 }
  0xa7   : > { %1195 = vst.msk [vmem:[#allocation3 + $0x8] sm:$0xff] %vm1193_vm7, %v1100_v18 }
  0xa8   : > { %v1291_v19 = vpop.permute.xlu1 %1290  ;;  %922 = vrot.lane.b32.xlu0 %v12543_v29, %s12334_s9  ;;  %v343_v29 = vld [vmem:[%s12489_s29 + $0x90] sm:$0xff] }
  0xa9   : > { %1387 = vst.msk [vmem:[#allocation3] sm:$0xff] %vm1386_vm8, %v1291_v19  ;;  %v345_v19 = vld [vmem:[%s12489_s29 + $0xa0] sm:$0xff] }
  0xaa   : > { %1113 = vrot.lane.b32.xlu1 %v1619_v14, %s12335_s10  ;;  %v525_v22 = vpop.permute.xlu0 %524  ;;  %376 = vst.msk [vmem:[#allocation2 + $0xf1] sm:$0xff] %vm279_vm0, %v343_v29  ;;  %378 = vst.msk [vmem:[#allocation2 + $0x109] sm:$0xff] %vm279_vm0, %v345_v19 }
  0xab   : > { %618 = vst.msk [vmem:[#allocation3 + $0x18] sm:$0xff] %vm614_vm4, %v525_v22 }
  0xac   : > { %v716_v23 = vpop.permute.xlu1 %715  ;;  %1691 = vrot.lane.b32.xlu0 %v1620_v20, %s12338_s13 }
  0xad   : > { %810 = vst.msk [vmem:[#allocation3 + $0x10] sm:$0xff] %vm807_vm5, %v716_v23 }
  0xae   : > { %1882 = vrot.lane.b32.xlu1 %v1812_v21, %s12339_s16  ;;  %v1293_v24 = vpop.permute.xlu0 %1292 }
  0xaf   : > { %1388 = vst.msk [vmem:[#allocation3 + $0x8] sm:$0xff] %vm1386_vm8, %v1293_v24 }
  0xb0   : > { %v1485_v25 = vpop.permute.xlu1 %1484  ;;  %538 = vrot.lane.b32.xlu0 %v1619_v14, %s12333_s8  ;;  %v1815_v14 = vld [vmem:[#allocation2 + $0x9a] sm:$0xff] }
  0xb1   : > { %1581 = vst.msk [vmem:[#allocation3] sm:$0xff] %vm1580_vm9, %v1485_v25  ;;  %v12750_v36 = vld [vmem:[#allocation2 + $0xf0] sm:$0xff]  ;;  %v12766_v57 = vld [vmem:[#allocation2 + $0xf8] sm:$0xff] }
  0xb2   : > { %1115 = vrot.lane.b32.xlu1 %v1620_v20, %s12335_s10  ;;  %v718_v27 = vpop.permute.xlu0 %717  ;;  %442 = vst.msk [vmem:[#allocation3 + $0xa0] sm:$0xff] %vm279_vm0, %v12750_v36  ;;  %443 = vst.msk [vmem:[#allocation3 + $0xa8] sm:$0xff] %vm279_vm0, %v12766_v57 }
  0xb3   : > { %811 = vst.msk [vmem:[#allocation3 + $0x18] sm:$0xff] %vm807_vm5, %v718_v27  ;;  %v12818_v27 = vld [vmem:[#allocation2 + $0x108] sm:$0xff] }
  0xb4   : > { %v909_v28 = vpop.permute.xlu1 %908  ;;  %1306 = vrot.lane.b32.xlu0 %v1812_v21, %s12336_s11  ;;  %444 = vst.msk [vmem:[#allocation3 + $0xb0] sm:$0xff] %vm279_vm0, %v12818_v27 }
  0xb5   : > { %1003 = vst.msk [vmem:[#allocation3 + $0x10] sm:$0xff] %vm1000_vm6, %v909_v28  ;;  %v346_v28 = vld [vmem:[%s12489_s29 + $0xa8] sm:$0xff] }
  0xb6   : > { %1884 = vrot.lane.b32.xlu1 %v1813_v26, %s12339_s16  ;;  %v1487_v30 = vpop.permute.xlu0 %1486  ;;  %379 = vst.msk [vmem:[#allocation2 + $0x111] sm:$0xff] %vm279_vm0, %v346_v28  ;;  %v348_v28 = vld [vmem:[%s12489_s29 + $0xb8] sm:$0xff] }
  0xb7   : > { %1582 = vst.msk [vmem:[#allocation3 + $0x8] sm:$0xff] %vm1580_vm9, %v1487_v30 }
  0xb8   : > { %v1678_v31 = vpop.permute.xlu1 %1677  ;;  %540 = vrot.lane.b32.xlu0 %v1620_v20, %s12333_s8  ;;  %381 = vst.msk [vmem:[#allocation2 + $0x129] sm:$0xff] %vm279_vm0, %v348_v28 }
  0xb9   : > { %1774 = vst.msk [vmem:[#allocation3] sm:$0xff] %vm1773_vm10, %v1678_v31  ;;  %v1623_v31 = vld [vmem:[#allocation2 + $0xa9] sm:$0xff] }
  0xba   : > { %731 = vrot.lane.b32.xlu1 %v1812_v21, %s12332_s30  ;;  %v911_v32 = vpop.permute.xlu0 %910 }
  0xbb   : > { %1004 = vst.msk [vmem:[#allocation3 + $0x18] sm:$0xff] %vm1000_vm6, %v911_v32 }
  0xbc   : > { %v1102_v34 = vpop.permute.xlu1 %1101  ;;  %1308 = vrot.lane.b32.xlu0 %v1813_v26, %s12336_s11 }
  0xbd   : > { %1196 = vst.msk [vmem:[#allocation3 + $0x10] sm:$0xff] %vm1193_vm7, %v1102_v34  ;;  %v12834_v37 = vld [vmem:[#allocation2 + $0x110] sm:$0xff] }
  0xbe   : > { %1500 = vrot.lane.b32.xlu1 %v12558_v33, %s12337_s12  ;;  %v1680_v47 = vpop.permute.xlu0 %1679  ;;  %445 = vst.msk [vmem:[#allocation3 + $0xb8] sm:$0xff] %vm279_vm0, %v12834_v37  ;;  %v1825_v0 = vld [vmem:[#allocation2 + $0x112] sm:$0xff] }
  0xbf   : > { %1775 = vst.msk [vmem:[#allocation3 + $0x8] sm:$0xff] %vm1773_vm10, %v1680_v47 }
  0xc0   : > { %v1871_v49 = vpop.permute.xlu1 %1870  ;;  %733 = vrot.lane.b32.xlu0 %v1813_v26, %s12332_s30 }
  0xc1   : > { %1967 = vst.msk [vmem:[#allocation3] sm:$0xff] %vm1966_vm11, %v1871_v49 }
  0xc2   : > { %924 = vrot.lane.b32.xlu1 %v12558_v33, %s12334_s9  ;;  %v527_v54 = vpop.permute.xlu0 %526 }
  0xc3   : > { %619 = vst.msk [vmem:[#allocation3 + $0x20] sm:$0xff] %vm614_vm4, %v527_v54 }
  0xc4   : > { %v1104_v55 = vpop.permute.xlu1 %1103  ;;  %1502 = vrot.lane.b32.xlu0 %v12565_v35, %s12337_s12 }
  0xc5   : > { %1197 = vst.msk [vmem:[#allocation3 + $0x18] sm:$0xff] %vm1193_vm7, %v1104_v55  ;;  %v1624_v55 = vld [vmem:[#allocation2 + $0xb1] sm:$0xff] }
  0xc6   : > { %1693 = vrot.lane.b32.xlu1 %v1621_v50, %s12338_s13  ;;  %v1295_v58 = vpop.permute.xlu0 %1294 }
  0xc7   : > { %1389 = vst.msk [vmem:[#allocation3 + $0x10] sm:$0xff] %vm1386_vm8, %v1295_v58  ;;  %v1816_v58 = vld [vmem:[#allocation2 + $0xaa] sm:$0xff] }
  0xc8   : > { %v1873_v33 = vpop.permute.xlu1 %1872  ;;  %v1999_v59 = vld [vmem:[#allocation3] sm:$0xff]  ;;  %926 = vrot.lane.b32.xlu0 %v12565_v35, %s12334_s9 }
  0xc9   : > { %1968 = vst.msk [vmem:[#allocation3 + $0x8] sm:$0xff] %vm1966_vm11, %v1873_v33  ;;  %v2045_v60 = vsel %vm2043_vm12, %v1999_v59, 0 }
  0xca   : > { %1117 = vrot.lane.b32.xlu1 %v1621_v50, %s12335_s10  ;;  %v12779_v62 = vand.u32 4294901760, %v2045_v60  ;;  %v529_v3 = vpop.permute.xlu0 %528 }
  0xcb   : > { %620 = vst.msk [vmem:[#allocation3 + $0x28] sm:$0xff] %vm614_vm4, %v529_v3 }
  0xcc   : > { %v720_v4 = vpop.permute.xlu1 %719  ;;  %v12782_v5 = vsub.f32 %v2045_v60, %v12779_v62  ;;  %1695 = vrot.lane.b32.xlu0 %v1622_v63, %s12338_s13 }
  0xcd   : > { %812 = vst.msk [vmem:[#allocation3 + $0x20] sm:$0xff] %vm807_vm5, %v720_v4 }
  0xce   : > { %1886 = vrot.lane.b32.xlu1 %v1814_v2, %s12339_s16  ;;  %v16512_v35 = vand.u32 4294901760, %v12782_v5  ;;  %v1297_v6 = vpop.permute.xlu0 %1296 }
  0xcf   : > { %1390 = vst.msk [vmem:[#allocation3 + $0x18] sm:$0xff] %vm1386_vm8, %v1297_v6 }
  0xd0   : > { %v1489_v7 = vpop.permute.xlu1 %1488  ;;  %v2217_v8 = vsub.f32 %v12782_v5, %v16512_v35  ;;  %v2000_v9 = vld [vmem:[#allocation3 + $0x8] sm:$0xff]  ;;  %542 = vrot.lane.b32.xlu0 %v1621_v50, %s12333_s8 }
  0xd1   : > { %1583 = vst.msk [vmem:[#allocation3 + $0x10] sm:$0xff] %vm1580_vm9, %v1489_v7  ;;  %v2048_v11 = vsel %vm2043_vm12, %v2000_v9, 0  ;;  %v1817_v9 = vld [vmem:[#allocation2 + $0xb2] sm:$0xff] }
  0xd2   : > { %1119 = vrot.lane.b32.xlu1 %v1622_v63, %s12335_s10  ;;  %v2218_v12 = vand.u32 4294901760, %v2217_v8  ;;  %v12797_v13 = vand.u32 4294901760, %v2048_v11  ;;  %v722_v15 = vpop.permute.xlu0 %721 }
  0xd3   : > { %813 = vst.msk [vmem:[#allocation3 + $0x28] sm:$0xff] %vm807_vm5, %v722_v15  ;;  %v347_v15 = vld [vmem:[%s12489_s29 + $0xb0] sm:$0xff] }
  0xd4   : > { %16927 = vst [vmem:[#allocation8_spill] sm:$0xff] %v12797_v13  ;;  %10516 = vmatprep.mubr.f32.mxu0 %v2218_v12  ;;  %v913_v16 = vpop.permute.xlu1 %912  ;;  %v12800_v18 = vsub.f32 %v2048_v11, %v12797_v13  ;;  %1310 = vrot.lane.b32.xlu0 %v1814_v2, %s12336_s11  ;;  %380 = vst.msk [vmem:[#allocation2 + $0x121] sm:$0xff] %vm279_vm0, %v347_v15  ;;  %v1819_v15 = vld [vmem:[#allocation2 + $0xca] sm:$0xff] }
  0xd5   : > { %1005 = vst.msk [vmem:[#allocation3 + $0x20] sm:$0xff] %vm1000_vm6, %v913_v16 }
  0xd6   : > { %1888 = vrot.lane.b32.xlu1 %v1815_v14, %s12339_s16  ;;  %v16509_v20 = vand.u32 4294901760, %v12800_v18  ;;  %v1491_v21 = vpop.permute.xlu0 %1490 }
  0xd7   : > { %1584 = vst.msk [vmem:[#allocation3 + $0x18] sm:$0xff] %vm1580_vm9, %v1491_v21 }
  0xd8   : > { %v1682_v22 = vpop.permute.xlu1 %1681  ;;  %v2227_v23 = vsub.f32 %v12800_v18, %v16509_v20  ;;  %544 = vrot.lane.b32.xlu0 %v1622_v63, %s12333_s8 }
  0xd9   : > { %1776 = vst.msk [vmem:[#allocation3 + $0x10] sm:$0xff] %vm1773_vm10, %v1682_v22 }
  0xda   : > { %735 = vrot.lane.b32.xlu1 %v1814_v2, %s12332_s30  ;;  %v2228_v24 = vand.u32 4294901760, %v2227_v23  ;;  %v915_v25 = vpop.permute.xlu0 %914 }
  0xdb   : > { %1006 = vst.msk [vmem:[#allocation3 + $0x28] sm:$0xff] %vm1000_vm6, %v915_v25 }
  0xdc   : > { %10517 = vmatmul.mubr.f32.vlgmr.msra.gmra.mrb[0].mxu0 %v2228_v24  ;;  %v1106_v26 = vpop.permute.xlu1 %1105  ;;  %1312 = vrot.lane.b32.xlu0 %v1815_v14, %s12336_s11 }
  0xdd   : > { %1198 = vst.msk [vmem:[#allocation3 + $0x20] sm:$0xff] %vm1193_vm7, %v1106_v26  ;;  %v12886_v26 = vld [vmem:[#allocation2 + $0x120] sm:$0xff] }
  0xde   : > { %1504 = vrot.lane.b32.xlu1 %v12634_v53, %s12337_s12  ;;  %v1684_v29 = vpop.permute.xlu0 %1683  ;;  %446 = vst.msk [vmem:[#allocation3 + $0xc0] sm:$0xff] %vm279_vm0, %v12886_v26 }
  0xdf   : > { %1777 = vst.msk [vmem:[#allocation3 + $0x18] sm:$0xff] %vm1773_vm10, %v1684_v29 }
  0xe0   : > { %v1875_v30 = vpop.permute.xlu1 %1874  ;;  %737 = vrot.lane.b32.xlu0 %v1815_v14, %s12332_s30 }
  0xe1   : > { %1969 = vst.msk [vmem:[#allocation3 + $0x10] sm:$0xff] %vm1966_vm11, %v1875_v30 }
  0xe2   : > { %928 = vrot.lane.b32.xlu1 %v12634_v53, %s12334_s9  ;;  %v531_v32 = vpop.permute.xlu0 %530 }
  0xe3   : > { %621 = vst.msk [vmem:[#allocation3 + $0x30] sm:$0xff] %vm614_vm4, %v531_v32 }
  0xe4   : > { %v1108_v34 = vpop.permute.xlu1 %1107  ;;  %1506 = vrot.lane.b32.xlu0 %v12646_v56, %s12337_s12 }
  0xe5   : > { %1199 = vst.msk [vmem:[#allocation3 + $0x28] sm:$0xff] %vm1193_vm7, %v1108_v34 }
  0xe6   : > { %1697 = vrot.lane.b32.xlu1 %v1623_v31, %s12338_s13  ;;  %v1299_v47 = vpop.permute.xlu0 %1298 }
  0xe7   : > { %1391 = vst.msk [vmem:[#allocation3 + $0x20] sm:$0xff] %vm1386_vm8, %v1299_v47  ;;  %v12902_v47 = vld [vmem:[#allocation2 + $0x128] sm:$0xff] }
  0xe8   : > { %v1877_v49 = vpop.permute.xlu1 %1876  ;;  %v2001_v53 = vld [vmem:[#allocation3 + $0x10] sm:$0xff]  ;;  %930 = vrot.lane.b32.xlu0 %v12646_v56, %s12334_s9  ;;  %447 = vst.msk [vmem:[#allocation3 + $0xc8] sm:$0xff] %vm279_vm0, %v12902_v47 }
  0xe9   : > { %1970 = vst.msk [vmem:[#allocation3 + $0x18] sm:$0xff] %vm1966_vm11, %v1877_v49  ;;  %v2051_v50 = vsel %vm2043_vm12, %v2001_v53, 0 }
  0xea   : > { %1121 = vrot.lane.b32.xlu1 %v1623_v31, %s12335_s10  ;;  %v12847_v54 = vand.u32 4294901760, %v2051_v50  ;;  %v533_v33 = vpop.permute.xlu0 %532 }
  0xeb   : > { %622 = vst.msk [vmem:[#allocation3 + $0x38] sm:$0xff] %vm614_vm4, %v533_v33  ;;  %v1818_v33 = vld [vmem:[#allocation2 + $0xc2] sm:$0xff] }
  0xec   : > { %16928 = vst [vmem:[#allocation9_spill] sm:$0xff] %v12847_v54  ;;  %v724_v59 = vpop.permute.xlu1 %723  ;;  %v12850_v60 = vsub.f32 %v2051_v50, %v12847_v54  ;;  %1699 = vrot.lane.b32.xlu0 %v1624_v55, %s12338_s13 }
  0xed   : > { %814 = vst.msk [vmem:[#allocation3 + $0x30] sm:$0xff] %vm807_vm5, %v724_v59 }
  0xee   : > { %16929 = vst [vmem:[#allocation10_spill] sm:$0xff] %v12850_v60  ;;  %1890 = vrot.lane.b32.xlu1 %v1816_v58, %s12339_s16  ;;  %v16508_v56 = vand.u32 4294901760, %v12850_v60  ;;  %v1301_v63 = vpop.permute.xlu0 %1300 }
  0xef   : > { %1392 = vst.msk [vmem:[#allocation3 + $0x28] sm:$0xff] %vm1386_vm8, %v1301_v63 }
  0xf0   : > { %v1493_v2 = vpop.permute.xlu1 %1492  ;;  %v2237_v3 = vsub.f32 %v12850_v60, %v16508_v56  ;;  %v2002_v4 = vld [vmem:[#allocation3 + $0x18] sm:$0xff]  ;;  %546 = vrot.lane.b32.xlu0 %v1623_v31, %s12333_s8 }
  0xf1   : > { %1585 = vst.msk [vmem:[#allocation3 + $0x20] sm:$0xff] %vm1580_vm9, %v1493_v2  ;;  %v2054_v6 = vsel %vm2043_vm12, %v2002_v4, 0  ;;  %v1625_v31 = vld [vmem:[#allocation2 + $0xc1] sm:$0xff] }
  0xf2   : > { %1123 = vrot.lane.b32.xlu1 %v1624_v55, %s12335_s10  ;;  %v2238_v7 = vand.u32 4294901760, %v2237_v3  ;;  %v12865_v8 = vand.u32 4294901760, %v2054_v6  ;;  %v726_v11 = vpop.permute.xlu0 %725 }
  0xf3   : > { %815 = vst.msk [vmem:[#allocation3 + $0x38] sm:$0xff] %vm807_vm5, %v726_v11 }
  0xf4   : > { %16930 = vst [vmem:[#allocation11_spill] sm:$0xff] %v12865_v8  ;;  %v917_v12 = vpop.permute.xlu1 %916  ;;  %10519 = vmatprep.mubr.f32.mxu0 %v2238_v7  ;;  %v12868_v14 = vsub.f32 %v2054_v6, %v12865_v8  ;;  %1314 = vrot.lane.b32.xlu0 %v1816_v58, %s12336_s11 }
  0xf5   : > { %1007 = vst.msk [vmem:[#allocation3 + $0x30] sm:$0xff] %vm1000_vm6, %v917_v12 }
  0xf6   : > { %16931 = vst [vmem:[#allocation12_spill] sm:$0xff] %v12868_v14  ;;  %1892 = vrot.lane.b32.xlu1 %v1817_v9, %s12339_s16  ;;  %v16507_v16 = vand.u32 4294901760, %v12868_v14  ;;  %v1495_v19 = vpop.permute.xlu0 %1494 }
  0xf7   : > { %1586 = vst.msk [vmem:[#allocation3 + $0x28] sm:$0xff] %vm1580_vm9, %v1495_v19 }
  0xf8   : > { %v1686_v21 = vpop.permute.xlu1 %1685  ;;  %v2247_v22 = vsub.f32 %v12868_v14, %v16507_v16  ;;  %548 = vrot.lane.b32.xlu0 %v1624_v55, %s12333_s8  ;;  %v12301_v14 = vld [vmem:[#allocation3 + $0x10] sm:$0xff] }
  0xf9   : > { %1778 = vst.msk [vmem:[#allocation3 + $0x20] sm:$0xff] %vm1773_vm10, %v1686_v21 }
  0xfa   : > { %739 = vrot.lane.b32.xlu1 %v1816_v58, %s12332_s30  ;;  %v2248_v23 = vand.u32 4294901760, %v2247_v22  ;;  %v919_v24 = vpop.permute.xlu0 %918  ;;  %v1626_v58 = vld [vmem:[#allocation2 + $0xc9] sm:$0xff] }
  0xfb   : > { %1008 = vst.msk [vmem:[#allocation3 + $0x38] sm:$0xff] %vm1000_vm6, %v919_v24 }
  0xfc   : > { %v1110_v25 = vpop.permute.xlu1 %1109  ;;  %10520 = vmatmul.mubr.f32.gmra.mrb[2].mxu0 %v2248_v23  ;;  %1316 = vrot.lane.b32.xlu0 %v1817_v9, %s12336_s11  ;;  %v349_v23 = vld [vmem:[%s12489_s29 + $0xc0] sm:$0xff] }
  0xfd   : > { %1200 = vst.msk [vmem:[#allocation3 + $0x30] sm:$0xff] %vm1193_vm7, %v1110_v25 }
  0xfe   : > { %1508 = vrot.lane.b32.xlu1 %v12666_v61, %s12337_s12  ;;  %v1688_v29 = vpop.permute.xlu0 %1687  ;;  %382 = vst.msk [vmem:[#allocation2 + $0x139] sm:$0xff] %vm279_vm0, %v349_v23 }
  0xff   : > { %1779 = vst.msk [vmem:[#allocation3 + $0x28] sm:$0xff] %vm1773_vm10, %v1688_v29 }
 0x100   : > { %v1879_v30 = vpop.permute.xlu1 %1878  ;;  %741 = vrot.lane.b32.xlu0 %v1817_v9, %s12332_s30 }
 0x101   : > { %1971 = vst.msk [vmem:[#allocation3 + $0x20] sm:$0xff] %vm1966_vm11, %v1879_v30 }
 0x102   : > { %932 = vrot.lane.b32.xlu1 %v12666_v61, %s12334_s9  ;;  %v535_v32 = vpop.permute.xlu0 %534 }
 0x103   : > { %623 = vst.msk [vmem:[#allocation3 + $0x40] sm:$0xff] %vm614_vm4, %v535_v32 }
 0x104   : > { %v1112_v34 = vpop.permute.xlu1 %1111  ;;  %1510 = vrot.lane.b32.xlu0 %v12678_v1, %s12337_s12 }
 0x105   : > { %1201 = vst.msk [vmem:[#allocation3 + $0x38] sm:$0xff] %vm1193_vm7, %v1112_v34  ;;  %v12954_v34 = vld [vmem:[#allocation2 + $0x138] sm:$0xff] }
 0x106   : > { %1701 = vrot.lane.b32.xlu1 %v1625_v31, %s12338_s13  ;;  %v1303_v49 = vpop.permute.xlu0 %1302  ;;  %448 = vst.msk [vmem:[#allocation3 + $0xd0] sm:$0xff] %vm279_vm0, %v12954_v34 }
 0x107   : > { %1393 = vst.msk [vmem:[#allocation3 + $0x30] sm:$0xff] %vm1386_vm8, %v1303_v49  ;;  %v350_v49 = vld [vmem:[%s12489_s29 + $0xc8] sm:$0xff] }
 0x108   : > { %v1881_v53 = vpop.permute.xlu1 %1880  ;;  %v2003_v61 = vld [vmem:[#allocation3 + $0x20] sm:$0xff]  ;;  %934 = vrot.lane.b32.xlu0 %v12678_v1, %s12334_s9  ;;  %383 = vst.msk [vmem:[#allocation2 + $0x141] sm:$0xff] %vm279_vm0, %v350_v49 }
 0x109   : > { %1972 = vst.msk [vmem:[#allocation3 + $0x28] sm:$0xff] %vm1966_vm11, %v1881_v53  ;;  %v2057_v50 = vsel %vm2043_vm12, %v2003_v61, 0  ;;  %v12303_v60 = vld [vmem:[#allocation3 + $0x20] sm:$0xff] }
 0x10a   : > { %1125 = vrot.lane.b32.xlu1 %v1625_v31, %s12335_s10  ;;  %v12915_v55 = vand.u32 4294901760, %v2057_v50  ;;  %v537_v59 = vpop.permute.xlu0 %536 }
 0x10b   : > { %624 = vst.msk [vmem:[#allocation3 + $0x48] sm:$0xff] %vm614_vm4, %v537_v59 }
 0x10c   : > { %16932 = vst [vmem:[#allocation13_spill] sm:$0xff] %v12915_v55  ;;  %v728_v63 = vpop.permute.xlu1 %727  ;;  %v12918_v2 = vsub.f32 %v2057_v50, %v12915_v55  ;;  %1703 = vrot.lane.b32.xlu0 %v1626_v58, %s12338_s13  ;;  %v1627_v50 = vld [vmem:[#allocation2 + $0xd9] sm:$0xff] }
 0x10d   : > { %816 = vst.msk [vmem:[#allocation3 + $0x40] sm:$0xff] %vm807_vm5, %v728_v63 }
 0x10e   : > { %16933 = vst [vmem:[#allocation14_spill] sm:$0xff] %v12918_v2  ;;  %1894 = vrot.lane.b32.xlu1 %v1818_v33, %s12339_s16  ;;  %v16504_v1 = vand.u32 4294901760, %v12918_v2  ;;  %v1305_v3 = vpop.permute.xlu0 %1304 }
 0x10f   : > { %1394 = vst.msk [vmem:[#allocation3 + $0x38] sm:$0xff] %vm1386_vm8, %v1305_v3  ;;  %v12970_v59 = vld [vmem:[#allocation2 + $0x140] sm:$0xff] }
 0x110   : > { %v1497_v4 = vpop.permute.xlu1 %1496  ;;  %v2257_v6 = vsub.f32 %v12918_v2, %v16504_v1  ;;  %v2004_v7 = vld [vmem:[#allocation3 + $0x28] sm:$0xff]  ;;  %550 = vrot.lane.b32.xlu0 %v1625_v31, %s12333_s8  ;;  %449 = vst.msk [vmem:[#allocation3 + $0xd8] sm:$0xff] %vm279_vm0, %v12970_v59 }
 0x111   : > { %1587 = vst.msk [vmem:[#allocation3 + $0x30] sm:$0xff] %vm1580_vm9, %v1497_v4  ;;  %v2060_v9 = vsel %vm2043_vm12, %v2004_v7, 0  ;;  %v1628_v7 = vld [vmem:[#allocation2 + $0xe1] sm:$0xff]  ;;  %v12302_v48 = vld [vmem:[#allocation3 + $0x28] sm:$0xff] }
 0x112   : > { %1127 = vrot.lane.b32.xlu1 %v1626_v58, %s12335_s10  ;;  %v2258_v11 = vand.u32 4294901760, %v2257_v6  ;;  %v12933_v12 = vand.u32 4294901760, %v2060_v9  ;;  %v730_v19 = vpop.permute.xlu0 %729 }
 0x113   : > { %817 = vst.msk [vmem:[#allocation3 + $0x48] sm:$0xff] %vm807_vm5, %v730_v19 }
 0x114   : > { %16934 = vst [vmem:[#allocation15_spill] sm:$0xff] %v12933_v12  ;;  %v921_v21 = vpop.permute.xlu1 %920  ;;  %10522 = vmatprep.mubr.f32.mxu0 %v2258_v11  ;;  %v12936_v22 = vsub.f32 %v2060_v9, %v12933_v12  ;;  %1318 = vrot.lane.b32.xlu0 %v1818_v33, %s12336_s11  ;;  %v1820_v9 = vld [vmem:[#allocation2 + $0xda] sm:$0xff] }
 0x115   : > { %1009 = vst.msk [vmem:[#allocation3 + $0x40] sm:$0xff] %vm1000_vm6, %v921_v21 }
 0x116   : > { %16935 = vst [vmem:[#allocation16_spill] sm:$0xff] %v12936_v22  ;;  %1896 = vrot.lane.b32.xlu1 %v1819_v15, %s12339_s16  ;;  %v16503_v24 = vand.u32 4294901760, %v12936_v22  ;;  %v1499_v25 = vpop.permute.xlu0 %1498 }
 0x117   : > { %1588 = vst.msk [vmem:[#allocation3 + $0x38] sm:$0xff] %vm1580_vm9, %v1499_v25 }
 0x118   : > { %v1690_v28 = vpop.permute.xlu1 %1689  ;;  %v2267_v29 = vsub.f32 %v12936_v22, %v16503_v24  ;;  %552 = vrot.lane.b32.xlu0 %v1626_v58, %s12333_s8 }
 0x119   : > { %1780 = vst.msk [vmem:[#allocation3 + $0x30] sm:$0xff] %vm1773_vm10, %v1690_v28 }
 0x11a   : > { %743 = vrot.lane.b32.xlu1 %v1818_v33, %s12332_s30  ;;  %v2268_v30 = vand.u32 4294901760, %v2267_v29  ;;  %v923_v31 = vpop.permute.xlu0 %922 }
 0x11b   : > { %1010 = vst.msk [vmem:[#allocation3 + $0x48] sm:$0xff] %vm1000_vm6, %v923_v31 }
 0x11c   : > { %v1114_v32 = vpop.permute.xlu1 %1113  ;;  %10523 = vmatmul.mubr.f32.gmra.mrb[4].mxu0 %v2268_v30  ;;  %1320 = vrot.lane.b32.xlu0 %v1819_v15, %s12336_s11 }
 0x11d   : > { %1202 = vst.msk [vmem:[#allocation3 + $0x40] sm:$0xff] %vm1193_vm7, %v1114_v32  ;;  %v1821_v32 = vld [vmem:[#allocation2 + $0xe2] sm:$0xff] }
 0x11e   : > { %1512 = vrot.lane.b32.xlu1 %v12701_v10, %s12337_s12  ;;  %v1692_v53 = vpop.permute.xlu0 %1691 }
 0x11f   : > { %1781 = vst.msk [vmem:[#allocation3 + $0x38] sm:$0xff] %vm1773_vm10, %v1692_v53 }
 0x120   : > { %v1883_v61 = vpop.permute.xlu1 %1882  ;;  %745 = vrot.lane.b32.xlu0 %v1819_v15, %s12332_s30 }
 0x121   : > { %1973 = vst.msk [vmem:[#allocation3 + $0x30] sm:$0xff] %vm1966_vm11, %v1883_v61 }
 0x122   : > { %936 = vrot.lane.b32.xlu1 %v12701_v10, %s12334_s9  ;;  %v539_v58 = vpop.permute.xlu0 %538 }
 0x123   : > { %625 = vst.msk [vmem:[#allocation3 + $0x50] sm:$0xff] %vm614_vm4, %v539_v58  ;;  %v351_v58 = vld [vmem:[%s12489_s29 + $0xd0] sm:$0xff] }
 0x124   : > { %v1116_v33 = vpop.permute.xlu1 %1115  ;;  %1514 = vrot.lane.b32.xlu0 %v12718_v17, %s12337_s12  ;;  %384 = vst.msk [vmem:[#allocation2 + $0x151] sm:$0xff] %vm279_vm0, %v351_v58  ;;  %v1630_v58 = vld [vmem:[#allocation2 + $0xf9] sm:$0xff] }
 0x125   : > { %1203 = vst.msk [vmem:[#allocation3 + $0x48] sm:$0xff] %vm1193_vm7, %v1116_v33 }
 0x126   : > { %1705 = vrot.lane.b32.xlu1 %v1627_v50, %s12338_s13  ;;  %v1307_v63 = vpop.permute.xlu0 %1306 }
 0x127   : > { %1395 = vst.msk [vmem:[#allocation3 + $0x40] sm:$0xff] %vm1386_vm8, %v1307_v63 }
 0x128   : > { %v1885_v3 = vpop.permute.xlu1 %1884  ;;  %v2005_v10 = vld [vmem:[#allocation3 + $0x30] sm:$0xff]  ;;  %938 = vrot.lane.b32.xlu0 %v12718_v17, %s12334_s9 }
 0x129   : > { %1974 = vst.msk [vmem:[#allocation3 + $0x38] sm:$0xff] %vm1966_vm11, %v1885_v3  ;;  %v2063_v4 = vsel %vm2043_vm12, %v2005_v10, 0 }
 0x12a   : > { %1129 = vrot.lane.b32.xlu1 %v1627_v50, %s12335_s10  ;;  %v12983_v6 = vand.u32 4294901760, %v2063_v4  ;;  %v541_v11 = vpop.permute.xlu0 %540 }
 0x12b   : > { %626 = vst.msk [vmem:[#allocation3 + $0x58] sm:$0xff] %vm614_vm4, %v541_v11 }
 0x12c   : > { %16936 = vst [vmem:[#allocation17_spill] sm:$0xff] %v12983_v6  ;;  %v732_v15 = vpop.permute.xlu1 %731  ;;  %v12986_v19 = vsub.f32 %v2063_v4, %v12983_v6  ;;  %1707 = vrot.lane.b32.xlu0 %v1628_v7, %s12338_s13 }
 0x12d   : > { %818 = vst.msk [vmem:[#allocation3 + $0x50] sm:$0xff] %vm807_vm5, %v732_v15  ;;  %v13022_v15 = vld [vmem:[#allocation2 + $0x150] sm:$0xff] }
 0x12e   : > { %16937 = vst [vmem:[#allocation18_spill] sm:$0xff] %v12986_v19  ;;  %1898 = vrot.lane.b32.xlu1 %v1820_v9, %s12339_s16  ;;  %v16500_v17 = vand.u32 4294901760, %v12986_v19  ;;  %v1309_v21 = vpop.permute.xlu0 %1308  ;;  %450 = vst.msk [vmem:[#allocation3 + $0xe0] sm:$0xff] %vm279_vm0, %v13022_v15 }
 0x12f   : > { %1396 = vst.msk [vmem:[#allocation3 + $0x48] sm:$0xff] %vm1386_vm8, %v1309_v21  ;;  %v352_v21 = vld [vmem:[%s12489_s29 + $0xd8] sm:$0xff] }
 0x130   : > { %v1501_v23 = vpop.permute.xlu1 %1500  ;;  %v2277_v25 = vsub.f32 %v12986_v19, %v16500_v17  ;;  %v2006_v28 = vld [vmem:[#allocation3 + $0x38] sm:$0xff]  ;;  %554 = vrot.lane.b32.xlu0 %v1627_v50, %s12333_s8  ;;  %385 = vst.msk [vmem:[#allocation2 + $0x159] sm:$0xff] %vm279_vm0, %v352_v21 }
 0x131   : > { %1589 = vst.msk [vmem:[#allocation3 + $0x40] sm:$0xff] %vm1580_vm9, %v1501_v23  ;;  %v2066_v29 = vsel %vm2043_vm12, %v2006_v28, 0  ;;  %v1629_v23 = vld [vmem:[#allocation2 + $0xf1] sm:$0xff] }
 0x132   : > { %1131 = vrot.lane.b32.xlu1 %v1628_v7, %s12335_s10  ;;  %v2278_v30 = vand.u32 4294901760, %v2277_v25  ;;  %v13001_v31 = vand.u32 4294901760, %v2066_v29  ;;  %v734_v49 = vpop.permute.xlu0 %733 }
 0x133   : > { %819 = vst.msk [vmem:[#allocation3 + $0x58] sm:$0xff] %vm807_vm5, %v734_v49 }
 0x134   : > { %16938 = vst [vmem:[#allocation19_spill] sm:$0xff] %v13001_v31  ;;  %v925_v53 = vpop.permute.xlu1 %924  ;;  %10525 = vmatprep.mubr.f32.mxu0 %v2278_v30  ;;  %v13004_v61 = vsub.f32 %v2066_v29, %v13001_v31  ;;  %1322 = vrot.lane.b32.xlu0 %v1820_v9, %s12336_s11 }
 0x135   : > { %1011 = vst.msk [vmem:[#allocation3 + $0x50] sm:$0xff] %vm1000_vm6, %v925_v53 }
 0x136   : > { %16939 = vst [vmem:[#allocation20_spill] sm:$0xff] %v13004_v61  ;;  %1900 = vrot.lane.b32.xlu1 %v1821_v32, %s12339_s16  ;;  %v16499_v50 = vand.u32 4294901760, %v13004_v61  ;;  %v1503_v33 = vpop.permute.xlu0 %1502 }
 0x137   : > { %1590 = vst.msk [vmem:[#allocation3 + $0x48] sm:$0xff] %vm1580_vm9, %v1503_v33  ;;  %v13038_v29 = vld [vmem:[#allocation2 + $0x158] sm:$0xff] }
 0x138   : > { %v1694_v63 = vpop.permute.xlu1 %1693  ;;  %v2287_v3 = vsub.f32 %v13004_v61, %v16499_v50  ;;  %556 = vrot.lane.b32.xlu0 %v1628_v7, %s12333_s8  ;;  %451 = vst.msk [vmem:[#allocation3 + $0xe8] sm:$0xff] %vm279_vm0, %v13038_v29  ;;  %v1822_v33 = vld [vmem:[#allocation2 + $0xf2] sm:$0xff]  ;;  %v1831_v16 = vld [vmem:[#allocation2 + $0x15a] sm:$0xff] }
 0x139   : > { %1782 = vst.msk [vmem:[#allocation3 + $0x40] sm:$0xff] %vm1773_vm10, %v1694_v63 }
 0x13a   : > { %747 = vrot.lane.b32.xlu1 %v1820_v9, %s12332_s30  ;;  %v2288_v10 = vand.u32 4294901760, %v2287_v3  ;;  %v927_v4 = vpop.permute.xlu0 %926 }
 0x13b   : > { %1012 = vst.msk [vmem:[#allocation3 + $0x58] sm:$0xff] %vm1000_vm6, %v927_v4 }
 0x13c   : > { %v1118_v11 = vpop.permute.xlu1 %1117  ;;  %10526 = vmatmul.mubr.f32.gmra.mrb[6].mxu0 %v2288_v10  ;;  %1324 = vrot.lane.b32.xlu0 %v1821_v32, %s12336_s11 }
 0x13d   : > { %1204 = vst.msk [vmem:[#allocation3 + $0x50] sm:$0xff] %vm1193_vm7, %v1118_v11 }
 0x13e   : > { %1516 = vrot.lane.b32.xlu1 %v12750_v36, %s12337_s12  ;;  %v1696_v7 = vpop.permute.xlu0 %1695 }
 0x13f   : > { %1783 = vst.msk [vmem:[#allocation3 + $0x48] sm:$0xff] %vm1773_vm10, %v1696_v7 }
 0x140   : > { %v1887_v9 = vpop.permute.xlu1 %1886  ;;  %749 = vrot.lane.b32.xlu0 %v1821_v32, %s12332_s30 }
 0x141   : > { %1975 = vst.msk [vmem:[#allocation3 + $0x40] sm:$0xff] %vm1966_vm11, %v1887_v9 }
 0x142   : > { %940 = vrot.lane.b32.xlu1 %v12750_v36, %s12334_s9  ;;  %v543_v25 = vpop.permute.xlu0 %542 }
 0x143   : > { %627 = vst.msk [vmem:[#allocation3 + $0x60] sm:$0xff] %vm614_vm4, %v543_v25 }
 0x144   : > { %v1120_v28 = vpop.permute.xlu1 %1119  ;;  %1518 = vrot.lane.b32.xlu0 %v12766_v57, %s12337_s12 }
 0x145   : > { %1205 = vst.msk [vmem:[#allocation3 + $0x58] sm:$0xff] %vm1193_vm7, %v1120_v28 }
 0x146   : > { %1709 = vrot.lane.b32.xlu1 %v1629_v23, %s12338_s13  ;;  %v1311_v30 = vpop.permute.xlu0 %1310 }
 0x147   : > { %1397 = vst.msk [vmem:[#allocation3 + $0x50] sm:$0xff] %vm1386_vm8, %v1311_v30  ;;  %v1823_v30 = vld [vmem:[#allocation2 + $0xfa] sm:$0xff] }
 0x148   : > { %v1889_v32 = vpop.permute.xlu1 %1888  ;;  %v2007_v36 = vld [vmem:[#allocation3 + $0x40] sm:$0xff]  ;;  %942 = vrot.lane.b32.xlu0 %v12766_v57, %s12334_s9 }
 0x149   : > { %1976 = vst.msk [vmem:[#allocation3 + $0x48] sm:$0xff] %vm1966_vm11, %v1889_v32  ;;  %v2069_v49 = vsel %vm2043_vm12, %v2007_v36, 0 }
 0x14a   : > { %1133 = vrot.lane.b32.xlu1 %v1629_v23, %s12335_s10  ;;  %v13051_v53 = vand.u32 4294901760, %v2069_v49  ;;  %v545_v63 = vpop.permute.xlu0 %544 }
 0x14b   : > { %628 = vst.msk [vmem:[#allocation3 + $0x68] sm:$0xff] %vm614_vm4, %v545_v63  ;;  %v353_v63 = vld [vmem:[%s12489_s29 + $0xe0] sm:$0xff] }
 0x14c   : > { %16940 = vst [vmem:[#allocation21_spill] sm:$0xff] %v13051_v53  ;;  %v736_v3 = vpop.permute.xlu1 %735  ;;  %v13054_v10 = vsub.f32 %v2069_v49, %v13051_v53  ;;  %1711 = vrot.lane.b32.xlu0 %v1630_v58, %s12338_s13  ;;  %386 = vst.msk [vmem:[#allocation2 + $0x169] sm:$0xff] %vm279_vm0, %v353_v63 }
 0x14d   : > { %820 = vst.msk [vmem:[#allocation3 + $0x60] sm:$0xff] %vm807_vm5, %v736_v3 }
 0x14e   : > { %16941 = vst [vmem:[#allocation22_spill] sm:$0xff] %v13054_v10  ;;  %1902 = vrot.lane.b32.xlu1 %v1822_v33, %s12339_s16  ;;  %v16496_v57 = vand.u32 4294901760, %v13054_v10  ;;  %v1313_v4 = vpop.permute.xlu0 %1312 }
 0x14f   : > { %1398 = vst.msk [vmem:[#allocation3 + $0x58] sm:$0xff] %vm1386_vm8, %v1313_v4 }
 0x150   : > { %v1505_v11 = vpop.permute.xlu1 %1504  ;;  %v2297_v21 = vsub.f32 %v13054_v10, %v16496_v57  ;;  %v2008_v7 = vld [vmem:[#allocation3 + $0x48] sm:$0xff]  ;;  %558 = vrot.lane.b32.xlu0 %v1629_v23, %s12333_s8 }
 0x151   : > { %1591 = vst.msk [vmem:[#allocation3 + $0x50] sm:$0xff] %vm1580_vm9, %v1505_v11  ;;  %v2072_v9 = vsel %vm2043_vm12, %v2008_v7, 0 }
 0x152   : > { %1135 = vrot.lane.b32.xlu1 %v1630_v58, %s12335_s10  ;;  %v2298_v25 = vand.u32 4294901760, %v2297_v21  ;;  %v13069_v28 = vand.u32 4294901760, %v2072_v9  ;;  %v738_v32 = vpop.permute.xlu0 %737 }
 0x153   : > { %821 = vst.msk [vmem:[#allocation3 + $0x68] sm:$0xff] %vm807_vm5, %v738_v32  ;;  %v354_v32 = vld [vmem:[%s12489_s29 + $0xe8] sm:$0xff] }
 0x154   : > { %16942 = vst [vmem:[#allocation23_spill] sm:$0xff] %v13069_v28  ;;  %v929_v36 = vpop.permute.xlu1 %928  ;;  %10528 = vmatprep.mubr.f32.mxu0 %v2298_v25  ;;  %v13072_v49 = vsub.f32 %v2072_v9, %v13069_v28  ;;  %1326 = vrot.lane.b32.xlu0 %v1822_v33, %s12336_s11  ;;  %v13090_v25 = vld [vmem:[#allocation2 + $0x168] sm:$0xff]  ;;  %387 = vst.msk [vmem:[#allocation2 + $0x171] sm:$0xff] %vm279_vm0, %v354_v32 }
 0x155   : > { %1013 = vst.msk [vmem:[#allocation3 + $0x60] sm:$0xff] %vm1000_vm6, %v929_v36  ;;  %v1631_v36 = vld [vmem:[#allocation2 + $0x109] sm:$0xff] }
 0x156   : > { %16943 = vst [vmem:[#allocation24_spill] sm:$0xff] %v13072_v49  ;;  %1904 = vrot.lane.b32.xlu1 %v1823_v30, %s12339_s16  ;;  %v16495_v23 = vand.u32 4294901760, %v13072_v49  ;;  %v1507_v3 = vpop.permute.xlu0 %1506  ;;  %452 = vst.msk [vmem:[#allocation3 + $0xf0] sm:$0xff] %vm279_vm0, %v13090_v25  ;;  %v1824_v32 = vld [vmem:[#allocation2 + $0x10a] sm:$0xff] }
 0x157   : > { %1592 = vst.msk [vmem:[#allocation3 + $0x58] sm:$0xff] %vm1580_vm9, %v1507_v3 }
 0x158   : > { %v1698_v4 = vpop.permute.xlu1 %1697  ;;  %v2307_v11 = vsub.f32 %v13072_v49, %v16495_v23  ;;  %560 = vrot.lane.b32.xlu0 %v1630_v58, %s12333_s8 }
 0x159   : > { %1784 = vst.msk [vmem:[#allocation3 + $0x50] sm:$0xff] %vm1773_vm10, %v1698_v4 }
 0x15a   : > { %751 = vrot.lane.b32.xlu1 %v1822_v33, %s12332_s30  ;;  %v2308_v21 = vand.u32 4294901760, %v2307_v11  ;;  %v931_v7 = vpop.permute.xlu0 %930 }
 0x15b   : > { %1014 = vst.msk [vmem:[#allocation3 + $0x68] sm:$0xff] %vm1000_vm6, %v931_v7  ;;  %v13106_v4 = vld [vmem:[#allocation2 + $0x170] sm:$0xff] }
 0x15c   : > { %v1122_v9 = vpop.permute.xlu1 %1121  ;;  %10529 = vmatmul.mubr.f32.gmra.mrb[8].mxu0 %v2308_v21  ;;  %1328 = vrot.lane.b32.xlu0 %v1823_v30, %s12336_s11  ;;  %453 = vst.msk [vmem:[#allocation3 + $0xf8] sm:$0xff] %vm279_vm0, %v13106_v4  ;;  %v1833_v45 = vld [vmem:[#allocation2 + $0x172] sm:$0xff] }
 0x15d   : > { %1206 = vst.msk [vmem:[#allocation3 + $0x60] sm:$0xff] %vm1193_vm7, %v1122_v9  ;;  %v1632_v9 = vld [vmem:[#allocation2 + $0x111] sm:$0xff] }
 0x15e   : > { %1520 = vrot.lane.b32.xlu1 %v12818_v27, %s12337_s12  ;;  %v1700_v58 = vpop.permute.xlu0 %1699 }
 0x15f   : > { %1785 = vst.msk [vmem:[#allocation3 + $0x58] sm:$0xff] %vm1773_vm10, %v1700_v58 }
 0x160   : > { %v1891_v33 = vpop.permute.xlu1 %1890  ;;  %753 = vrot.lane.b32.xlu0 %v1823_v30, %s12332_s30 }
 0x161   : > { %1977 = vst.msk [vmem:[#allocation3 + $0x50] sm:$0xff] %vm1966_vm11, %v1891_v33 }
 0x162   : > { %944 = vrot.lane.b32.xlu1 %v12818_v27, %s12334_s9  ;;  %v547_v63 = vpop.permute.xlu0 %546 }
 0x163   : > { %629 = vst.msk [vmem:[#allocation3 + $0x70] sm:$0xff] %vm614_vm4, %v547_v63 }
 0x164   : > { %v1124_v3 = vpop.permute.xlu1 %1123  ;;  %1522 = vrot.lane.b32.xlu0 %v12834_v37, %s12337_s12 }
 0x165   : > { %1207 = vst.msk [vmem:[#allocation3 + $0x68] sm:$0xff] %vm1193_vm7, %v1124_v3 }
 0x166   : > { %1713 = vrot.lane.b32.xlu1 %v1631_v36, %s12338_s13  ;;  %v1315_v30 = vpop.permute.xlu0 %1314 }
 0x167   : > { %1399 = vst.msk [vmem:[#allocation3 + $0x60] sm:$0xff] %vm1386_vm8, %v1315_v30 }
 0x168   : > { %v1893_v11 = vpop.permute.xlu1 %1892  ;;  %v2009_v27 = vld [vmem:[#allocation3 + $0x50] sm:$0xff]  ;;  %946 = vrot.lane.b32.xlu0 %v12834_v37, %s12334_s9 }
 0x169   : > { %1978 = vst.msk [vmem:[#allocation3 + $0x58] sm:$0xff] %vm1966_vm11, %v1893_v11  ;;  %v2075_v21 = vsel %vm2043_vm12, %v2009_v27, 0 }
 0x16a   : > { %1137 = vrot.lane.b32.xlu1 %v1631_v36, %s12335_s10  ;;  %v13119_v7 = vand.u32 4294901760, %v2075_v21  ;;  %v549_v58 = vpop.permute.xlu0 %548 }
 0x16b   : > { %630 = vst.msk [vmem:[#allocation3 + $0x78] sm:$0xff] %vm614_vm4, %v549_v58 }
 0x16c   : > { %16944 = vst [vmem:[#allocation25_spill] sm:$0xff] %v13119_v7  ;;  %v740_v33 = vpop.permute.xlu1 %739  ;;  %v13122_v63 = vsub.f32 %v2075_v21, %v13119_v7  ;;  %1715 = vrot.lane.b32.xlu0 %v1632_v9, %s12338_s13 }
 0x16d   : > { %822 = vst.msk [vmem:[#allocation3 + $0x70] sm:$0xff] %vm807_vm5, %v740_v33 }
 0x16e   : > { %16945 = vst [vmem:[#allocation26_spill] sm:$0xff] %v13122_v63  ;;  %1906 = vrot.lane.b32.xlu1 %v1824_v32, %s12339_s16  ;;  %v16497_v37 = vand.u32 4294901760, %v13122_v63  ;;  %v1317_v3 = vpop.permute.xlu0 %1316 }
 0x16f   : > { %1400 = vst.msk [vmem:[#allocation3 + $0x68] sm:$0xff] %vm1386_vm8, %v1317_v3  ;;  %v355_v3 = vld [vmem:[%s12489_s29 + $0xf0] sm:$0xff] }
 0x170   : > { %v1509_v30 = vpop.permute.xlu1 %1508  ;;  %v2317_v11 = vsub.f32 %v13122_v63, %v16497_v37  ;;  %v2010_v27 = vld [vmem:[#allocation3 + $0x58] sm:$0xff]  ;;  %562 = vrot.lane.b32.xlu0 %v1631_v36, %s12333_s8  ;;  %388 = vst.msk [vmem:[#allocation2 + $0x181] sm:$0xff] %vm279_vm0, %v355_v3 }
 0x171   : > { %1593 = vst.msk [vmem:[#allocation3 + $0x60] sm:$0xff] %vm1580_vm9, %v1509_v30  ;;  %v2078_v21 = vsel %vm2043_vm12, %v2010_v27, 0 }
 0x172   : > { %1139 = vrot.lane.b32.xlu1 %v1632_v9, %s12335_s10  ;;  %v2318_v58 = vand.u32 4294901760, %v2317_v11  ;;  %v13137_v33 = vand.u32 4294901760, %v2078_v21  ;;  %v742_v23 = vpop.permute.xlu0 %741 }
 0x173   : > { %823 = vst.msk [vmem:[#allocation3 + $0x78] sm:$0xff] %vm807_vm5, %v742_v23 }
 0x174   : > { %16946 = vst [vmem:[#allocation27_spill] sm:$0xff] %v13137_v33  ;;  %v933_v57 = vpop.permute.xlu1 %932  ;;  %10531 = vmatprep.mubr.f32.mxu0 %v2318_v58  ;;  %v13140_v37 = vsub.f32 %v2078_v21, %v13137_v33  ;;  %1330 = vrot.lane.b32.xlu0 %v1824_v32, %s12336_s11  ;;  %v356_v58 = vld [vmem:[%s12489_s29 + $0xf8] sm:$0xff] }
 0x175   : > { %1015 = vst.msk [vmem:[#allocation3 + $0x70] sm:$0xff] %vm1000_vm6, %v933_v57 }
 0x176   : > { %16947 = vst [vmem:[#allocation28_spill] sm:$0xff] %v13140_v37  ;;  %1908 = vrot.lane.b32.xlu1 %v1825_v0, %s12339_s16  ;;  %v16498_v36 = vand.u32 4294901760, %v13140_v37  ;;  %v1511_v30 = vpop.permute.xlu0 %1510  ;;  %389 = vst.msk [vmem:[#allocation2 + $0x189] sm:$0xff] %vm279_vm0, %v356_v58  ;;  %v1826_v58 = vld [vmem:[#allocation2 + $0x122] sm:$0xff] }
 0x177   : > { %1594 = vst.msk [vmem:[#allocation3 + $0x68] sm:$0xff] %vm1580_vm9, %v1511_v30 }
 0x178   : > { %v1702_v11 = vpop.permute.xlu1 %1701  ;;  %v2327_v27 = vsub.f32 %v13140_v37, %v16498_v36  ;;  %564 = vrot.lane.b32.xlu0 %v1632_v9, %s12333_s8  ;;  %v1827_v36 = vld [vmem:[#allocation2 + $0x12a] sm:$0xff] }
 0x179   : > { %1786 = vst.msk [vmem:[#allocation3 + $0x60] sm:$0xff] %vm1773_vm10, %v1702_v11 }
 0x17a   : > { %755 = vrot.lane.b32.xlu1 %v1824_v32, %s12332_s30  ;;  %v2328_v57 = vand.u32 4294901760, %v2327_v27  ;;  %v935_v23 = vpop.permute.xlu0 %934  ;;  %v1633_v32 = vld [vmem:[#allocation2 + $0x121] sm:$0xff] }
 0x17b   : > { %1016 = vst.msk [vmem:[#allocation3 + $0x78] sm:$0xff] %vm1000_vm6, %v935_v23 }
 0x17c   : > { %v1126_v21 = vpop.permute.xlu1 %1125  ;;  %10532 = vmatmul.mubr.f32.gmra.mrb[10].mxu0 %v2328_v57  ;;  %1332 = vrot.lane.b32.xlu0 %v1825_v0, %s12336_s11 }
 0x17d   : > { %1208 = vst.msk [vmem:[#allocation3 + $0x70] sm:$0xff] %vm1193_vm7, %v1126_v21  ;;  %v1634_v21 = vld [vmem:[#allocation2 + $0x129] sm:$0xff] }
 0x17e   : > { %1524 = vrot.lane.b32.xlu1 %v12886_v26, %s12337_s12  ;;  %v1704_v3 = vpop.permute.xlu0 %1703 }
 0x17f   : > { %1787 = vst.msk [vmem:[#allocation3 + $0x68] sm:$0xff] %vm1773_vm10, %v1704_v3 }
 0x180   : > { %v1895_v9 = vpop.permute.xlu1 %1894  ;;  %757 = vrot.lane.b32.xlu0 %v1825_v0, %s12332_s30 }
 0x181   : > { %1979 = vst.msk [vmem:[#allocation3 + $0x60] sm:$0xff] %vm1966_vm11, %v1895_v9 }
 0x182   : > { %948 = vrot.lane.b32.xlu1 %v12886_v26, %s12334_s9  ;;  %v551_v30 = vpop.permute.xlu0 %550 }
 0x183   : > { %631 = vst.msk [vmem:[#allocation3 + $0x80] sm:$0xff] %vm614_vm4, %v551_v30 }
 0x184   : > { %v1128_v11 = vpop.permute.xlu1 %1127  ;;  %1526 = vrot.lane.b32.xlu0 %v12902_v47, %s12337_s12 }
 0x185   : > { %1209 = vst.msk [vmem:[#allocation3 + $0x78] sm:$0xff] %vm1193_vm7, %v1128_v11 }
 0x186   : > { %1717 = vrot.lane.b32.xlu1 %v1633_v32, %s12338_s13  ;;  %v1319_v27 = vpop.permute.xlu0 %1318 }
 0x187   : > { %1401 = vst.msk [vmem:[#allocation3 + $0x70] sm:$0xff] %vm1386_vm8, %v1319_v27 }
 0x188   : > { %v1897_v57 = vpop.permute.xlu1 %1896  ;;  %v2011_v23 = vld [vmem:[#allocation3 + $0x60] sm:$0xff]  ;;  %950 = vrot.lane.b32.xlu0 %v12902_v47, %s12334_s9 }
 0x189   : > { %1980 = vst.msk [vmem:[#allocation3 + $0x68] sm:$0xff] %vm1966_vm11, %v1897_v57  ;;  %v2081_v0 = vsel %vm2043_vm12, %v2011_v23, 0 }
 0x18a   : > { %1141 = vrot.lane.b32.xlu1 %v1633_v32, %s12335_s10  ;;  %v13179_v26 = vand.u32 4294901760, %v2081_v0  ;;  %v553_v3 = vpop.permute.xlu0 %552 }
 0x18b   : > { %632 = vst.msk [vmem:[#allocation3 + $0x88] sm:$0xff] %vm614_vm4, %v553_v3 }
 0x18c   : > { %16948 = vst [vmem:[#allocation29_spill] sm:$0xff] %v13179_v26  ;;  %v744_v9 = vpop.permute.xlu1 %743  ;;  %v13182_v30 = vsub.f32 %v2081_v0, %v13179_v26  ;;  %1719 = vrot.lane.b32.xlu0 %v1634_v21, %s12338_s13 }
 0x18d   : > { %824 = vst.msk [vmem:[#allocation3 + $0x80] sm:$0xff] %vm807_vm5, %v744_v9 }
 0x18e   : > { %16949 = vst [vmem:[#allocation30_spill] sm:$0xff] %v13182_v30  ;;  %1910 = vrot.lane.b32.xlu1 %v1826_v58, %s12339_s16  ;;  %v16501_v47 = vand.u32 4294901760, %v13182_v30  ;;  %v1321_v11 = vpop.permute.xlu0 %1320 }
 0x18f   : > { %1402 = vst.msk [vmem:[#allocation3 + $0x78] sm:$0xff] %vm1386_vm8, %v1321_v11 }
 0x190   : > { %v1513_v27 = vpop.permute.xlu1 %1512  ;;  %v2337_v57 = vsub.f32 %v13182_v30, %v16501_v47  ;;  %v2012_v23 = vld [vmem:[#allocation3 + $0x68] sm:$0xff]  ;;  %566 = vrot.lane.b32.xlu0 %v1633_v32, %s12333_s8 }
 0x191   : > { %1595 = vst.msk [vmem:[#allocation3 + $0x70] sm:$0xff] %vm1580_vm9, %v1513_v27  ;;  %v2084_v0 = vsel %vm2043_vm12, %v2012_v23, 0 }
 0x192   : > { %1143 = vrot.lane.b32.xlu1 %v1634_v21, %s12335_s10  ;;  %v2338_v3 = vand.u32 4294901760, %v2337_v57  ;;  %v13197_v9 = vand.u32 4294901760, %v2084_v0  ;;  %v746_v50 = vpop.permute.xlu0 %745 }
 0x193   : > { %825 = vst.msk [vmem:[#allocation3 + $0x88] sm:$0xff] %vm807_vm5, %v746_v50 }
 0x194   : > { %16950 = vst [vmem:[#allocation31_spill] sm:$0xff] %v13197_v9  ;;  %v937_v17 = vpop.permute.xlu1 %936  ;;  %10534 = vmatprep.mubr.f32.mxu0 %v2338_v3  ;;  %v13200_v47 = vsub.f32 %v2084_v0, %v13197_v9  ;;  %1334 = vrot.lane.b32.xlu0 %v1826_v58, %s12336_s11 }
 0x195   : > { %1017 = vst.msk [vmem:[#allocation3 + $0x80] sm:$0xff] %vm1000_vm6, %v937_v17 }
 0x196   : > { %16951 = vst [vmem:[#allocation32_spill] sm:$0xff] %v13200_v47  ;;  %1912 = vrot.lane.b32.xlu1 %v1827_v36, %s12339_s16  ;;  %v16502_v32 = vand.u32 4294901760, %v13200_v47  ;;  %v1515_v11 = vpop.permute.xlu0 %1514 }
 0x197   : > { %1596 = vst.msk [vmem:[#allocation3 + $0x78] sm:$0xff] %vm1580_vm9, %v1515_v11 }
 0x198   : > { %v1706_v27 = vpop.permute.xlu1 %1705  ;;  %v2347_v57 = vsub.f32 %v13200_v47, %v16502_v32  ;;  %568 = vrot.lane.b32.xlu0 %v1634_v21, %s12333_s8  ;;  %v1635_v21 = vld [vmem:[#allocation2 + $0x139] sm:$0xff]  ;;  %v1829_v32 = vld [vmem:[#allocation2 + $0x142] sm:$0xff] }
 0x199   : > { %1788 = vst.msk [vmem:[#allocation3 + $0x70] sm:$0xff] %vm1773_vm10, %v1706_v27 }
 0x19a   : > { %759 = vrot.lane.b32.xlu1 %v1826_v58, %s12332_s30  ;;  %v2348_v17 = vand.u32 4294901760, %v2347_v57  ;;  %v939_v50 = vpop.permute.xlu0 %938 }
 0x19b   : > { %1018 = vst.msk [vmem:[#allocation3 + $0x88] sm:$0xff] %vm1000_vm6, %v939_v50  ;;  %v1636_v50 = vld [vmem:[#allocation2 + $0x141] sm:$0xff] }
 0x19c   : > { %v1130_v23 = vpop.permute.xlu1 %1129  ;;  %10535 = vmatmul.mubr.f32.gmra.mrb[12].mxu0 %v2348_v17  ;;  %1336 = vrot.lane.b32.xlu0 %v1827_v36, %s12336_s11 }
 0x19d   : > { %1210 = vst.msk [vmem:[#allocation3 + $0x80] sm:$0xff] %vm1193_vm7, %v1130_v23  ;;  %v1828_v23 = vld [vmem:[#allocation2 + $0x13a] sm:$0xff] }
 0x19e   : > { %1528 = vrot.lane.b32.xlu1 %v12954_v34, %s12337_s12  ;;  %v1708_v0 = vpop.permute.xlu0 %1707 }
 0x19f   : > { %1789 = vst.msk [vmem:[#allocation3 + $0x78] sm:$0xff] %vm1773_vm10, %v1708_v0 }
 0x1a0   : > { %v1899_v3 = vpop.permute.xlu1 %1898  ;;  %761 = vrot.lane.b32.xlu0 %v1827_v36, %s12332_s30 }
 0x1a1   : > { %1981 = vst.msk [vmem:[#allocation3 + $0x70] sm:$0xff] %vm1966_vm11, %v1899_v3 }
 0x1a2   : > { %952 = vrot.lane.b32.xlu1 %v12954_v34, %s12334_s9  ;;  %v555_v58 = vpop.permute.xlu0 %554 }
 0x1a3   : > { %633 = vst.msk [vmem:[#allocation3 + $0x90] sm:$0xff] %vm614_vm4, %v555_v58 }
 0x1a4   : > { %v1132_v11 = vpop.permute.xlu1 %1131  ;;  %1530 = vrot.lane.b32.xlu0 %v12970_v59, %s12337_s12 }
 0x1a5   : > { %1211 = vst.msk [vmem:[#allocation3 + $0x88] sm:$0xff] %vm1193_vm7, %v1132_v11 }
 0x1a6   : > { %1721 = vrot.lane.b32.xlu1 %v1635_v21, %s12338_s13  ;;  %v1323_v27 = vpop.permute.xlu0 %1322 }
 0x1a7   : > { %1403 = vst.msk [vmem:[#allocation3 + $0x80] sm:$0xff] %vm1386_vm8, %v1323_v27 }
 0x1a8   : > { %v1901_v57 = vpop.permute.xlu1 %1900  ;;  %v2013_v17 = vld [vmem:[#allocation3 + $0x70] sm:$0xff]  ;;  %954 = vrot.lane.b32.xlu0 %v12970_v59, %s12334_s9 }
 0x1a9   : > { %1982 = vst.msk [vmem:[#allocation3 + $0x78] sm:$0xff] %vm1966_vm11, %v1901_v57  ;;  %v2087_v34 = vsel %vm2043_vm12, %v2013_v17, 0 }
 0x1aa   : > { %1145 = vrot.lane.b32.xlu1 %v1635_v21, %s12335_s10  ;;  %v13235_v36 = vand.u32 4294901760, %v2087_v34  ;;  %v557_v0 = vpop.permute.xlu0 %556 }
 0x1ab   : > { %634 = vst.msk [vmem:[#allocation3 + $0x98] sm:$0xff] %vm614_vm4, %v557_v0 }
 0x1ac   : > { %16952 = vst [vmem:[#allocation33_spill] sm:$0xff] %v13235_v36  ;;  %v748_v3 = vpop.permute.xlu1 %747  ;;  %v13238_v58 = vsub.f32 %v2087_v34, %v13235_v36  ;;  %1723 = vrot.lane.b32.xlu0 %v1636_v50, %s12338_s13 }
 0x1ad   : > { %826 = vst.msk [vmem:[#allocation3 + $0x90] sm:$0xff] %vm807_vm5, %v748_v3 }
 0x1ae   : > { %16953 = vst [vmem:[#allocation34_spill] sm:$0xff] %v13238_v58  ;;  %1914 = vrot.lane.b32.xlu1 %v1828_v23, %s12339_s16  ;;  %v16505_v59 = vand.u32 4294901760, %v13238_v58  ;;  %v1325_v11 = vpop.permute.xlu0 %1324 }
 0x1af   : > { %1404 = vst.msk [vmem:[#allocation3 + $0x88] sm:$0xff] %vm1386_vm8, %v1325_v11 }
 0x1b0   : > { %v1517_v27 = vpop.permute.xlu1 %1516  ;;  %v2357_v57 = vsub.f32 %v13238_v58, %v16505_v59  ;;  %v2014_v17 = vld [vmem:[#allocation3 + $0x78] sm:$0xff]  ;;  %570 = vrot.lane.b32.xlu0 %v1635_v21, %s12333_s8 }
 0x1b1   : > { %1597 = vst.msk [vmem:[#allocation3 + $0x80] sm:$0xff] %vm1580_vm9, %v1517_v27  ;;  %v2090_v34 = vsel %vm2043_vm12, %v2014_v17, 0 }
 0x1b2   : > { %1147 = vrot.lane.b32.xlu1 %v1636_v50, %s12335_s10  ;;  %v2358_v0 = vand.u32 4294901760, %v2357_v57  ;;  %v13253_v3 = vand.u32 4294901760, %v2090_v34  ;;  %v750_v24 = vpop.permute.xlu0 %749 }
 0x1b3   : > { %827 = vst.msk [vmem:[#allocation3 + $0x98] sm:$0xff] %vm807_vm5, %v750_v24 }
 0x1b4   : > { %16954 = vst [vmem:[#allocation35_spill] sm:$0xff] %v13253_v3  ;;  %v941_v1 = vpop.permute.xlu1 %940  ;;  %10537 = vmatprep.mubr.f32.mxu0 %v2358_v0  ;;  %v13256_v59 = vsub.f32 %v2090_v34, %v13253_v3  ;;  %1338 = vrot.lane.b32.xlu0 %v1828_v23, %s12336_s11 }
 0x1b5   : > { %1019 = vst.msk [vmem:[#allocation3 + $0x90] sm:$0xff] %vm1000_vm6, %v941_v1 }
 0x1b6   : > { %16955 = vst [vmem:[#allocation36_spill] sm:$0xff] %v13256_v59  ;;  %1916 = vrot.lane.b32.xlu1 %v1829_v32, %s12339_s16  ;;  %v16506_v21 = vand.u32 4294901760, %v13256_v59  ;;  %v1519_v11 = vpop.permute.xlu0 %1518 }
 0x1b7   : > { %1598 = vst.msk [vmem:[#allocation3 + $0x88] sm:$0xff] %vm1580_vm9, %v1519_v11 }
 0x1b8   : > { %v1710_v27 = vpop.permute.xlu1 %1709  ;;  %v2367_v57 = vsub.f32 %v13256_v59, %v16506_v21  ;;  %572 = vrot.lane.b32.xlu0 %v1636_v50, %s12333_s8  ;;  %v1637_v50 = vld [vmem:[#allocation2 + $0x151] sm:$0xff] }
 0x1b9   : > { %1790 = vst.msk [vmem:[#allocation3 + $0x80] sm:$0xff] %vm1773_vm10, %v1710_v27 }
 0x1ba   : > { %763 = vrot.lane.b32.xlu1 %v1828_v23, %s12332_s30  ;;  %v2368_v1 = vand.u32 4294901760, %v2367_v57  ;;  %v943_v24 = vpop.permute.xlu0 %942 }
 0x1bb   : > { %1020 = vst.msk [vmem:[#allocation3 + $0x98] sm:$0xff] %vm1000_vm6, %v943_v24  ;;  %v1638_v24 = vld [vmem:[#allocation2 + $0x159] sm:$0xff] }
 0x1bc   : > { %v1134_v17 = vpop.permute.xlu1 %1133  ;;  %10538 = vmatmul.mubr.f32.gmra.mrb[14].mxu0 %v2368_v1  ;;  %1340 = vrot.lane.b32.xlu0 %v1829_v32, %s12336_s11 }
 0x1bd   : > { %1212 = vst.msk [vmem:[#allocation3 + $0x90] sm:$0xff] %vm1193_vm7, %v1134_v17  ;;  %v1830_v17 = vld [vmem:[#allocation2 + $0x152] sm:$0xff] }
 0x1be   : > { %1532 = vrot.lane.b32.xlu1 %v13022_v15, %s12337_s12  ;;  %v1712_v34 = vpop.permute.xlu0 %1711 }
 0x1bf   : > { %1791 = vst.msk [vmem:[#allocation3 + $0x88] sm:$0xff] %vm1773_vm10, %v1712_v34 }
 0x1c0   : > { %v1903_v0 = vpop.permute.xlu1 %1902  ;;  %765 = vrot.lane.b32.xlu0 %v1829_v32, %s12332_s30 }
 0x1c1   : > { %1983 = vst.msk [vmem:[#allocation3 + $0x80] sm:$0xff] %vm1966_vm11, %v1903_v0 }
 0x1c2   : > { %956 = vrot.lane.b32.xlu1 %v13022_v15, %s12334_s9  ;;  %v559_v23 = vpop.permute.xlu0 %558 }
 0x1c3   : > { %635 = vst.msk [vmem:[#allocation3 + $0xa0] sm:$0xff] %vm614_vm4, %v559_v23 }
 0x1c4   : > { %v1136_v11 = vpop.permute.xlu1 %1135  ;;  %1534 = vrot.lane.b32.xlu0 %v13038_v29, %s12337_s12 }
 0x1c5   : > { %1213 = vst.msk [vmem:[#allocation3 + $0x98] sm:$0xff] %vm1193_vm7, %v1136_v11 }
 0x1c6   : > { %1725 = vrot.lane.b32.xlu1 %v1637_v50, %s12338_s13  ;;  %v1327_v27 = vpop.permute.xlu0 %1326 }
 0x1c7   : > { %1405 = vst.msk [vmem:[#allocation3 + $0x90] sm:$0xff] %vm1386_vm8, %v1327_v27 }
 0x1c8   : > { %v1905_v57 = vpop.permute.xlu1 %1904  ;;  %v13285_v1 = vld [vmem:[#allocation3 + $0x80] sm:$0xff]  ;;  %958 = vrot.lane.b32.xlu0 %v13038_v29, %s12334_s9 }
 0x1c9   : > { %1984 = vst.msk [vmem:[#allocation3 + $0x88] sm:$0xff] %vm1966_vm11, %v1905_v57  ;;  %v2093_v15 = vsel %vm2043_vm12, %v13285_v1, 0 }
 0x1ca   : > { %1149 = vrot.lane.b32.xlu1 %v1637_v50, %s12335_s10  ;;  %v13294_v32 = vand.u32 4294901760, %v2093_v15  ;;  %v561_v34 = vpop.permute.xlu0 %560 }
 0x1cb   : > { %636 = vst.msk [vmem:[#allocation3 + $0xa8] sm:$0xff] %vm614_vm4, %v561_v34 }
 0x1cc   : > { %16956 = vst [vmem:[#allocation37_spill] sm:$0xff] %v13294_v32  ;;  %v752_v0 = vpop.permute.xlu1 %751  ;;  %v13297_v23 = vsub.f32 %v2093_v15, %v13294_v32  ;;  %1727 = vrot.lane.b32.xlu0 %v1638_v24, %s12338_s13 }
 0x1cd   : > { %828 = vst.msk [vmem:[#allocation3 + $0xa0] sm:$0xff] %vm807_vm5, %v752_v0 }
 0x1ce   : > { %16957 = vst [vmem:[#allocation38_spill] sm:$0xff] %v13297_v23  ;;  %1918 = vrot.lane.b32.xlu1 %v1830_v17, %s12339_s16  ;;  %v16510_v29 = vand.u32 4294901760, %v13297_v23  ;;  %v1329_v11 = vpop.permute.xlu0 %1328 }
 0x1cf   : > { %1406 = vst.msk [vmem:[#allocation3 + $0x98] sm:$0xff] %vm1386_vm8, %v1329_v11 }
 0x1d0   : > { %v1521_v27 = vpop.permute.xlu1 %1520  ;;  %v2377_v57 = vsub.f32 %v13297_v23, %v16510_v29  ;;  %v13307_v21 = vld [vmem:[#allocation3 + $0x88] sm:$0xff]  ;;  %574 = vrot.lane.b32.xlu0 %v1637_v50, %s12333_s8 }
 0x1d1   : > { %1599 = vst.msk [vmem:[#allocation3 + $0x90] sm:$0xff] %vm1580_vm9, %v1521_v27  ;;  %v2096_v15 = vsel %vm2043_vm12, %v13307_v21, 0 }
 0x1d2   : > { %1151 = vrot.lane.b32.xlu1 %v1638_v24, %s12335_s10  ;;  %v2378_v34 = vand.u32 4294901760, %v2377_v57  ;;  %v13315_v0 = vand.u32 4294901760, %v2096_v15  ;;  %v754_v56 = vpop.permute.xlu0 %753 }
 0x1d3   : > { %829 = vst.msk [vmem:[#allocation3 + $0xa8] sm:$0xff] %vm807_vm5, %v754_v56 }
 0x1d4   : > { %16958 = vst [vmem:[#allocation39_spill] sm:$0xff] %v13315_v0  ;;  %v945_v20 = vpop.permute.xlu1 %944  ;;  %10540 = vmatprep.mubr.f32.mxu0 %v2378_v34  ;;  %v13318_v29 = vsub.f32 %v2096_v15, %v13315_v0  ;;  %1342 = vrot.lane.b32.xlu0 %v1830_v17, %s12336_s11 }
 0x1d5   : > { %1021 = vst.msk [vmem:[#allocation3 + $0xa0] sm:$0xff] %vm1000_vm6, %v945_v20 }
 0x1d6   : > { %16959 = vst [vmem:[#allocation40_spill] sm:$0xff] %v13318_v29  ;;  %1920 = vrot.lane.b32.xlu1 %v1831_v16, %s12339_s16  ;;  %v16511_v50 = vand.u32 4294901760, %v13318_v29  ;;  %v1523_v11 = vpop.permute.xlu0 %1522 }
 0x1d7   : > { %1600 = vst.msk [vmem:[#allocation3 + $0x98] sm:$0xff] %vm1580_vm9, %v1523_v11 }
 0x1d8   : > { %v1714_v27 = vpop.permute.xlu1 %1713  ;;  %v2387_v57 = vsub.f32 %v13318_v29, %v16511_v50  ;;  %576 = vrot.lane.b32.xlu0 %v1638_v24, %s12333_s8  ;;  %v1639_v24 = vld [vmem:[#allocation2 + $0x169] sm:$0xff] }
 0x1d9   : > { %1792 = vst.msk [vmem:[#allocation3 + $0x90] sm:$0xff] %vm1773_vm10, %v1714_v27 }
 0x1da   : > { %767 = vrot.lane.b32.xlu1 %v1830_v17, %s12332_s30  ;;  %v2388_v20 = vand.u32 4294901760, %v2387_v57  ;;  %v947_v56 = vpop.permute.xlu0 %946 }
 0x1db   : > { %1022 = vst.msk [vmem:[#allocation3 + $0xa8] sm:$0xff] %vm1000_vm6, %v947_v56 }
 0x1dc   : > { %v1138_v15 = vpop.permute.xlu1 %1137  ;;  %10541 = vmatmul.mubr.f32.gmra.mrb[16].mxu0 %v2388_v20  ;;  %1344 = vrot.lane.b32.xlu0 %v1831_v16, %s12336_s11 }
 0x1dd   : > { %1214 = vst.msk [vmem:[#allocation3 + $0xa0] sm:$0xff] %vm1193_vm7, %v1138_v15 }
 0x1de   : > { %1536 = vrot.lane.b32.xlu1 %v13090_v25, %s12337_s12  ;;  %v1716_v34 = vpop.permute.xlu0 %1715 }
 0x1df   : > { %1793 = vst.msk [vmem:[#allocation3 + $0x98] sm:$0xff] %vm1773_vm10, %v1716_v34  ;;  %v12295_v34 = vld [vmem:[%s16488_s3 + $0x8] sm:$0xff] }
 0x1e0   : > { %v1907_v11 = vpop.permute.xlu1 %1906  ;;  %769 = vrot.lane.b32.xlu0 %v1831_v16, %s12332_s30 }
 0x1e1   : > { %1985 = vst.msk [vmem:[#allocation3 + $0x90] sm:$0xff] %vm1966_vm11, %v1907_v11  ;;  %v13365_v11 = vsub.f32 %v12295_v34, %v2148_v41 }
 0x1e2   : > { %960 = vrot.lane.b32.xlu1 %v13090_v25, %s12334_s9  ;;  %v563_v17 = vpop.permute.xlu0 %562  ;;  %v12294_v25 = vld [vmem:[%s16488_s3] sm:$0xff] }
 0x1e3   : > { %637 = vst.msk [vmem:[#allocation3 + $0xb0] sm:$0xff] %vm614_vm4, %v563_v17  ;;  %v13358_v15 = vsub.f32 %v12294_v25, %v2145_v40  ;;  %16961 = vst [vmem:[#allocation42_spill] sm:$0xff] %v13365_v11  ;;  %v16514_v40 = vand.u32 4294901760, %v13365_v11 }
 0x1e4   : > { %v1140_v27 = vpop.permute.xlu1 %1139  ;;  %1538 = vrot.lane.b32.xlu0 %v13106_v4, %s12337_s12 }
 0x1e5   : > { %1215 = vst.msk [vmem:[#allocation3 + $0xa8] sm:$0xff] %vm1193_vm7, %v1140_v27  ;;  %16960 = vst [vmem:[#allocation41_spill] sm:$0xff] %v13358_v15  ;;  %v1640_v27 = vld [vmem:[#allocation2 + $0x171] sm:$0xff]  ;;  %v16515_v38 = vand.u32 4294901760, %v13358_v15  ;;  %v2545_v41 = vsub.f32 %v13365_v11, %v16514_v40 }
 0x1e6   : > { %1729 = vrot.lane.b32.xlu1 %v1639_v24, %s12338_s13  ;;  %v1331_v57 = vpop.permute.xlu0 %1330 }
 0x1e7   : > { %1407 = vst.msk [vmem:[#allocation3 + $0xa0] sm:$0xff] %vm1386_vm8, %v1331_v57  ;;  %v1832_v57 = vld [vmem:[#allocation2 + $0x16a] sm:$0xff]  ;;  %v2538_v39 = vsub.f32 %v13358_v15, %v16515_v38  ;;  %v2546_v34 = vand.u32 4294901760, %v2545_v41 }
 0x1e8   : > { %v1909_v20 = vpop.permute.xlu1 %1908  ;;  %v13347_v56 = vld [vmem:[#allocation3 + $0x90] sm:$0xff]  ;;  %962 = vrot.lane.b32.xlu0 %v13106_v4, %s12334_s9 }
 0x1e9   : > { %1986 = vst.msk [vmem:[#allocation3 + $0x98] sm:$0xff] %vm1966_vm11, %v1909_v20  ;;  %v2099_v16 = vsel %vm2043_vm12, %v13347_v56, 0 }
 0x1ea   : > { %1153 = vrot.lane.b32.xlu1 %v1639_v24, %s12335_s10  ;;  %v13370_v17 = vand.u32 4294901760, %v2099_v16  ;;  %v565_v20 = vpop.permute.xlu0 %564 }
 0x1eb   : > { %638 = vst.msk [vmem:[#allocation3 + $0xb8] sm:$0xff] %vm614_vm4, %v565_v20 }
 0x1ec   : > { %16962 = vst [vmem:[#allocation43_spill] sm:$0xff] %v13370_v17  ;;  %v756_v25 = vpop.permute.xlu1 %755  ;;  %v13375_v50 = vsub.f32 %v2099_v16, %v13370_v17  ;;  %1731 = vrot.lane.b32.xlu0 %v1640_v27, %s12338_s13  ;;  %v2539_v16 = vand.u32 4294901760, %v2538_v39 }
 0x1ed   : > { %830 = vst.msk [vmem:[#allocation3 + $0xb0] sm:$0xff] %vm807_vm5, %v756_v25 }
 0x1ee   : > { %16963 = vst [vmem:[#allocation44_spill] sm:$0xff] %v13375_v50  ;;  %1922 = vrot.lane.b32.xlu1 %v1832_v57, %s12339_s16  ;;  %v16517_v4 = vand.u32 4294901760, %v13375_v50  ;;  %v1333_v35 = vpop.permute.xlu0 %1332  ;;  %v11558_v38 = vpack.c.bf16 %v2546_v34, %v2539_v16 }
 0x1ef   : > { %1408 = vst.msk [vmem:[#allocation3 + $0xa8] sm:$0xff] %vm1386_vm8, %v1333_v35 }
 0x1f0   : > { %v1525_v20 = vpop.permute.xlu1 %1524  ;;  %v2397_v25 = vsub.f32 %v13375_v50, %v16517_v4  ;;  %v13391_v46 = vld [vmem:[#allocation3 + $0x98] sm:$0xff]  ;;  %578 = vrot.lane.b32.xlu0 %v1639_v24, %s12333_s8  ;;  %11559 = vmatprep.subr.bf16.mxu0 %v11558_v38 }
 0x1f1   : > { %1601 = vst.msk [vmem:[#allocation3 + $0xa0] sm:$0xff] %vm1580_vm9, %v1525_v20  ;;  %v2102_v40 = vsel %vm2043_vm12, %v13391_v46, 0  ;;  %11561 = vmatpush3.bf16.msra.mxu0 %v11558_v38  ;;  %v1448_v38 = vld [vmem:[#allocation2 + $0x180] sm:$0xff] }
 0x1f2   : > { %1155 = vrot.lane.b32.xlu1 %v1640_v27, %s12335_s10  ;;  %v2398_v39 = vand.u32 4294901760, %v2397_v25  ;;  %v13399_v41 = vand.u32 4294901760, %v2102_v40  ;;  %v758_v4 = vpop.permute.xlu0 %757 }
 0x1f3   : > { %831 = vst.msk [vmem:[#allocation3 + $0xb8] sm:$0xff] %vm807_vm5, %v758_v4 }
 0x1f4   : > { %16964 = vst [vmem:[#allocation45_spill] sm:$0xff] %v13399_v41  ;;  %v949_v50 = vpop.permute.xlu1 %948  ;;  %10543 = vmatprep.mubr.f32.mxu0 %v2398_v39  ;;  %v13402_v35 = vsub.f32 %v2102_v40, %v13399_v41  ;;  %1346 = vrot.lane.b32.xlu0 %v1832_v57, %s12336_s11 }
 0x1f5   : > { %1023 = vst.msk [vmem:[#allocation3 + $0xb0] sm:$0xff] %vm1000_vm6, %v949_v50 }
 0x1f6   : > { %16965 = vst [vmem:[#allocation46_spill] sm:$0xff] %v13402_v35  ;;  %1924 = vrot.lane.b32.xlu1 %v1833_v45, %s12339_s16  ;;  %v16520_v24 = vand.u32 4294901760, %v13402_v35  ;;  %v1527_v16 = vpop.permute.xlu0 %1526 }
 0x1f7   : > { %1602 = vst.msk [vmem:[#allocation3 + $0xa8] sm:$0xff] %vm1580_vm9, %v1527_v16 }
 0x1f8   : > { %v1718_v34 = vpop.permute.xlu1 %1717  ;;  %v2407_v20 = vsub.f32 %v13402_v35, %v16520_v24  ;;  %580 = vrot.lane.b32.xlu0 %v1640_v27, %s12333_s8  ;;  %v12296_v27 = vld [vmem:[%s16488_s3 + $0x10] sm:$0xff] }
 0x1f9   : > { %1794 = vst.msk [vmem:[#allocation3 + $0xa0] sm:$0xff] %vm1773_vm10, %v1718_v34  ;;  %v12297_v34 = vld [vmem:[%s16488_s3 + $0x18] sm:$0xff] }
 0x1fa   : > { %771 = vrot.lane.b32.xlu1 %v1832_v57, %s12332_s30  ;;  %v2408_v50 = vand.u32 4294901760, %v2407_v20  ;;  %v951_v40 = vpop.permute.xlu0 %950  ;;  %v16966_v57 = vand.u32 4294901760, %v12596_v43  ;;  %v16968_v20 = vand.u32 4294901760, %v12601_v44 }
 0x1fb   : > { %1024 = vst.msk [vmem:[#allocation3 + $0xb8] sm:$0xff] %vm1000_vm6, %v951_v40  ;;  %v1449_v40 = vld [vmem:[#allocation2 + $0x188] sm:$0xff] }
 0x1fc   : > { %v1142_v4 = vpop.permute.xlu1 %1141  ;;  %10544 = vmatmul.mubr.f32.gmra.mrb[18].mxu0 %v2408_v50  ;;  %1348 = vrot.lane.b32.xlu0 %v1833_v45, %s12336_s11  ;;  %v13427_v16 = vsub.f32 %v12296_v27, %v16966_v57  ;;  %v13434_v50 = vsub.f32 %v12297_v34, %v16968_v20 }
 0x1fd   : > { %1216 = vst.msk [vmem:[#allocation3 + $0xb0] sm:$0xff] %vm1193_vm7, %v1142_v4  ;;  %v1641_v4 = vld [vmem:[#allocation2 + $0x181] sm:$0xff] }
 0x1fe   : > { %1540 = vrot.lane.b32.xlu1 %v1448_v38, %s12337_s12  ;;  %v1720_v25 = vpop.permute.xlu0 %1719  ;;  %16967 = vst [vmem:[#allocation47_spill] sm:$0xff] %v13427_v16  ;;  %16969 = vst [vmem:[#allocation48_spill] sm:$0xff] %v13434_v50  ;;  %v16521_v43 = vand.u32 4294901760, %v13434_v50 }
 0x1ff   : > { %1795 = vst.msk [vmem:[#allocation3 + $0xa8] sm:$0xff] %vm1773_vm10, %v1720_v25  ;;  %v16522_v25 = vand.u32 4294901760, %v13427_v16 }
 0x200   : > { %v1911_v39 = vpop.permute.xlu1 %1910  ;;  %773 = vrot.lane.b32.xlu0 %v1833_v45, %s12332_s30  ;;  %v2559_v45 = vsub.f32 %v13434_v50, %v16521_v43 }
 0x201   : > { %1987 = vst.msk [vmem:[#allocation3 + $0xa0] sm:$0xff] %vm1966_vm11, %v1911_v39  ;;  %v2552_v44 = vsub.f32 %v13427_v16, %v16522_v25 }
 0x202   : > { %964 = vrot.lane.b32.xlu1 %v1448_v38, %s12334_s9  ;;  %v567_v39 = vpop.permute.xlu0 %566  ;;  %v2560_v57 = vand.u32 4294901760, %v2559_v45  ;;  %v1834_v45 = vld [vmem:[#allocation2 + $0x182] sm:$0xff] }
 0x203   : > { %639 = vst.msk [vmem:[#allocation3 + $0xc0] sm:$0xff] %vm614_vm4, %v567_v39  ;;  %v2553_v38 = vand.u32 4294901760, %v2552_v44  ;;  %v1642_v44 = vld [vmem:[#allocation2 + $0x189] sm:$0xff] }
 0x204   : > { %v1144_v27 = vpop.permute.xlu1 %1143  ;;  %1542 = vrot.lane.b32.xlu0 %v1449_v40, %s12337_s12 }
 0x205   : > { %1217 = vst.msk [vmem:[#allocation3 + $0xb8] sm:$0xff] %vm1193_vm7, %v1144_v27  ;;  %v11562_v27 = vpack.c.bf16 %v2560_v57, %v2553_v38 }
 0x206   : > { %1733 = vrot.lane.b32.xlu1 %v1641_v4, %s12338_s13  ;;  %v1335_v34 = vpop.permute.xlu0 %1334 }
 0x207   : > { %1409 = vst.msk [vmem:[#allocation3 + $0xb0] sm:$0xff] %vm1386_vm8, %v1335_v34  ;;  %11563 = vmatprep.subr.bf16.mxu0 %v11562_v27 }
 0x208   : > { %v1913_v20 = vpop.permute.xlu1 %1912  ;;  %v13450_v24 = vld [vmem:[#allocation3 + $0xa0] sm:$0xff]  ;;  %966 = vrot.lane.b32.xlu0 %v1449_v40, %s12334_s9  ;;  %11565 = vmatpush3.bf16.msra.mxu0 %v11562_v27 }
 0x209   : > { %1988 = vst.msk [vmem:[#allocation3 + $0xa8] sm:$0xff] %vm1966_vm11, %v1913_v20  ;;  %v2105_v39 = vsel %vm2043_vm12, %v13450_v24, 0 }
 0x20a   : > { %1157 = vrot.lane.b32.xlu1 %v1641_v4, %s12335_s10  ;;  %v13458_v43 = vand.u32 4294901760, %v2105_v39  ;;  %v569_v25 = vpop.permute.xlu0 %568 }
 0x20b   : > { %640 = vst.msk [vmem:[#allocation3 + $0xc8] sm:$0xff] %vm614_vm4, %v569_v25 }
 0x20c   : > { %16970 = vst [vmem:[#allocation49_spill] sm:$0xff] %v13458_v43  ;;  %v760_v35 = vpop.permute.xlu1 %759  ;;  %v13461_v29 = vsub.f32 %v2105_v39, %v13458_v43  ;;  %1735 = vrot.lane.b32.xlu0 %v1642_v44, %s12338_s13  ;;  %v1835_v39 = vld [vmem:[#allocation2 + $0x18a] sm:$0xff] }
 0x20d   : > { %832 = vst.msk [vmem:[#allocation3 + $0xc0] sm:$0xff] %vm807_vm5, %v760_v35 }
 0x20e   : > { %16971 = vst [vmem:[#allocation50_spill] sm:$0xff] %v13461_v29  ;;  %1926 = vrot.lane.b32.xlu1 %v1834_v45, %s12339_s16  ;;  %v16529_v40 = vand.u32 4294901760, %v13461_v29  ;;  %v1337_v4 = vpop.permute.xlu0 %1336 }
 0x20f   : > { %1410 = vst.msk [vmem:[#allocation3 + $0xb8] sm:$0xff] %vm1386_vm8, %v1337_v4  ;;  %v13488_v4 = vsub.f32 %v12624_v51, %v12628_v52 }
 0x210   : > { %v1529_v38 = vpop.permute.xlu1 %1528  ;;  %v2417_v57 = vsub.f32 %v13461_v29, %v16529_v40  ;;  %v13471_v34 = vld [vmem:[#allocation3 + $0xa8] sm:$0xff]  ;;  %1159 = vrot.lane.b32.xlu0 %v1642_v44, %s12335_s10  ;;  %v1644_v29 = vld [vmem:[#allocation2 + $0x1a1] sm:$0xff] }
 0x211   : > { %1603 = vst.msk [vmem:[#allocation3 + $0xb0] sm:$0xff] %vm1580_vm9, %v1529_v38  ;;  %v2108_v35 = vsel %vm2043_vm12, %v13471_v34, 0  ;;  %v1451_v38 = vld [vmem:[#allocation2 + $0x1a0] sm:$0xff] }
 0x212   : > { %1350 = vrot.lane.b32.xlu1 %v1834_v45, %s12336_s11  ;;  %v2418_v25 = vand.u32 4294901760, %v2417_v57  ;;  %v13479_v20 = vand.u32 4294901760, %v2108_v35  ;;  %v762_v27 = vpop.permute.xlu0 %761  ;;  %v1450_v45 = vld [vmem:[#allocation2 + $0x198] sm:$0xff]  ;;  %v13494_v57 = vand.u32 4294901760, %v13488_v4 }
 0x213   : > { %833 = vst.msk [vmem:[#allocation3 + $0xc8] sm:$0xff] %vm807_vm5, %v762_v27  ;;  %v1643_v27 = vld [vmem:[#allocation2 + $0x199] sm:$0xff] }
 0x214   : > { %16972 = vst [vmem:[#allocation51_spill] sm:$0xff] %v13479_v20  ;;  %v953_v23 = vpop.permute.xlu1 %952  ;;  %10546 = vmatprep.mubr.f32.mxu0 %v2418_v25  ;;  %v13482_v40 = vsub.f32 %v2108_v35, %v13479_v20  ;;  %1928 = vrot.lane.b32.xlu0 %v1835_v39, %s12339_s16  ;;  %16974 = vst [vmem:[#allocation53_spill] sm:$0xff] %v13494_v57  ;;  %v2566_v51 = vsub.f32 %v13488_v4, %v13494_v57 }
 0x215   : > { %1025 = vst.msk [vmem:[#allocation3 + $0xc0] sm:$0xff] %vm1000_vm6, %v953_v23 }
 0x216   : > { %16973 = vst [vmem:[#allocation52_spill] sm:$0xff] %v13482_v40  ;;  %1352 = vrot.lane.b32.xlu1 %v1835_v39, %s12336_s11  ;;  %v16538_v44 = vand.u32 4294901760, %v13482_v40  ;;  %v1531_v35 = vpop.permute.xlu0 %1530  ;;  %v2567_v59 = vand.u32 4294901760, %v2566_v51 }
 0x217   : > { %1604 = vst.msk [vmem:[#allocation3 + $0xb8] sm:$0xff] %vm1580_vm9, %v1531_v35  ;;  %v1836_v35 = vld [vmem:[#allocation2 + $0x19a] sm:$0xff] }
 0x218   : > { %v1722_v25 = vpop.permute.xlu1 %1721  ;;  %v2427_v23 = vsub.f32 %v13482_v40, %v16538_v44  ;;  %1544 = vrot.lane.b32.xlu0 %v1450_v45, %s12337_s12  ;;  %10572 = vmatprep.subr.mxu0 %v2567_v59  ;;  %v1837_v45 = vld [vmem:[#allocation2 + $0x1a2] sm:$0xff] }
 0x219   : > { %1796 = vst.msk [vmem:[#allocation3 + $0xb0] sm:$0xff] %vm1773_vm10, %v1722_v25  ;;  %10573 = vmatpush3.msra.mxu0 %v2567_v59 }
 0x21a   : > { %1546 = vrot.lane.b32.xlu1 %v1451_v38, %s12337_s12  ;;  %v2428_v39 = vand.u32 4294901760, %v2427_v23  ;;  %v955_v58 = vpop.permute.xlu0 %954 }
 0x21b   : > { %1026 = vst.msk [vmem:[#allocation3 + $0xc8] sm:$0xff] %vm1000_vm6, %v955_v58 }
 0x21c   : > { %v1146_v47 = vpop.permute.xlu1 %1145  ;;  %10547 = vmatmul.mubr.f32.gmra.mrb[20].mxu0 %v2428_v39  ;;  %1737 = vrot.lane.b32.xlu0 %v1643_v27, %s12338_s13  ;;  %v13525_v27 = vpack.c.bf16 %v13365_v11, %v13358_v15 }
 0x21d   : > { %1218 = vst.msk [vmem:[#allocation3 + $0xc0] sm:$0xff] %vm1193_vm7, %v1146_v47 }
 0x21e   : > { %1739 = vrot.lane.b32.xlu1 %v1644_v29, %s12338_s13  ;;  %v1724_v38 = vpop.permute.xlu0 %1723  ;;  %11567 = vmatprep.subr.bf16.mxu0 %v13525_v27  ;;  %s12340_s13 = smov 112  }
 0x21f   : > { %1797 = vst.msk [vmem:[#allocation3 + $0xb8] sm:$0xff] %vm1773_vm10, %v1724_v38 }
 0x220   : > { %v1915_v25 = vpop.permute.xlu1 %1914  ;;  %1930 = vrot.lane.b32.xlu0 %v1836_v35, %s12339_s16 }
 0x221   : > { %1989 = vst.msk [vmem:[#allocation3 + $0xb0] sm:$0xff] %vm1966_vm11, %v1915_v25 }
 0x222   : > { %1932 = vrot.lane.b32.xlu1 %v1837_v45, %s12339_s16  ;;  %v571_v58 = vpop.permute.xlu0 %570 }
 0x223   : > { %641 = vst.msk [vmem:[#allocation3 + $0xd0] sm:$0xff] %vm614_vm4, %v571_v58 }
 0x224   : > { %v1148_v47 = vpop.permute.xlu1 %1147 }
 0x225   : > { %1219 = vst.msk [vmem:[#allocation3 + $0xc8] sm:$0xff] %vm1193_vm7, %v1148_v47 }
 0x226   : > { %v1339_v29 = vpop.permute.xlu0 %1338 }
 0x227   : > { %1411 = vst.msk [vmem:[#allocation3 + $0xc0] sm:$0xff] %vm1386_vm8, %v1339_v29 }
 0x228   : > { %v1917_v23 = vpop.permute.xlu1 %1916  ;;  %v13515_v51 = vld [vmem:[#allocation3 + $0xb0] sm:$0xff] }
 0x229   : > { %1990 = vst.msk [vmem:[#allocation3 + $0xb8] sm:$0xff] %vm1966_vm11, %v1917_v23  ;;  %v2111_v59 = vsel %vm2043_vm12, %v13515_v51, 0 }
 0x22a   : > { %v13521_v39 = vand.u32 4294901760, %v2111_v59  ;;  %v573_v35 = vpop.permute.xlu0 %572 }
 0x22b   : > { %642 = vst.msk [vmem:[#allocation3 + $0xd8] sm:$0xff] %vm614_vm4, %v573_v35 }
 0x22c   : > { %16975 = vst [vmem:[#allocation54_spill] sm:$0xff] %v13521_v39  ;;  %v764_v45 = vpop.permute.xlu1 %763  ;;  %v13528_v38 = vsub.f32 %v2111_v59, %v13521_v39 }
 0x22d   : > { %834 = vst.msk [vmem:[#allocation3 + $0xd0] sm:$0xff] %vm807_vm5, %v764_v45 }
 0x22e   : > { %16976 = vst [vmem:[#allocation55_spill] sm:$0xff] %v13528_v38  ;;  %v16543_v25 = vand.u32 4294901760, %v13528_v38  ;;  %v1341_v58 = vpop.permute.xlu0 %1340 }
 0x22f   : > { %1412 = vst.msk [vmem:[#allocation3 + $0xc8] sm:$0xff] %vm1386_vm8, %v1341_v58 }
 0x230   : > { %v1533_v47 = vpop.permute.xlu1 %1532  ;;  %v2437_v29 = vsub.f32 %v13528_v38, %v16543_v25  ;;  %v13537_v23 = vld [vmem:[#allocation3 + $0xb8] sm:$0xff] }
 0x231   : > { %1605 = vst.msk [vmem:[#allocation3 + $0xc0] sm:$0xff] %vm1580_vm9, %v1533_v47  ;;  %v2114_v59 = vsel %vm2043_vm12, %v13537_v23, 0 }
 0x232   : > { %v2438_v35 = vand.u32 4294901760, %v2437_v29  ;;  %v13543_v45 = vand.u32 4294901760, %v2114_v59  ;;  %v766_v44 = vpop.permute.xlu0 %765 }
 0x233   : > { %835 = vst.msk [vmem:[#allocation3 + $0xd8] sm:$0xff] %vm807_vm5, %v766_v44 }
 0x234   : > { %16977 = vst [vmem:[#allocation56_spill] sm:$0xff] %v13543_v45  ;;  %v957_v57 = vpop.permute.xlu1 %956  ;;  %10549 = vmatprep.mubr.f32.mxu0 %v2438_v35  ;;  %v13546_v40 = vsub.f32 %v2114_v59, %v13543_v45 }
 0x235   : > { %1027 = vst.msk [vmem:[#allocation3 + $0xd0] sm:$0xff] %vm1000_vm6, %v957_v57 }
 0x236   : > { %16978 = vst [vmem:[#allocation57_spill] sm:$0xff] %v13546_v40  ;;  %v16546_v58 = vand.u32 4294901760, %v13546_v40  ;;  %v1535_v25 = vpop.permute.xlu0 %1534 }
 0x237   : > { %1606 = vst.msk [vmem:[#allocation3 + $0xc8] sm:$0xff] %vm1580_vm9, %v1535_v25 }
 0x238   : > { %v1726_v47 = vpop.permute.xlu1 %1725  ;;  %v2447_v29 = vsub.f32 %v13546_v40, %v16546_v58  ;;  %v13562_v58 = vpack.c.bf16 %v13434_v50, %v13427_v16 }
 0x239   : > { %1798 = vst.msk [vmem:[#allocation3 + $0xc0] sm:$0xff] %vm1773_vm10, %v1726_v47 }
 0x23a   : > { %v2448_v35 = vand.u32 4294901760, %v2447_v29  ;;  %v959_v38 = vpop.permute.xlu0 %958 }
 0x23b   : > { %1028 = vst.msk [vmem:[#allocation3 + $0xd8] sm:$0xff] %vm1000_vm6, %v959_v38 }
 0x23c   : > { %v1150_v59 = vpop.permute.xlu1 %1149  ;;  %10550 = vmatmul.mubr.f32.gmra.mrb[22].mxu0 %v2448_v35 }
 0x23d   : > { %1220 = vst.msk [vmem:[#allocation3 + $0xd0] sm:$0xff] %vm1193_vm7, %v1150_v59 }
 0x23e   : > { %v1728_v44 = vpop.permute.xlu0 %1727 }
 0x23f   : > { %1799 = vst.msk [vmem:[#allocation3 + $0xc8] sm:$0xff] %vm1773_vm10, %v1728_v44 }
 0x240   : > { %v1919_v57 = vpop.permute.xlu1 %1918 }
 0x241   : > { %1991 = vst.msk [vmem:[#allocation3 + $0xc0] sm:$0xff] %vm1966_vm11, %v1919_v57 }
 0x242   : > { %v575_v25 = vpop.permute.xlu0 %574 }
 0x243   : > { %643 = vst.msk [vmem:[#allocation3 + $0xe0] sm:$0xff] %vm614_vm4, %v575_v25 }
 0x244   : > { %v1152_v47 = vpop.permute.xlu1 %1151 }
 0x245   : > { %1221 = vst.msk [vmem:[#allocation3 + $0xd8] sm:$0xff] %vm1193_vm7, %v1152_v47 }
 0x246   : > { %v1343_v29 = vpop.permute.xlu0 %1342 }
 0x247   : > { %1413 = vst.msk [vmem:[#allocation3 + $0xd0] sm:$0xff] %vm1386_vm8, %v1343_v29 }
 0x248   : > { %v1921_v38 = vpop.permute.xlu1 %1920  ;;  %v13566_v35 = vld [vmem:[#allocation3 + $0xc0] sm:$0xff] }
 0x249   : > { %1992 = vst.msk [vmem:[#allocation3 + $0xc8] sm:$0xff] %vm1966_vm11, %v1921_v38  ;;  %v2117_v59 = vsel %vm2043_vm12, %v13566_v35, 0 }
 0x24a   : > { %v13572_v44 = vand.u32 4294901760, %v2117_v59  ;;  %v577_v57 = vpop.permute.xlu0 %576 }
 0x24b   : > { %644 = vst.msk [vmem:[#allocation3 + $0xe8] sm:$0xff] %vm614_vm4, %v577_v57 }
 0x24c   : > { %16979 = vst [vmem:[#allocation58_spill] sm:$0xff] %v13572_v44  ;;  %v768_v50 = vpop.permute.xlu1 %767  ;;  %v13575_v16 = vsub.f32 %v2117_v59, %v13572_v44 }
 0x24d   : > { %836 = vst.msk [vmem:[#allocation3 + $0xe0] sm:$0xff] %vm807_vm5, %v768_v50 }
 0x24e   : > { %16980 = vst [vmem:[#allocation59_spill] sm:$0xff] %v13575_v16  ;;  %v16557_v25 = vand.u32 4294901760, %v13575_v16  ;;  %v1345_v47 = vpop.permute.xlu0 %1344 }
 0x24f   : > { %1414 = vst.msk [vmem:[#allocation3 + $0xd8] sm:$0xff] %vm1386_vm8, %v1345_v47 }
 0x250   : > { %v1537_v29 = vpop.permute.xlu1 %1536  ;;  %v2457_v38 = vsub.f32 %v13575_v16, %v16557_v25  ;;  %v13583_v40 = vld [vmem:[#allocation3 + $0xc8] sm:$0xff] }
 0x251   : > { %1607 = vst.msk [vmem:[#allocation3 + $0xd0] sm:$0xff] %vm1580_vm9, %v1537_v29  ;;  %v2120_v59 = vsel %vm2043_vm12, %v13583_v40, 0 }
 0x252   : > { %v2458_v57 = vand.u32 4294901760, %v2457_v38  ;;  %v13589_v30 = vand.u32 4294901760, %v2120_v59  ;;  %v770_v50 = vpop.permute.xlu0 %769 }
 0x253   : > { %837 = vst.msk [vmem:[#allocation3 + $0xe8] sm:$0xff] %vm807_vm5, %v770_v50 }
 0x254   : > { %16981 = vst [vmem:[#allocation60_spill] sm:$0xff] %v13589_v30  ;;  %v961_v37 = vpop.permute.xlu1 %960  ;;  %10552 = vmatprep.mubr.f32.mxu0 %v2458_v57  ;;  %v13592_v63 = vsub.f32 %v2120_v59, %v13589_v30 }
 0x255   : > { %1029 = vst.msk [vmem:[#allocation3 + $0xe0] sm:$0xff] %vm1000_vm6, %v961_v37 }
 0x256   : > { %16982 = vst [vmem:[#allocation61_spill] sm:$0xff] %v13592_v63  ;;  %v16562_v47 = vand.u32 4294901760, %v13592_v63  ;;  %v1539_v25 = vpop.permute.xlu0 %1538 }
 0x257   : > { %1608 = vst.msk [vmem:[#allocation3 + $0xd8] sm:$0xff] %vm1580_vm9, %v1539_v25 }
 0x258   : > { %v1730_v29 = vpop.permute.xlu1 %1729  ;;  %v2467_v38 = vsub.f32 %v13592_v63, %v16562_v47 }
 0x259   : > { %1800 = vst.msk [vmem:[#allocation3 + $0xd0] sm:$0xff] %vm1773_vm10, %v1730_v29 }
 0x25a   : > { %v2468_v57 = vand.u32 4294901760, %v2467_v38  ;;  %v963_v16 = vpop.permute.xlu0 %962 }
 0x25b   : > { %1030 = vst.msk [vmem:[#allocation3 + $0xe8] sm:$0xff] %vm1000_vm6, %v963_v16 }
 0x25c   : > { %v1154_v59 = vpop.permute.xlu1 %1153  ;;  %10553 = vmatmul.mubr.f32.gmra.mrb[24].mxu0 %v2468_v57 }
 0x25d   : > { %1222 = vst.msk [vmem:[#allocation3 + $0xe0] sm:$0xff] %vm1193_vm7, %v1154_v59 }
 0x25e   : > { %v1732_v37 = vpop.permute.xlu0 %1731 }
 0x25f   : > { %1801 = vst.msk [vmem:[#allocation3 + $0xd8] sm:$0xff] %vm1773_vm10, %v1732_v37 }
 0x260   : > { %v1923_v50 = vpop.permute.xlu1 %1922 }
 0x261   : > { %1993 = vst.msk [vmem:[#allocation3 + $0xd0] sm:$0xff] %vm1966_vm11, %v1923_v50 }
 0x262   : > { %v579_v49 = vpop.permute.xlu0 %578 }
 0x263   : > { %645 = vst.msk [vmem:[#allocation3 + $0xf0] sm:$0xff] %vm614_vm4, %v579_v49 }
 0x264   : > { %v1156_v47 = vpop.permute.xlu1 %1155 }
 0x265   : > { %1223 = vst.msk [vmem:[#allocation3 + $0xe8] sm:$0xff] %vm1193_vm7, %v1156_v47 }
 0x266   : > { %v1347_v25 = vpop.permute.xlu0 %1346 }
 0x267   : > { %1415 = vst.msk [vmem:[#allocation3 + $0xe0] sm:$0xff] %vm1386_vm8, %v1347_v25 }
 0x268   : > { %v1925_v29 = vpop.permute.xlu1 %1924  ;;  %v13608_v38 = vld [vmem:[#allocation3 + $0xd0] sm:$0xff] }
 0x269   : > { %1994 = vst.msk [vmem:[#allocation3 + $0xd8] sm:$0xff] %vm1966_vm11, %v1925_v29  ;;  %v2123_v16 = vsel %vm2043_vm12, %v13608_v38, 0 }
 0x26a   : > { %v13614_v57 = vand.u32 4294901760, %v2123_v16  ;;  %v581_v59 = vpop.permute.xlu0 %580 }
 0x26b   : > { %646 = vst.msk [vmem:[#allocation3 + $0xf8] sm:$0xff] %vm614_vm4, %v581_v59  ;;  %vm7000_vm4 = vcmask 392512  }
 0x26c   : > { %16983 = vst [vmem:[#allocation62_spill] sm:$0xff] %v13614_v57  ;;  %v772_v37 = vpop.permute.xlu1 %771  ;;  %v13617_v50 = vsub.f32 %v2123_v16, %v13614_v57 }
 0x26d   : > { %838 = vst.msk [vmem:[#allocation3 + $0xf0] sm:$0xff] %vm807_vm5, %v772_v37 }
 0x26e   : > { %16984 = vst [vmem:[#allocation63_spill] sm:$0xff] %v13617_v50  ;;  %v16571_v49 = vand.u32 4294901760, %v13617_v50  ;;  %v1349_v47 = vpop.permute.xlu0 %1348 }
 0x26f   : > { %1416 = vst.msk [vmem:[#allocation3 + $0xe8] sm:$0xff] %vm1386_vm8, %v1349_v47 }
 0x270   : > { %v1541_v25 = vpop.permute.xlu1 %1540  ;;  %v2477_v29 = vsub.f32 %v13617_v50, %v16571_v49  ;;  %v13625_v63 = vld [vmem:[#allocation3 + $0xd8] sm:$0xff] }
 0x271   : > { %1609 = vst.msk [vmem:[#allocation3 + $0xe0] sm:$0xff] %vm1580_vm9, %v1541_v25  ;;  %v2126_v16 = vsel %vm2043_vm12, %v13625_v63, 0 }
 0x272   : > { %v2478_v59 = vand.u32 4294901760, %v2477_v29  ;;  %v13631_v10 = vand.u32 4294901760, %v2126_v16  ;;  %v774_v37 = vpop.permute.xlu0 %773 }
 0x273   : > { %839 = vst.msk [vmem:[#allocation3 + $0xf8] sm:$0xff] %vm807_vm5, %v774_v37  ;;  %vm7194_vm5 = vcmask 458112  }
 0x274   : > { %16985 = vst [vmem:[#allocation64_spill] sm:$0xff] %v13631_v10  ;;  %v965_v61 = vpop.permute.xlu1 %964  ;;  %10555 = vmatprep.mubr.f32.mxu0 %v2478_v59  ;;  %v13634_v19 = vsub.f32 %v2126_v16, %v13631_v10 }
 0x275   : > { %1031 = vst.msk [vmem:[#allocation3 + $0xf0] sm:$0xff] %vm1000_vm6, %v965_v61 }
 0x276   : > { %16986 = vst [vmem:[#allocation65_spill] sm:$0xff] %v13634_v19  ;;  %v16576_v47 = vand.u32 4294901760, %v13634_v19  ;;  %v1543_v49 = vpop.permute.xlu0 %1542 }
 0x277   : > { %1610 = vst.msk [vmem:[#allocation3 + $0xe8] sm:$0xff] %vm1580_vm9, %v1543_v49 }
 0x278   : > { %v1734_v25 = vpop.permute.xlu1 %1733  ;;  %v2487_v29 = vsub.f32 %v13634_v19, %v16576_v47 }
 0x279   : > { %1802 = vst.msk [vmem:[#allocation3 + $0xe0] sm:$0xff] %vm1773_vm10, %v1734_v25 }
 0x27a   : > { %v2488_v59 = vand.u32 4294901760, %v2487_v29  ;;  %v967_v50 = vpop.permute.xlu0 %966 }
 0x27b   : > { %1032 = vst.msk [vmem:[#allocation3 + $0xf8] sm:$0xff] %vm1000_vm6, %v967_v50  ;;  %vm7387_vm6 = vcmask 523712  }
 0x27c   : > { %v1158_v16 = vpop.permute.xlu1 %1157  ;;  %10556 = vmatmul.mubr.f32.gmra.mrb[26].mxu0 %v2488_v59 }
 0x27d   : > { %1224 = vst.msk [vmem:[#allocation3 + $0xf0] sm:$0xff] %vm1193_vm7, %v1158_v16 }
 0x27e   : > { %v1736_v61 = vpop.permute.xlu0 %1735 }
 0x27f   : > { %1803 = vst.msk [vmem:[#allocation3 + $0xe8] sm:$0xff] %vm1773_vm10, %v1736_v61 }
 0x280   : > { %v1927_v37 = vpop.permute.xlu1 %1926 }
 0x281   : > { %1995 = vst.msk [vmem:[#allocation3 + $0xe0] sm:$0xff] %vm1966_vm11, %v1927_v37 }
 0x282   : > { %v1160_v22 = vpop.permute.xlu0 %1159 }
 0x283   : > { %1225 = vst.msk [vmem:[#allocation3 + $0xf8] sm:$0xff] %vm1193_vm7, %v1160_v22  ;;  %vm7580_vm7 = vcmask 589312  }
 0x284   : > { %v1351_v47 = vpop.permute.xlu1 %1350 }
 0x285   : > { %1417 = vst.msk [vmem:[#allocation3 + $0xf0] sm:$0xff] %vm1386_vm8, %v1351_v47  ;;  %v4007_v47 = vld [vmem:[%s16486_s1] sm:$0xf] }
 0x286   : > { %v1929_v49 = vpop.permute.xlu0 %1928 }
 0x287   : > { %1996 = vst.msk [vmem:[#allocation3 + $0xe8] sm:$0xff] %vm1966_vm11, %v1929_v49 }
 0x288   : > { %v1353_v25 = vpop.permute.xlu1 %1352  ;;  %v13650_v29 = vld [vmem:[#allocation3 + $0xe0] sm:$0xff] }
 0x289   : > { %1418 = vst.msk [vmem:[#allocation3 + $0xf8] sm:$0xff] %vm1386_vm8, %v1353_v25  ;;  %v2129_v50 = vsel %vm2043_vm12, %v13650_v29, 0  ;;  %vm7661_vm8 = vcmask 588800  }
 0x28a   : > { %v13656_v59 = vand.u32 4294901760, %v2129_v50  ;;  %v1545_v16 = vpop.permute.xlu0 %1544 }
 0x28b   : > { %1611 = vst.msk [vmem:[#allocation3 + $0xf0] sm:$0xff] %vm1580_vm9, %v1545_v16 }
 0x28c   : > { %16987 = vst [vmem:[#allocation66_spill] sm:$0xff] %v13656_v59  ;;  %v1547_v61 = vpop.permute.xlu1 %1546  ;;  %v13659_v37 = vsub.f32 %v2129_v50, %v13656_v59  ;;  %v4144_v50 = vsel %vm2140_vm3, %v4007_v47, 0  ;;  %vm6807_vm3 = vcmask 326912  }
 0x28d   : > { %1612 = vst.msk [vmem:[#allocation3 + $0xf8] sm:$0xff] %vm1580_vm9, %v1547_v61  ;;  %v13677_v61 = vand.u32 4294901760, %v4144_v50 }
 0x28e   : > { %16988 = vst [vmem:[#allocation67_spill] sm:$0xff] %v13659_v37  ;;  %v16585_v22 = vand.u32 4294901760, %v13659_v37  ;;  %v1738_v49 = vpop.permute.xlu0 %1737  ;;  %v13670_v11 = vld [vmem:[#allocation3 + $0xe8] sm:$0xff] }
 0x28f   : > { %1804 = vst.msk [vmem:[#allocation3 + $0xf0] sm:$0xff] %vm1773_vm10, %v1738_v49  ;;  %v2132_v16 = vsel %vm2043_vm12, %v13670_v11, 0  ;;  %16989 = vst [vmem:[#allocation68_spill] sm:$0xff] %v13677_v61  ;;  %v13682_v2 = vsub.f32 %v4144_v50, %v13677_v61 }
 0x290   : > { %v1740_v25 = vpop.permute.xlu1 %1739  ;;  %v2497_v19 = vsub.f32 %v13659_v37, %v16585_v22  ;;  %v13679_v52 = vand.u32 4294901760, %v2132_v16 }
 0x291   : > { %1805 = vst.msk [vmem:[#allocation3 + $0xf8] sm:$0xff] %vm1773_vm10, %v1740_v25  ;;  %16991 = vst [vmem:[#allocation70_spill] sm:$0xff] %v13682_v2  ;;  %11694 = vmatprep.subr.mxu1 %v13682_v2 }
 0x292   : > { %v2498_v15 = vand.u32 4294901760, %v2497_v19  ;;  %16990 = vst [vmem:[#allocation69_spill] sm:$0xff] %v13679_v52  ;;  %v1931_v22 = vpop.permute.xlu0 %1930  ;;  %v13685_v47 = vsub.f32 %v2132_v16, %v13679_v52  ;;  %11695 = vmatpush3.msra.mxu1 %v13682_v2 }
 0x293   : > { %1997 = vst.msk [vmem:[#allocation3 + $0xf0] sm:$0xff] %vm1966_vm11, %v1931_v22  ;;  %11004 = vmatprep.subr.mxu1 %v13677_v61 }
 0x294   : > { %v1933_v37 = vpop.permute.xlu1 %1932  ;;  %10558 = vmatprep.mubr.f32.mxu0 %v2498_v15  ;;  %16992 = vst [vmem:[#allocation71_spill] sm:$0xff] %v13685_v47  ;;  %v16592_v49 = vand.u32 4294901760, %v13685_v47 }
 0x295   : > { %1998 = vst.msk [vmem:[#allocation3 + $0xf8] sm:$0xff] %vm1966_vm11, %v1933_v37 }
 0x296   : > { %v2507_v19 = vsub.f32 %v13685_v47, %v16592_v49  ;;  %v12299_v49 = vld [vmem:[#allocation3 + $0x8] sm:$0xff] }
 0x298   : > { %v2508_v15 = vand.u32 4294901760, %v2507_v19 }
 0x29a   : > { %10559 = vmatmul.mubr.f32.gmra.mrb[28].mxu0 %v2508_v15  ;;  %v2029_v25 = vld [vmem:[#allocation3 + $0xf0] sm:$0xff]  ;;  %v12298_v15 = vld [vmem:[#allocation3] sm:$0xff] }
 0x29b   : > { %4075 = vrot.lane.b32.xlu0 %v2029_v25, %s12340_s13  ;;  %v2135_v37 = vsel %vm2043_vm12, %v2029_v25, 0 }
 0x29c   : > { %v2030_v50 = vld [vmem:[#allocation3 + $0xf8] sm:$0xff]  ;;  %v13700_v16 = vand.u32 4294901760, %v2135_v37 }
 0x29d   : > { %4077 = vrot.lane.b32.xlu1 %v2030_v50, %s12340_s13  ;;  %v2138_v22 = vsel %vm2043_vm12, %v2030_v50, 0 }
 0x29e   : > { %16993 = vst [vmem:[#allocation72_spill] sm:$0xff] %v13700_v16  ;;  %v13702_v61 = vand.u32 4294901760, %v2138_v22  ;;  %v13705_v2 = vsub.f32 %v2135_v37, %v13700_v16 }
 0x29f   : > { %4015 = vrot.lane.b32.xlu0 %v12298_v15, %s12340_s13 }
 0x2a0   : > { %16994 = vst [vmem:[#allocation73_spill] sm:$0xff] %v13702_v61  ;;  %v13708_v19 = vsub.f32 %v2138_v22, %v13702_v61  ;;  %v16601_v25 = vand.u32 4294901760, %v13705_v2  ;;  %v12300_v22 = vld [vmem:[#allocation3 + $0x18] sm:$0xff] }
 0x2a1   : > { %4017 = vrot.lane.b32.xlu1 %v12299_v49, %s12340_s13 }
 0x2a2   : > { %v16602_v50 = vand.u32 4294901760, %v13708_v19  ;;  %v2517_v47 = vsub.f32 %v13705_v2, %v16601_v25  ;;  %v12304_v25 = vld [vmem:[#allocation3 + $0x38] sm:$0xff] }
 0x2a3   : > { %4019 = vrot.lane.b32.xlu0 %v12301_v14, %s12340_s13  ;;  %v12308_v14 = vld [vmem:[#allocation3 + $0x58] sm:$0xff] }
 0x2a4   : > { %v2527_v37 = vsub.f32 %v13708_v19, %v16602_v50  ;;  %v2518_v15 = vand.u32 4294901760, %v2517_v47  ;;  %v12305_v50 = vld [vmem:[#allocation3 + $0x30] sm:$0xff]  ;;  %v12310_v47 = vld [vmem:[#allocation3 + $0x68] sm:$0xff] }
 0x2a5   : > { %4021 = vrot.lane.b32.xlu1 %v12300_v22, %s12340_s13  ;;  %v17010_v22 = vld [vmem:[#allocation28_spill] sm:$0xff] }
 0x2a6   : > { %v2528_v49 = vand.u32 4294901760, %v2527_v37  ;;  %10561 = vmatprep.mubr.f32.mxu0 %v2518_v15  ;;  %v17009_v37 = vld [vmem:[#allocation26_spill] sm:$0xff] }
 0x2a7   : > { %4023 = vrot.lane.b32.xlu0 %v12303_v60, %s12340_s13  ;;  %v12307_v60 = vld [vmem:[#allocation3 + $0x40] sm:$0xff]  ;;  %v17011_v15 = vld [vmem:[#allocation30_spill] sm:$0xff] }
 0x2a8   : > { %10562 = vmatmul.mubr.f32.gmra.mrb[30].mxu0 %v2528_v49  ;;  %v17012_v49 = vld [vmem:[#allocation32_spill] sm:$0xff] }
 0x2a9   : > { %4025 = vrot.lane.b32.xlu1 %v12302_v48, %s12340_s13  ;;  %10574 = vmatprep.mubr.f32.mxu0 %v12779_v62  ;;  %v12306_v48 = vld [vmem:[#allocation3 + $0x48] sm:$0xff] }
 0x2ab   : > { %4027 = vrot.lane.b32.xlu0 %v12305_v50, %s12340_s13  ;;  %v12313_v50 = vld [vmem:[#allocation3 + $0x70] sm:$0xff] }
 0x2ac   : > { %10575 = vmatmul.mubr.f32.vlgmr.msra.gmra.mrb[0].mxu0 %v12797_v13  ;;  %v17061_v13 = vld [vmem:[#allocation48_spill] sm:$0xff] }
 0x2ad   : > { %4029 = vrot.lane.b32.xlu1 %v12304_v25, %s12340_s13  ;;  %11569 = vmatpush3.bf16.msra.mxu0 %v13525_v27  ;;  %v12309_v27 = vld [vmem:[#allocation3 + $0x50] sm:$0xff]  ;;  %v12312_v25 = vld [vmem:[#allocation3 + $0x78] sm:$0xff] }
 0x2ae   : > { %10577 = vmatprep.mubr.f32.mxu0 %v12847_v54  ;;  %11571 = vmatprep.subr.bf16.mxu0 %v13562_v58 }
 0x2af   : > { %4031 = vrot.lane.b32.xlu0 %v12307_v60, %s12340_s13  ;;  %v17014_v60 = vld [vmem:[#allocation36_spill] sm:$0xff] }
 0x2b0   : > { %10578 = vmatmul.mubr.f32.gmra.mrb[2].mxu0 %v12865_v8 }
 0x2b1   : > { %4033 = vrot.lane.b32.xlu1 %v12306_v48, %s12340_s13  ;;  %10580 = vmatprep.mubr.f32.mxu0 %v12915_v55  ;;  %v17013_v48 = vld [vmem:[#allocation34_spill] sm:$0xff]  ;;  %v17050_v55 = vld [vmem:[#allocation71_spill] sm:$0xff] }
 0x2b2   : > { %11573 = vmatpush3.bf16.msra.mxu0 %v13562_v58  ;;  %v12311_v58 = vld [vmem:[#allocation3 + $0x60] sm:$0xff] }
 0x2b3   : > { %10630 = vmatprep.subr.mxu0 %v13488_v4  ;;  %4035 = vrot.lane.b32.xlu0 %v12309_v27, %s12340_s13  ;;  %v17016_v27 = vld [vmem:[#allocation40_spill] sm:$0xff] }
 0x2b4   : > { %10581 = vmatmul.mubr.f32.gmra.mrb[4].mxu0 %v12933_v12 }
 0x2b5   : > { %4037 = vrot.lane.b32.xlu1 %v12308_v14, %s12340_s13  ;;  %10583 = vmatprep.mubr.f32.mxu0 %v12983_v6  ;;  %v17015_v14 = vld [vmem:[#allocation38_spill] sm:$0xff] }
 0x2b6   : > { %10631 = vmatpush3.msra.mxu0 %v13488_v4 }
 0x2b7   : > { %11575 = vmatprep.subr.bf16.mxu0 %v12591_v42  ;;  %4039 = vrot.lane.b32.xlu0 %v12311_v58, %s12340_s13 }
 0x2b8   : > { %10584 = vmatmul.mubr.f32.gmra.mrb[6].mxu0 %v13001_v31  ;;  %v17045_v31 = vld [vmem:[#allocation65_spill] sm:$0xff] }
 0x2b9   : > { %4041 = vrot.lane.b32.xlu1 %v12310_v47, %s12340_s13  ;;  %10586 = vmatprep.mubr.f32.mxu0 %v13051_v53  ;;  %v17017_v47 = vld [vmem:[#allocation44_spill] sm:$0xff] }
 0x2bb   : > { %4043 = vrot.lane.b32.xlu0 %v12313_v50, %s12340_s13 }
 0x2bc   : > { %10587 = vmatmul.mubr.f32.gmra.mrb[8].mxu0 %v13069_v28 }
 0x2bd   : > { %4045 = vrot.lane.b32.xlu1 %v12312_v25, %s12340_s13  ;;  %10589 = vmatprep.mubr.f32.mxu0 %v13119_v7 }
 0x2bf   : > { %4047 = vrot.lane.b32.xlu0 %v13285_v1, %s12340_s13  ;;  %v16998_v1 = vld [vmem:[#allocation14_spill] sm:$0xff] }
 0x2c0   : > { %10590 = vmatmul.mubr.f32.gmra.mrb[10].mxu0 %v13137_v33  ;;  %v17041_v33 = vld [vmem:[#allocation61_spill] sm:$0xff] }
 0x2c1   : > { %4049 = vrot.lane.b32.xlu1 %v13307_v21, %s12340_s13  ;;  %10592 = vmatprep.mubr.f32.mxu0 %v13179_v26  ;;  %v16997_v21 = vld [vmem:[#allocation12_spill] sm:$0xff] }
 0x2c3   : > { %4051 = vrot.lane.b32.xlu0 %v13347_v56, %s12340_s13  ;;  %v16999_v56 = vld [vmem:[#allocation7_spill] sm:$0xff] }
 0x2c4   : > { %10593 = vmatmul.mubr.f32.gmra.mrb[12].mxu0 %v13197_v9 }
 0x2c5   : > { %4053 = vrot.lane.b32.xlu1 %v13391_v46, %s12340_s13  ;;  %10595 = vmatprep.mubr.f32.mxu0 %v13235_v36  ;;  %v16995_v46 = vld [vmem:[#allocation10_spill] sm:$0xff] }
 0x2c7   : > { %4055 = vrot.lane.b32.xlu0 %v13450_v24, %s12340_s13 }
 0x2c8   : > { %10596 = vmatmul.mubr.f32.gmra.mrb[14].mxu0 %v13253_v3 }
 0x2c9   : > { %4057 = vrot.lane.b32.xlu1 %v13471_v34, %s12340_s13  ;;  %10598 = vmatprep.mubr.f32.mxu0 %v13294_v32  ;;  %v17035_v32 = vld [vmem:[#allocation57_spill] sm:$0xff] }
 0x2cb   : > { %4059 = vrot.lane.b32.xlu0 %v13515_v51, %s12340_s13  ;;  %v17004_v51 = vld [vmem:[#allocation16_spill] sm:$0xff] }
 0x2cc   : > { %10599 = vmatmul.mubr.f32.gmra.mrb[16].mxu0 %v13315_v0 }
 0x2cd   : > { %4061 = vrot.lane.b32.xlu1 %v13537_v23, %s12340_s13  ;;  %10601 = vmatprep.mubr.f32.mxu0 %v13370_v17  ;;  %v17005_v23 = vld [vmem:[#allocation18_spill] sm:$0xff] }
 0x2cf   : > { %4063 = vrot.lane.b32.xlu0 %v13566_v35, %s12340_s13  ;;  %v17006_v35 = vld [vmem:[#allocation20_spill] sm:$0xff] }
 0x2d0   : > { %10602 = vmatmul.mubr.f32.gmra.mrb[18].mxu0 %v13399_v41 }
 0x2d1   : > { %4065 = vrot.lane.b32.xlu1 %v13583_v40, %s12340_s13  ;;  %10604 = vmatprep.mubr.f32.mxu0 %v13458_v43  ;;  %v17002_v40 = vld [vmem:[#allocation42_spill] sm:$0xff] }
 0x2d2   : > { %v17003_v34 = vand.u32 4294901760, %v17002_v40 }
 0x2d3   : > { %4067 = vrot.lane.b32.xlu0 %v13608_v38, %s12340_s13  ;;  %v17007_v38 = vld [vmem:[#allocation22_spill] sm:$0xff] }
 0x2d4   : > { %10605 = vmatmul.mubr.f32.gmra.mrb[20].mxu0 %v13479_v20 }
 0x2d5   : > { %4069 = vrot.lane.b32.xlu1 %v13625_v63, %s12340_s13  ;;  %10607 = vmatprep.mubr.f32.mxu0 %v13521_v39  ;;  %v16996_v63 = vld [vmem:[#allocation6_spill] sm:$0xff] }
 0x2d7   : > { %4071 = vrot.lane.b32.xlu0 %v13650_v29, %s12340_s13  ;;  %v17008_v29 = vld [vmem:[#allocation24_spill] sm:$0xff] }
 0x2d8   : > { %10608 = vmatmul.mubr.f32.gmra.mrb[22].mxu0 %v13543_v45 }
 0x2d9   : > { %4073 = vrot.lane.b32.xlu1 %v13670_v11, %s12340_s13  ;;  %10610 = vmatprep.mubr.f32.mxu0 %v13572_v44  ;;  %v17000_v11 = vld [vmem:[#allocation41_spill] sm:$0xff] }
 0x2da   : > { %v17001_v24 = vand.u32 4294901760, %v17000_v11 }
 0x2dc   : > { %10611 = vmatmul.mubr.f32.gmra.mrb[24].mxu0 %v13589_v30  ;;  %v13813_v4 = vpack.c.bf16 %v17003_v34, %v17001_v24  ;;  %v17020_v34 = vld [vmem:[#allocation46_spill] sm:$0xff] }
 0x2dd   : > { %10613 = vmatprep.mubr.f32.mxu0 %v13614_v57  ;;  %v17023_v57 = vld [vmem:[#allocation70_spill] sm:$0xff] }
 0x2de   : > { %v13848_v30 = vand.u32 4294901760, %v17023_v57 }
 0x2e0   : > { %10614 = vmatmul.mubr.f32.gmra.mrb[26].mxu0 %v13631_v10  ;;  %17024 = vst [vmem:[#allocation41_spill] sm:$0xff] %v13848_v30 }
 0x2e1   : > { %10616 = vmatprep.mubr.f32.mxu0 %v13656_v59 }
 0x2e4   : > { %10617 = vmatmul.mubr.f32.gmra.mrb[28].mxu0 %v13679_v52  ;;  %v17022_v52 = vld [vmem:[#allocation50_spill] sm:$0xff] }
 0x2e5   : > { %10619 = vmatprep.mubr.f32.mxu0 %v13700_v16 }
 0x2e8   : > { %10620 = vmatmul.mubr.f32.gmra.mrb[30].mxu0 %v13702_v61 }
 0x2e9   : > { %10632 = vmatprep.mubr.f32.mxu0 %v12782_v5 }
 0x2ec   : > { %10633 = vmatmul.mubr.f32.vlgmr.msra.gmra.mrb[0].mxu0 %v12800_v18 }
 0x2ed   : > { %11577 = vmatpush3.bf16.msra.mxu0 %v12591_v42  ;;  %10635 = vmatprep.mubr.f32.mxu0 %v16995_v46 }
 0x2ee   : > { %11579 = vmatprep.subr.bf16.mxu0 %v16996_v63 }
 0x2f0   : > { %10636 = vmatmul.mubr.f32.gmra.mrb[2].mxu0 %v16997_v21 }
 0x2f1   : > { %10638 = vmatprep.mubr.f32.mxu0 %v16998_v1  ;;  %11581 = vmatpush3.bf16.msra.mxu0 %v16996_v63 }
 0x2f2   : > { %10688 = vmatprep.subr.mxu0 %v16999_v56 }
 0x2f4   : > { %10639 = vmatmul.mubr.f32.gmra.mrb[4].mxu0 %v17004_v51 }
 0x2f5   : > { %10641 = vmatprep.mubr.f32.mxu0 %v17005_v23  ;;  %10689 = vmatpush3.msra.mxu0 %v16999_v56 }
 0x2f6   : > { %11583 = vmatprep.subr.bf16.mxu0 %v13813_v4 }
 0x2f8   : > { %10642 = vmatmul.mubr.f32.gmra.mrb[6].mxu0 %v17006_v35 }
 0x2f9   : > { %10644 = vmatprep.mubr.f32.mxu0 %v17007_v38 }
 0x2fc   : > { %10645 = vmatmul.mubr.f32.gmra.mrb[8].mxu0 %v17008_v29 }
 0x2fd   : > { %10647 = vmatprep.mubr.f32.mxu0 %v17009_v37 }
 0x300   : > { %10648 = vmatmul.mubr.f32.gmra.mrb[10].mxu0 %v17010_v22 }
 0x301   : > { %10650 = vmatprep.mubr.f32.mxu0 %v17011_v15 }
 0x304   : > { %10651 = vmatmul.mubr.f32.gmra.mrb[12].mxu0 %v17012_v49 }
 0x305   : > { %10653 = vmatprep.mubr.f32.mxu0 %v17013_v48 }
 0x308   : > { %10654 = vmatmul.mubr.f32.gmra.mrb[14].mxu0 %v17014_v60 }
 0x309   : > { %10656 = vmatprep.mubr.f32.mxu0 %v17015_v14 }
 0x30c   : > { %10657 = vmatmul.mubr.f32.gmra.mrb[16].mxu0 %v17016_v27 }
 0x30d   : > { %10659 = vmatprep.mubr.f32.mxu0 %v17017_v47  ;;  %v4076_v58 = vpop.permute.xlu0 %4075 }
 0x30e   : > { %v4139_v50 = vsel %vm279_vm0, %v4076_v58, 0 }
 0x30f   : > { %v4078_v25 = vpop.permute.xlu1 %4077  ;;  %v13833_v24 = vand.u32 4294901760, %v4139_v50 }
 0x310   : > { %v4141_v11 = vsel %vm279_vm0, %v4078_v25, 0  ;;  %10660 = vmatmul.mubr.f32.gmra.mrb[18].mxu0 %v17020_v34 }
 0x311   : > { %17018 = vst [vmem:[#allocation10_spill] sm:$0xff] %v13833_v24  ;;  %v13835_v40 = vand.u32 4294901760, %v4141_v11  ;;  %v13839_v61 = vsub.f32 %v4139_v50, %v13833_v24  ;;  %10662 = vmatprep.mubr.f32.mxu0 %v17022_v52  ;;  %v4016_v59 = vpop.permute.xlu0 %4015  ;;  %v17031_v24 = vld [vmem:[#allocation68_spill] sm:$0xff] }
 0x312   : > { %v4079_v58 = vsel %vm279_vm0, %v4016_v59, 0  ;;  %v17030_v59 = vld [vmem:[#allocation55_spill] sm:$0xff] }
 0x313   : > { %17019 = vst [vmem:[#allocation12_spill] sm:$0xff] %v13835_v40  ;;  %v13842_v16 = vsub.f32 %v4141_v11, %v13835_v40  ;;  %v4018_v10 = vpop.permute.xlu1 %4017  ;;  %v13850_v44 = vand.u32 4294901760, %v4079_v58  ;;  %11001 = vmatprep.mubr.f32.mxu1 %v13839_v61  ;;  %v16641_v50 = vand.u32 4294901760, %v13839_v61  ;;  %v17027_v11 = vld [vmem:[#allocation52_spill] sm:$0xff] }
 0x314   : > { %v4081_v25 = vsel %vm279_vm0, %v4018_v10, 0  ;;  %10663 = vmatmul.mubr.f32.gmra.mrb[20].mxu0 %v17027_v11 }
 0x315   : > { %17021 = vst [vmem:[#allocation14_spill] sm:$0xff] %v13842_v16  ;;  %17025 = vst [vmem:[#allocation42_spill] sm:$0xff] %v13850_v44  ;;  %v13852_v45 = vand.u32 4294901760, %v4081_v25  ;;  %11002 = vmatmul.mubr.f32.vlgmr.msra.gmra.mrb[0].mxu1 %v13842_v16  ;;  %v13859_v40 = vsub.f32 %v4079_v58, %v13850_v44  ;;  %10665 = vmatprep.mubr.f32.mxu0 %v17030_v59  ;;  %v4020_v39 = vpop.permute.xlu0 %4019  ;;  %v13869_v20 = vsub.f32 %v13839_v61, %v16641_v50 }
 0x316   : > { %11005 = vmatpush3.msra.mxu1 %v17031_v24  ;;  %v4083_v41 = vsel %vm279_vm0, %v4020_v39, 0 }
 0x317   : > { %17026 = vst [vmem:[#allocation16_spill] sm:$0xff] %v13852_v45  ;;  %17028 = vst [vmem:[#allocation18_spill] sm:$0xff] %v13859_v40  ;;  %v13862_v10 = vsub.f32 %v4081_v25, %v13852_v45  ;;  %v4022_v57 = vpop.permute.xlu1 %4021  ;;  %11054 = vmatprep.subr.mxu1 %v13848_v30  ;;  %v13877_v17 = vand.u32 4294901760, %v4083_v41  ;;  %v16650_v0 = vand.u32 4294901760, %v13859_v40 }
 0x318   : > { %17032 = vst [vmem:[#allocation22_spill] sm:$0xff] %v13869_v20  ;;  %v4085_v43 = vsel %vm279_vm0, %v4022_v57, 0  ;;  %10666 = vmatmul.mubr.f32.gmra.mrb[22].mxu0 %v17035_v32  ;;  %v17038_v57 = vld [vmem:[#allocation59_spill] sm:$0xff] }
 0x319   : > { %17029 = vst [vmem:[#allocation20_spill] sm:$0xff] %v13862_v10  ;;  %v13875_v25 = vand.u32 4294901760, %v4085_v43  ;;  %17034 = vst [vmem:[#allocation26_spill] sm:$0xff] %v13877_v17  ;;  %v13885_v50 = vsub.f32 %v4083_v41, %v13877_v17  ;;  %10668 = vmatprep.mubr.f32.mxu0 %v17038_v57  ;;  %11006 = vmatprep.mubr.f32.mxu1 %v16650_v0  ;;  %v4024_v58 = vpop.permute.xlu0 %4023  ;;  %v17039_v9 = vand.u32 4294901760, %v13862_v10 }
 0x31a   : > { %v4087_v36 = vsel %vm279_vm0, %v4024_v58, 0 }
 0x31b   : > { %17033 = vst [vmem:[#allocation24_spill] sm:$0xff] %v13875_v25  ;;  %v13882_v3 = vsub.f32 %v4085_v43, %v13875_v25  ;;  %17037 = vst [vmem:[#allocation30_spill] sm:$0xff] %v13885_v50  ;;  %v4026_v39 = vpop.permute.xlu1 %4025  ;;  %11007 = vmatmul.mubr.f32.vlgmr.msra.gmra.mrb[2].mxu1 %v17039_v9  ;;  %v13896_v43 = vand.u32 4294901760, %v4087_v36  ;;  %v16664_v41 = vand.u32 4294901760, %v13885_v50  ;;  %v17044_v9 = vld [vmem:[#allocation63_spill] sm:$0xff] }
 0x31c   : > { %v4089_v20 = vsel %vm279_vm0, %v4026_v39, 0  ;;  %11055 = vmatpush3.msra.mxu1 %v13848_v30  ;;  %10669 = vmatmul.mubr.f32.gmra.mrb[24].mxu0 %v17041_v33 }
 0x31d   : > { %17036 = vst [vmem:[#allocation28_spill] sm:$0xff] %v13882_v3  ;;  %v13894_v26 = vand.u32 4294901760, %v4089_v20  ;;  %17040 = vst [vmem:[#allocation32_spill] sm:$0xff] %v13896_v43  ;;  %v16667_v0 = vand.u32 4294901760, %v13882_v3  ;;  %11104 = vmatprep.subr.mxu1 %v17031_v24  ;;  %v13907_v58 = vsub.f32 %v4087_v36, %v13896_v43  ;;  %10671 = vmatprep.mubr.f32.mxu0 %v17044_v9  ;;  %v4028_v40 = vpop.permute.xlu0 %4027 }
 0x31e   : > { %11009 = vmatprep.mubr.f32.mxu1 %v16664_v41  ;;  %v4091_v7 = vsel %vm279_vm0, %v4028_v40, 0  ;;  %v17048_v40 = vld [vmem:[#allocation67_spill] sm:$0xff] }
 0x31f   : > { %v13904_v39 = vsub.f32 %v4089_v20, %v13894_v26  ;;  %17043 = vst [vmem:[#allocation36_spill] sm:$0xff] %v13907_v58  ;;  %v4030_v10 = vpop.permute.xlu1 %4029  ;;  %11010 = vmatmul.mubr.f32.gmra.mrb[4].mxu1 %v16667_v0  ;;  %v13918_v20 = vand.u32 4294901760, %v4091_v7  ;;  %v16677_v36 = vand.u32 4294901760, %v13907_v58 }
 0x320   : > { %v4093_v30 = vsel %vm279_vm0, %v4030_v10, 0  ;;  %10672 = vmatmul.mubr.f32.gmra.mrb[26].mxu0 %v17045_v31 }
 0x321   : > { %17042 = vst [vmem:[#allocation34_spill] sm:$0xff] %v13904_v39  ;;  %v13916_v28 = vand.u32 4294901760, %v4093_v30  ;;  %v16678_v53 = vand.u32 4294901760, %v13904_v39  ;;  %v13927_v10 = vsub.f32 %v4091_v7, %v13918_v20  ;;  %10674 = vmatprep.mubr.f32.mxu0 %v17048_v40  ;;  %11012 = vmatprep.mubr.f32.mxu1 %v16677_v36  ;;  %v4032_v0 = vpop.permute.xlu0 %4031 }
 0x322   : > { %v4095_v6 = vsel %vm279_vm0, %v4032_v0, 0 }
 0x323   : > { %v13924_v41 = vsub.f32 %v4093_v30, %v13916_v28  ;;  %17047 = vst [vmem:[#allocation40_spill] sm:$0xff] %v13927_v10  ;;  %v4034_v3 = vpop.permute.xlu1 %4033  ;;  %11013 = vmatmul.mubr.f32.gmra.mrb[6].mxu1 %v16678_v53  ;;  %v13938_v30 = vand.u32 4294901760, %v4095_v6  ;;  %v16686_v7 = vand.u32 4294901760, %v13927_v10 }
 0x324   : > { %v4097_v50 = vsel %vm279_vm0, %v4034_v3, 0  ;;  %10675 = vmatmul.mubr.f32.gmra.mrb[28].mxu0 %v17050_v55 }
 0x325   : > { %17046 = vst [vmem:[#allocation38_spill] sm:$0xff] %v13924_v41  ;;  %v13936_v12 = vand.u32 4294901760, %v4097_v50  ;;  %v16687_v56 = vand.u32 4294901760, %v13924_v41  ;;  %v13947_v3 = vsub.f32 %v4095_v6, %v13938_v30  ;;  %10677 = vmatprep.mubr.f32.mxu0 %v13705_v2  ;;  %11015 = vmatprep.mubr.f32.mxu1 %v16686_v7  ;;  %v4036_v53 = vpop.permute.xlu0 %4035 }
 0x326   : > { %v4099_v58 = vsel %vm279_vm0, %v4036_v53, 0  ;;  %v17057_v53 = vand.u32 4294901760, %v12782_v5 }
 0x327   : > { %17049 = vst [vmem:[#allocation44_spill] sm:$0xff] %v13936_v12  ;;  %v13944_v36 = vsub.f32 %v4097_v50, %v13936_v12  ;;  %17052 = vst [vmem:[#allocation50_spill] sm:$0xff] %v13947_v3  ;;  %v4038_v0 = vpop.permute.xlu1 %4037  ;;  %11016 = vmatmul.mubr.f32.gmra.mrb[8].mxu1 %v16687_v56  ;;  %v13958_v50 = vand.u32 4294901760, %v4099_v58  ;;  %v16702_v6 = vand.u32 4294901760, %v13947_v3 }
 0x328   : > { %v4101_v39 = vsel %vm279_vm0, %v4038_v0, 0  ;;  %10678 = vmatmul.mubr.f32.gmra.mrb[30].mxu0 %v13708_v19 }
 0x329   : > { %17051 = vst [vmem:[#allocation46_spill] sm:$0xff] %v13944_v36  ;;  %v13956_v8 = vand.u32 4294901760, %v4101_v39  ;;  %17054 = vst [vmem:[#allocation55_spill] sm:$0xff] %v13958_v50  ;;  %v13967_v0 = vsub.f32 %v4099_v58, %v13958_v50  ;;  %10690 = vmatprep.mubr.f32.mxu0 %v17057_v53  ;;  %11018 = vmatprep.mubr.f32.mxu1 %v16702_v6  ;;  %v4040_v41 = vpop.permute.xlu0 %4039  ;;  %v17058_v54 = vand.u32 4294901760, %v13944_v36  ;;  %v17062_v58 = vand.u32 4294901760, %v17061_v13  ;;  %v17158_v36 = vld [vmem:[#allocation41_spill] sm:$0xff] }
 0x32a   : > { %v4103_v63 = vsel %vm279_vm0, %v4040_v41, 0  ;;  %v17066_v13 = vand.u32 4294901760, %v16995_v46 }
 0x32b   : > { %17053 = vst [vmem:[#allocation52_spill] sm:$0xff] %v13956_v8  ;;  %v13964_v7 = vsub.f32 %v4101_v39, %v13956_v8  ;;  %17056 = vst [vmem:[#allocation57_spill] sm:$0xff] %v13967_v0  ;;  %v4042_v56 = vpop.permute.xlu1 %4041  ;;  %11019 = vmatmul.mubr.f32.gmra.mrb[10].mxu1 %v17058_v54  ;;  %v17059_v39 = vld [vmem:[#allocation47_spill] sm:$0xff]  ;;  %v13983_v5 = vand.u32 4294901760, %v4103_v63  ;;  %v16703_v53 = vand.u32 4294901760, %v13967_v0  ;;  %v17155_v0 = vld [vmem:[#allocation66_spill] sm:$0xff] }
 0x32c   : > { %v4105_v10 = vsel %vm279_vm0, %v4042_v56, 0  ;;  %v17060_v8 = vand.u32 4294901760, %v17059_v39  ;;  %v17063_v56 = vand.u32 4294901760, %v12800_v18 }
 0x32d   : > { %17055 = vst [vmem:[#allocation68_spill] sm:$0xff] %v13964_v7  ;;  %v13981_v12 = vand.u32 4294901760, %v4105_v10  ;;  %v16704_v6 = vand.u32 4294901760, %v13964_v7  ;;  %v13993_v54 = vsub.f32 %v4103_v63, %v13983_v5  ;;  %v4044_v39 = vpop.permute.xlu0 %4043  ;;  %11021 = vmatprep.mubr.f32.mxu1 %v16703_v53 }
 0x32e   : > { %v11586_v50 = vpack.c.bf16 %v17062_v58, %v17060_v8  ;;  %10691 = vmatmul.mubr.f32.vlgmr.msra.gmra.mrb[0].mxu0 %v17063_v56  ;;  %v4107_v18 = vsel %vm279_vm0, %v4044_v39, 0  ;;  %v17070_v39 = vand.u32 4294901760, %v16998_v1 }
 0x32f   : > { %v13990_v41 = vsub.f32 %v4105_v10, %v13981_v12  ;;  %17065 = vst [vmem:[#allocation61_spill] sm:$0xff] %v13993_v54  ;;  %11585 = vmatpush3.bf16.msra.mxu0 %v13813_v4  ;;  %10693 = vmatprep.mubr.f32.mxu0 %v17066_v13  ;;  %v4046_v8 = vpop.permute.xlu1 %4045  ;;  %v14004_v56 = vand.u32 4294901760, %v4107_v18  ;;  %v16707_v46 = vand.u32 4294901760, %v13993_v54  ;;  %v17067_v4 = vand.u32 4294901760, %v16997_v21 }
 0x330   : > { %v4109_v58 = vsel %vm279_vm0, %v4046_v8, 0  ;;  %11587 = vmatprep.subr.bf16.mxu0 %v11586_v50  ;;  %11022 = vmatmul.mubr.f32.gmra.mrb[12].mxu1 %v16704_v6 }
 0x331   : > { %17064 = vst [vmem:[#allocation59_spill] sm:$0xff] %v13990_v41  ;;  %v14002_v10 = vand.u32 4294901760, %v4109_v58  ;;  %v14016_v8 = vsub.f32 %v4107_v18, %v14004_v56  ;;  %11024 = vmatprep.mubr.f32.mxu1 %v16707_v46  ;;  %v4048_v6 = vpop.permute.xlu0 %4047  ;;  %v17071_v18 = vand.u32 4294901760, %v13990_v41  ;;  %v17073_v46 = vand.u32 4294901760, %v17004_v51 }
 0x332   : > { %10694 = vmatmul.mubr.f32.gmra.mrb[2].mxu0 %v17067_v4  ;;  %v4111_v63 = vsel %vm279_vm0, %v4048_v6, 0  ;;  %v17076_v6 = vand.u32 4294901760, %v17005_v23 }
 0x333   : > { %v14013_v13 = vsub.f32 %v4109_v58, %v14002_v10  ;;  %17069 = vst [vmem:[#allocation65_spill] sm:$0xff] %v14016_v8  ;;  %10696 = vmatprep.mubr.f32.mxu0 %v17070_v39  ;;  %v4050_v53 = vpop.permute.xlu1 %4049  ;;  %11589 = vmatpush3.bf16.msra.mxu0 %v11586_v50  ;;  %v14026_v58 = vand.u32 4294901760, %v4111_v63  ;;  %v16712_v1 = vand.u32 4294901760, %v14016_v8  ;;  %v17072_v39 = vld [vmem:[#allocation53_spill] sm:$0xff]  ;;  %v17154_v8 = vld [vmem:[#allocation64_spill] sm:$0xff] }
 0x334   : > { %v4113_v7 = vsel %vm279_vm0, %v4050_v53, 0  ;;  %11025 = vmatmul.mubr.f32.gmra.mrb[14].mxu1 %v17071_v18  ;;  %10746 = vmatprep.subr.mxu0 %v17072_v39 }
 0x335   : > { %17068 = vst [vmem:[#allocation63_spill] sm:$0xff] %v14013_v13  ;;  %v14024_v21 = vand.u32 4294901760, %v4113_v7  ;;  %v14039_v50 = vsub.f32 %v4111_v63, %v14026_v58  ;;  %11027 = vmatprep.mubr.f32.mxu1 %v16712_v1  ;;  %v4052_v18 = vpop.permute.xlu0 %4051 }
 0x336   : > { %10697 = vmatmul.mubr.f32.gmra.mrb[4].mxu0 %v17073_v46  ;;  %v4115_v54 = vsel %vm279_vm0, %v4052_v18, 0  ;;  %v17077_v46 = vand.u32 4294901760, %v14013_v13  ;;  %v17081_v18 = vand.u32 4294901760, %v17007_v38 }
 0x337   : > { %v14036_v53 = vsub.f32 %v4113_v7, %v14024_v21  ;;  %17075 = vst [vmem:[#allocation71_spill] sm:$0xff] %v14039_v50  ;;  %10699 = vmatprep.mubr.f32.mxu0 %v17076_v6  ;;  %v4054_v41 = vpop.permute.xlu1 %4053  ;;  %10747 = vmatpush3.msra.mxu0 %v17072_v39  ;;  %v14050_v7 = vand.u32 4294901760, %v4115_v54  ;;  %v16715_v23 = vand.u32 4294901760, %v14039_v50  ;;  %v17078_v6 = vand.u32 4294901760, %v17006_v35 }
 0x338   : > { %v4117_v4 = vsel %vm279_vm0, %v4054_v41, 0  ;;  %11028 = vmatmul.mubr.f32.gmra.mrb[16].mxu1 %v17077_v46  ;;  %11591 = vmatprep.subr.bf16.mxu0 %v12591_v42 }
 0x339   : > { %17074 = vst [vmem:[#allocation67_spill] sm:$0xff] %v14036_v53  ;;  %v14048_v51 = vand.u32 4294901760, %v4117_v4  ;;  %v14063_v39 = vsub.f32 %v4115_v54, %v14050_v7  ;;  %11030 = vmatprep.mubr.f32.mxu1 %v16715_v23  ;;  %v4056_v46 = vpop.permute.xlu0 %4055 }
 0x33a   : > { %10700 = vmatmul.mubr.f32.gmra.mrb[6].mxu0 %v17078_v6  ;;  %v4119_v13 = vsel %vm279_vm0, %v4056_v46, 0  ;;  %v17086_v46 = vand.u32 4294901760, %v17009_v37 }
 0x33b   : > { %v14060_v41 = vsub.f32 %v4117_v4, %v14048_v51  ;;  %17080 = vst [vmem:[#allocation48_spill] sm:$0xff] %v14063_v39  ;;  %10702 = vmatprep.mubr.f32.mxu0 %v17081_v18  ;;  %v4058_v1 = vpop.permute.xlu1 %4057  ;;  %v14073_v6 = vand.u32 4294901760, %v4119_v13  ;;  %v17082_v4 = vand.u32 4294901760, %v14036_v53  ;;  %v16720_v54 = vand.u32 4294901760, %v14063_v39 }
 0x33c   : > { %v4121_v63 = vsel %vm279_vm0, %v4058_v1, 0  ;;  %v17083_v18 = vand.u32 4294901760, %v17008_v29 }
 0x33d   : > { %17079 = vst [vmem:[#allocation47_spill] sm:$0xff] %v14060_v41  ;;  %v14071_v35 = vand.u32 4294901760, %v4121_v63  ;;  %11031 = vmatmul.mubr.f32.gmra.mrb[18].mxu1 %v17082_v4  ;;  %v14085_v1 = vsub.f32 %v4119_v13, %v14073_v6  ;;  %v4060_v4 = vpop.permute.xlu0 %4059 }
 0x33e   : > { %10703 = vmatmul.mubr.f32.gmra.mrb[8].mxu0 %v17083_v18  ;;  %11033 = vmatprep.mubr.f32.mxu1 %v16720_v54  ;;  %v4123_v38 = vsel %vm279_vm0, %v4060_v4, 0  ;;  %v17091_v4 = vand.u32 4294901760, %v17011_v15 }
 0x33f   : > { %v14082_v23 = vsub.f32 %v4121_v63, %v14071_v35  ;;  %17085 = vst [vmem:[#allocation74_spill] sm:$0xff] %v14085_v1  ;;  %10705 = vmatprep.mubr.f32.mxu0 %v17086_v46  ;;  %v4062_v50 = vpop.permute.xlu1 %4061  ;;  %v14095_v18 = vand.u32 4294901760, %v4123_v38  ;;  %v17087_v63 = vand.u32 4294901760, %v14060_v41  ;;  %v16725_v13 = vand.u32 4294901760, %v14085_v1 }
 0x340   : > { %v4125_v53 = vsel %vm279_vm0, %v4062_v50, 0  ;;  %v17088_v46 = vand.u32 4294901760, %v17010_v22 }
 0x341   : > { %17084 = vst [vmem:[#allocation53_spill] sm:$0xff] %v14082_v23  ;;  %v14093_v29 = vand.u32 4294901760, %v4125_v53  ;;  %11034 = vmatmul.mubr.f32.gmra.mrb[20].mxu1 %v17087_v63  ;;  %v14107_v50 = vsub.f32 %v4123_v38, %v14095_v18  ;;  %v4064_v63 = vpop.permute.xlu0 %4063 }
 0x342   : > { %10706 = vmatmul.mubr.f32.gmra.mrb[10].mxu0 %v17088_v46  ;;  %11036 = vmatprep.mubr.f32.mxu1 %v16725_v13  ;;  %v4127_v37 = vsel %vm279_vm0, %v4064_v63, 0  ;;  %v17096_v63 = vand.u32 4294901760, %v17013_v48 }
 0x343   : > { %v14104_v54 = vsub.f32 %v4125_v53, %v14093_v29  ;;  %17090 = vst [vmem:[#allocation76_spill] sm:$0xff] %v14107_v50  ;;  %10708 = vmatprep.mubr.f32.mxu0 %v17091_v4  ;;  %v4066_v39 = vpop.permute.xlu1 %4065  ;;  %v14117_v46 = vand.u32 4294901760, %v4127_v37  ;;  %v17092_v53 = vand.u32 4294901760, %v14082_v23  ;;  %v16730_v38 = vand.u32 4294901760, %v14107_v50 }
 0x344   : > { %v4129_v41 = vsel %vm279_vm0, %v4066_v39, 0  ;;  %v17093_v4 = vand.u32 4294901760, %v17012_v49 }
 0x345   : > { %17089 = vst [vmem:[#allocation75_spill] sm:$0xff] %v14104_v54  ;;  %v14115_v22 = vand.u32 4294901760, %v4129_v41  ;;  %11037 = vmatmul.mubr.f32.gmra.mrb[22].mxu1 %v17092_v53  ;;  %v14129_v39 = vsub.f32 %v4127_v37, %v14117_v46  ;;  %v4068_v53 = vpop.permute.xlu0 %4067 }
 0x346   : > { %10709 = vmatmul.mubr.f32.gmra.mrb[12].mxu0 %v17093_v4  ;;  %11039 = vmatprep.mubr.f32.mxu1 %v16730_v38  ;;  %v4131_v15 = vsel %vm279_vm0, %v4068_v53, 0  ;;  %v17101_v53 = vand.u32 4294901760, %v17015_v14 }
 0x347   : > { %v14126_v13 = vsub.f32 %v4129_v41, %v14115_v22  ;;  %17095 = vst [vmem:[#allocation78_spill] sm:$0xff] %v14129_v39  ;;  %10711 = vmatprep.mubr.f32.mxu0 %v17096_v63  ;;  %v4070_v1 = vpop.permute.xlu1 %4069  ;;  %v14139_v4 = vand.u32 4294901760, %v4131_v15  ;;  %v17097_v41 = vand.u32 4294901760, %v14104_v54  ;;  %v16735_v37 = vand.u32 4294901760, %v14129_v39  ;;  %v17153_v39 = vld [vmem:[#allocation62_spill] sm:$0xff] }
 0x348   : > { %v4133_v23 = vsel %vm279_vm0, %v4070_v1, 0  ;;  %v17098_v63 = vand.u32 4294901760, %v17014_v60 }
 0x349   : > { %17094 = vst [vmem:[#allocation77_spill] sm:$0xff] %v14126_v13  ;;  %v14137_v49 = vand.u32 4294901760, %v4133_v23  ;;  %11040 = vmatmul.mubr.f32.gmra.mrb[24].mxu1 %v17097_v41  ;;  %v14151_v1 = vsub.f32 %v4131_v15, %v14139_v4  ;;  %v4072_v41 = vpop.permute.xlu0 %4071 }
 0x34a   : > { %10712 = vmatmul.mubr.f32.gmra.mrb[14].mxu0 %v17098_v63  ;;  %11042 = vmatprep.mubr.f32.mxu1 %v16735_v37  ;;  %v4135_v48 = vsel %vm279_vm0, %v4072_v41, 0  ;;  %v17106_v41 = vand.u32 4294901760, %v17017_v47  ;;  %v17109_v47 = vand.u32 4294901760, %v17027_v11  ;;  %v17115_v11 = vand.u32 4294901760, %v17044_v9  ;;  %v17121_v9 = vld [vmem:[#allocation44_spill] sm:$0xff] }
 0x34b   : > { %v14148_v38 = vsub.f32 %v4133_v23, %v14137_v49  ;;  %17100 = vst [vmem:[#allocation80_spill] sm:$0xff] %v14151_v1  ;;  %10714 = vmatprep.mubr.f32.mxu0 %v17101_v53  ;;  %v4074_v50 = vpop.permute.xlu1 %4073  ;;  %v14161_v63 = vand.u32 4294901760, %v4135_v48  ;;  %v17102_v23 = vand.u32 4294901760, %v14126_v13  ;;  %v16740_v15 = vand.u32 4294901760, %v14151_v1  ;;  %v17151_v1 = vld [vmem:[#allocation58_spill] sm:$0xff]  ;;  %v17152_v13 = vld [vmem:[#allocation60_spill] sm:$0xff] }
 0x34c   : > { %v4137_v54 = vsel %vm279_vm0, %v4074_v50, 0  ;;  %v17103_v53 = vand.u32 4294901760, %v17016_v27  ;;  %vm6228_vm0 = vcmask 130112  }
 0x34d   : > { %17099 = vst [vmem:[#allocation79_spill] sm:$0xff] %v14148_v38  ;;  %v14159_v60 = vand.u32 4294901760, %v4137_v54  ;;  %11043 = vmatmul.mubr.f32.gmra.mrb[26].mxu1 %v17102_v23  ;;  %v16739_v14 = vand.u32 4294901760, %v14148_v38  ;;  %v14173_v50 = vsub.f32 %v4135_v48, %v14161_v63  ;;  %v17110_v48 = vand.u32 4294901760, %v13839_v61  ;;  %v17150_v38 = vld [vmem:[#allocation56_spill] sm:$0xff] }
 0x34e   : > { %10715 = vmatmul.mubr.f32.gmra.mrb[16].mxu0 %v17103_v53  ;;  %11045 = vmatprep.mubr.f32.mxu1 %v16740_v15  ;;  %v17107_v53 = vand.u32 4294901760, %v17020_v34  ;;  %v16736_v34 = vand.u32 4294901760, %v13842_v16  ;;  %v17114_v61 = vand.u32 4294901760, %v17041_v33  ;;  %v17118_v33 = vand.u32 4294901760, %v17050_v55  ;;  %v17123_v55 = vld [vmem:[#allocation55_spill] sm:$0xff]  ;;  %v17147_v16 = vld [vmem:[#allocation10_spill] sm:$0xff] }
 0x34f   : > { %v14170_v37 = vsub.f32 %v4137_v54, %v14159_v60  ;;  %17105 = vst [vmem:[#allocation82_spill] sm:$0xff] %v14173_v50  ;;  %10717 = vmatprep.mubr.f32.mxu0 %v17106_v41  ;;  %v16738_v23 = vand.u32 4294901760, %v14173_v50  ;;  %v17108_v54 = vand.u32 4294901760, %v17022_v52  ;;  %v17111_v41 = vand.u32 4294901760, %v17030_v59  ;;  %v17146_v15 = vld [vmem:[#allocation51_spill] sm:$0xff]  ;;  %v17149_v50 = vld [vmem:[#allocation12_spill] sm:$0xff] }
 0x350   : > { %v17112_v52 = vand.u32 4294901760, %v17035_v32  ;;  %v17116_v32 = vand.u32 4294901760, %v17045_v31  ;;  %v17117_v59 = vand.u32 4294901760, %v17048_v40  ;;  %v17120_v31 = vand.u32 4294901760, %v13708_v19  ;;  %v17122_v40 = vld [vmem:[#allocation8_spill] sm:$0xff]  ;;  %v17127_v19 = vld [vmem:[#allocation11_spill] sm:$0xff] }
 0x351   : > { %17104 = vst [vmem:[#allocation81_spill] sm:$0xff] %v14170_v37  ;;  %11046 = vmatmul.mubr.f32.gmra.mrb[28].mxu1 %v16739_v14  ;;  %v16737_v27 = vand.u32 4294901760, %v14170_v37  ;;  %v17145_v14 = vld [vmem:[#allocation49_spill] sm:$0xff]  ;;  %v17148_v37 = vld [vmem:[#allocation54_spill] sm:$0xff] }
 0x352   : > { %10718 = vmatmul.mubr.f32.gmra.mrb[18].mxu0 %v17107_v53  ;;  %11048 = vmatprep.mubr.f32.mxu1 %v16738_v23  ;;  %v17113_v53 = vand.u32 4294901760, %v17038_v57  ;;  %v17119_v57 = vand.u32 4294901760, %v13705_v2  ;;  %v17125_v2 = vld [vmem:[#allocation6_spill] sm:$0xff]  ;;  %v17144_v23 = vld [vmem:[#allocation45_spill] sm:$0xff] }
 0x353   : > { %10720 = vmatprep.mubr.f32.mxu0 %v17108_v54  ;;  %v17124_v54 = vld [vmem:[#allocation9_spill] sm:$0xff] }
 0x355   : > { %11049 = vmatmul.mubr.f32.gmra.mrb[30].mxu1 %v16737_v27  ;;  %v17143_v27 = vld [vmem:[#allocation43_spill] sm:$0xff] }
 0x356   : > { %10721 = vmatmul.mubr.f32.gmra.mrb[20].mxu0 %v17109_v47  ;;  %11051 = vmatprep.mubr.f32.mxu1 %v17110_v48  ;;  %v17126_v47 = vld [vmem:[#allocation52_spill] sm:$0xff]  ;;  %v17128_v48 = vld [vmem:[#allocation13_spill] sm:$0xff] }
 0x357   : > { %10723 = vmatprep.mubr.f32.mxu0 %v17111_v41  ;;  %v17129_v41 = vld [vmem:[#allocation7_spill] sm:$0xff] }
 0x359   : > { %11052 = vmatmul.mubr.f32.gmra.mrb[0].mxu1 %v16736_v34  ;;  %v17142_v34 = vld [vmem:[#allocation39_spill] sm:$0xff] }
 0x35a   : > { %10724 = vmatmul.mubr.f32.gmra.mrb[22].mxu0 %v17112_v52  ;;  %11056 = vmatprep.mubr.f32.mxu1 %v13850_v44  ;;  %v17130_v52 = vld [vmem:[#allocation15_spill] sm:$0xff] }
 0x35b   : > { %10726 = vmatprep.mubr.f32.mxu0 %v17113_v53  ;;  %v17132_v53 = vld [vmem:[#allocation19_spill] sm:$0xff] }
 0x35d   : > { %11057 = vmatmul.mubr.f32.vlgmr.msra.gmra.mrb[2].mxu1 %v13852_v45 }
 0x35e   : > { %10727 = vmatmul.mubr.f32.gmra.mrb[24].mxu0 %v17114_v61  ;;  %11059 = vmatprep.mubr.f32.mxu1 %v13877_v17  ;;  %v17133_v61 = vld [vmem:[#allocation21_spill] sm:$0xff] }
 0x35f   : > { %10729 = vmatprep.mubr.f32.mxu0 %v17115_v11  ;;  %11105 = vmatpush3.msra.mxu1 %v17031_v24  ;;  %v17134_v11 = vld [vmem:[#allocation23_spill] sm:$0xff] }
 0x361   : > { %11060 = vmatmul.mubr.f32.gmra.mrb[4].mxu1 %v13875_v25 }
 0x362   : > { %10730 = vmatmul.mubr.f32.gmra.mrb[26].mxu0 %v17116_v32  ;;  %11062 = vmatprep.mubr.f32.mxu1 %v13896_v43  ;;  %v17135_v32 = vld [vmem:[#allocation25_spill] sm:$0xff] }
 0x363   : > { %10732 = vmatprep.mubr.f32.mxu0 %v17117_v59  ;;  %v17136_v59 = vld [vmem:[#allocation27_spill] sm:$0xff] }
 0x365   : > { %11063 = vmatmul.mubr.f32.gmra.mrb[6].mxu1 %v13894_v26 }
 0x366   : > { %10733 = vmatmul.mubr.f32.gmra.mrb[28].mxu0 %v17118_v33  ;;  %11065 = vmatprep.mubr.f32.mxu1 %v13918_v20  ;;  %v17137_v33 = vld [vmem:[#allocation29_spill] sm:$0xff] }
 0x367   : > { %10735 = vmatprep.mubr.f32.mxu0 %v17119_v57  ;;  %v17138_v57 = vld [vmem:[#allocation31_spill] sm:$0xff] }
 0x369   : > { %11066 = vmatmul.mubr.f32.gmra.mrb[8].mxu1 %v13916_v28 }
 0x36a   : > { %10736 = vmatmul.mubr.f32.gmra.mrb[30].mxu0 %v17120_v31  ;;  %11068 = vmatprep.mubr.f32.mxu1 %v13938_v30  ;;  %v17139_v31 = vld [vmem:[#allocation33_spill] sm:$0xff] }
 0x36b   : > { %10748 = vmatprep.mubr.f32.mxu0 %v12779_v62 }
 0x36d   : > { %11069 = vmatmul.mubr.f32.gmra.mrb[10].mxu1 %v17121_v9 }
 0x36e   : > { %10749 = vmatmul.mubr.f32.vlgmr.msra.gmra.mrb[0].mxu0 %v17122_v40  ;;  %11071 = vmatprep.mubr.f32.mxu1 %v17123_v55 }
 0x36f   : > { %11593 = vmatpush3.bf16.msra.mxu0 %v12591_v42  ;;  %10751 = vmatprep.mubr.f32.mxu0 %v17124_v54  ;;  %v17131_v42 = vld [vmem:[#allocation17_spill] sm:$0xff] }
 0x370   : > { %11595 = vmatprep.subr.bf16.mxu0 %v17125_v2 }
 0x371   : > { %11072 = vmatmul.mubr.f32.gmra.mrb[12].mxu1 %v17126_v47 }
 0x372   : > { %10752 = vmatmul.mubr.f32.gmra.mrb[2].mxu0 %v17127_v19  ;;  %11074 = vmatprep.mubr.f32.mxu1 %v13983_v5 }
 0x373   : > { %10754 = vmatprep.mubr.f32.mxu0 %v17128_v48  ;;  %11597 = vmatpush3.bf16.msra.mxu0 %v17125_v2  ;;  %v17140_v2 = vld [vmem:[#allocation35_spill] sm:$0xff] }
 0x374   : > { %10804 = vmatprep.subr.mxu0 %v17129_v41 }
 0x375   : > { %11075 = vmatmul.mubr.f32.gmra.mrb[14].mxu1 %v13981_v12 }
 0x376   : > { %10755 = vmatmul.mubr.f32.gmra.mrb[4].mxu0 %v17130_v52  ;;  %11077 = vmatprep.mubr.f32.mxu1 %v14004_v56 }
 0x377   : > { %10757 = vmatprep.mubr.f32.mxu0 %v17131_v42  ;;  %10805 = vmatpush3.msra.mxu0 %v17129_v41  ;;  %v17141_v41 = vld [vmem:[#allocation37_spill] sm:$0xff] }
 0x378   : > { %10854 = vmatprep.subr.mxu0 %v17031_v24 }
 0x379   : > { %11078 = vmatmul.mubr.f32.gmra.mrb[16].mxu1 %v14002_v10 }
 0x37a   : > { %10758 = vmatmul.mubr.f32.gmra.mrb[6].mxu0 %v17132_v53  ;;  %11080 = vmatprep.mubr.f32.mxu1 %v14026_v58 }
 0x37b   : > { %10760 = vmatprep.mubr.f32.mxu0 %v17133_v61 }
 0x37d   : > { %11081 = vmatmul.mubr.f32.gmra.mrb[18].mxu1 %v14024_v21 }
 0x37e   : > { %10761 = vmatmul.mubr.f32.gmra.mrb[8].mxu0 %v17134_v11  ;;  %11083 = vmatprep.mubr.f32.mxu1 %v14050_v7 }
 0x37f   : > { %10763 = vmatprep.mubr.f32.mxu0 %v17135_v32 }
 0x381   : > { %11084 = vmatmul.mubr.f32.gmra.mrb[20].mxu1 %v14048_v51 }
 0x382   : > { %10764 = vmatmul.mubr.f32.gmra.mrb[10].mxu0 %v17136_v59  ;;  %11086 = vmatprep.mubr.f32.mxu1 %v14073_v6 }
 0x383   : > { %10766 = vmatprep.mubr.f32.mxu0 %v17137_v33 }
 0x385   : > { %11087 = vmatmul.mubr.f32.gmra.mrb[22].mxu1 %v14071_v35 }
 0x386   : > { %10767 = vmatmul.mubr.f32.gmra.mrb[12].mxu0 %v17138_v57  ;;  %11089 = vmatprep.mubr.f32.mxu1 %v14095_v18 }
 0x387   : > { %10769 = vmatprep.mubr.f32.mxu0 %v17139_v31 }
 0x389   : > { %11090 = vmatmul.mubr.f32.gmra.mrb[24].mxu1 %v14093_v29 }
 0x38a   : > { %10770 = vmatmul.mubr.f32.gmra.mrb[14].mxu0 %v17140_v2  ;;  %11092 = vmatprep.mubr.f32.mxu1 %v14117_v46 }
 0x38b   : > { %10772 = vmatprep.mubr.f32.mxu0 %v17141_v41 }
 0x38d   : > { %11093 = vmatmul.mubr.f32.gmra.mrb[26].mxu1 %v14115_v22 }
 0x38e   : > { %10773 = vmatmul.mubr.f32.gmra.mrb[16].mxu0 %v17142_v34  ;;  %11095 = vmatprep.mubr.f32.mxu1 %v14139_v4 }
 0x38f   : > { %10775 = vmatprep.mubr.f32.mxu0 %v17143_v27 }
 0x391   : > { %11096 = vmatmul.mubr.f32.gmra.mrb[28].mxu1 %v14137_v49 }
 0x392   : > { %10776 = vmatmul.mubr.f32.gmra.mrb[18].mxu0 %v17144_v23  ;;  %11098 = vmatprep.mubr.f32.mxu1 %v14161_v63 }
 0x393   : > { %10778 = vmatprep.mubr.f32.mxu0 %v17145_v14 }
 0x395   : > { %11099 = vmatmul.mubr.f32.gmra.mrb[30].mxu1 %v14159_v60 }
 0x396   : > { %10779 = vmatmul.mubr.f32.gmra.mrb[20].mxu0 %v17146_v15  ;;  %11101 = vmatprep.mubr.f32.mxu1 %v17147_v16 }
 0x397   : > { %10781 = vmatprep.mubr.f32.mxu0 %v17148_v37 }
 0x399   : > { %11102 = vmatmul.mubr.f32.gmra.mrb[0].mxu1 %v17149_v50 }
 0x39a   : > { %10782 = vmatmul.mubr.f32.gmra.mrb[22].mxu0 %v17150_v38  ;;  %11106 = vmatprep.mubr.f32.mxu1 %v13850_v44  ;;  %v17156_v44 = vld [vmem:[#allocation69_spill] sm:$0xff] }
 0x39b   : > { %10784 = vmatprep.mubr.f32.mxu0 %v17151_v1 }
 0x39d   : > { %11107 = vmatmul.mubr.f32.vlgmr.msra.gmra.mrb[2].mxu1 %v13852_v45  ;;  %v17157_v45 = vld [vmem:[#allocation72_spill] sm:$0xff] }
 0x39e   : > { %10785 = vmatmul.mubr.f32.gmra.mrb[24].mxu0 %v17152_v13  ;;  %11109 = vmatprep.mubr.f32.mxu1 %v13877_v17  ;;  %v17159_v17 = vld [vmem:[#allocation70_spill] sm:$0xff] }
 0x39f   : > { %10787 = vmatprep.mubr.f32.mxu0 %v17153_v39  ;;  %v4536_v3 = vsub.f32 %v17159_v17, %v17158_v36 }
 0x3a1   : > { %11110 = vmatmul.mubr.f32.gmra.mrb[4].mxu1 %v13875_v25  ;;  %v17160_v25 = vld [vmem:[#allocation73_spill] sm:$0xff] }
 0x3a2   : > { %10788 = vmatmul.mubr.f32.gmra.mrb[26].mxu0 %v17154_v8  ;;  %11112 = vmatprep.mubr.f32.mxu1 %v13896_v43  ;;  %v14301_v43 = vand.u32 4294901760, %v4536_v3  ;;  %v17163_v3 = vld [vmem:[#allocation20_spill] sm:$0xff] }
 0x3a3   : > { %10790 = vmatprep.mubr.f32.mxu0 %v17155_v0 }
 0x3a5   : > { %11113 = vmatmul.mubr.f32.gmra.mrb[6].mxu1 %v13894_v26 }
 0x3a6   : > { %10791 = vmatmul.mubr.f32.gmra.mrb[28].mxu0 %v17156_v44  ;;  %11115 = vmatprep.mubr.f32.mxu1 %v13918_v20 }
 0x3a7   : > { %10793 = vmatprep.mubr.f32.mxu0 %v17157_v45 }
 0x3a9   : > { %11116 = vmatmul.mubr.f32.gmra.mrb[8].mxu1 %v13916_v28 }
 0x3aa   : > { %10794 = vmatmul.mubr.f32.gmra.mrb[30].mxu0 %v17160_v25  ;;  %11118 = vmatprep.mubr.f32.mxu1 %v13938_v30 }
 0x3ab   : > { %10806 = vmatprep.mubr.f32.mxu0 %v12779_v62  ;;  %v17161_v62 = vld [vmem:[#allocation18_spill] sm:$0xff] }
 0x3ad   : > { %11119 = vmatmul.mubr.f32.gmra.mrb[10].mxu1 %v17121_v9 }
 0x3ae   : > { %10807 = vmatmul.mubr.f32.vlgmr.msra.gmra.mrb[0].mxu0 %v17122_v40  ;;  %11121 = vmatprep.mubr.f32.mxu1 %v17123_v55 }
 0x3af   : > { %10809 = vmatprep.mubr.f32.mxu0 %v17124_v54  ;;  %10855 = vmatpush3.msra.mxu0 %v17031_v24  ;;  %v17162_v24 = vand.u32 4294901760, %v17161_v62  ;;  %v17171_v54 = vld [vmem:[#allocation34_spill] sm:$0xff] }
 0x3b0   : > { %10904 = vmatprep.subr.mxu0 %v14301_v43 }
 0x3b1   : > { %11122 = vmatmul.mubr.f32.gmra.mrb[12].mxu1 %v17126_v47  ;;  %v4215_v36 = vsub.f32 %v17161_v62, %v17162_v24 }
 0x3b2   : > { %10810 = vmatmul.mubr.f32.gmra.mrb[2].mxu0 %v17127_v19  ;;  %11124 = vmatprep.mubr.f32.mxu1 %v13983_v5  ;;  %v17172_v19 = vand.u32 4294901760, %v17171_v54 }
 0x3b3   : > { %10812 = vmatprep.mubr.f32.mxu0 %v17128_v48 }
 0x3b5   : > { %11125 = vmatmul.mubr.f32.gmra.mrb[14].mxu1 %v13981_v12 }
 0x3b6   : > { %10813 = vmatmul.mubr.f32.gmra.mrb[4].mxu0 %v17130_v52  ;;  %11127 = vmatprep.mubr.f32.mxu1 %v14004_v56  ;;  %v17173_v52 = vld [vmem:[#allocation40_spill] sm:$0xff] }
 0x3b7   : > { %10815 = vmatprep.mubr.f32.mxu0 %v17131_v42  ;;  %v17174_v42 = vand.u32 4294901760, %v17173_v52 }
 0x3b9   : > { %11128 = vmatmul.mubr.f32.gmra.mrb[16].mxu1 %v14002_v10 }
 0x3ba   : > { %10816 = vmatmul.mubr.f32.gmra.mrb[6].mxu0 %v17132_v53  ;;  %11130 = vmatprep.mubr.f32.mxu1 %v14026_v58  ;;  %v4275_v53 = vsub.f32 %v17173_v52, %v17174_v42 }
 0x3bb   : > { %10818 = vmatprep.mubr.f32.mxu0 %v17133_v61 }
 0x3bd   : > { %11131 = vmatmul.mubr.f32.gmra.mrb[18].mxu1 %v14024_v21 }
 0x3be   : > { %10819 = vmatmul.mubr.f32.gmra.mrb[8].mxu0 %v17134_v11  ;;  %11133 = vmatprep.mubr.f32.mxu1 %v14050_v7  ;;  %v17175_v11 = vld [vmem:[#allocation38_spill] sm:$0xff] }
 0x3bf   : > { %10821 = vmatprep.mubr.f32.mxu0 %v17135_v32  ;;  %v17176_v32 = vand.u32 4294901760, %v17175_v11 }
 0x3c1   : > { %11134 = vmatmul.mubr.f32.gmra.mrb[20].mxu1 %v14048_v51 }
 0x3c2   : > { %10822 = vmatmul.mubr.f32.gmra.mrb[10].mxu0 %v17136_v59  ;;  %11136 = vmatprep.mubr.f32.mxu1 %v14073_v6  ;;  %v4285_v59 = vsub.f32 %v17175_v11, %v17176_v32  ;;  %v17190_v32 = vld [vmem:[#allocation65_spill] sm:$0xff] }
 0x3c3   : > { %10824 = vmatprep.mubr.f32.mxu0 %v17137_v33  ;;  %v17177_v33 = vld [vmem:[#allocation50_spill] sm:$0xff] }
 0x3c5   : > { %11137 = vmatmul.mubr.f32.gmra.mrb[22].mxu1 %v14071_v35 }
 0x3c6   : > { %10825 = vmatmul.mubr.f32.gmra.mrb[12].mxu0 %v17138_v57  ;;  %11139 = vmatprep.mubr.f32.mxu1 %v14095_v18  ;;  %v17178_v57 = vand.u32 4294901760, %v17177_v33 }
 0x3c7   : > { %10827 = vmatprep.mubr.f32.mxu0 %v17139_v31 }
 0x3c8   : > { %v4295_v31 = vsub.f32 %v17177_v33, %v17178_v57 }
 0x3c9   : > { %11140 = vmatmul.mubr.f32.gmra.mrb[24].mxu1 %v14093_v29 }
 0x3ca   : > { %10828 = vmatmul.mubr.f32.gmra.mrb[14].mxu0 %v17140_v2  ;;  %11142 = vmatprep.mubr.f32.mxu1 %v14117_v46  ;;  %v4286_v2 = vand.u32 4294901760, %v4285_v59  ;;  %v17191_v59 = vand.u32 4294901760, %v17190_v32 }
 0x3cb   : > { %10830 = vmatprep.mubr.f32.mxu0 %v17141_v41  ;;  %v17179_v41 = vld [vmem:[#allocation46_spill] sm:$0xff] }
 0x3cc   : > { %v17180_v24 = vand.u32 4294901760, %v17179_v41 }
 0x3cd   : > { %11143 = vmatmul.mubr.f32.gmra.mrb[26].mxu1 %v14115_v22 }
 0x3ce   : > { %10831 = vmatmul.mubr.f32.gmra.mrb[16].mxu0 %v17142_v34  ;;  %11145 = vmatprep.mubr.f32.mxu1 %v14139_v4 }
 0x3cf   : > { %10833 = vmatprep.mubr.f32.mxu0 %v17143_v27  ;;  %v17169_v27 = vld [vmem:[#allocation36_spill] sm:$0xff] }
 0x3d1   : > { %11146 = vmatmul.mubr.f32.gmra.mrb[28].mxu1 %v14137_v49 }
 0x3d2   : > { %10834 = vmatmul.mubr.f32.gmra.mrb[18].mxu0 %v17144_v23  ;;  %11148 = vmatprep.mubr.f32.mxu1 %v14161_v63 }
 0x3d3   : > { %10836 = vmatprep.mubr.f32.mxu0 %v17145_v14 }
 0x3d5   : > { %11149 = vmatmul.mubr.f32.gmra.mrb[30].mxu1 %v14159_v60 }
 0x3d6   : > { %10837 = vmatmul.mubr.f32.gmra.mrb[20].mxu0 %v17146_v15  ;;  %11151 = vmatprep.mubr.f32.mxu1 %v17147_v16 }
 0x3d7   : > { %10839 = vmatprep.mubr.f32.mxu0 %v17148_v37 }
 0x3d9   : > { %11152 = vmatmul.mubr.f32.gmra.mrb[0].mxu1 %v17149_v50 }
 0x3da   : > { %10840 = vmatmul.mubr.f32.gmra.mrb[22].mxu0 %v17150_v38  ;;  %v17164_v38 = vand.u32 4294901760, %v17163_v3 }
 0x3db   : > { %10842 = vmatprep.mubr.f32.mxu0 %v17151_v1  ;;  %v4216_v1 = vand.u32 4294901760, %v4215_v36  ;;  %v4305_v36 = vsub.f32 %v17179_v41, %v17180_v24 }
 0x3dc   : > { %v4225_v37 = vsub.f32 %v17163_v3, %v17164_v38  ;;  %v4296_v38 = vand.u32 4294901760, %v4295_v31  ;;  %v17192_v31 = vld [vmem:[#allocation63_spill] sm:$0xff] }
 0x3de   : > { %10843 = vmatmul.mubr.f32.gmra.mrb[24].mxu0 %v17152_v13  ;;  %v17165_v13 = vld [vmem:[#allocation30_spill] sm:$0xff] }
 0x3df   : > { %10845 = vmatprep.mubr.f32.mxu0 %v17153_v39  ;;  %v17166_v15 = vand.u32 4294901760, %v17165_v13 }
 0x3e1   : > { %v4235_v39 = vsub.f32 %v17165_v13, %v17166_v15 }
 0x3e2   : > { %10846 = vmatmul.mubr.f32.gmra.mrb[26].mxu0 %v17154_v8  ;;  %v17167_v8 = vld [vmem:[#allocation28_spill] sm:$0xff] }
 0x3e3   : > { %10848 = vmatprep.mubr.f32.mxu0 %v17155_v0  ;;  %v4226_v0 = vand.u32 4294901760, %v4225_v37  ;;  %v17168_v14 = vand.u32 4294901760, %v17167_v8  ;;  %v17181_v37 = vld [vmem:[#allocation57_spill] sm:$0xff] }
 0x3e5   : > { %v4245_v23 = vsub.f32 %v17167_v8, %v17168_v14 }
 0x3e6   : > { %10849 = vmatmul.mubr.f32.gmra.mrb[28].mxu0 %v17156_v44  ;;  %v4236_v44 = vand.u32 4294901760, %v4235_v39  ;;  %v4306_v39 = vand.u32 4294901760, %v4305_v36 }
 0x3e7   : > { %10851 = vmatprep.mubr.f32.mxu0 %v17157_v45  ;;  %v17170_v45 = vand.u32 4294901760, %v17169_v27  ;;  %v4246_v40 = vand.u32 4294901760, %v4245_v23 }
 0x3e9   : > { %v4255_v34 = vsub.f32 %v17169_v27, %v17170_v45  ;;  %v17185_v45 = vld [vmem:[#allocation61_spill] sm:$0xff] }
 0x3ea   : > { %10852 = vmatmul.mubr.f32.gmra.mrb[30].mxu0 %v17160_v25  ;;  %v4265_v25 = vsub.f32 %v17171_v54, %v17172_v19  ;;  %v17187_v19 = vmov 0.0  }
 0x3eb   : > { %10856 = vmatprep.mubr.f32.mxu0 %v4216_v1  ;;  %v4256_v48 = vand.u32 4294901760, %v4255_v34  ;;  %v17182_v1 = vand.u32 4294901760, %v17181_v37  ;;  %v17186_v34 = vand.u32 4294901760, %v17185_v45  ;;  %5926 = vst.msk [vmem:[#allocation4] sm:$0xff] %vm5925_vm13, %v17187_v19  ;;  %5927 = vst.msk [vmem:[#allocation4 + $0x8] sm:$0xff] %vm5925_vm13, %v17187_v19 }
 0x3ec   : > { %v4266_v61 = vand.u32 4294901760, %v4265_v25  ;;  %5931 = vst.msk [vmem:[#allocation4 + $0x198] sm:$0xff] %vm5925_vm13, %v17187_v19  ;;  %5932 = vst.msk [vmem:[#allocation4 + $0x1a0] sm:$0xff] %vm5925_vm13, %v17187_v19 }
 0x3ed   : > { %v4315_v15 = vsub.f32 %v17181_v37, %v17182_v1  ;;  %5929 = vst.msk [vmem:[#allocation4 + $0x10] sm:$0x3] %vm5928_vm14, %v17187_v19  ;;  %5933 = vst.msk [vmem:[#allocation4 + $0x1a8] sm:$0x3] %vm5928_vm14, %v17187_v19 }
 0x3ee   : > { %10857 = vmatmul.mubr.f32.vlgmr.msra.gmra.mrb[32].mxu0 %v4226_v0  ;;  %v17183_v0 = vld [vmem:[#allocation68_spill] sm:$0xff]  ;;  %5953 = vst.msk [vmem:[#allocation4 + $0x11] sm:$0x1] %vm5934_vm15, %v17187_v19  ;;  %5935 = vst.msk [vmem:[#allocation4] sm:$0x1] %vm5934_vm15, %v17187_v19 }
 0x3ef   : > { %10859 = vmatprep.mubr.f32.mxu0 %v4236_v44  ;;  %10905 = vmatpush3.msra.mxu0 %v14301_v43  ;;  %v4276_v43 = vand.u32 4294901760, %v4275_v53  ;;  %v17184_v14 = vand.u32 4294901760, %v17183_v0  ;;  %v4316_v44 = vand.u32 4294901760, %v4315_v15  ;;  %5936 = vst.msk [vmem:[#allocation4 + $0x18] sm:$0x1] %vm5934_vm15, %v17187_v19 }
 0x3f0   : > { %10954 = vmatprep.subr.mxu0 %v17159_v17  ;;  %5937 = vst.msk [vmem:[#allocation4 + $0x30] sm:$0x1] %vm5934_vm15, %v17187_v19  ;;  %5938 = vst.msk [vmem:[#allocation4 + $0x48] sm:$0x1] %vm5934_vm15, %v17187_v19 }
 0x3f1   : > { %v4325_v23 = vsub.f32 %v17183_v0, %v17184_v14  ;;  %5939 = vst.msk [vmem:[#allocation4 + $0x60] sm:$0x1] %vm5934_vm15, %v17187_v19  ;;  %5940 = vst.msk [vmem:[#allocation4 + $0x78] sm:$0x1] %vm5934_vm15, %v17187_v19 }
 0x3f2   : > { %10860 = vmatmul.mubr.f32.gmra.mrb[34].mxu0 %v4246_v40  ;;  %v4335_v40 = vsub.f32 %v17185_v45, %v17186_v34  ;;  %5941 = vst.msk [vmem:[#allocation4 + $0x90] sm:$0x1] %vm5934_vm15, %v17187_v19  ;;  %5942 = vst.msk [vmem:[#allocation4 + $0xa8] sm:$0x1] %vm5934_vm15, %v17187_v19 }
 0x3f3   : > { %10862 = vmatprep.mubr.f32.mxu0 %v4256_v48  ;;  %v4326_v25 = vand.u32 4294901760, %v4325_v23  ;;  %v17188_v48 = vld [vmem:[#allocation59_spill] sm:$0xff]  ;;  %5943 = vst.msk [vmem:[#allocation4 + $0xc0] sm:$0x1] %vm5934_vm15, %v17187_v19  ;;  %5944 = vst.msk [vmem:[#allocation4 + $0xd8] sm:$0x1] %vm5934_vm15, %v17187_v19 }
 0x3f4   : > { %v17189_v42 = vand.u32 4294901760, %v17188_v48  ;;  %5945 = vst.msk [vmem:[#allocation4 + $0xf0] sm:$0x1] %vm5934_vm15, %v17187_v19  ;;  %5946 = vst.msk [vmem:[#allocation4 + $0x108] sm:$0x1] %vm5934_vm15, %v17187_v19  ;;  %v6069_v14 = vld [vmem:[#allocation4 + $0x9] sm:$0xff] }
 0x3f5   : > { %5947 = vst.msk [vmem:[#allocation4 + $0x120] sm:$0x1] %vm5934_vm15, %v17187_v19  ;;  %5948 = vst.msk [vmem:[#allocation4 + $0x138] sm:$0x1] %vm5934_vm15, %v17187_v19  ;;  %6134 = vrot.lane.b32.xlu1 %v6069_v14, %s12332_s30 }
 0x3f6   : > { %10863 = vmatmul.mubr.f32.gmra.mrb[36].mxu0 %v4266_v61  ;;  %v4345_v53 = vsub.f32 %v17188_v48, %v17189_v42  ;;  %v4336_v61 = vand.u32 4294901760, %v4335_v40  ;;  %5949 = vst.msk [vmem:[#allocation4 + $0x150] sm:$0x1] %vm5934_vm15, %v17187_v19  ;;  %5950 = vst.msk [vmem:[#allocation4 + $0x168] sm:$0x1] %vm5934_vm15, %v17187_v19 }
 0x3f7   : > { %10865 = vmatprep.mubr.f32.mxu0 %v4276_v43  ;;  %v4355_v43 = vsub.f32 %v17190_v32, %v17191_v59  ;;  %5951 = vst.msk [vmem:[#allocation4 + $0x180] sm:$0x1] %vm5934_vm15, %v17187_v19  ;;  %5952 = vst.msk [vmem:[#allocation4 + $0x198] sm:$0x1] %vm5934_vm15, %v17187_v19  ;;  %v6262_v59 = vld [vmem:[#allocation4 + $0xa] sm:$0xff] }
 0x3f8   : > { %5954 = vst.msk [vmem:[#allocation4 + $0x29] sm:$0x1] %vm5934_vm15, %v17187_v19  ;;  %5955 = vst.msk [vmem:[#allocation4 + $0x41] sm:$0x1] %vm5934_vm15, %v17187_v19  ;;  %v4346_v57 = vand.u32 4294901760, %v4345_v53 }
 0x3f9   : > { %5956 = vst.msk [vmem:[#allocation4 + $0x59] sm:$0x1] %vm5934_vm15, %v17187_v19  ;;  %5957 = vst.msk [vmem:[#allocation4 + $0x71] sm:$0x1] %vm5934_vm15, %v17187_v19  ;;  %v4356_v36 = vand.u32 4294901760, %v4355_v43  ;;  %6327 = vrot.lane.b32.xlu1 %v6262_v59, %s12335_s10 }
 0x3fa   : > { %10866 = vmatmul.mubr.f32.gmra.mrb[38].mxu0 %v4286_v2  ;;  %5958 = vst.msk [vmem:[#allocation4 + $0x89] sm:$0x1] %vm5934_vm15, %v17187_v19  ;;  %5959 = vst.msk [vmem:[#allocation4 + $0xa1] sm:$0x1] %vm5934_vm15, %v17187_v19  ;;  %v17193_v2 = vand.u32 4294901760, %v17192_v31 }
 0x3fb   : > { %10868 = vmatprep.mubr.f32.mxu0 %v4296_v38  ;;  %5960 = vst.msk [vmem:[#allocation4 + $0xb9] sm:$0x1] %vm5934_vm15, %v17187_v19  ;;  %5961 = vst.msk [vmem:[#allocation4 + $0xd1] sm:$0x1] %vm5934_vm15, %v17187_v19  ;;  %v17194_v38 = vld [vmem:[#allocation71_spill] sm:$0xff] }
 0x3fc   : > { %5962 = vst.msk [vmem:[#allocation4 + $0xe9] sm:$0x1] %vm5934_vm15, %v17187_v19  ;;  %5963 = vst.msk [vmem:[#allocation4 + $0x101] sm:$0x1] %vm5934_vm15, %v17187_v19  ;;  %v4365_v24 = vsub.f32 %v17192_v31, %v17193_v2  ;;  %v17195_v1 = vand.u32 4294901760, %v17194_v38 }
 0x3fd   : > { %5964 = vst.msk [vmem:[#allocation4 + $0x119] sm:$0x1] %vm5934_vm15, %v17187_v19  ;;  %5965 = vst.msk [vmem:[#allocation4 + $0x131] sm:$0x1] %vm5934_vm15, %v17187_v19 }
 0x3fe   : > { %10869 = vmatmul.mubr.f32.gmra.mrb[40].mxu0 %v4306_v39  ;;  %5966 = vst.msk [vmem:[#allocation4 + $0x149] sm:$0x1] %vm5934_vm15, %v17187_v19  ;;  %5967 = vst.msk [vmem:[#allocation4 + $0x161] sm:$0x1] %vm5934_vm15, %v17187_v19  ;;  %v4375_v15 = vsub.f32 %v17194_v38, %v17195_v1  ;;  %v6068_v39 = vld [vmem:[#allocation4 + $0x1] sm:$0xff]  ;;  %v4366_v23 = vand.u32 4294901760, %v4365_v24 }
 0x3ff   : > { %10871 = vmatprep.mubr.f32.mxu0 %v4316_v44  ;;  %5968 = vst.msk [vmem:[#allocation4 + $0x179] sm:$0x1] %vm5934_vm15, %v17187_v19  ;;  %5969 = vst.msk [vmem:[#allocation4 + $0x191] sm:$0x1] %vm5934_vm15, %v17187_v19  ;;  %6132 = vrot.lane.b32.xlu0 %v6068_v39, %s12332_s30  ;;  %v17196_v44 = vld [vmem:[#allocation67_spill] sm:$0xff]  ;;  %v17202_v1 = vld [vmem:[#allocation74_spill] sm:$0xff] }
 0x400   : > { %5970 = vst.msk [vmem:[#allocation4 + $0x1a9] sm:$0x1] %vm5934_vm15, %v17187_v19  ;;  %v17197_v34 = vand.u32 4294901760, %v17196_v44  ;;  %v4376_v19 = vand.u32 4294901760, %v4375_v15  ;;  %v17203_v15 = vand.u32 4294901760, %v17202_v1 }
 0x402   : > { %10872 = vmatmul.mubr.f32.gmra.mrb[42].mxu0 %v4326_v25  ;;  %v4385_v40 = vsub.f32 %v17196_v44, %v17197_v34  ;;  %v17198_v25 = vld [vmem:[#allocation48_spill] sm:$0xff]  ;;  %v4415_v39 = vsub.f32 %v17202_v1, %v17203_v15 }
 0x403   : > { %10874 = vmatprep.mubr.f32.mxu0 %v4336_v61  ;;  %v17199_v42 = vand.u32 4294901760, %v17198_v25  ;;  %v6261_v61 = vld [vmem:[#allocation4 + $0x2] sm:$0xff] }
 0x404   : > { %6325 = vrot.lane.b32.xlu0 %v6261_v61, %s12335_s10  ;;  %v4386_v43 = vand.u32 4294901760, %v4385_v40  ;;  %v17206_v61 = vld [vmem:[#allocation76_spill] sm:$0xff] }
 0x405   : > { %v4395_v53 = vsub.f32 %v17198_v25, %v17199_v42  ;;  %v17207_v59 = vand.u32 4294901760, %v17206_v61 }
 0x406   : > { %10875 = vmatmul.mubr.f32.gmra.mrb[44].mxu0 %v4346_v57  ;;  %v17200_v57 = vld [vmem:[#allocation47_spill] sm:$0xff] }
 0x407   : > { %10877 = vmatprep.mubr.f32.mxu0 %v4356_v36  ;;  %v17201_v2 = vand.u32 4294901760, %v17200_v57  ;;  %v4396_v36 = vand.u32 4294901760, %v4395_v53  ;;  %v4435_v40 = vsub.f32 %v17206_v61, %v17207_v59  ;;  %v17208_v53 = vld [vmem:[#allocation75_spill] sm:$0xff] }
 0x409   : > { %v4405_v24 = vsub.f32 %v17200_v57, %v17201_v2  ;;  %v17209_v57 = vand.u32 4294901760, %v17208_v53  ;;  %v4436_v15 = vand.u32 4294901760, %v4435_v40  ;;  %v17216_v40 = vld [vmem:[#allocation79_spill] sm:$0xff] }
 0x40a   : > { %10878 = vmatmul.mubr.f32.gmra.mrb[46].mxu0 %v4366_v23  ;;  %v17204_v23 = vld [vmem:[#allocation53_spill] sm:$0xff] }
 0x40b   : > { %10880 = vmatprep.mubr.f32.mxu0 %v4376_v19  ;;  %v4406_v14 = vand.u32 4294901760, %v4405_v24  ;;  %v17205_v34 = vand.u32 4294901760, %v17204_v23  ;;  %v4416_v19 = vand.u32 4294901760, %v4415_v39  ;;  %v4445_v25 = vsub.f32 %v17208_v53, %v17209_v57  ;;  %v17212_v39 = vld [vmem:[#allocation77_spill] sm:$0xff] }
 0x40c   : > { %v17217_v53 = vand.u32 4294901760, %v17216_v40 }
 0x40d   : > { %v4425_v42 = vsub.f32 %v17204_v23, %v17205_v34  ;;  %v4446_v34 = vand.u32 4294901760, %v4445_v25  ;;  %v17213_v23 = vand.u32 4294901760, %v17212_v39 }
 0x40e   : > { %10881 = vmatmul.mubr.f32.gmra.mrb[48].mxu0 %v4386_v43  ;;  %v17210_v43 = vld [vmem:[#allocation78_spill] sm:$0xff]  ;;  %v4485_v61 = vsub.f32 %v17216_v40, %v17217_v53 }
 0x40f   : > { %10883 = vmatprep.mubr.f32.mxu0 %v4396_v36  ;;  %v4426_v2 = vand.u32 4294901760, %v4425_v42  ;;  %v17211_v36 = vand.u32 4294901760, %v17210_v43  ;;  %v4465_v1 = vsub.f32 %v17212_v39, %v17213_v23 }
 0x410   : > { %v4486_v23 = vand.u32 4294901760, %v4485_v61  ;;  %v17226_v61 = vld [vmem:[#allocation16_spill] sm:$0xff] }
 0x411   : > { %v4455_v24 = vsub.f32 %v17210_v43, %v17211_v36  ;;  %v4466_v57 = vand.u32 4294901760, %v4465_v1 }
 0x412   : > { %10884 = vmatmul.mubr.f32.gmra.mrb[50].mxu0 %v4406_v14  ;;  %v17214_v14 = vld [vmem:[#allocation80_spill] sm:$0xff] }
 0x413   : > { %10886 = vmatprep.mubr.f32.mxu0 %v4416_v19  ;;  %v4456_v59 = vand.u32 4294901760, %v4455_v24  ;;  %v17215_v19 = vand.u32 4294901760, %v17214_v14  ;;  %v17220_v24 = vld [vmem:[#allocation81_spill] sm:$0xff] }
 0x414   : > { %v17221_v39 = vand.u32 4294901760, %v17220_v24 }
 0x415   : > { %v4475_v42 = vsub.f32 %v17214_v14, %v17215_v19 }
 0x416   : > { %10887 = vmatmul.mubr.f32.gmra.mrb[52].mxu0 %v4426_v2  ;;  %v17218_v2 = vld [vmem:[#allocation82_spill] sm:$0xff]  ;;  %v4505_v43 = vsub.f32 %v17220_v24, %v17221_v39  ;;  %v17228_v39 = vld [vmem:[#allocation24_spill] sm:$0xff] }
 0x417   : > { %10889 = vmatprep.mubr.f32.mxu0 %v4436_v15  ;;  %v4476_v36 = vand.u32 4294901760, %v4475_v42  ;;  %v17219_v15 = vand.u32 4294901760, %v17218_v2  ;;  %v17224_v42 = vld [vmem:[#allocation22_spill] sm:$0xff] }
 0x418   : > { %v4506_v1 = vand.u32 4294901760, %v4505_v43  ;;  %v4516_v40 = vand.u32 4294901760, %v17224_v42  ;;  %v17229_v43 = vld [vmem:[#allocation32_spill] sm:$0xff] }
 0x419   : > { %v4495_v25 = vsub.f32 %v17218_v2, %v17219_v15 }
 0x41a   : > { %10890 = vmatmul.mubr.f32.gmra.mrb[54].mxu0 %v4446_v34  ;;  %v17222_v34 = vld [vmem:[#allocation14_spill] sm:$0xff] }
 0x41b   : > { %10892 = vmatprep.mubr.f32.mxu0 %v4456_v59  ;;  %v4496_v19 = vand.u32 4294901760, %v4495_v25  ;;  %v17223_v59 = vand.u32 4294901760, %v17222_v34 }
 0x41d   : > { %v4525_v53 = vsub.f32 %v17222_v34, %v17223_v59 }
 0x41e   : > { %10893 = vmatmul.mubr.f32.gmra.mrb[56].mxu0 %v4466_v57  ;;  %v17225_v57 = vld [vmem:[#allocation42_spill] sm:$0xff] }
 0x41f   : > { %10895 = vmatprep.mubr.f32.mxu0 %v4476_v36  ;;  %v4526_v15 = vand.u32 4294901760, %v4525_v53  ;;  %v17227_v36 = vld [vmem:[#allocation26_spill] sm:$0xff] }
 0x422   : > { %10896 = vmatmul.mubr.f32.gmra.mrb[58].mxu0 %v4486_v23  ;;  %v17230_v23 = vld [vmem:[#allocation48_spill] sm:$0xff] }
 0x423   : > { %10898 = vmatprep.mubr.f32.mxu0 %v4496_v19 }
 0x426   : > { %10899 = vmatmul.mubr.f32.gmra.mrb[60].mxu0 %v4506_v1 }
 0x427   : > { %10901 = vmatprep.mubr.f32.mxu0 %v4516_v40 }
 0x42a   : > { %10902 = vmatmul.mubr.f32.gmra.mrb[62].mxu0 %v4526_v15  ;;  %v17231_v15 = vld [vmem:[#allocation47_spill] sm:$0xff] }
 0x42b   : > { %10906 = vmatprep.mubr.f32.mxu0 %v17225_v57 }
 0x42e   : > { %10907 = vmatmul.mubr.f32.vlgmr.msra.gmra.mrb[32].mxu0 %v17226_v61 }
 0x42f   : > { %10909 = vmatprep.mubr.f32.mxu0 %v17227_v36  ;;  %10955 = vmatpush3.msra.mxu0 %v17159_v17 }
 0x432   : > { %10910 = vmatmul.mubr.f32.gmra.mrb[34].mxu0 %v17228_v39 }
 0x433   : > { %10912 = vmatprep.mubr.f32.mxu0 %v17229_v43 }
 0x436   : > { %10913 = vmatmul.mubr.f32.gmra.mrb[36].mxu0 %v13894_v26 }
 0x437   : > { %10915 = vmatprep.mubr.f32.mxu0 %v13918_v20  ;;  %v6005_v20 = vld [vmem:[#allocation4 + $0x8] sm:$0xff] }
 0x438   : > { %6037 = vst.msk [vmem:[#allocation5 + $0x8] sm:$0xff] %vm5925_vm13, %v6005_v20 }
 0x43a   : > { %10916 = vmatmul.mubr.f32.gmra.mrb[38].mxu0 %v13916_v28 }
 0x43b   : > { %10918 = vmatprep.mubr.f32.mxu0 %v13938_v30 }
 0x43e   : > { %10919 = vmatmul.mubr.f32.gmra.mrb[40].mxu0 %v17121_v9 }
 0x43f   : > { %10921 = vmatprep.mubr.f32.mxu0 %v17123_v55 }
 0x442   : > { %10922 = vmatmul.mubr.f32.gmra.mrb[42].mxu0 %v17126_v47 }
 0x443   : > { %10924 = vmatprep.mubr.f32.mxu0 %v13983_v5 }
 0x446   : > { %10925 = vmatmul.mubr.f32.gmra.mrb[44].mxu0 %v13981_v12 }
 0x447   : > { %10927 = vmatprep.mubr.f32.mxu0 %v14004_v56 }
 0x44a   : > { %10928 = vmatmul.mubr.f32.gmra.mrb[46].mxu0 %v14002_v10 }
 0x44b   : > { %10930 = vmatprep.mubr.f32.mxu0 %v14026_v58 }
 0x44e   : > { %10931 = vmatmul.mubr.f32.gmra.mrb[48].mxu0 %v14024_v21 }
 0x44f   : > { %10933 = vmatprep.mubr.f32.mxu0 %v14050_v7 }
 0x452   : > { %10934 = vmatmul.mubr.f32.gmra.mrb[50].mxu0 %v14048_v51 }
 0x453   : > { %10936 = vmatprep.mubr.f32.mxu0 %v14073_v6 }
 0x456   : > { %10937 = vmatmul.mubr.f32.gmra.mrb[52].mxu0 %v14071_v35  ;;  %v14610_v35 = vld [vmem:[%s16489_s4] ss:$0 sm:$0xff] }
 0x457   : > { %10939 = vmatprep.mubr.f32.mxu0 %v14095_v18 }
 0x45a   : > { %10940 = vmatmul.mubr.f32.gmra.mrb[54].mxu0 %v14093_v29 }
 0x45b   : > { %10942 = vmatprep.mubr.f32.mxu0 %v14117_v46 }
 0x45e   : > { %10943 = vmatmul.mubr.f32.gmra.mrb[56].mxu0 %v14115_v22 }
 0x45f   : > { %10945 = vmatprep.mubr.f32.mxu0 %v14139_v4 }
 0x462   : > { %10946 = vmatmul.mubr.f32.gmra.mrb[58].mxu0 %v14137_v49 }
 0x463   : > { %10948 = vmatprep.mubr.f32.mxu0 %v14161_v63 }
 0x466   : > { %10949 = vmatmul.mubr.f32.gmra.mrb[60].mxu0 %v14159_v60 }
 0x467   : > { %10951 = vmatprep.mubr.f32.mxu0 %v17147_v16  ;;  %v6004_v16 = vld [vmem:[#allocation4] sm:$0xff]  ;;  %v6135_v56 = vpop.permute.xlu1 %6134 }
 0x468   : > { %6036 = vst.msk [vmem:[#allocation5] sm:$0xff] %vm5925_vm13, %v6004_v16  ;;  %v17232_v16 = vld [vmem:[#allocation74_spill] sm:$0xff] }
 0x469   : > { %6230 = vst.msk [vmem:[#allocation5 + $0x8] sm:$0xff] %vm6228_vm0, %v6135_v56 }
 0x46a   : > { %10952 = vmatmul.mubr.f32.gmra.mrb[62].mxu0 %v17149_v50 }
 0x46b   : > { %10956 = vmatprep.mubr.f32.mxu0 %v17161_v62  ;;  %v6328_v7 = vpop.permute.xlu1 %6327 }
 0x46c   : > { %6423 = vst.msk [vmem:[#allocation5 + $0x8] sm:$0xff] %vm6421_vm1, %v6328_v7 }
 0x46e   : > { %10957 = vmatmul.mubr.f32.vlgmr.msra.gmra.mrb[32].mxu0 %v17163_v3 }
 0x46f   : > { %10959 = vmatprep.mubr.f32.mxu0 %v17165_v13 }
 0x470   : > { %v14577_v12 = vpop.f32.mrb[2].mxu1 }
 0x471   : > { %v14579_v28 = vpop.f32.mrb[3].mxu1  ;;  %v6133_v5 = vpop.permute.xlu0 %6132 }
 0x472   : > { %10960 = vmatmul.mubr.f32.gmra.mrb[34].mxu0 %v17167_v8  ;;  %6229 = vst.msk [vmem:[#allocation5] sm:$0xff] %vm6228_vm0, %v6133_v5 }
 0x473   : > { %10962 = vmatprep.mubr.f32.mxu0 %v17169_v27 }
 0x474   : > { %v14583_v26 = vpop.f32.mrb[4].mxu1 }
 0x475   : > { %v14585_v17 = vpop.f32.mrb[5].mxu1 }
 0x476   : > { %10963 = vmatmul.mubr.f32.gmra.mrb[36].mxu0 %v17171_v54  ;;  %v6326_v58 = vpop.permute.xlu0 %6325 }
 0x477   : > { %10965 = vmatprep.mubr.f32.mxu0 %v17173_v52  ;;  %6422 = vst.msk [vmem:[#allocation5] sm:$0xff] %vm6421_vm1, %v6326_v58 }
 0x478   : > { %v14589_v30 = vpop.f32.mrb[6].mxu1 }
 0x479   : > { %v14593_v10 = vpop.f32.mrb[7].mxu1 }
 0x47a   : > { %10966 = vmatmul.mubr.f32.gmra.mrb[38].mxu0 %v17175_v11 }
 0x47b   : > { %10968 = vmatprep.mubr.f32.mxu0 %v17177_v33 }
 0x47c   : > { %v14599_v21 = vpop.f32.mrb[8].mxu1 }
 0x47d   : > { %v14601_v51 = vpop.f32.mrb[9].mxu1 }
 0x47e   : > { %10969 = vmatmul.mubr.f32.gmra.mrb[40].mxu0 %v17179_v41 }
 0x47f   : > { %10971 = vmatprep.mubr.f32.mxu0 %v17181_v37 }
 0x480   : > { %v14612_v6 = vpop.f32.mrb[10].mxu1 }
 0x481   : > { %v10808_v29 = vpop.f32.mrb[0].mxu0  ;;  %v14614_v18 = vpop.f32.mrb[11].mxu1 }
 0x482   : > { %v11696_v22 = vadd.f32 %v10808_v29, %v14610_v35  ;;  %v3785_v46 = vpop.f32.mrb[1].mxu0  ;;  %10972 = vmatmul.mubr.f32.gmra.mrb[42].mxu0 %v17183_v0 }
 0x483   : > { %v11697_v49 = vadd.f32 %v14610_v35, %v3785_v46  ;;  %10974 = vmatprep.mubr.f32.mxu0 %v17185_v45  ;;  %v17233_v46 = vld [vmem:[#allocation53_spill] sm:$0xff] }
 0x484   : > { %v3976_v4 = vmax.f32 %v11696_v22, 0.0  ;;  %v14620_v60 = vpop.f32.mrb[12].mxu1 }
 0x485   : > { %v3975_v63 = vmax.f32 %v11697_v49, 0.0  ;;  %v10811_v50 = vpop.f32.mrb[2].mxu0  ;;  %v14622_v9 = vpop.f32.mrb[13].mxu1 }
 0x486   : > { %5973 = vst.msk [vmem:[#allocation4 + $0x21] sm:$0xff] %vm5925_vm13, %v3976_v4  ;;  %v11698_v55 = vadd.f32 %v10811_v50, %v14610_v35  ;;  %v3797_v47 = vpop.f32.mrb[3].mxu0  ;;  %10975 = vmatmul.mubr.f32.gmra.mrb[44].mxu0 %v17188_v48 }
 0x487   : > { %5972 = vst.msk [vmem:[#allocation4 + $0x19] sm:$0xff] %vm5925_vm13, %v3975_v63  ;;  %v11699_v62 = vadd.f32 %v14610_v35, %v3797_v47  ;;  %10977 = vmatprep.mubr.f32.mxu0 %v17190_v32  ;;  %v17234_v47 = vld [vmem:[#allocation76_spill] sm:$0xff] }
 0x488   : > { %v3978_v3 = vmax.f32 %v11698_v55, 0.0  ;;  %v14630_v13 = vpop.f32.mrb[14].mxu1 }
 0x489   : > { %v3977_v8 = vmax.f32 %v11699_v62, 0.0  ;;  %v10814_v27 = vpop.f32.mrb[4].mxu0  ;;  %v14632_v54 = vpop.f32.mrb[15].mxu1 }
 0x48a   : > { %5975 = vst.msk [vmem:[#allocation4 + $0x39] sm:$0xff] %vm5925_vm13, %v3978_v3  ;;  %v11700_v52 = vadd.f32 %v10814_v27, %v14610_v35  ;;  %v3809_v11 = vpop.f32.mrb[5].mxu0  ;;  %10978 = vmatmul.mubr.f32.gmra.mrb[46].mxu0 %v17192_v31 }
 0x48b   : > { %5974 = vst.msk [vmem:[#allocation4 + $0x31] sm:$0xff] %vm5925_vm13, %v3977_v8  ;;  %v11701_v33 = vadd.f32 %v14610_v35, %v3809_v11  ;;  %10980 = vmatprep.mubr.f32.mxu0 %v17194_v38 }
 0x48c   : > { %v3980_v41 = vmax.f32 %v11700_v52, 0.0  ;;  %v14640_v37 = vpop.f32.mrb[16].mxu1 }
 0x48d   : > { %v3979_v0 = vmax.f32 %v11701_v33, 0.0  ;;  %v10817_v45 = vpop.f32.mrb[6].mxu0  ;;  %v14642_v48 = vpop.f32.mrb[17].mxu1  ;;  %v6648_v32 = vld [vmem:[#allocation4 + $0x21] sm:$0xff]  ;;  %v17235_v33 = vld [vmem:[#allocation75_spill] sm:$0xff] }
 0x48e   : > { %5977 = vst.msk [vmem:[#allocation4 + $0x51] sm:$0xff] %vm5925_vm13, %v3980_v41  ;;  %v11702_v40 = vadd.f32 %v10817_v45, %v14610_v35  ;;  %10981 = vmatmul.mubr.f32.gmra.mrb[48].mxu0 %v17196_v44  ;;  %6713 = vrot.lane.b32.xlu0 %v6648_v32, %s12339_s16  ;;  %v3821_v31 = vpop.f32.mrb[7].mxu0  ;;  %v6455_v25 = vld [vmem:[#allocation4 + $0x20] sm:$0xff]  ;;  %v14652_v19 = vld [vmem:[#allocation4 + $0x18] sm:$0xff] }
 0x48f   : > { %5976 = vst.msk [vmem:[#allocation4 + $0x49] sm:$0xff] %vm5925_vm13, %v3979_v0  ;;  %v11703_v38 = vadd.f32 %v14610_v35, %v3821_v31  ;;  %10983 = vmatprep.mubr.f32.mxu0 %v17230_v23  ;;  %6520 = vrot.lane.b32.xlu1 %v6455_v25, %s12337_s12  ;;  %6039 = vst.msk [vmem:[#allocation5 + $0x18] sm:$0xff] %vm5925_vm13, %v6455_v25  ;;  %v14665_v61 = vld [vmem:[#allocation4 + $0x19] sm:$0xff]  ;;  %v6841_v29 = vld [vmem:[#allocation4 + $0x22] sm:$0xff] }
 0x490   : > { %v3982_v1 = vmax.f32 %v11702_v40, 0.0  ;;  %v14655_v34 = vpop.f32.mrb[18].mxu1  ;;  %6038 = vst.msk [vmem:[#allocation5 + $0x10] sm:$0xff] %vm5925_vm13, %v14652_v19  ;;  %v6840_v4 = vld [vmem:[#allocation4 + $0x1a] sm:$0xff]  ;;  %v17236_v40 = vld [vmem:[#allocation78_spill] sm:$0xff] }
 0x491   : > { %v3981_v44 = vmax.f32 %v11703_v38, 0.0  ;;  %v10820_v59 = vpop.f32.mrb[8].mxu0  ;;  %v14659_v53 = vpop.f32.mrb[19].mxu1 }
 0x492   : > { %5979 = vst.msk [vmem:[#allocation4 + $0x69] sm:$0xff] %vm5925_vm13, %v3982_v1  ;;  %v11704_v42 = vadd.f32 %v10820_v59, %v14610_v35  ;;  %10984 = vmatmul.mubr.f32.gmra.mrb[50].mxu0 %v17231_v15  ;;  %6138 = vrot.lane.b32.xlu0 %v6648_v32, %s12332_s30  ;;  %v3833_v57 = vpop.f32.mrb[9].mxu0  ;;  %v14667_v36 = vld [vmem:[#allocation4 + $0x30] sm:$0xff]  ;;  %v14669_v39 = vld [vmem:[#allocation4 + $0x38] sm:$0xff] }
 0x493   : > { %5978 = vst.msk [vmem:[#allocation4 + $0x61] sm:$0xff] %vm5925_vm13, %v3981_v44  ;;  %v11705_v43 = vadd.f32 %v14610_v35, %v3833_v57  ;;  %10986 = vmatprep.mubr.f32.mxu0 %v17232_v16  ;;  %6136 = vrot.lane.b32.xlu1 %v14665_v61, %s12332_s30  ;;  %6041 = vst.msk [vmem:[#allocation5 + $0x28] sm:$0xff] %vm5925_vm13, %v14669_v39  ;;  %v6650_v15 = vld [vmem:[#allocation4 + $0x39] sm:$0xff] }
 0x494   : > { %6040 = vst.msk [vmem:[#allocation5 + $0x20] sm:$0xff] %vm5925_vm13, %v14667_v36  ;;  %v3984_v20 = vmax.f32 %v11704_v42, 0.0  ;;  %v14680_v5 = vpop.f32.mrb[20].mxu1  ;;  %v17237_v42 = vld [vmem:[#allocation77_spill] sm:$0xff] }
 0x495   : > { %v3983_v56 = vmax.f32 %v11705_v43, 0.0  ;;  %v10823_v58 = vpop.f32.mrb[10].mxu0  ;;  %v14682_v7 = vpop.f32.mrb[21].mxu1 }
 0x496   : > { %5981 = vst.msk [vmem:[#allocation4 + $0x81] sm:$0xff] %vm5925_vm13, %v3984_v20  ;;  %v11706_v22 = vadd.f32 %v10823_v58, %v14610_v35  ;;  %10987 = vmatmul.mubr.f32.gmra.mrb[52].mxu0 %v17233_v46  ;;  %6906 = vrot.lane.b32.xlu0 %v6841_v29, %s12341_s22  ;;  %v3845_v49 = vpop.f32.mrb[11].mxu0  ;;  %v14688_v63 = vld [vmem:[#allocation4 + $0x48] sm:$0xff]  ;;  %v14690_v50 = vld [vmem:[#allocation4 + $0x50] sm:$0xff]  ;;  %v17238_v46 = vld [vmem:[#allocation79_spill] sm:$0xff] }
 0x497   : > { %5980 = vst.msk [vmem:[#allocation4 + $0x79] sm:$0xff] %vm5925_vm13, %v3983_v56  ;;  %v11707_v55 = vadd.f32 %v14610_v35, %v3845_v49  ;;  %10989 = vmatprep.mubr.f32.mxu0 %v17234_v47  ;;  %6904 = vrot.lane.b32.xlu1 %v6840_v4, %s12341_s22  ;;  %6043 = vst.msk [vmem:[#allocation5 + $0x38] sm:$0xff] %vm5925_vm13, %v14690_v50  ;;  %v14750_v49 = vld [vmem:[#allocation4 + $0x3a] sm:$0xff] }
 0x498   : > { %6042 = vst.msk [vmem:[#allocation5 + $0x30] sm:$0xff] %vm5925_vm13, %v14688_v63  ;;  %v3986_v62 = vmax.f32 %v11706_v22, 0.0  ;;  %v14700_v3 = vpop.f32.mrb[22].mxu1 }
 0x499   : > { %v3985_v8 = vmax.f32 %v11707_v55, 0.0  ;;  %v10826_v27 = vpop.f32.mrb[12].mxu0  ;;  %v14702_v52 = vpop.f32.mrb[23].mxu1 }
 0x49a   : > { %5983 = vst.msk [vmem:[#allocation4 + $0x99] sm:$0xff] %vm5925_vm13, %v3986_v62  ;;  %v11708_v11 = vadd.f32 %v10826_v27, %v14610_v35  ;;  %10990 = vmatmul.mubr.f32.gmra.mrb[54].mxu0 %v17235_v33  ;;  %6331 = vrot.lane.b32.xlu0 %v6841_v29, %s12335_s10  ;;  %v3857_v41 = vpop.f32.mrb[13].mxu0  ;;  %v14708_v0 = vld [vmem:[#allocation4 + $0x60] sm:$0xff]  ;;  %v14710_v45 = vld [vmem:[#allocation4 + $0x68] sm:$0xff] }
 0x49b   : > { %5982 = vst.msk [vmem:[#allocation4 + $0x91] sm:$0xff] %vm5925_vm13, %v3985_v8  ;;  %v11709_v32 = vadd.f32 %v14610_v35, %v3857_v41  ;;  %10992 = vmatprep.mubr.f32.mxu0 %v17236_v40  ;;  %6329 = vrot.lane.b32.xlu1 %v6840_v4, %s12335_s10  ;;  %6045 = vst.msk [vmem:[#allocation5 + $0x48] sm:$0xff] %vm5925_vm13, %v14710_v45 }
 0x49c   : > { %6044 = vst.msk [vmem:[#allocation5 + $0x40] sm:$0xff] %vm5925_vm13, %v14708_v0  ;;  %v3988_v31 = vmax.f32 %v11708_v11, 0.0  ;;  %v14720_v25 = vpop.f32.mrb[24].mxu1 }
 0x49d   : > { %v3987_v38 = vmax.f32 %v11709_v32, 0.0  ;;  %v10829_v23 = vpop.f32.mrb[14].mxu0  ;;  %v14722_v1 = vpop.f32.mrb[25].mxu1 }
 0x49e   : > { %5985 = vst.msk [vmem:[#allocation4 + $0xb1] sm:$0xff] %vm5925_vm13, %v3988_v31  ;;  %v11710_v44 = vadd.f32 %v10829_v23, %v14610_v35  ;;  %v3869_v59 = vpop.f32.mrb[15].mxu0  ;;  %10993 = vmatmul.mubr.f32.gmra.mrb[56].mxu0 %v17237_v42  ;;  %6518 = vrot.lane.b32.xlu0 %v14652_v19, %s12337_s12  ;;  %v14729_v57 = vld [vmem:[#allocation4 + $0x78] sm:$0xff]  ;;  %v14731_v43 = vld [vmem:[#allocation4 + $0x80] sm:$0xff] }
 0x49f   : > { %5984 = vst.msk [vmem:[#allocation4 + $0xa9] sm:$0xff] %vm5925_vm13, %v3987_v38  ;;  %v11711_v16 = vadd.f32 %v14610_v35, %v3869_v59  ;;  %10995 = vmatprep.mubr.f32.mxu0 %v17214_v14  ;;  %6717 = vrot.lane.b32.xlu1 %v6650_v15, %s12339_s16  ;;  %6046 = vst.msk [vmem:[#allocation5 + $0x50] sm:$0xff] %vm5925_vm13, %v14729_v57  ;;  %v14790_v38 = vld [vmem:[%s16490_s5] sm:$0xff]  ;;  %v14795_v23 = vld [vmem:[%s16490_s5 + $0x8] sm:$0xff] }
 0x4a0   : > { %6047 = vst.msk [vmem:[#allocation5 + $0x58] sm:$0xff] %vm5925_vm13, %v14731_v43  ;;  %v3990_v19 = vmax.f32 %v11710_v44, 0.0  ;;  %v14741_v20 = vpop.f32.mrb[26].mxu1  ;;  %17239 = vst [vmem:[#allocation44_spill] sm:$0xff] %v14790_v38 }
 0x4a1   : > { %v3989_v56 = vmax.f32 %v11711_v16, 0.0  ;;  %v10832_v58 = vpop.f32.mrb[16].mxu0  ;;  %v14743_v29 = vpop.f32.mrb[27].mxu1  ;;  %17240 = vst [vmem:[#allocation8_spill] sm:$0xff] %v14795_v23  ;;  %v16778_v16 = vand.u32 4294901760, %v14790_v38 }
 0x4a2   : > { %5987 = vst.msk [vmem:[#allocation4 + $0xc9] sm:$0xff] %vm5925_vm13, %v3990_v19  ;;  %v11712_v22 = vadd.f32 %v10832_v58, %v14610_v35  ;;  %v3881_v14 = vpop.f32.mrb[17].mxu0  ;;  %10996 = vmatmul.mubr.f32.gmra.mrb[58].mxu0 %v17238_v46  ;;  %6711 = vrot.lane.b32.xlu0 %v14665_v61, %s12339_s16  ;;  %v14752_v4 = vld [vmem:[#allocation4 + $0x90] sm:$0xff]  ;;  %v14754_v55 = vld [vmem:[#allocation4 + $0x98] sm:$0xff]  ;;  %v16777_v19 = vand.u32 4294901760, %v14795_v23 }
 0x4a3   : > { %5986 = vst.msk [vmem:[#allocation4 + $0xc1] sm:$0xff] %vm5925_vm13, %v3989_v56  ;;  %v11713_v47 = vadd.f32 %v14610_v35, %v3881_v14  ;;  %10998 = vmatprep.mubr.f32.mxu0 %v17218_v2  ;;  %7486 = vrot.lane.b32.xlu1 %v14750_v49, %s12342_s23  ;;  %6048 = vst.msk [vmem:[#allocation5 + $0x60] sm:$0xff] %vm5925_vm13, %v14752_v4  ;;  %v7420_v23 = vld [vmem:[#allocation4 + $0x32] sm:$0xff] }
 0x4a4   : > { %6049 = vst.msk [vmem:[#allocation5 + $0x68] sm:$0xff] %vm5925_vm13, %v14754_v55  ;;  %v3992_v61 = vmax.f32 %v11712_v22, 0.0  ;;  %v14765_v62 = vpop.f32.mrb[28].mxu1 }
 0x4a5   : > { %v3991_v8 = vmax.f32 %v11713_v47, 0.0  ;;  %v10835_v27 = vpop.f32.mrb[18].mxu0  ;;  %v14767_v11 = vpop.f32.mrb[29].mxu1  ;;  %v14816_v47 = vpack.c.bf16 %v16777_v19, %v16778_v16 }
 0x4a6   : > { %5989 = vst.msk [vmem:[#allocation4 + $0xe1] sm:$0xff] %vm5925_vm13, %v3992_v61  ;;  %v11714_v2 = vadd.f32 %v10835_v27, %v14610_v35  ;;  %v3893_v33 = vpop.f32.mrb[19].mxu0  ;;  %10999 = vmatmul.mubr.f32.gmra.mrb[60].mxu0 %v17220_v24  ;;  %7293 = vrot.lane.b32.xlu0 %v6650_v15, %s12343_s27  ;;  %v14773_v41 = vld [vmem:[#allocation4 + $0xa8] sm:$0xff]  ;;  %v14775_v32 = vld [vmem:[#allocation4 + $0xb0] sm:$0xff] }
 0x4a7   : > { %5988 = vst.msk [vmem:[#allocation4 + $0xd9] sm:$0xff] %vm5925_vm13, %v3991_v8  ;;  %v11715_v40 = vadd.f32 %v14610_v35, %v3893_v33  ;;  %7098 = vrot.lane.b32.xlu1 %v14667_v36, %s12344_s28  ;;  %6050 = vst.msk [vmem:[#allocation5 + $0x70] sm:$0xff] %vm5925_vm13, %v14773_v41  ;;  %v14827_v8 = vld [vmem:[%s16490_s5 + $0x10] sm:$0xff]  ;;  %11599 = vmatprep.subr.bf16.mxu1 %v14816_v47 }
 0x4a8   : > { %6051 = vst.msk [vmem:[#allocation5 + $0x78] sm:$0xff] %vm5925_vm13, %v14775_v32  ;;  %v3994_v24 = vmax.f32 %v11714_v2, 0.0  ;;  %v14785_v31 = vpop.f32.mrb[30].mxu1  ;;  %17241 = vst [vmem:[#allocation55_spill] sm:$0xff] %v14816_v47  ;;  %11601 = vmatpush3.bf16.msra.mxu1 %v14816_v47 }
 0x4a9   : > { %v3993_v44 = vmax.f32 %v11715_v40, 0.0  ;;  %v10838_v59 = vpop.f32.mrb[20].mxu0  ;;  %v14797_v42 = vpop.f32.mrb[31].mxu1  ;;  %17242 = vst [vmem:[#allocation9_spill] sm:$0xff] %v14827_v8  ;;  %v16780_v40 = vand.u32 4294901760, %v14827_v8 }
 0x4aa   : > { %5991 = vst.msk [vmem:[#allocation4 + $0xf9] sm:$0xff] %vm5925_vm13, %v3994_v24  ;;  %v11716_v56 = vadd.f32 %v10838_v59, %v14610_v35  ;;  %v3905_v58 = vpop.f32.mrb[21].mxu0  ;;  %6142 = vrot.lane.b32.xlu0 %v6650_v15, %s12332_s30  ;;  %v14804_v22 = vld [vmem:[#allocation4 + $0xc0] sm:$0xff]  ;;  %v14806_v14 = vld [vmem:[#allocation4 + $0xc8] sm:$0xff] }
 0x4ab   : > { %5990 = vst.msk [vmem:[#allocation4 + $0xf1] sm:$0xff] %vm5925_vm13, %v3993_v44  ;;  %v11717_v46 = vadd.f32 %v14610_v35, %v3905_v58  ;;  %6522 = vrot.lane.b32.xlu1 %v14667_v36, %s12337_s12  ;;  %6052 = vst.msk [vmem:[#allocation5 + $0x80] sm:$0xff] %vm5925_vm13, %v14804_v22  ;;  %v14832_v36 = vld [vmem:[%s16490_s5 + $0x18] sm:$0xff] }
 0x4ac   : > { %6053 = vst.msk [vmem:[#allocation5 + $0x88] sm:$0xff] %vm5925_vm13, %v14806_v14  ;;  %v3996_v15 = vmax.f32 %v11716_v56, 0.0  ;;  %v14822_v61 = vpop.f32.mrb[0].mxu1  ;;  %17243 = vst [vmem:[#allocation6_spill] sm:$0xff] %v14832_v36  ;;  %v16779_v24 = vand.u32 4294901760, %v14832_v36  ;;  %v14843_v56 = vld [vmem:[#allocation4 + $0x31] sm:$0xff] }
 0x4ad   : > { %v3995_v27 = vmax.f32 %v11717_v46, 0.0  ;;  %v10841_v2 = vpop.f32.mrb[22].mxu0  ;;  %v14834_v33 = vpop.f32.mrb[1].mxu1 }
 0x4ae   : > { %5993 = vst.msk [vmem:[#allocation4 + $0x111] sm:$0xff] %vm5925_vm13, %v3996_v15  ;;  %v11718_v44 = vadd.f32 %v10841_v2, %v14610_v35  ;;  %v3917_v59 = vpop.f32.mrb[23].mxu0  ;;  %6910 = vrot.lane.b32.xlu0 %v14750_v49, %s12341_s22  ;;  %v14846_v58 = vld [vmem:[#allocation4 + $0xd8] sm:$0xff]  ;;  %v14848_v46 = vld [vmem:[#allocation4 + $0xe0] sm:$0xff]  ;;  %v14858_v15 = vpack.c.bf16 %v16779_v24, %v16780_v40 }
 0x4af   : > { %5992 = vst.msk [vmem:[#allocation4 + $0x109] sm:$0xff] %vm5925_vm13, %v3995_v27  ;;  %v11719_v19 = vadd.f32 %v14610_v35, %v3917_v59  ;;  %7291 = vrot.lane.b32.xlu1 %v14843_v56, %s12343_s27  ;;  %6054 = vst.msk [vmem:[#allocation5 + $0x90] sm:$0xff] %vm5925_vm13, %v14846_v58  ;;  %v14867_v27 = vld [vmem:[%s16490_s5 + $0x20] sm:$0xff]  ;;  %v14872_v59 = vld [vmem:[%s16490_s5 + $0x28] sm:$0xff] }
 0x4b0   : > { %17244 = vst [vmem:[#allocation52_spill] sm:$0xff] %v14858_v15  ;;  %6055 = vst.msk [vmem:[#allocation5 + $0x98] sm:$0xff] %vm5925_vm13, %v14848_v46  ;;  %v3998_v2 = vmax.f32 %v11718_v44, 0.0  ;;  %11603 = vmatprep.subr.bf16.mxu1 %v14858_v15  ;;  %v16787_v47 = vand.u32 4294901760, %v14872_v59 }
 0x4b1   : > { %17245 = vst [vmem:[#allocation11_spill] sm:$0xff] %v14867_v27  ;;  %17246 = vst [vmem:[#allocation13_spill] sm:$0xff] %v14872_v59  ;;  %v3997_v16 = vmax.f32 %v11719_v19, 0.0  ;;  %v10844_v24 = vpop.f32.mrb[24].mxu0  ;;  %11605 = vmatpush3.bf16.msra.mxu1 %v14858_v15 }
 0x4b2   : > { %5995 = vst.msk [vmem:[#allocation4 + $0x129] sm:$0xff] %vm5925_vm13, %v3998_v2  ;;  %v11720_v44 = vadd.f32 %v10844_v24, %v14610_v35  ;;  %v3929_v36 = vpop.f32.mrb[25].mxu0  ;;  %6335 = vrot.lane.b32.xlu0 %v14750_v49, %s12335_s10  ;;  %v14882_v8 = vld [vmem:[#allocation4 + $0xf0] sm:$0xff]  ;;  %v14884_v19 = vld [vmem:[#allocation4 + $0xf8] sm:$0xff]  ;;  %v17249_v2 = vand.u32 4294901760, %v14867_v27 }
 0x4b3   : > { %17247 = vst [vmem:[#allocation7_spill] sm:$0xff] %v14882_v8  ;;  %17248 = vst [vmem:[#allocation15_spill] sm:$0xff] %v14884_v19  ;;  %v11721_v40 = vadd.f32 %v14610_v35, %v3929_v36  ;;  %6715 = vrot.lane.b32.xlu1 %v14843_v56, %s12339_s16  ;;  %v14908_v36 = vld [vmem:[%s16490_s5 + $0x38] sm:$0xff] }
 0x4b4   : > { %5994 = vst.msk [vmem:[#allocation4 + $0x121] sm:$0xff] %vm5925_vm13, %v3997_v16  ;;  %v14894_v24 = vpack.c.bf16 %v16787_v47, %v17249_v2  ;;  %6056 = vst.msk [vmem:[#allocation5 + $0xa0] sm:$0xff] %vm5925_vm13, %v14882_v8  ;;  %v4000_v49 = vmax.f32 %v11720_v44, 0.0  ;;  %v14903_v16 = vld [vmem:[%s16490_s5 + $0x30] sm:$0xff]  ;;  %v16798_v59 = vand.u32 4294901760, %v14908_v36 }
 0x4b5   : > { %6057 = vst.msk [vmem:[#allocation5 + $0xa8] sm:$0xff] %vm5925_vm13, %v14884_v19  ;;  %17251 = vst [vmem:[#allocation19_spill] sm:$0xff] %v14903_v16  ;;  %v3999_v15 = vmax.f32 %v11721_v40, 0.0  ;;  %v10847_v2 = vpop.f32.mrb[26].mxu0 }
 0x4b6   : > { %17250 = vst [vmem:[#allocation17_spill] sm:$0xff] %v14894_v24  ;;  %17252 = vst [vmem:[#allocation21_spill] sm:$0xff] %v14908_v36  ;;  %11607 = vmatprep.subr.bf16.mxu1 %v14894_v24  ;;  %v11722_v44 = vadd.f32 %v10847_v2, %v14610_v35  ;;  %v3941_v27 = vpop.f32.mrb[27].mxu0  ;;  %7100 = vrot.lane.b32.xlu0 %v14669_v39, %s12344_s28  ;;  %v14918_v38 = vld [vmem:[#allocation4 + $0x108] sm:$0xff]  ;;  %v14920_v40 = vld [vmem:[#allocation4 + $0x110] sm:$0xff] }
 0x4b7   : > { %5997 = vst.msk [vmem:[#allocation4 + $0x141] sm:$0xff] %vm5925_vm13, %v4000_v49  ;;  %11609 = vmatpush3.bf16.msra.mxu1 %v14894_v24  ;;  %5996 = vst.msk [vmem:[#allocation4 + $0x139] sm:$0xff] %vm5925_vm13, %v3999_v15  ;;  %v11723_v47 = vadd.f32 %v14610_v35, %v3941_v27  ;;  %7484 = vrot.lane.b32.xlu1 %v7420_v23, %s12342_s23  ;;  %v17253_v49 = vand.u32 4294901760, %v14903_v16 }
 0x4b8   : > { %6058 = vst.msk [vmem:[#allocation5 + $0xb0] sm:$0xff] %vm5925_vm13, %v14918_v38  ;;  %6059 = vst.msk [vmem:[#allocation5 + $0xb8] sm:$0xff] %vm5925_vm13, %v14920_v40  ;;  %v4002_v24 = vmax.f32 %v11722_v44, 0.0 }
 0x4b9   : > { %v14929_v2 = vpack.c.bf16 %v16798_v59, %v17253_v49  ;;  %v4001_v19 = vmax.f32 %v11723_v47, 0.0  ;;  %v10850_v8 = vpop.f32.mrb[28].mxu0  ;;  %v7653_v49 = vld [vmem:[%s16490_s5 + $0x40] sm:$0xff] }
 0x4ba   : > { %5999 = vst.msk [vmem:[#allocation4 + $0x159] sm:$0xff] %vm5925_vm13, %v4002_v24  ;;  %v11724_v15 = vadd.f32 %v10850_v8, %v14610_v35  ;;  %v3953_v27 = vpop.f32.mrb[29].mxu0  ;;  %6524 = vrot.lane.b32.xlu0 %v14669_v39, %s12337_s12  ;;  %v14951_v8 = vand.u32 4294901760, %v7653_v49  ;;  %v6652_v49 = vld [vmem:[#allocation4 + $0x51] sm:$0xff] }
 0x4bb   : > { %17254 = vst [vmem:[#allocation23_spill] sm:$0xff] %v14929_v2  ;;  %11611 = vmatprep.subr.bf16.mxu1 %v14929_v2  ;;  %v14944_v59 = vld [vmem:[#allocation4 + $0x120] sm:$0xff]  ;;  %v14946_v47 = vld [vmem:[#allocation4 + $0x128] sm:$0xff]  ;;  %5998 = vst.msk [vmem:[#allocation4 + $0x151] sm:$0xff] %vm5925_vm13, %v4001_v19  ;;  %v11725_v24 = vadd.f32 %v14610_v35, %v3953_v27  ;;  %6333 = vrot.lane.b32.xlu1 %v7420_v23, %s12335_s10 }
 0x4bc   : > { %11613 = vmatpush3.bf16.msra.mxu1 %v14929_v2  ;;  %17255 = vst [vmem:[#allocation25_spill] sm:$0xff] %v14951_v8  ;;  %6060 = vst.msk [vmem:[#allocation5 + $0xc0] sm:$0xff] %vm5925_vm13, %v14944_v59  ;;  %v4004_v39 = vmax.f32 %v11724_v15, 0.0 }
 0x4bd   : > { %6061 = vst.msk [vmem:[#allocation5 + $0xc8] sm:$0xff] %vm5925_vm13, %v14946_v47  ;;  %v4003_v44 = vmax.f32 %v11725_v24, 0.0  ;;  %v10853_v2 = vpop.f32.mrb[30].mxu0  ;;  %11170 = vmatprep.subr.mxu1 %v14951_v8  ;;  %v7423_v24 = vld [vmem:[#allocation4 + $0x52] sm:$0xff] }
 0x4be   : > { %6001 = vst.msk [vmem:[#allocation4 + $0x171] sm:$0xff] %vm5925_vm13, %v4004_v39  ;;  %v11726_v19 = vadd.f32 %v10853_v2, %v14610_v35  ;;  %v3965_v27 = vpop.f32.mrb[31].mxu0  ;;  %6140 = vrot.lane.b32.xlu0 %v14843_v56, %s12332_s30  ;;  %v14963_v36 = vld [vmem:[#allocation4 + $0x138] sm:$0xff]  ;;  %v14965_v16 = vld [vmem:[#allocation4 + $0x140] sm:$0xff] }
 0x4bf   : > { %6000 = vst.msk [vmem:[#allocation4 + $0x169] sm:$0xff] %vm5925_vm13, %v4003_v44  ;;  %v11727_v15 = vadd.f32 %v14610_v35, %v3965_v27  ;;  %6721 = vrot.lane.b32.xlu1 %v6652_v49, %s12339_s16  ;;  %6062 = vst.msk [vmem:[#allocation5 + $0xd0] sm:$0xff] %vm5925_vm13, %v14963_v36  ;;  %v7422_v27 = vld [vmem:[#allocation4 + $0x4a] sm:$0xff] }
 0x4c0   : > { %11171 = vmatpush3.msra.mxu1 %v14951_v8  ;;  %6063 = vst.msk [vmem:[#allocation5 + $0xd8] sm:$0xff] %vm5925_vm13, %v14965_v16  ;;  %v4006_v56 = vmax.f32 %v11726_v19, 0.0  ;;  %v7229_v19 = vld [vmem:[#allocation4 + $0x49] sm:$0xff] }
 0x4c1   : > { %v4005_v2 = vmax.f32 %v11727_v15, 0.0  ;;  %v7424_v15 = vld [vmem:[#allocation4 + $0x62] sm:$0xff] }
 0x4c2   : > { %6003 = vst.msk [vmem:[#allocation4 + $0x189] sm:$0xff] %vm5925_vm13, %v4006_v56  ;;  %6908 = vrot.lane.b32.xlu0 %v7420_v23, %s12341_s22  ;;  %v14976_v39 = vld [vmem:[#allocation4 + $0x150] sm:$0xff]  ;;  %v14978_v44 = vld [vmem:[#allocation4 + $0x158] sm:$0xff] }
 0x4c3   : > { %6002 = vst.msk [vmem:[#allocation4 + $0x181] sm:$0xff] %vm5925_vm13, %v4005_v2  ;;  %7490 = vrot.lane.b32.xlu1 %v7423_v24, %s12342_s23  ;;  %6064 = vst.msk [vmem:[#allocation5 + $0xe0] sm:$0xff] %vm5925_vm13, %v14976_v39 }
 0x4c4   : > { %6065 = vst.msk [vmem:[#allocation5 + $0xe8] sm:$0xff] %vm5925_vm13, %v14978_v44 }
 0x4c6   : > { %7297 = vrot.lane.b32.xlu0 %v6652_v49, %s12343_s27  ;;  %v14987_v35 = vld [vmem:[#allocation4 + $0x168] sm:$0xff]  ;;  %v14989_v23 = vld [vmem:[#allocation4 + $0x170] sm:$0xff] }
 0x4c7   : > { %17256 = vst [vmem:[#allocation27_spill] sm:$0xff] %v14989_v23  ;;  %7102 = vrot.lane.b32.xlu1 %v14688_v63, %s12344_s28  ;;  %6066 = vst.msk [vmem:[#allocation5 + $0xf0] sm:$0xff] %vm5925_vm13, %v14987_v35 }
 0x4c8   : > { %6067 = vst.msk [vmem:[#allocation5 + $0xf8] sm:$0xff] %vm5925_vm13, %v14989_v23 }
 0x4ca   : > { %6146 = vrot.lane.b32.xlu0 %v6652_v49, %s12332_s30  ;;  %v7425_v49 = vld [vmem:[#allocation4 + $0x6a] sm:$0xff] }
 0x4cb   : > { %6526 = vrot.lane.b32.xlu1 %v14688_v63, %s12337_s12  ;;  %v6654_v63 = vld [vmem:[#allocation4 + $0x69] sm:$0xff] }
 0x4ce   : > { %6914 = vrot.lane.b32.xlu0 %v7423_v24, %s12341_s22 }
 0x4cf   : > { %7295 = vrot.lane.b32.xlu1 %v7229_v19, %s12343_s27 }
 0x4d2   : > { %6339 = vrot.lane.b32.xlu0 %v7423_v24, %s12335_s10 }
 0x4d3   : > { %6719 = vrot.lane.b32.xlu1 %v7229_v19, %s12339_s16 }
 0x4d6   : > { %7104 = vrot.lane.b32.xlu0 %v14690_v50, %s12344_s28 }
 0x4d7   : > { %7488 = vrot.lane.b32.xlu1 %v7422_v27, %s12342_s23 }
 0x4da   : > { %6528 = vrot.lane.b32.xlu0 %v14690_v50, %s12337_s12  ;;  %v7231_v50 = vld [vmem:[#allocation4 + $0x61] sm:$0xff] }
 0x4db   : > { %6337 = vrot.lane.b32.xlu1 %v7422_v27, %s12335_s10 }
 0x4de   : > { %6144 = vrot.lane.b32.xlu0 %v7229_v19, %s12332_s30 }
 0x4df   : > { %6725 = vrot.lane.b32.xlu1 %v6654_v63, %s12339_s16 }
 0x4e2   : > { %6912 = vrot.lane.b32.xlu0 %v7422_v27, %s12341_s22 }
 0x4e3   : > { %7494 = vrot.lane.b32.xlu1 %v7425_v49, %s12342_s23 }
 0x4e6   : > { %7301 = vrot.lane.b32.xlu0 %v6654_v63, %s12343_s27 }
 0x4e7   : > { %7106 = vrot.lane.b32.xlu1 %v14708_v0, %s12344_s28 }
 0x4ea   : > { %6150 = vrot.lane.b32.xlu0 %v6654_v63, %s12332_s30  ;;  %v7233_v63 = vld [vmem:[#allocation4 + $0x79] sm:$0xff] }
 0x4eb   : > { %6530 = vrot.lane.b32.xlu1 %v14708_v0, %s12337_s12  ;;  %v6656_v0 = vld [vmem:[#allocation4 + $0x81] sm:$0xff] }
 0x4ee   : > { %6918 = vrot.lane.b32.xlu0 %v7425_v49, %s12341_s22 }
 0x4ef   : > { %7299 = vrot.lane.b32.xlu1 %v7231_v50, %s12343_s27 }
 0x4f2   : > { %6343 = vrot.lane.b32.xlu0 %v7425_v49, %s12335_s10 }
 0x4f3   : > { %6723 = vrot.lane.b32.xlu1 %v7231_v50, %s12339_s16 }
 0x4f6   : > { %7108 = vrot.lane.b32.xlu0 %v14710_v45, %s12344_s28 }
 0x4f7   : > { %7492 = vrot.lane.b32.xlu1 %v7424_v15, %s12342_s23 }
 0x4fa   : > { %6532 = vrot.lane.b32.xlu0 %v14710_v45, %s12337_s12 }
 0x4fb   : > { %6341 = vrot.lane.b32.xlu1 %v7424_v15, %s12335_s10 }
 0x4fe   : > { %6148 = vrot.lane.b32.xlu0 %v7231_v50, %s12332_s30 }
 0x4ff   : > { %6729 = vrot.lane.b32.xlu1 %v6656_v0, %s12339_s16 }
 0x500   : > { %v6714_v56 = vpop.permute.xlu0 %6713 }
 0x501   : > { %v6521_v2 = vpop.permute.xlu1 %6520 }
 0x502   : > { %6616 = vst.msk [vmem:[#allocation5 + $0x8] sm:$0xff] %vm6614_vm2, %v6521_v2  ;;  %6916 = vrot.lane.b32.xlu0 %v7424_v15, %s12341_s22 }
 0x503   : > { %7110 = vrot.lane.b32.xlu1 %v14729_v57, %s12344_s28  ;;  %6809 = vst.msk [vmem:[#allocation5 + $0x8] sm:$0xff] %vm6807_vm3, %v6714_v56  ;;  %v7426_v56 = vld [vmem:[#allocation4 + $0x7a] sm:$0xff] }
 0x504   : > { %v6139_v45 = vpop.permute.xlu0 %6138 }
 0x505   : > { %6232 = vst.msk [vmem:[#allocation5 + $0x18] sm:$0xff] %vm6228_vm0, %v6139_v45  ;;  %v6137_v24 = vpop.permute.xlu1 %6136 }
 0x506   : > { %6231 = vst.msk [vmem:[#allocation5 + $0x10] sm:$0xff] %vm6228_vm0, %v6137_v24  ;;  %7305 = vrot.lane.b32.xlu0 %v6656_v0, %s12343_s27 }
 0x507   : > { %6534 = vrot.lane.b32.xlu1 %v14729_v57, %s12337_s12 }
 0x508   : > { %v6907_v19 = vpop.permute.xlu0 %6906 }
 0x509   : > { %7002 = vst.msk [vmem:[#allocation5 + $0x8] sm:$0xff] %vm7000_vm4, %v6907_v19  ;;  %v6905_v27 = vpop.permute.xlu1 %6904 }
 0x50a   : > { %7112 = vrot.lane.b32.xlu0 %v14731_v43, %s12344_s28 }
 0x50b   : > { %7303 = vrot.lane.b32.xlu1 %v7233_v63, %s12343_s27 }
 0x50c   : > { %v6332_v49 = vpop.permute.xlu0 %6331 }
 0x50d   : > { %6425 = vst.msk [vmem:[#allocation5 + $0x18] sm:$0xff] %vm6421_vm1, %v6332_v49  ;;  %v6330_v50 = vpop.permute.xlu1 %6329 }
 0x50e   : > { %6424 = vst.msk [vmem:[#allocation5 + $0x10] sm:$0xff] %vm6421_vm1, %v6330_v50  ;;  %6536 = vrot.lane.b32.xlu0 %v14731_v43, %s12337_s12  ;;  %v7427_v43 = vld [vmem:[#allocation4 + $0x82] sm:$0xff] }
 0x50f   : > { %6727 = vrot.lane.b32.xlu1 %v7233_v63, %s12339_s16 }
 0x510   : > { %v6519_v57 = vpop.permute.xlu0 %6518 }
 0x511   : > { %6615 = vst.msk [vmem:[#allocation5] sm:$0xff] %vm6614_vm2, %v6519_v57  ;;  %v6718_v15 = vpop.permute.xlu1 %6717 }
 0x512   : > { %6152 = vrot.lane.b32.xlu0 %v7233_v63, %s12332_s30 }
 0x513   : > { %7496 = vrot.lane.b32.xlu1 %v7426_v56, %s12342_s23 }
 0x514   : > { %v6712_v2 = vpop.permute.xlu0 %6711 }
 0x515   : > { %6808 = vst.msk [vmem:[#allocation5] sm:$0xff] %vm6807_vm3, %v6712_v2  ;;  %v7487_v45 = vpop.permute.xlu1 %7486 }
 0x516   : > { %7001 = vst.msk [vmem:[#allocation5] sm:$0xff] %vm7000_vm4, %v6905_v27  ;;  %6920 = vrot.lane.b32.xlu0 %v7426_v56, %s12341_s22 }
 0x517   : > { %7498 = vrot.lane.b32.xlu1 %v7427_v43, %s12342_s23 }
 0x518   : > { %v7294_v24 = vpop.permute.xlu0 %7293 }
 0x519   : > { %v7099_v19 = vpop.permute.xlu1 %7098 }
 0x51a   : > { %7195 = vst.msk [vmem:[#allocation5] sm:$0xff] %vm7194_vm5, %v7099_v19  ;;  %6154 = vrot.lane.b32.xlu0 %v6656_v0, %s12332_s30 }
 0x51b   : > { %6345 = vrot.lane.b32.xlu1 %v7426_v56, %s12335_s10  ;;  %v7235_v56 = vld [vmem:[#allocation4 + $0x91] sm:$0xff] }
 0x51c   : > { %v6143_v63 = vpop.permute.xlu0 %6142 }
 0x51d   : > { %6234 = vst.msk [vmem:[#allocation5 + $0x28] sm:$0xff] %vm6228_vm0, %v6143_v63  ;;  %v6523_v49 = vpop.permute.xlu1 %6522  ;;  %v7236_v63 = vld [vmem:[#allocation4 + $0x99] sm:$0xff] }
 0x51e   : > { %6617 = vst.msk [vmem:[#allocation5 + $0x10] sm:$0xff] %vm6614_vm2, %v6523_v49  ;;  %6922 = vrot.lane.b32.xlu0 %v7427_v43, %s12341_s22  ;;  %v7428_v49 = vld [vmem:[#allocation4 + $0x92] sm:$0xff] }
 0x51f   : > { %7114 = vrot.lane.b32.xlu1 %v14752_v4, %s12344_s28 }
 0x520   : > { %v6911_v27 = vpop.permute.xlu0 %6910 }
 0x521   : > { %v7292_v50 = vpop.permute.xlu1 %7291 }
 0x522   : > { %7388 = vst.msk [vmem:[#allocation5] sm:$0xff] %vm7387_vm6, %v7292_v50  ;;  %6347 = vrot.lane.b32.xlu0 %v7427_v43, %s12335_s10 }
 0x523   : > { %6538 = vrot.lane.b32.xlu1 %v14752_v4, %s12337_s12 }
 0x524   : > { %v6336_v0 = vpop.permute.xlu0 %6335 }
 0x525   : > { %6427 = vst.msk [vmem:[#allocation5 + $0x28] sm:$0xff] %vm6421_vm1, %v6336_v0  ;;  %v6716_v57 = vpop.permute.xlu1 %6715 }
 0x526   : > { %6810 = vst.msk [vmem:[#allocation5 + $0x10] sm:$0xff] %vm6807_vm3, %v6716_v57  ;;  %7116 = vrot.lane.b32.xlu0 %v14754_v55, %s12344_s28 }
 0x527   : > { %7307 = vrot.lane.b32.xlu1 %v7235_v56, %s12343_s27 }
 0x528   : > { %v7101_v2 = vpop.permute.xlu0 %7100 }
 0x529   : > { %7196 = vst.msk [vmem:[#allocation5 + $0x8] sm:$0xff] %vm7194_vm5, %v7101_v2  ;;  %v7485_v43 = vpop.permute.xlu1 %7484 }
 0x52a   : > { %7389 = vst.msk [vmem:[#allocation5 + $0x8] sm:$0xff] %vm7387_vm6, %v7294_v24  ;;  %6540 = vrot.lane.b32.xlu0 %v14754_v55, %s12337_s12 }
 0x52b   : > { %7581 = vst.msk [vmem:[#allocation5] sm:$0xff] %vm7580_vm7, %v7485_v43  ;;  %7582 = vst.msk [vmem:[#allocation5 + $0x8] sm:$0xff] %vm7580_vm7, %v7487_v45  ;;  %6731 = vrot.lane.b32.xlu1 %v7235_v56, %s12339_s16 }
 0x52c   : > { %v6525_v4 = vpop.permute.xlu0 %6524 }
 0x52d   : > { %6618 = vst.msk [vmem:[#allocation5 + $0x18] sm:$0xff] %vm6614_vm2, %v6525_v4  ;;  %v6334_v19 = vpop.permute.xlu1 %6333 }
 0x52e   : > { %6811 = vst.msk [vmem:[#allocation5 + $0x18] sm:$0xff] %vm6807_vm3, %v6718_v15  ;;  %7309 = vrot.lane.b32.xlu0 %v7236_v63, %s12343_s27 }
 0x52f   : > { %7004 = vst.msk [vmem:[#allocation5 + $0x18] sm:$0xff] %vm7000_vm4, %v6911_v27  ;;  %7500 = vrot.lane.b32.xlu1 %v7428_v49, %s12342_s23 }
 0x530   : > { %v6141_v55 = vpop.permute.xlu0 %6140 }
 0x531   : > { %6233 = vst.msk [vmem:[#allocation5 + $0x20] sm:$0xff] %vm6228_vm0, %v6141_v55  ;;  %v15088_v45 = vpop.permute.xlu1 %6721 }
 0x532   : > { %v7613_v24 = vld [vmem:[#allocation5] sm:$0xff]  ;;  %6426 = vst.msk [vmem:[#allocation5 + $0x20] sm:$0xff] %vm6421_vm1, %v6334_v19  ;;  %6156 = vrot.lane.b32.xlu0 %v7235_v56, %s12332_s30  ;;  %v7614_v50 = vld [vmem:[#allocation5 + $0x8] sm:$0xff] }
 0x533   : > { %v7663_v15 = vsel %vm7661_vm8, %v7613_v24, 0  ;;  %6733 = vrot.lane.b32.xlu1 %v7236_v63, %s12339_s16  ;;  %v7666_v27 = vsel %vm7661_vm8, %v7614_v50, 0  ;;  %v7429_v56 = vld [vmem:[#allocation4 + $0x9a] sm:$0xff] }
 0x534   : > { %v15094_v0 = vand.u32 4294901760, %v7663_v15  ;;  %v6909_v57 = vpop.permute.xlu0 %6908  ;;  %v15097_v2 = vand.u32 4294901760, %v7666_v27 }
 0x535   : > { %7003 = vst.msk [vmem:[#allocation5 + $0x10] sm:$0xff] %vm7000_vm4, %v6909_v57  ;;  %v15100_v43 = vpop.permute.xlu1 %7490 }
 0x536   : > { %17257 = vst [vmem:[#allocation29_spill] sm:$0xff] %v15094_v0  ;;  %17258 = vst [vmem:[#allocation31_spill] sm:$0xff] %v15097_v2  ;;  %v15103_v4 = vsub.f32 %v7663_v15, %v15094_v0  ;;  %6924 = vrot.lane.b32.xlu0 %v7428_v49, %s12341_s22  ;;  %v15107_v19 = vsub.f32 %v7666_v27, %v15097_v2  ;;  %v15124_v27 = vld [vmem:[%s16487_s2] ss:$0 sm:$0xff] }
 0x537   : > { %7502 = vrot.lane.b32.xlu1 %v7429_v56, %s12342_s23 }
 0x538   : > { %17259 = vst [vmem:[#allocation33_spill] sm:$0xff] %v15107_v19  ;;  %v16811_v55 = vand.u32 4294901760, %v15103_v4  ;;  %v7298_v24 = vpop.permute.xlu0 %7297  ;;  %v16812_v50 = vand.u32 4294901760, %v15107_v19 }
 0x539   : > { %v7103_v8 = vpop.permute.xlu1 %7102 }
 0x53a   : > { %v7835_v57 = vsub.f32 %v15103_v4, %v16811_v55  ;;  %7197 = vst.msk [vmem:[#allocation5 + $0x10] sm:$0xff] %vm7194_vm5, %v7103_v8  ;;  %6158 = vrot.lane.b32.xlu0 %v7236_v63, %s12332_s30  ;;  %v7845_v15 = vsub.f32 %v15107_v19, %v16812_v50 }
 0x53b   : > { %6349 = vrot.lane.b32.xlu1 %v7428_v49, %s12335_s10 }
 0x53c   : > { %v7836_v2 = vand.u32 4294901760, %v7835_v57  ;;  %v6147_v0 = vpop.permute.xlu0 %6146  ;;  %v7846_v23 = vand.u32 4294901760, %v7845_v15 }
 0x53d   : > { %6236 = vst.msk [vmem:[#allocation5 + $0x38] sm:$0xff] %vm6228_vm0, %v6147_v0  ;;  %v10953_v55 = vpop.f32.mrb[62].mxu0  ;;  %v6527_v8 = vpop.permute.xlu1 %6526 }
 0x53e   : > { %11172 = vmatprep.mubr.f32.mxu1 %v7836_v2  ;;  %v11788_v63 = vadd.f32 %v10953_v55, %v15124_v27  ;;  %6619 = vst.msk [vmem:[#allocation5 + $0x20] sm:$0xff] %vm6614_vm2, %v6527_v8  ;;  %v4784_v50 = vpop.f32.mrb[63].mxu0  ;;  %6926 = vrot.lane.b32.xlu0 %v7429_v56, %s12341_s22 }
 0x53f   : > { %11173 = vmatmul.mubr.f32.vlgmr.msra.gmra.mrb[32].mxu1 %v7846_v23  ;;  %v11790_v49 = vadd.f32 %v15124_v27, %v4784_v50  ;;  %7118 = vrot.lane.b32.xlu1 %v14773_v41, %s12344_s28 }
 0x540   : > { %v15134_v57 = vadd.f32 %v11788_v63, %v14822_v61  ;;  %v6915_v0 = vpop.permute.xlu0 %6914 }
 0x541   : > { %v15137_v2 = vadd.f32 %v11790_v49, %v14834_v33  ;;  %v10958_v15 = vpop.f32.mrb[32].mxu0  ;;  %v7296_v55 = vpop.permute.xlu1 %7295 }
 0x542   : > { %17260 = vst [vmem:[#allocation35_spill] sm:$0xff] %v15134_v57  ;;  %v11728_v8 = vadd.f32 %v10958_v15, %v15124_v27  ;;  %7390 = vst.msk [vmem:[#allocation5 + $0x10] sm:$0xff] %vm7387_vm6, %v7296_v55  ;;  %v4864_v19 = vpop.f32.mrb[33].mxu0  ;;  %6351 = vrot.lane.b32.xlu0 %v7429_v56, %s12335_s10 }
 0x543   : > { %17261 = vst [vmem:[#allocation37_spill] sm:$0xff] %v15137_v2  ;;  %v11730_v23 = vadd.f32 %v15124_v27, %v4864_v19  ;;  %6542 = vrot.lane.b32.xlu1 %v14773_v41, %s12337_s12  ;;  %v7237_v41 = vld [vmem:[#allocation4 + $0xa9] sm:$0xff] }
 0x544   : > { %v15146_v61 = vadd.f32 %v11728_v8, %v14577_v12  ;;  %v6340_v50 = vpop.permute.xlu0 %6339 }
 0x545   : > { %v15149_v33 = vadd.f32 %v11730_v23, %v14579_v28  ;;  %6429 = vst.msk [vmem:[#allocation5 + $0x38] sm:$0xff] %vm6421_vm1, %v6340_v50  ;;  %v10961_v63 = vpop.f32.mrb[34].mxu0  ;;  %v6720_v49 = vpop.permute.xlu1 %6719 }
 0x546   : > { %17262 = vst [vmem:[#allocation39_spill] sm:$0xff] %v15146_v61  ;;  %v11732_v15 = vadd.f32 %v10961_v63, %v15124_v27  ;;  %6812 = vst.msk [vmem:[#allocation5 + $0x20] sm:$0xff] %vm6807_vm3, %v6720_v49  ;;  %v4878_v56 = vpop.f32.mrb[35].mxu0  ;;  %7120 = vrot.lane.b32.xlu0 %v14775_v32, %s12344_s28  ;;  %v7258_v61 = vld [vmem:[#allocation4 + $0x1a1] sm:$0xff] }
 0x547   : > { %17263 = vst [vmem:[#allocation43_spill] sm:$0xff] %v15149_v33  ;;  %v11734_v12 = vadd.f32 %v15124_v27, %v4878_v56  ;;  %7311 = vrot.lane.b32.xlu1 %v7237_v41, %s12343_s27 }
 0x548   : > { %v15159_v28 = vadd.f32 %v11732_v15, %v14583_v26  ;;  %v7105_v19 = vpop.permute.xlu0 %7104 }
 0x549   : > { %v15162_v55 = vadd.f32 %v11734_v12, %v14585_v17  ;;  %7198 = vst.msk [vmem:[#allocation5 + $0x18] sm:$0xff] %vm7194_vm5, %v7105_v19  ;;  %v10964_v8 = vpop.f32.mrb[36].mxu0  ;;  %v7489_v23 = vpop.permute.xlu1 %7488  ;;  %v7238_v12 = vld [vmem:[#allocation4 + $0xb1] sm:$0xff] }
 0x54a   : > { %17264 = vst [vmem:[#allocation45_spill] sm:$0xff] %v15159_v28  ;;  %7391 = vst.msk [vmem:[#allocation5 + $0x18] sm:$0xff] %vm7387_vm6, %v7298_v24  ;;  %v11736_v50 = vadd.f32 %v10964_v8, %v15124_v27  ;;  %v4892_v63 = vpop.f32.mrb[37].mxu0  ;;  %6544 = vrot.lane.b32.xlu0 %v14775_v32, %s12337_s12  ;;  %v7430_v19 = vld [vmem:[#allocation4 + $0xaa] sm:$0xff]  ;;  %v7257_v28 = vld [vmem:[#allocation4 + $0x199] sm:$0xff] }
 0x54b   : > { %17265 = vst [vmem:[#allocation49_spill] sm:$0xff] %v15162_v55  ;;  %7583 = vst.msk [vmem:[#allocation5 + $0x10] sm:$0xff] %vm7580_vm7, %v7489_v23  ;;  %v11738_v26 = vadd.f32 %v15124_v27, %v4892_v63  ;;  %6735 = vrot.lane.b32.xlu1 %v7237_v41, %s12339_s16 }
 0x54c   : > { %7584 = vst.msk [vmem:[#allocation5 + $0x18] sm:$0xff] %vm7580_vm7, %v15100_v43  ;;  %v15175_v17 = vadd.f32 %v11736_v50, %v14589_v30  ;;  %v6529_v49 = vpop.permute.xlu0 %6528 }
 0x54d   : > { %v15178_v24 = vadd.f32 %v11738_v26, %v14593_v10  ;;  %6620 = vst.msk [vmem:[#allocation5 + $0x28] sm:$0xff] %vm6614_vm2, %v6529_v49  ;;  %v10967_v15 = vpop.f32.mrb[38].mxu0  ;;  %v6338_v56 = vpop.permute.xlu1 %6337 }
 0x54e   : > { %17266 = vst [vmem:[#allocation51_spill] sm:$0xff] %v15175_v17  ;;  %6813 = vst.msk [vmem:[#allocation5 + $0x28] sm:$0xff] %vm6807_vm3, %v15088_v45  ;;  %v11740_v32 = vadd.f32 %v10967_v15, %v15124_v27  ;;  %v4906_v43 = vpop.f32.mrb[39].mxu0  ;;  %7313 = vrot.lane.b32.xlu0 %v7238_v12, %s12343_s27 }
 0x54f   : > { %17267 = vst [vmem:[#allocation10_spill] sm:$0xff] %v15178_v24  ;;  %7006 = vst.msk [vmem:[#allocation5 + $0x28] sm:$0xff] %vm7000_vm4, %v6915_v0  ;;  %v11742_v30 = vadd.f32 %v15124_v27, %v4906_v43  ;;  %7504 = vrot.lane.b32.xlu1 %v7430_v19, %s12342_s23 }
 0x550   : > { %v15189_v10 = vadd.f32 %v11740_v32, %v14599_v21  ;;  %v6145_v8 = vpop.permute.xlu0 %6144 }
 0x551   : > { %v15192_v23 = vadd.f32 %v11742_v30, %v14601_v51  ;;  %6235 = vst.msk [vmem:[#allocation5 + $0x30] sm:$0xff] %vm6228_vm0, %v6145_v8  ;;  %v10970_v45 = vpop.f32.mrb[40].mxu0  ;;  %v15195_v50 = vpop.permute.xlu1 %6725 }
 0x552   : > { %17268 = vst [vmem:[#allocation54_spill] sm:$0xff] %v15189_v10  ;;  %v7615_v63 = vld [vmem:[#allocation5 + $0x10] sm:$0xff]  ;;  %6428 = vst.msk [vmem:[#allocation5 + $0x30] sm:$0xff] %vm6421_vm1, %v6338_v56  ;;  %v11744_v0 = vadd.f32 %v10970_v45, %v15124_v27  ;;  %v4920_v26 = vpop.f32.mrb[41].mxu0  ;;  %6160 = vrot.lane.b32.xlu0 %v7237_v41, %s12332_s30  ;;  %v17326_v10 = vld [vmem:[#allocation21_spill] sm:$0xff] }
 0x553   : > { %17269 = vst [vmem:[#allocation12_spill] sm:$0xff] %v15192_v23  ;;  %v7669_v21 = vsel %vm7661_vm8, %v7615_v63, 0  ;;  %v7616_v49 = vld [vmem:[#allocation5 + $0x18] sm:$0xff]  ;;  %v11746_v15 = vadd.f32 %v15124_v27, %v4920_v26  ;;  %6737 = vrot.lane.b32.xlu1 %v7238_v12, %s12339_s16 }
 0x554   : > { %v15203_v51 = vand.u32 4294901760, %v7669_v21  ;;  %v7672_v32 = vsel %vm7661_vm8, %v7616_v49, 0  ;;  %v15207_v43 = vadd.f32 %v11744_v0, %v14612_v6  ;;  %v6913_v56 = vpop.permute.xlu0 %6912  ;;  %v7431_v6 = vld [vmem:[#allocation4 + $0xb2] sm:$0xff] }
 0x555   : > { %v15209_v30 = vand.u32 4294901760, %v7672_v32  ;;  %v15212_v8 = vadd.f32 %v11746_v15, %v14614_v18  ;;  %7005 = vst.msk [vmem:[#allocation5 + $0x20] sm:$0xff] %vm7000_vm4, %v6913_v56  ;;  %v10973_v41 = vpop.f32.mrb[42].mxu0  ;;  %v15215_v45 = vpop.permute.xlu1 %7494 }
 0x556   : > { %17270 = vst [vmem:[#allocation56_spill] sm:$0xff] %v15207_v43  ;;  %v15218_v63 = vsub.f32 %v7669_v21, %v15203_v51  ;;  %v11748_v26 = vadd.f32 %v10973_v41, %v15124_v27  ;;  %v4934_v49 = vpop.f32.mrb[43].mxu0  ;;  %6928 = vrot.lane.b32.xlu0 %v7430_v19, %s12341_s22 }
 0x557   : > { %17271 = vst [vmem:[#allocation58_spill] sm:$0xff] %v15212_v8  ;;  %v15223_v0 = vsub.f32 %v7672_v32, %v15209_v30  ;;  %v11750_v18 = vadd.f32 %v15124_v27, %v4934_v49  ;;  %7506 = vrot.lane.b32.xlu1 %v7431_v6, %s12342_s23 }
 0x558   : > { %v16815_v15 = vand.u32 4294901760, %v15218_v63  ;;  %v15229_v56 = vadd.f32 %v11748_v26, %v14620_v60  ;;  %v7302_v21 = vpop.permute.xlu0 %7301 }
 0x559   : > { %v16816_v2 = vand.u32 4294901760, %v15223_v0  ;;  %v15233_v41 = vadd.f32 %v11750_v18, %v14622_v9  ;;  %v10976_v57 = vpop.f32.mrb[44].mxu0  ;;  %v7107_v8 = vpop.permute.xlu1 %7106 }
 0x55a   : > { %17272 = vst [vmem:[#allocation60_spill] sm:$0xff] %v15229_v56  ;;  %v7855_v32 = vsub.f32 %v15218_v63, %v16815_v15  ;;  %v11752_v49 = vadd.f32 %v10976_v57, %v15124_v27  ;;  %7199 = vst.msk [vmem:[#allocation5 + $0x20] sm:$0xff] %vm7194_vm5, %v7107_v8  ;;  %v4948_v43 = vpop.f32.mrb[45].mxu0  ;;  %6162 = vrot.lane.b32.xlu0 %v7238_v12, %s12332_s30 }
 0x55b   : > { %17273 = vst [vmem:[#allocation62_spill] sm:$0xff] %v15233_v41  ;;  %v7865_v60 = vsub.f32 %v15223_v0, %v16816_v2  ;;  %v11754_v9 = vadd.f32 %v15124_v27, %v4948_v43  ;;  %6353 = vrot.lane.b32.xlu1 %v7430_v19, %s12335_s10 }
 0x55c   : > { %v7856_v26 = vand.u32 4294901760, %v7855_v32  ;;  %v15247_v18 = vadd.f32 %v11752_v49, %v14630_v13  ;;  %v6151_v15 = vpop.permute.xlu0 %6150 }
 0x55d   : > { %v7866_v41 = vand.u32 4294901760, %v7865_v60  ;;  %v15250_v57 = vadd.f32 %v11754_v9, %v14632_v54  ;;  %6238 = vst.msk [vmem:[#allocation5 + $0x48] sm:$0xff] %vm6228_vm0, %v6151_v15  ;;  %v10979_v12 = vpop.f32.mrb[46].mxu0  ;;  %v6531_v8 = vpop.permute.xlu1 %6530 }
 0x55e   : > { %17274 = vst [vmem:[#allocation64_spill] sm:$0xff] %v15247_v18  ;;  %11175 = vmatprep.mubr.f32.mxu1 %v7856_v26  ;;  %v11756_v2 = vadd.f32 %v10979_v12, %v15124_v27  ;;  %6621 = vst.msk [vmem:[#allocation5 + $0x30] sm:$0xff] %vm6614_vm2, %v6531_v8  ;;  %v4962_v43 = vpop.f32.mrb[47].mxu0  ;;  %6930 = vrot.lane.b32.xlu0 %v7431_v6, %s12341_s22 }
 0x55f   : > { %17275 = vst [vmem:[#allocation66_spill] sm:$0xff] %v15250_v57  ;;  %11176 = vmatmul.mubr.f32.gmra.mrb[34].mxu1 %v7866_v41  ;;  %v11758_v13 = vadd.f32 %v15124_v27, %v4962_v43  ;;  %7122 = vrot.lane.b32.xlu1 %v14804_v22, %s12344_s28 }
 0x560   : > { %v15260_v54 = vadd.f32 %v11756_v2, %v14640_v37  ;;  %v6919_v19 = vpop.permute.xlu0 %6918 }
 0x561   : > { %v15263_v15 = vadd.f32 %v11758_v13, %v14642_v48  ;;  %v10982_v32 = vpop.f32.mrb[48].mxu0  ;;  %v7300_v49 = vpop.permute.xlu1 %7299 }
 0x562   : > { %17276 = vst [vmem:[#allocation69_spill] sm:$0xff] %v15260_v54  ;;  %v11760_v60 = vadd.f32 %v10982_v32, %v15124_v27  ;;  %7392 = vst.msk [vmem:[#allocation5 + $0x20] sm:$0xff] %vm7387_vm6, %v7300_v49  ;;  %v4976_v9 = vpop.f32.mrb[49].mxu0  ;;  %6355 = vrot.lane.b32.xlu0 %v7431_v6, %s12335_s10 }
 0x563   : > { %17277 = vst [vmem:[#allocation72_spill] sm:$0xff] %v15263_v15  ;;  %v11762_v41 = vadd.f32 %v15124_v27, %v4976_v9  ;;  %6546 = vrot.lane.b32.xlu1 %v14804_v22, %s12337_s12  ;;  %v7239_v22 = vld [vmem:[#allocation4 + $0xc1] sm:$0xff] }
 0x564   : > { %v15272_v37 = vadd.f32 %v11760_v60, %v14655_v34  ;;  %v6344_v2 = vpop.permute.xlu0 %6343 }
 0x565   : > { %v15275_v48 = vadd.f32 %v11762_v41, %v14659_v53  ;;  %6431 = vst.msk [vmem:[#allocation5 + $0x48] sm:$0xff] %vm6421_vm1, %v6344_v2  ;;  %v10985_v26 = vpop.f32.mrb[50].mxu0  ;;  %v6724_v12 = vpop.permute.xlu1 %6723 }
 0x566   : > { %17278 = vst [vmem:[#allocation41_spill] sm:$0xff] %v15272_v37  ;;  %v11764_v8 = vadd.f32 %v10985_v26, %v15124_v27  ;;  %6814 = vst.msk [vmem:[#allocation5 + $0x30] sm:$0xff] %vm6807_vm3, %v6724_v12  ;;  %v4990_v6 = vpop.f32.mrb[51].mxu0  ;;  %7124 = vrot.lane.b32.xlu0 %v14806_v14, %s12344_s28  ;;  %v7240_v12 = vld [vmem:[#allocation4 + $0xc9] sm:$0xff] }
 0x567   : > { %17279 = vst [vmem:[#allocation70_spill] sm:$0xff] %v15275_v48  ;;  %v11766_v34 = vadd.f32 %v15124_v27, %v4990_v6  ;;  %7315 = vrot.lane.b32.xlu1 %v7239_v22, %s12343_s27 }
 0x568   : > { %v15285_v53 = vadd.f32 %v11764_v8, %v14680_v5  ;;  %v7109_v43 = vpop.permute.xlu0 %7108  ;;  %v7432_v8 = vld [vmem:[#allocation4 + $0xc2] sm:$0xff] }
 0x569   : > { %v15288_v13 = vadd.f32 %v11766_v34, %v14682_v7  ;;  %7200 = vst.msk [vmem:[#allocation5 + $0x28] sm:$0xff] %vm7194_vm5, %v7109_v43  ;;  %v10988_v32 = vpop.f32.mrb[52].mxu0  ;;  %v7493_v49 = vpop.permute.xlu1 %7492 }
 0x56a   : > { %17280 = vst [vmem:[#allocation73_spill] sm:$0xff] %v15285_v53  ;;  %7393 = vst.msk [vmem:[#allocation5 + $0x28] sm:$0xff] %vm7387_vm6, %v7302_v21  ;;  %v11768_v60 = vadd.f32 %v10988_v32, %v15124_v27  ;;  %v5004_v9 = vpop.f32.mrb[53].mxu0  ;;  %6548 = vrot.lane.b32.xlu0 %v14806_v14, %s12337_s12 }
 0x56b   : > { %17281 = vst [vmem:[#allocation18_spill] sm:$0xff] %v15288_v13  ;;  %7585 = vst.msk [vmem:[#allocation5 + $0x20] sm:$0xff] %vm7580_vm7, %v7493_v49  ;;  %v11770_v5 = vadd.f32 %v15124_v27, %v5004_v9  ;;  %6739 = vrot.lane.b32.xlu1 %v7239_v22, %s12339_s16 }
 0x56c   : > { %7586 = vst.msk [vmem:[#allocation5 + $0x28] sm:$0xff] %vm7580_vm7, %v15215_v45  ;;  %v15301_v7 = vadd.f32 %v11768_v60, %v14700_v3  ;;  %v6533_v41 = vpop.permute.xlu0 %6532 }
 0x56d   : > { %v15304_v21 = vadd.f32 %v11770_v5, %v14702_v52  ;;  %6622 = vst.msk [vmem:[#allocation5 + $0x38] sm:$0xff] %vm6614_vm2, %v6533_v41  ;;  %v10991_v2 = vpop.f32.mrb[54].mxu0  ;;  %v6342_v26 = vpop.permute.xlu1 %6341 }
 0x56e   : > { %17282 = vst [vmem:[#allocation20_spill] sm:$0xff] %v15301_v7  ;;  %6815 = vst.msk [vmem:[#allocation5 + $0x38] sm:$0xff] %vm6807_vm3, %v15195_v50  ;;  %v11772_v14 = vadd.f32 %v10991_v2, %v15124_v27  ;;  %v5018_v45 = vpop.f32.mrb[55].mxu0  ;;  %7317 = vrot.lane.b32.xlu0 %v7240_v12, %s12343_s27 }
 0x56f   : > { %17283 = vst [vmem:[#allocation30_spill] sm:$0xff] %v15304_v21  ;;  %7008 = vst.msk [vmem:[#allocation5 + $0x38] sm:$0xff] %vm7000_vm4, %v6919_v19  ;;  %v11774_v3 = vadd.f32 %v15124_v27, %v5018_v45  ;;  %7508 = vrot.lane.b32.xlu1 %v7432_v8, %s12342_s23 }
 0x570   : > { %v15315_v52 = vadd.f32 %v11772_v14, %v14720_v25  ;;  %v6149_v6 = vpop.permute.xlu0 %6148 }
 0x571   : > { %v15318_v34 = vadd.f32 %v11774_v3, %v14722_v1  ;;  %6237 = vst.msk [vmem:[#allocation5 + $0x40] sm:$0xff] %vm6228_vm0, %v6149_v6  ;;  %v10994_v50 = vpop.f32.mrb[56].mxu0  ;;  %v6730_v43 = vpop.permute.xlu1 %6729 }
 0x572   : > { %17284 = vst [vmem:[#allocation28_spill] sm:$0xff] %v15315_v52  ;;  %v7617_v32 = vld [vmem:[#allocation5 + $0x20] sm:$0xff]  ;;  %6430 = vst.msk [vmem:[#allocation5 + $0x40] sm:$0xff] %vm6421_vm1, %v6342_v26  ;;  %v11776_v19 = vadd.f32 %v10994_v50, %v15124_v27  ;;  %v5032_v49 = vpop.f32.mrb[57].mxu0  ;;  %6164 = vrot.lane.b32.xlu0 %v7239_v22, %s12332_s30 }
 0x573   : > { %17285 = vst [vmem:[#allocation36_spill] sm:$0xff] %v15318_v34  ;;  %v7675_v60 = vsel %vm7661_vm8, %v7617_v32, 0  ;;  %v7618_v25 = vld [vmem:[#allocation5 + $0x28] sm:$0xff]  ;;  %v11778_v9 = vadd.f32 %v15124_v27, %v5032_v49  ;;  %6741 = vrot.lane.b32.xlu1 %v7240_v12, %s12339_s16 }
 0x574   : > { %v15327_v1 = vand.u32 4294901760, %v7675_v60  ;;  %v7678_v5 = vsel %vm7661_vm8, %v7618_v25, 0  ;;  %v15331_v41 = vadd.f32 %v11776_v19, %v14741_v20  ;;  %v6917_v2 = vpop.permute.xlu0 %6916  ;;  %v7433_v20 = vld [vmem:[#allocation4 + $0xca] sm:$0xff] }
 0x575   : > { %v15333_v26 = vand.u32 4294901760, %v7678_v5  ;;  %v15336_v14 = vadd.f32 %v11778_v9, %v14743_v29  ;;  %7007 = vst.msk [vmem:[#allocation5 + $0x30] sm:$0xff] %vm7000_vm4, %v6917_v2  ;;  %v10997_v22 = vpop.f32.mrb[58].mxu0  ;;  %v7111_v45 = vpop.permute.xlu1 %7110 }
 0x576   : > { %17286 = vst [vmem:[#allocation34_spill] sm:$0xff] %v15331_v41  ;;  %v15340_v3 = vsub.f32 %v7675_v60, %v15327_v1  ;;  %v11780_v6 = vadd.f32 %v10997_v22, %v15124_v27  ;;  %7201 = vst.msk [vmem:[#allocation5 + $0x30] sm:$0xff] %vm7194_vm5, %v7111_v45  ;;  %v5046_v50 = vpop.f32.mrb[59].mxu0  ;;  %6932 = vrot.lane.b32.xlu0 %v7432_v8, %s12341_s22 }
 0x577   : > { %17287 = vst [vmem:[#allocation40_spill] sm:$0xff] %v15336_v14  ;;  %v15346_v32 = vsub.f32 %v7678_v5, %v15333_v26  ;;  %v11782_v29 = vadd.f32 %v15124_v27, %v5046_v50  ;;  %7510 = vrot.lane.b32.xlu1 %v7433_v20, %s12342_s23 }
 0x578   : > { %v16817_v19 = vand.u32 4294901760, %v15340_v3  ;;  %v15352_v49 = vadd.f32 %v11780_v6, %v14765_v62  ;;  %v7306_v60 = vpop.permute.xlu0 %7305 }
 0x579   : > { %v16822_v25 = vand.u32 4294901760, %v15346_v32  ;;  %v15356_v9 = vadd.f32 %v11782_v29, %v14767_v11  ;;  %v11000_v2 = vpop.f32.mrb[60].mxu0  ;;  %v6535_v22 = vpop.permute.xlu1 %6534 }
 0x57a   : > { %17288 = vst [vmem:[#allocation38_spill] sm:$0xff] %v15352_v49  ;;  %v7875_v5 = vsub.f32 %v15340_v3, %v16817_v19  ;;  %v11784_v45 = vadd.f32 %v11000_v2, %v15124_v27  ;;  %6623 = vst.msk [vmem:[#allocation5 + $0x40] sm:$0xff] %vm6614_vm2, %v6535_v22  ;;  %v5060_v50 = vpop.f32.mrb[61].mxu0  ;;  %6166 = vrot.lane.b32.xlu0 %v7240_v12, %s12332_s30 }
 0x57b   : > { %17289 = vst [vmem:[#allocation50_spill] sm:$0xff] %v15356_v9  ;;  %v7885_v62 = vsub.f32 %v15346_v32, %v16822_v25  ;;  %v11786_v11 = vadd.f32 %v15124_v27, %v5060_v50  ;;  %6357 = vrot.lane.b32.xlu1 %v7432_v8, %s12335_s10 }
 0x57c   : > { %v7876_v6 = vand.u32 4294901760, %v7875_v5  ;;  %v15370_v29 = vadd.f32 %v11784_v45, %v14785_v31  ;;  %v7113_v19 = vpop.permute.xlu0 %7112  ;;  %v7434_v5 = vld [vmem:[#allocation4 + $0xda] sm:$0xff] }
 0x57d   : > { %v7886_v9 = vand.u32 4294901760, %v7885_v62  ;;  %v15373_v2 = vadd.f32 %v11786_v11, %v14797_v42  ;;  %7202 = vst.msk [vmem:[#allocation5 + $0x38] sm:$0xff] %vm7194_vm5, %v7113_v19  ;;  %v7304_v12 = vpop.permute.xlu1 %7303  ;;  %v7241_v19 = vld [vmem:[#allocation4 + $0xd9] sm:$0xff] }
 0x57e   : > { %17290 = vst [vmem:[#allocation46_spill] sm:$0xff] %v15370_v29  ;;  %11178 = vmatprep.mubr.f32.mxu1 %v7876_v6  ;;  %7395 = vst.msk [vmem:[#allocation5 + $0x38] sm:$0xff] %vm7387_vm6, %v7306_v60  ;;  %6934 = vrot.lane.b32.xlu0 %v7433_v20, %s12341_s22 }
 0x57f   : > { %17291 = vst [vmem:[#allocation57_spill] sm:$0xff] %v15373_v2  ;;  %7394 = vst.msk [vmem:[#allocation5 + $0x30] sm:$0xff] %vm7387_vm6, %v7304_v12  ;;  %11179 = vmatmul.mubr.f32.gmra.mrb[36].mxu1 %v7886_v9  ;;  %7126 = vrot.lane.b32.xlu1 %v14846_v58, %s12344_s28  ;;  %v7242_v9 = vld [vmem:[#allocation4 + $0xe1] sm:$0xff] }
 0x580   : > { %v6537_v31 = vpop.permute.xlu0 %6536 }
 0x581   : > { %6624 = vst.msk [vmem:[#allocation5 + $0x48] sm:$0xff] %vm6614_vm2, %v6537_v31  ;;  %v6728_v27 = vpop.permute.xlu1 %6727 }
 0x582   : > { %6817 = vst.msk [vmem:[#allocation5 + $0x48] sm:$0xff] %vm6807_vm3, %v6730_v43  ;;  %6816 = vst.msk [vmem:[#allocation5 + $0x40] sm:$0xff] %vm6807_vm3, %v6728_v27  ;;  %6359 = vrot.lane.b32.xlu0 %v7433_v20, %s12335_s10 }
 0x583   : > { %6550 = vrot.lane.b32.xlu1 %v14846_v58, %s12337_s12 }
 0x584   : > { %v6153_v42 = vpop.permute.xlu0 %6152 }
 0x585   : > { %6239 = vst.msk [vmem:[#allocation5 + $0x50] sm:$0xff] %vm6228_vm0, %v6153_v42  ;;  %v7497_v8 = vpop.permute.xlu1 %7496 }
 0x586   : > { %7587 = vst.msk [vmem:[#allocation5 + $0x30] sm:$0xff] %vm7580_vm7, %v7497_v8  ;;  %7128 = vrot.lane.b32.xlu0 %v14848_v46, %s12344_s28 }
 0x587   : > { %7319 = vrot.lane.b32.xlu1 %v7241_v19, %s12343_s27 }
 0x588   : > { %v6921_v43 = vpop.permute.xlu0 %6920 }
 0x589   : > { %7009 = vst.msk [vmem:[#allocation5 + $0x40] sm:$0xff] %vm7000_vm4, %v6921_v43  ;;  %v7499_v60 = vpop.permute.xlu1 %7498 }
 0x58a   : > { %7588 = vst.msk [vmem:[#allocation5 + $0x38] sm:$0xff] %vm7580_vm7, %v7499_v60  ;;  %6552 = vrot.lane.b32.xlu0 %v14848_v46, %s12337_s12 }
 0x58b   : > { %6743 = vrot.lane.b32.xlu1 %v7241_v19, %s12339_s16 }
 0x58c   : > { %v6155_v58 = vpop.permute.xlu0 %6154 }
 0x58d   : > { %6240 = vst.msk [vmem:[#allocation5 + $0x58] sm:$0xff] %vm6228_vm0, %v6155_v58  ;;  %v6346_v20 = vpop.permute.xlu1 %6345  ;;  %v7619_v22 = vld [vmem:[#allocation5 + $0x30] sm:$0xff] }
 0x58e   : > { %6432 = vst.msk [vmem:[#allocation5 + $0x50] sm:$0xff] %vm6421_vm1, %v6346_v20  ;;  %7321 = vrot.lane.b32.xlu0 %v7242_v9, %s12343_s27  ;;  %v7681_v45 = vsel %vm7661_vm8, %v7619_v22, 0 }
 0x58f   : > { %7512 = vrot.lane.b32.xlu1 %v7434_v5, %s12342_s23  ;;  %v15402_v50 = vand.u32 4294901760, %v7681_v45 }
 0x590   : > { %v6923_v46 = vpop.permute.xlu0 %6922 }
 0x591   : > { %7010 = vst.msk [vmem:[#allocation5 + $0x48] sm:$0xff] %vm7000_vm4, %v6923_v46  ;;  %v7115_v62 = vpop.permute.xlu1 %7114  ;;  %v15406_v11 = vsub.f32 %v7681_v45, %v15402_v50  ;;  %v7620_v6 = vld [vmem:[#allocation5 + $0x38] sm:$0xff] }
 0x592   : > { %7203 = vst.msk [vmem:[#allocation5 + $0x40] sm:$0xff] %vm7194_vm5, %v7115_v62  ;;  %6168 = vrot.lane.b32.xlu0 %v7241_v19, %s12332_s30  ;;  %v7684_v12 = vsel %vm7661_vm8, %v7620_v6, 0  ;;  %v7435_v19 = vld [vmem:[#allocation4 + $0xe2] sm:$0xff] }
 0x593   : > { %6745 = vrot.lane.b32.xlu1 %v7242_v9, %s12339_s16  ;;  %v16819_v31 = vand.u32 4294901760, %v15406_v11  ;;  %v15413_v27 = vand.u32 4294901760, %v7684_v12 }
 0x594   : > { %v6348_v42 = vpop.permute.xlu0 %6347 }
 0x595   : > { %6433 = vst.msk [vmem:[#allocation5 + $0x58] sm:$0xff] %vm6421_vm1, %v6348_v42  ;;  %v6539_v8 = vpop.permute.xlu1 %6538  ;;  %v7895_v43 = vsub.f32 %v15406_v11, %v16819_v31  ;;  %v15420_v60 = vsub.f32 %v7684_v12, %v15413_v27  ;;  %v17292_v42 = vld [vmem:[#allocation7_spill] sm:$0xff] }
 0x596   : > { %6625 = vst.msk [vmem:[#allocation5 + $0x50] sm:$0xff] %vm6614_vm2, %v6539_v8  ;;  %6936 = vrot.lane.b32.xlu0 %v7434_v5, %s12341_s22 }
 0x597   : > { %7514 = vrot.lane.b32.xlu1 %v7435_v19, %s12342_s23  ;;  %v7896_v58 = vand.u32 4294901760, %v7895_v43  ;;  %v16818_v20 = vand.u32 4294901760, %v15420_v60 }
 0x598   : > { %v7117_v22 = vpop.permute.xlu0 %7116 }
 0x599   : > { %7204 = vst.msk [vmem:[#allocation5 + $0x48] sm:$0xff] %vm7194_vm5, %v7117_v22  ;;  %v7308_v45 = vpop.permute.xlu1 %7307  ;;  %11181 = vmatprep.mubr.f32.mxu1 %v7896_v58  ;;  %v7905_v46 = vsub.f32 %v15420_v60, %v16818_v20  ;;  %v17293_v58 = vld [vmem:[#allocation15_spill] sm:$0xff] }
 0x59a   : > { %7396 = vst.msk [vmem:[#allocation5 + $0x40] sm:$0xff] %vm7387_vm6, %v7308_v45  ;;  %6170 = vrot.lane.b32.xlu0 %v7242_v9, %s12332_s30  ;;  %v7243_v22 = vld [vmem:[#allocation4 + $0xf1] sm:$0xff] }
 0x59b   : > { %6361 = vrot.lane.b32.xlu1 %v7434_v5, %s12335_s10  ;;  %v7906_v62 = vand.u32 4294901760, %v7905_v46 }
 0x59c   : > { %v6541_v6 = vpop.permute.xlu0 %6540 }
 0x59d   : > { %6626 = vst.msk [vmem:[#allocation5 + $0x58] sm:$0xff] %vm6614_vm2, %v6541_v6  ;;  %v6732_v12 = vpop.permute.xlu1 %6731  ;;  %11182 = vmatmul.mubr.f32.gmra.mrb[38].mxu1 %v7906_v62 }
 0x59e   : > { %6818 = vst.msk [vmem:[#allocation5 + $0x50] sm:$0xff] %vm6807_vm3, %v6732_v12  ;;  %6938 = vrot.lane.b32.xlu0 %v7435_v19, %s12341_s22 }
 0x59f   : > { %7130 = vrot.lane.b32.xlu1 %v17292_v42, %s12344_s28 }
 0x5a0   : > { %v7310_v8 = vpop.permute.xlu0 %7309 }
 0x5a1   : > { %7397 = vst.msk [vmem:[#allocation5 + $0x48] sm:$0xff] %vm7387_vm6, %v7310_v8  ;;  %v7501_v43 = vpop.permute.xlu1 %7500  ;;  %v7244_v8 = vld [vmem:[#allocation4 + $0xf9] sm:$0xff] }
 0x5a2   : > { %7589 = vst.msk [vmem:[#allocation5 + $0x40] sm:$0xff] %vm7580_vm7, %v7501_v43  ;;  %6363 = vrot.lane.b32.xlu0 %v7435_v19, %s12335_s10 }
 0x5a3   : > { %6554 = vrot.lane.b32.xlu1 %v17292_v42, %s12337_s12 }
 0x5a4   : > { %v6157_v9 = vpop.permute.xlu0 %6156 }
 0x5a5   : > { %6241 = vst.msk [vmem:[#allocation5 + $0x60] sm:$0xff] %vm6228_vm0, %v6157_v9  ;;  %v6734_v5 = vpop.permute.xlu1 %6733  ;;  %v7436_v9 = vld [vmem:[#allocation4 + $0xf2] sm:$0xff] }
 0x5a6   : > { %6819 = vst.msk [vmem:[#allocation5 + $0x58] sm:$0xff] %vm6807_vm3, %v6734_v5  ;;  %7132 = vrot.lane.b32.xlu0 %v17293_v58, %s12344_s28 }
 0x5a7   : > { %7323 = vrot.lane.b32.xlu1 %v7243_v22, %s12343_s27 }
 0x5a8   : > { %v6925_v45 = vpop.permute.xlu0 %6924 }
 0x5a9   : > { %7011 = vst.msk [vmem:[#allocation5 + $0x50] sm:$0xff] %vm7000_vm4, %v6925_v45  ;;  %v7503_v46 = vpop.permute.xlu1 %7502  ;;  %v7621_v19 = vld [vmem:[#allocation5 + $0x40] sm:$0xff] }
 0x5aa   : > { %7590 = vst.msk [vmem:[#allocation5 + $0x48] sm:$0xff] %vm7580_vm7, %v7503_v46  ;;  %6556 = vrot.lane.b32.xlu0 %v17293_v58, %s12337_s12  ;;  %v7687_v62 = vsel %vm7661_vm8, %v7621_v19, 0 }
 0x5ab   : > { %6747 = vrot.lane.b32.xlu1 %v7243_v22, %s12339_s16  ;;  %v15454_v6 = vand.u32 4294901760, %v7687_v62 }
 0x5ac   : > { %v6159_v12 = vpop.permute.xlu0 %6158 }
 0x5ad   : > { %6242 = vst.msk [vmem:[#allocation5 + $0x68] sm:$0xff] %vm6228_vm0, %v6159_v12  ;;  %v6350_v42 = vpop.permute.xlu1 %6349  ;;  %v15458_v43 = vsub.f32 %v7687_v62, %v15454_v6 }
 0x5ae   : > { %6434 = vst.msk [vmem:[#allocation5 + $0x60] sm:$0xff] %vm6421_vm1, %v6350_v42  ;;  %7325 = vrot.lane.b32.xlu0 %v7244_v8, %s12343_s27 }
 0x5af   : > { %7516 = vrot.lane.b32.xlu1 %v7436_v9, %s12342_s23  ;;  %v16821_v5 = vand.u32 4294901760, %v15458_v43 }
 0x5b0   : > { %v6927_v58 = vpop.permute.xlu0 %6926 }
 0x5b1   : > { %7012 = vst.msk [vmem:[#allocation5 + $0x58] sm:$0xff] %vm7000_vm4, %v6927_v58  ;;  %v7119_v45 = vpop.permute.xlu1 %7118  ;;  %v7915_v46 = vsub.f32 %v15458_v43, %v16821_v5  ;;  %v7622_v19 = vld [vmem:[#allocation5 + $0x48] sm:$0xff] }
 0x5b2   : > { %7205 = vst.msk [vmem:[#allocation5 + $0x50] sm:$0xff] %vm7194_vm5, %v7119_v45  ;;  %6172 = vrot.lane.b32.xlu0 %v7243_v22, %s12332_s30  ;;  %v7690_v62 = vsel %vm7661_vm8, %v7622_v19, 0  ;;  %v7437_v22 = vld [vmem:[#allocation4 + $0xfa] sm:$0xff] }
 0x5b3   : > { %6749 = vrot.lane.b32.xlu1 %v7244_v8, %s12339_s16  ;;  %v7916_v12 = vand.u32 4294901760, %v7915_v46  ;;  %v15472_v42 = vand.u32 4294901760, %v7690_v62 }
 0x5b4   : > { %v6352_v20 = vpop.permute.xlu0 %6351 }
 0x5b5   : > { %6435 = vst.msk [vmem:[#allocation5 + $0x68] sm:$0xff] %vm6421_vm1, %v6352_v20  ;;  %v6543_v58 = vpop.permute.xlu1 %6542  ;;  %11184 = vmatprep.mubr.f32.mxu1 %v7916_v12  ;;  %v15476_v31 = vsub.f32 %v7690_v62, %v15472_v42 }
 0x5b6   : > { %6627 = vst.msk [vmem:[#allocation5 + $0x60] sm:$0xff] %vm6614_vm2, %v6543_v58  ;;  %6940 = vrot.lane.b32.xlu0 %v7436_v9, %s12341_s22 }
 0x5b7   : > { %7518 = vrot.lane.b32.xlu1 %v7437_v22, %s12342_s23  ;;  %v16820_v45 = vand.u32 4294901760, %v15476_v31 }
 0x5b8   : > { %v7121_v46 = vpop.permute.xlu0 %7120 }
 0x5b9   : > { %7206 = vst.msk [vmem:[#allocation5 + $0x58] sm:$0xff] %vm7194_vm5, %v7121_v46  ;;  %v7312_v19 = vpop.permute.xlu1 %7311  ;;  %v7925_v20 = vsub.f32 %v15476_v31, %v16820_v45 }
 0x5ba   : > { %7398 = vst.msk [vmem:[#allocation5 + $0x50] sm:$0xff] %vm7387_vm6, %v7312_v19  ;;  %6174 = vrot.lane.b32.xlu0 %v7244_v8, %s12332_s30 }
 0x5bb   : > { %6365 = vrot.lane.b32.xlu1 %v7436_v9, %s12335_s10  ;;  %v7926_v62 = vand.u32 4294901760, %v7925_v20  ;;  %v7245_v20 = vld [vmem:[#allocation4 + $0x109] sm:$0xff] }
 0x5bc   : > { %v6545_v12 = vpop.permute.xlu0 %6544 }
 0x5bd   : > { %6628 = vst.msk [vmem:[#allocation5 + $0x68] sm:$0xff] %vm6614_vm2, %v6545_v12  ;;  %v6736_v58 = vpop.permute.xlu1 %6735  ;;  %11185 = vmatmul.mubr.f32.gmra.mrb[40].mxu1 %v7926_v62 }
 0x5be   : > { %6820 = vst.msk [vmem:[#allocation5 + $0x60] sm:$0xff] %vm6807_vm3, %v6736_v58  ;;  %6942 = vrot.lane.b32.xlu0 %v7437_v22, %s12341_s22 }
 0x5bf   : > { %7134 = vrot.lane.b32.xlu1 %v14918_v38, %s12344_s28 }
 0x5c0   : > { %v7314_v46 = vpop.permute.xlu0 %7313 }
 0x5c1   : > { %7399 = vst.msk [vmem:[#allocation5 + $0x58] sm:$0xff] %vm7387_vm6, %v7314_v46  ;;  %v7505_v19 = vpop.permute.xlu1 %7504 }
 0x5c2   : > { %7591 = vst.msk [vmem:[#allocation5 + $0x50] sm:$0xff] %vm7580_vm7, %v7505_v19  ;;  %6367 = vrot.lane.b32.xlu0 %v7437_v22, %s12335_s10 }
 0x5c3   : > { %6558 = vrot.lane.b32.xlu1 %v14918_v38, %s12337_s12 }
 0x5c4   : > { %v6161_v8 = vpop.permute.xlu0 %6160 }
 0x5c5   : > { %6243 = vst.msk [vmem:[#allocation5 + $0x70] sm:$0xff] %vm6228_vm0, %v6161_v8  ;;  %v6738_v9 = vpop.permute.xlu1 %6737  ;;  %v7246_v8 = vld [vmem:[#allocation4 + $0x111] sm:$0xff] }
 0x5c6   : > { %6821 = vst.msk [vmem:[#allocation5 + $0x68] sm:$0xff] %vm6807_vm3, %v6738_v9  ;;  %7136 = vrot.lane.b32.xlu0 %v14920_v40, %s12344_s28 }
 0x5c7   : > { %7327 = vrot.lane.b32.xlu1 %v7245_v20, %s12343_s27 }
 0x5c8   : > { %v6929_v62 = vpop.permute.xlu0 %6928 }
 0x5c9   : > { %7013 = vst.msk [vmem:[#allocation5 + $0x60] sm:$0xff] %vm7000_vm4, %v6929_v62  ;;  %v7507_v12 = vpop.permute.xlu1 %7506  ;;  %v7623_v22 = vld [vmem:[#allocation5 + $0x50] sm:$0xff]  ;;  %v7438_v62 = vld [vmem:[#allocation4 + $0x10a] sm:$0xff] }
 0x5ca   : > { %7592 = vst.msk [vmem:[#allocation5 + $0x58] sm:$0xff] %vm7580_vm7, %v7507_v12  ;;  %6560 = vrot.lane.b32.xlu0 %v14920_v40, %s12337_s12  ;;  %v7693_v38 = vsel %vm7661_vm8, %v7623_v22, 0 }
 0x5cb   : > { %6751 = vrot.lane.b32.xlu1 %v7245_v20, %s12339_s16  ;;  %v15510_v58 = vand.u32 4294901760, %v7693_v38 }
 0x5cc   : > { %v6163_v46 = vpop.permute.xlu0 %6162 }
 0x5cd   : > { %6244 = vst.msk [vmem:[#allocation5 + $0x78] sm:$0xff] %vm6228_vm0, %v6163_v46  ;;  %v6354_v19 = vpop.permute.xlu1 %6353  ;;  %v15514_v9 = vsub.f32 %v7693_v38, %v15510_v58 }
 0x5ce   : > { %6436 = vst.msk [vmem:[#allocation5 + $0x70] sm:$0xff] %vm6421_vm1, %v6354_v19  ;;  %7329 = vrot.lane.b32.xlu0 %v7246_v8, %s12343_s27 }
 0x5cf   : > { %7520 = vrot.lane.b32.xlu1 %v7438_v62, %s12342_s23  ;;  %v16824_v40 = vand.u32 4294901760, %v15514_v9 }
 0x5d0   : > { %v6931_v12 = vpop.permute.xlu0 %6930 }
 0x5d1   : > { %7014 = vst.msk [vmem:[#allocation5 + $0x68] sm:$0xff] %vm7000_vm4, %v6931_v12  ;;  %v7123_v22 = vpop.permute.xlu1 %7122  ;;  %v7935_v46 = vsub.f32 %v15514_v9, %v16824_v40  ;;  %v7624_v45 = vld [vmem:[#allocation5 + $0x58] sm:$0xff] }
 0x5d2   : > { %7207 = vst.msk [vmem:[#allocation5 + $0x60] sm:$0xff] %vm7194_vm5, %v7123_v22  ;;  %6176 = vrot.lane.b32.xlu0 %v7245_v20, %s12332_s30  ;;  %v7696_v38 = vsel %vm7661_vm8, %v7624_v45, 0  ;;  %v7439_v20 = vld [vmem:[#allocation4 + $0x112] sm:$0xff] }
 0x5d3   : > { %6753 = vrot.lane.b32.xlu1 %v7246_v8, %s12339_s16  ;;  %v7936_v19 = vand.u32 4294901760, %v7935_v46  ;;  %v15528_v5 = vand.u32 4294901760, %v7696_v38 }
 0x5d4   : > { %v6356_v25 = vpop.permute.xlu0 %6355 }
 0x5d5   : > { %6437 = vst.msk [vmem:[#allocation5 + $0x78] sm:$0xff] %vm6421_vm1, %v6356_v25  ;;  %v6547_v12 = vpop.permute.xlu1 %6546  ;;  %11187 = vmatprep.mubr.f32.mxu1 %v7936_v19  ;;  %v15532_v2 = vsub.f32 %v7696_v38, %v15528_v5 }
 0x5d6   : > { %6629 = vst.msk [vmem:[#allocation5 + $0x70] sm:$0xff] %vm6614_vm2, %v6547_v12  ;;  %6944 = vrot.lane.b32.xlu0 %v7438_v62, %s12341_s22 }
 0x5d7   : > { %7522 = vrot.lane.b32.xlu1 %v7439_v20, %s12342_s23  ;;  %v16823_v45 = vand.u32 4294901760, %v15532_v2 }
 0x5d8   : > { %v7125_v22 = vpop.permute.xlu0 %7124 }
 0x5d9   : > { %7208 = vst.msk [vmem:[#allocation5 + $0x68] sm:$0xff] %vm7194_vm5, %v7125_v22  ;;  %v7316_v46 = vpop.permute.xlu1 %7315  ;;  %v7945_v25 = vsub.f32 %v15532_v2, %v16823_v45 }
 0x5da   : > { %7400 = vst.msk [vmem:[#allocation5 + $0x60] sm:$0xff] %vm7387_vm6, %v7316_v46  ;;  %6178 = vrot.lane.b32.xlu0 %v7246_v8, %s12332_s30 }
 0x5db   : > { %6369 = vrot.lane.b32.xlu1 %v7438_v62, %s12335_s10  ;;  %v7946_v38 = vand.u32 4294901760, %v7945_v25  ;;  %v7247_v25 = vld [vmem:[#allocation4 + $0x121] sm:$0xff] }
 0x5dc   : > { %v6549_v19 = vpop.permute.xlu0 %6548 }
 0x5dd   : > { %6630 = vst.msk [vmem:[#allocation5 + $0x78] sm:$0xff] %vm6614_vm2, %v6549_v19  ;;  %v6740_v12 = vpop.permute.xlu1 %6739  ;;  %11188 = vmatmul.mubr.f32.gmra.mrb[42].mxu1 %v7946_v38 }
 0x5de   : > { %6822 = vst.msk [vmem:[#allocation5 + $0x70] sm:$0xff] %vm6807_vm3, %v6740_v12  ;;  %6946 = vrot.lane.b32.xlu0 %v7439_v20, %s12341_s22 }
 0x5df   : > { %7138 = vrot.lane.b32.xlu1 %v14944_v59, %s12344_s28 }
 0x5e0   : > { %v7318_v22 = vpop.permute.xlu0 %7317 }
 0x5e1   : > { %7401 = vst.msk [vmem:[#allocation5 + $0x68] sm:$0xff] %vm7387_vm6, %v7318_v22  ;;  %v7509_v46 = vpop.permute.xlu1 %7508 }
 0x5e2   : > { %7593 = vst.msk [vmem:[#allocation5 + $0x60] sm:$0xff] %vm7580_vm7, %v7509_v46  ;;  %6371 = vrot.lane.b32.xlu0 %v7439_v20, %s12335_s10 }
 0x5e3   : > { %6562 = vrot.lane.b32.xlu1 %v14944_v59, %s12337_s12 }
 0x5e4   : > { %v6165_v8 = vpop.permute.xlu0 %6164 }
 0x5e5   : > { %6245 = vst.msk [vmem:[#allocation5 + $0x80] sm:$0xff] %vm6228_vm0, %v6165_v8  ;;  %v6742_v62 = vpop.permute.xlu1 %6741  ;;  %v7248_v8 = vld [vmem:[#allocation4 + $0x129] sm:$0xff] }
 0x5e6   : > { %6823 = vst.msk [vmem:[#allocation5 + $0x78] sm:$0xff] %vm6807_vm3, %v6742_v62  ;;  %7140 = vrot.lane.b32.xlu0 %v14946_v47, %s12344_s28 }
 0x5e7   : > { %7331 = vrot.lane.b32.xlu1 %v7247_v25, %s12343_s27 }
 0x5e8   : > { %v6933_v38 = vpop.permute.xlu0 %6932 }
 0x5e9   : > { %7015 = vst.msk [vmem:[#allocation5 + $0x70] sm:$0xff] %vm7000_vm4, %v6933_v38  ;;  %v7511_v19 = vpop.permute.xlu1 %7510  ;;  %v7625_v20 = vld [vmem:[#allocation5 + $0x60] sm:$0xff]  ;;  %v7440_v38 = vld [vmem:[#allocation4 + $0x122] sm:$0xff] }
 0x5ea   : > { %7594 = vst.msk [vmem:[#allocation5 + $0x68] sm:$0xff] %vm7580_vm7, %v7511_v19  ;;  %6564 = vrot.lane.b32.xlu0 %v14946_v47, %s12337_s12  ;;  %v7699_v59 = vsel %vm7661_vm8, %v7625_v20, 0 }
 0x5eb   : > { %6755 = vrot.lane.b32.xlu1 %v7247_v25, %s12339_s16  ;;  %v15566_v12 = vand.u32 4294901760, %v7699_v59 }
 0x5ec   : > { %v6167_v22 = vpop.permute.xlu0 %6166 }
 0x5ed   : > { %6246 = vst.msk [vmem:[#allocation5 + $0x88] sm:$0xff] %vm6228_vm0, %v6167_v22  ;;  %v6358_v46 = vpop.permute.xlu1 %6357  ;;  %v15570_v62 = vsub.f32 %v7699_v59, %v15566_v12 }
 0x5ee   : > { %6438 = vst.msk [vmem:[#allocation5 + $0x80] sm:$0xff] %vm6421_vm1, %v6358_v46  ;;  %7333 = vrot.lane.b32.xlu0 %v7248_v8, %s12343_s27 }
 0x5ef   : > { %7524 = vrot.lane.b32.xlu1 %v7440_v38, %s12342_s23  ;;  %v16826_v47 = vand.u32 4294901760, %v15570_v62 }
 0x5f0   : > { %v6935_v19 = vpop.permute.xlu0 %6934 }
 0x5f1   : > { %7016 = vst.msk [vmem:[#allocation5 + $0x78] sm:$0xff] %vm7000_vm4, %v6935_v19  ;;  %v7127_v20 = vpop.permute.xlu1 %7126  ;;  %v7955_v22 = vsub.f32 %v15570_v62, %v16826_v47  ;;  %v7626_v45 = vld [vmem:[#allocation5 + $0x68] sm:$0xff] }
 0x5f2   : > { %7209 = vst.msk [vmem:[#allocation5 + $0x70] sm:$0xff] %vm7194_vm5, %v7127_v20  ;;  %6180 = vrot.lane.b32.xlu0 %v7247_v25, %s12332_s30  ;;  %v7702_v59 = vsel %vm7661_vm8, %v7626_v45, 0  ;;  %v7441_v25 = vld [vmem:[#allocation4 + $0x12a] sm:$0xff] }
 0x5f3   : > { %6757 = vrot.lane.b32.xlu1 %v7248_v8, %s12339_s16  ;;  %v7956_v46 = vand.u32 4294901760, %v7955_v22  ;;  %v15584_v40 = vand.u32 4294901760, %v7702_v59 }
 0x5f4   : > { %v6360_v29 = vpop.permute.xlu0 %6359 }
 0x5f5   : > { %17294 = vst [vmem:[#allocation68_spill] sm:$0xff] %v15584_v40  ;;  %6439 = vst.msk [vmem:[#allocation5 + $0x88] sm:$0xff] %vm6421_vm1, %v6360_v29  ;;  %v6551_v19 = vpop.permute.xlu1 %6550  ;;  %11190 = vmatprep.mubr.f32.mxu1 %v7956_v46  ;;  %v15588_v49 = vsub.f32 %v7702_v59, %v15584_v40 }
 0x5f6   : > { %6631 = vst.msk [vmem:[#allocation5 + $0x80] sm:$0xff] %vm6614_vm2, %v6551_v19  ;;  %6948 = vrot.lane.b32.xlu0 %v7440_v38, %s12341_s22 }
 0x5f7   : > { %7526 = vrot.lane.b32.xlu1 %v7441_v25, %s12342_s23  ;;  %v16825_v45 = vand.u32 4294901760, %v15588_v49 }
 0x5f8   : > { %v7129_v20 = vpop.permute.xlu0 %7128 }
 0x5f9   : > { %7210 = vst.msk [vmem:[#allocation5 + $0x78] sm:$0xff] %vm7194_vm5, %v7129_v20  ;;  %v7320_v22 = vpop.permute.xlu1 %7319  ;;  %v7965_v29 = vsub.f32 %v15588_v49, %v16825_v45 }
 0x5fa   : > { %7402 = vst.msk [vmem:[#allocation5 + $0x70] sm:$0xff] %vm7387_vm6, %v7320_v22  ;;  %6182 = vrot.lane.b32.xlu0 %v7248_v8, %s12332_s30 }
 0x5fb   : > { %6373 = vrot.lane.b32.xlu1 %v7440_v38, %s12335_s10  ;;  %v7966_v59 = vand.u32 4294901760, %v7965_v29  ;;  %v7249_v29 = vld [vmem:[#allocation4 + $0x139] sm:$0xff] }
 0x5fc   : > { %v6553_v46 = vpop.permute.xlu0 %6552 }
 0x5fd   : > { %6632 = vst.msk [vmem:[#allocation5 + $0x88] sm:$0xff] %vm6614_vm2, %v6553_v46  ;;  %v6744_v19 = vpop.permute.xlu1 %6743  ;;  %11191 = vmatmul.mubr.f32.gmra.mrb[44].mxu1 %v7966_v59 }
 0x5fe   : > { %6824 = vst.msk [vmem:[#allocation5 + $0x80] sm:$0xff] %vm6807_vm3, %v6744_v19  ;;  %6950 = vrot.lane.b32.xlu0 %v7441_v25, %s12341_s22 }
 0x5ff   : > { %7142 = vrot.lane.b32.xlu1 %v14963_v36, %s12344_s28 }
 0x600   : > { %v7322_v20 = vpop.permute.xlu0 %7321 }
 0x601   : > { %7403 = vst.msk [vmem:[#allocation5 + $0x78] sm:$0xff] %vm7387_vm6, %v7322_v20  ;;  %v7513_v22 = vpop.permute.xlu1 %7512 }
 0x602   : > { %7595 = vst.msk [vmem:[#allocation5 + $0x70] sm:$0xff] %vm7580_vm7, %v7513_v22  ;;  %6375 = vrot.lane.b32.xlu0 %v7441_v25, %s12335_s10 }
 0x603   : > { %6566 = vrot.lane.b32.xlu1 %v14963_v36, %s12337_s12 }
 0x604   : > { %v6169_v8 = vpop.permute.xlu0 %6168 }
 0x605   : > { %6247 = vst.msk [vmem:[#allocation5 + $0x90] sm:$0xff] %vm6228_vm0, %v6169_v8  ;;  %v6746_v38 = vpop.permute.xlu1 %6745  ;;  %v7250_v8 = vld [vmem:[#allocation4 + $0x141] sm:$0xff] }
 0x606   : > { %6825 = vst.msk [vmem:[#allocation5 + $0x88] sm:$0xff] %vm6807_vm3, %v6746_v38  ;;  %7144 = vrot.lane.b32.xlu0 %v14965_v16, %s12344_s28 }
 0x607   : > { %7335 = vrot.lane.b32.xlu1 %v7249_v29, %s12343_s27 }
 0x608   : > { %v6937_v59 = vpop.permute.xlu0 %6936 }
 0x609   : > { %7017 = vst.msk [vmem:[#allocation5 + $0x80] sm:$0xff] %vm7000_vm4, %v6937_v59  ;;  %v7515_v46 = vpop.permute.xlu1 %7514  ;;  %v7627_v25 = vld [vmem:[#allocation5 + $0x70] sm:$0xff] }
 0x60a   : > { %7596 = vst.msk [vmem:[#allocation5 + $0x78] sm:$0xff] %vm7580_vm7, %v7515_v46  ;;  %6568 = vrot.lane.b32.xlu0 %v14965_v16, %s12337_s12  ;;  %v7705_v36 = vsel %vm7661_vm8, %v7627_v25, 0  ;;  %v7442_v59 = vld [vmem:[#allocation4 + $0x13a] sm:$0xff] }
 0x60b   : > { %6759 = vrot.lane.b32.xlu1 %v7249_v29, %s12339_s16  ;;  %v15622_v19 = vand.u32 4294901760, %v7705_v36 }
 0x60c   : > { %v6171_v20 = vpop.permute.xlu0 %6170 }
 0x60d   : > { %17295 = vst [vmem:[#allocation61_spill] sm:$0xff] %v15622_v19  ;;  %6248 = vst.msk [vmem:[#allocation5 + $0x98] sm:$0xff] %vm6228_vm0, %v6171_v20  ;;  %v6362_v22 = vpop.permute.xlu1 %6361  ;;  %v15626_v38 = vsub.f32 %v7705_v36, %v15622_v19 }
 0x60e   : > { %6440 = vst.msk [vmem:[#allocation5 + $0x90] sm:$0xff] %vm6421_vm1, %v6362_v22  ;;  %7337 = vrot.lane.b32.xlu0 %v7250_v8, %s12343_s27 }
 0x60f   : > { %7528 = vrot.lane.b32.xlu1 %v7442_v59, %s12342_s23  ;;  %v16828_v16 = vand.u32 4294901760, %v15626_v38 }
 0x610   : > { %v6939_v46 = vpop.permute.xlu0 %6938 }
 0x611   : > { %7018 = vst.msk [vmem:[#allocation5 + $0x88] sm:$0xff] %vm7000_vm4, %v6939_v46  ;;  %v7131_v25 = vpop.permute.xlu1 %7130  ;;  %v7975_v20 = vsub.f32 %v15626_v38, %v16828_v16  ;;  %v7628_v45 = vld [vmem:[#allocation5 + $0x78] sm:$0xff] }
 0x612   : > { %7211 = vst.msk [vmem:[#allocation5 + $0x80] sm:$0xff] %vm7194_vm5, %v7131_v25  ;;  %6184 = vrot.lane.b32.xlu0 %v7249_v29, %s12332_s30  ;;  %v7708_v36 = vsel %vm7661_vm8, %v7628_v45, 0  ;;  %v7443_v29 = vld [vmem:[#allocation4 + $0x142] sm:$0xff] }
 0x613   : > { %6761 = vrot.lane.b32.xlu1 %v7250_v8, %s12339_s16  ;;  %v7976_v22 = vand.u32 4294901760, %v7975_v20  ;;  %v15640_v47 = vand.u32 4294901760, %v7708_v36 }
 0x614   : > { %v6364_v14 = vpop.permute.xlu0 %6363 }
 0x615   : > { %17296 = vst [vmem:[#allocation59_spill] sm:$0xff] %v15640_v47  ;;  %6441 = vst.msk [vmem:[#allocation5 + $0x98] sm:$0xff] %vm6421_vm1, %v6364_v14  ;;  %v6555_v46 = vpop.permute.xlu1 %6554  ;;  %11193 = vmatprep.mubr.f32.mxu1 %v7976_v22  ;;  %v15644_v41 = vsub.f32 %v7708_v36, %v15640_v47 }
 0x616   : > { %6633 = vst.msk [vmem:[#allocation5 + $0x90] sm:$0xff] %vm6614_vm2, %v6555_v46  ;;  %6952 = vrot.lane.b32.xlu0 %v7442_v59, %s12341_s22 }
 0x617   : > { %7530 = vrot.lane.b32.xlu1 %v7443_v29, %s12342_s23  ;;  %v16827_v45 = vand.u32 4294901760, %v15644_v41 }
 0x618   : > { %v7133_v25 = vpop.permute.xlu0 %7132 }
 0x619   : > { %7212 = vst.msk [vmem:[#allocation5 + $0x88] sm:$0xff] %vm7194_vm5, %v7133_v25  ;;  %v7324_v20 = vpop.permute.xlu1 %7323  ;;  %v7985_v14 = vsub.f32 %v15644_v41, %v16827_v45 }
 0x61a   : > { %7404 = vst.msk [vmem:[#allocation5 + $0x80] sm:$0xff] %vm7387_vm6, %v7324_v20  ;;  %6186 = vrot.lane.b32.xlu0 %v7250_v8, %s12332_s30 }
 0x61b   : > { %6377 = vrot.lane.b32.xlu1 %v7442_v59, %s12335_s10  ;;  %v7986_v36 = vand.u32 4294901760, %v7985_v14  ;;  %v7251_v14 = vld [vmem:[#allocation4 + $0x151] sm:$0xff] }
 0x61c   : > { %v6557_v22 = vpop.permute.xlu0 %6556 }
 0x61d   : > { %6634 = vst.msk [vmem:[#allocation5 + $0x98] sm:$0xff] %vm6614_vm2, %v6557_v22  ;;  %v6748_v46 = vpop.permute.xlu1 %6747  ;;  %11194 = vmatmul.mubr.f32.gmra.mrb[46].mxu1 %v7986_v36 }
 0x61e   : > { %6826 = vst.msk [vmem:[#allocation5 + $0x90] sm:$0xff] %vm6807_vm3, %v6748_v46  ;;  %6954 = vrot.lane.b32.xlu0 %v7443_v29, %s12341_s22 }
 0x61f   : > { %7146 = vrot.lane.b32.xlu1 %v14976_v39, %s12344_s28 }
 0x620   : > { %v7326_v25 = vpop.permute.xlu0 %7325 }
 0x621   : > { %7405 = vst.msk [vmem:[#allocation5 + $0x88] sm:$0xff] %vm7387_vm6, %v7326_v25  ;;  %v7517_v20 = vpop.permute.xlu1 %7516 }
 0x622   : > { %7597 = vst.msk [vmem:[#allocation5 + $0x80] sm:$0xff] %vm7580_vm7, %v7517_v20  ;;  %6379 = vrot.lane.b32.xlu0 %v7443_v29, %s12335_s10 }
 0x623   : > { %6570 = vrot.lane.b32.xlu1 %v14976_v39, %s12337_s12 }
 0x624   : > { %v6173_v8 = vpop.permute.xlu0 %6172 }
 0x625   : > { %6249 = vst.msk [vmem:[#allocation5 + $0xa0] sm:$0xff] %vm6228_vm0, %v6173_v8  ;;  %v6750_v59 = vpop.permute.xlu1 %6749  ;;  %v7252_v8 = vld [vmem:[#allocation4 + $0x159] sm:$0xff] }
 0x626   : > { %6827 = vst.msk [vmem:[#allocation5 + $0x98] sm:$0xff] %vm6807_vm3, %v6750_v59  ;;  %7148 = vrot.lane.b32.xlu0 %v14978_v44, %s12344_s28 }
 0x627   : > { %7339 = vrot.lane.b32.xlu1 %v7251_v14, %s12343_s27 }
 0x628   : > { %v6941_v36 = vpop.permute.xlu0 %6940 }
 0x629   : > { %7019 = vst.msk [vmem:[#allocation5 + $0x90] sm:$0xff] %vm7000_vm4, %v6941_v36  ;;  %v7519_v22 = vpop.permute.xlu1 %7518  ;;  %v7629_v29 = vld [vmem:[#allocation5 + $0x80] sm:$0xff] }
 0x62a   : > { %7598 = vst.msk [vmem:[#allocation5 + $0x88] sm:$0xff] %vm7580_vm7, %v7519_v22  ;;  %6572 = vrot.lane.b32.xlu0 %v14978_v44, %s12337_s12  ;;  %v7711_v39 = vsel %vm7661_vm8, %v7629_v29, 0  ;;  %v7444_v36 = vld [vmem:[#allocation4 + $0x152] sm:$0xff] }
 0x62b   : > { %6763 = vrot.lane.b32.xlu1 %v7251_v14, %s12339_s16  ;;  %v15678_v46 = vand.u32 4294901760, %v7711_v39 }
 0x62c   : > { %v6175_v25 = vpop.permute.xlu0 %6174 }
 0x62d   : > { %17297 = vst [vmem:[#allocation65_spill] sm:$0xff] %v15678_v46  ;;  %6250 = vst.msk [vmem:[#allocation5 + $0xa8] sm:$0xff] %vm6228_vm0, %v6175_v25  ;;  %v6366_v20 = vpop.permute.xlu1 %6365  ;;  %v15682_v59 = vsub.f32 %v7711_v39, %v15678_v46 }
 0x62e   : > { %6442 = vst.msk [vmem:[#allocation5 + $0xa0] sm:$0xff] %vm6421_vm1, %v6366_v20  ;;  %7341 = vrot.lane.b32.xlu0 %v7252_v8, %s12343_s27 }
 0x62f   : > { %7532 = vrot.lane.b32.xlu1 %v7444_v36, %s12342_s23  ;;  %v16830_v44 = vand.u32 4294901760, %v15682_v59 }
 0x630   : > { %v6943_v22 = vpop.permute.xlu0 %6942 }
 0x631   : > { %7020 = vst.msk [vmem:[#allocation5 + $0x98] sm:$0xff] %vm7000_vm4, %v6943_v22  ;;  %v7135_v29 = vpop.permute.xlu1 %7134  ;;  %v7995_v25 = vsub.f32 %v15682_v59, %v16830_v44  ;;  %v7630_v45 = vld [vmem:[#allocation5 + $0x88] sm:$0xff] }
 0x632   : > { %7213 = vst.msk [vmem:[#allocation5 + $0x90] sm:$0xff] %vm7194_vm5, %v7135_v29  ;;  %6188 = vrot.lane.b32.xlu0 %v7251_v14, %s12332_s30  ;;  %v7714_v39 = vsel %vm7661_vm8, %v7630_v45, 0  ;;  %v7445_v14 = vld [vmem:[#allocation4 + $0x15a] sm:$0xff] }
 0x633   : > { %6765 = vrot.lane.b32.xlu1 %v7252_v8, %s12339_s16  ;;  %v7996_v20 = vand.u32 4294901760, %v7995_v25  ;;  %v15696_v16 = vand.u32 4294901760, %v7714_v39 }
 0x634   : > { %v6368_v34 = vpop.permute.xlu0 %6367 }
 0x635   : > { %17298 = vst [vmem:[#allocation63_spill] sm:$0xff] %v15696_v16  ;;  %6443 = vst.msk [vmem:[#allocation5 + $0xa8] sm:$0xff] %vm6421_vm1, %v6368_v34  ;;  %v6559_v22 = vpop.permute.xlu1 %6558  ;;  %11196 = vmatprep.mubr.f32.mxu1 %v7996_v20  ;;  %v15700_v52 = vsub.f32 %v7714_v39, %v15696_v16 }
 0x636   : > { %6635 = vst.msk [vmem:[#allocation5 + $0xa0] sm:$0xff] %vm6614_vm2, %v6559_v22  ;;  %6956 = vrot.lane.b32.xlu0 %v7444_v36, %s12341_s22 }
 0x637   : > { %17299 = vst [vmem:[#allocation71_spill] sm:$0xff] %v15700_v52  ;;  %7534 = vrot.lane.b32.xlu1 %v7445_v14, %s12342_s23  ;;  %v16829_v45 = vand.u32 4294901760, %v15700_v52 }
 0x638   : > { %v7137_v29 = vpop.permute.xlu0 %7136 }
 0x639   : > { %7214 = vst.msk [vmem:[#allocation5 + $0x98] sm:$0xff] %vm7194_vm5, %v7137_v29  ;;  %v7328_v25 = vpop.permute.xlu1 %7327  ;;  %v8005_v34 = vsub.f32 %v15700_v52, %v16829_v45  ;;  %v17303_v45 = vld [vmem:[#allocation8_spill] sm:$0xff] }
 0x63a   : > { %7406 = vst.msk [vmem:[#allocation5 + $0x90] sm:$0xff] %vm7387_vm6, %v7328_v25  ;;  %6190 = vrot.lane.b32.xlu0 %v7252_v8, %s12332_s30  ;;  %v17304_v44 = vand.u32 4294901760, %v17303_v45 }
 0x63b   : > { %6381 = vrot.lane.b32.xlu1 %v7444_v36, %s12335_s10  ;;  %v8006_v39 = vand.u32 4294901760, %v8005_v34  ;;  %v17300_v34 = vld [vmem:[#allocation27_spill] sm:$0xff] }
 0x63c   : > { %v6561_v20 = vpop.permute.xlu0 %6560 }
 0x63d   : > { %6636 = vst.msk [vmem:[#allocation5 + $0xa8] sm:$0xff] %vm6614_vm2, %v6561_v20  ;;  %v6752_v22 = vpop.permute.xlu1 %6751  ;;  %11197 = vmatmul.mubr.f32.gmra.mrb[48].mxu1 %v8006_v39  ;;  %v7253_v39 = vld [vmem:[#allocation4 + $0x169] sm:$0xff] }
 0x63e   : > { %6828 = vst.msk [vmem:[#allocation5 + $0xa0] sm:$0xff] %vm6807_vm3, %v6752_v22  ;;  %6958 = vrot.lane.b32.xlu0 %v7445_v14, %s12341_s22 }
 0x63f   : > { %7150 = vrot.lane.b32.xlu1 %v14987_v35, %s12344_s28 }
 0x640   : > { %v7330_v29 = vpop.permute.xlu0 %7329 }
 0x641   : > { %7407 = vst.msk [vmem:[#allocation5 + $0x98] sm:$0xff] %vm7387_vm6, %v7330_v29  ;;  %v7521_v25 = vpop.permute.xlu1 %7520  ;;  %v12314_v29 = vld [vmem:[%s16490_s5] sm:$0xff] }
 0x642   : > { %7599 = vst.msk [vmem:[#allocation5 + $0x90] sm:$0xff] %vm7580_vm7, %v7521_v25  ;;  %6383 = vrot.lane.b32.xlu0 %v7445_v14, %s12335_s10  ;;  %v17301_v25 = vld [vmem:[#allocation44_spill] sm:$0xff] }
 0x643   : > { %6574 = vrot.lane.b32.xlu1 %v14987_v35, %s12337_s12 }
 0x644   : > { %v6177_v8 = vpop.permute.xlu0 %6176 }
 0x645   : > { %6251 = vst.msk [vmem:[#allocation5 + $0xb0] sm:$0xff] %vm6228_vm0, %v6177_v8  ;;  %v6754_v36 = vpop.permute.xlu1 %6753  ;;  %v17302_v8 = vand.u32 4294901760, %v17301_v25  ;;  %v7254_v25 = vld [vmem:[#allocation4 + $0x171] sm:$0xff] }
 0x646   : > { %6829 = vst.msk [vmem:[#allocation5 + $0xa8] sm:$0xff] %vm6807_vm3, %v6754_v36  ;;  %7152 = vrot.lane.b32.xlu0 %v17300_v34, %s12344_s28 }
 0x647   : > { %7343 = vrot.lane.b32.xlu1 %v7253_v39, %s12343_s27  ;;  %v15738_v36 = vsub.f32 %v12314_v29, %v17302_v8 }
 0x648   : > { %v6945_v20 = vpop.permute.xlu0 %6944 }
 0x649   : > { %7021 = vst.msk [vmem:[#allocation5 + $0xa0] sm:$0xff] %vm7000_vm4, %v6945_v20  ;;  %v7523_v22 = vpop.permute.xlu1 %7522  ;;  %v7631_v14 = vld [vmem:[#allocation5 + $0x90] sm:$0xff]  ;;  %v12315_v20 = vld [vmem:[%s16490_s5 + $0x8] sm:$0xff]  ;;  %v16832_v21 = vand.u32 4294901760, %v15738_v36 }
 0x64a   : > { %7600 = vst.msk [vmem:[#allocation5 + $0x98] sm:$0xff] %vm7580_vm7, %v7523_v22  ;;  %6576 = vrot.lane.b32.xlu0 %v17300_v34, %s12337_s12  ;;  %v7717_v35 = vsel %vm7661_vm8, %v7631_v14, 0  ;;  %v15745_v22 = vsub.f32 %v12315_v20, %v17304_v44  ;;  %v7446_v44 = vld [vmem:[#allocation4 + $0x16a] sm:$0xff] }
 0x64b   : > { %6767 = vrot.lane.b32.xlu1 %v7253_v39, %s12339_s16  ;;  %v15748_v34 = vand.u32 4294901760, %v7717_v35  ;;  %v8156_v45 = vsub.f32 %v15738_v36, %v16832_v21 }
 0x64c   : > { %v6179_v14 = vpop.permute.xlu0 %6178  ;;  %v16831_v7 = vand.u32 4294901760, %v15745_v22 }
 0x64d   : > { %17305 = vst [vmem:[#allocation67_spill] sm:$0xff] %v15748_v34  ;;  %6252 = vst.msk [vmem:[#allocation5 + $0xb8] sm:$0xff] %vm6228_vm0, %v6179_v14  ;;  %v6370_v29 = vpop.permute.xlu1 %6369  ;;  %v15754_v8 = vsub.f32 %v7717_v35, %v15748_v34  ;;  %v8157_v35 = vand.u32 4294901760, %v8156_v45 }
 0x64e   : > { %6444 = vst.msk [vmem:[#allocation5 + $0xb0] sm:$0xff] %vm6421_vm1, %v6370_v29  ;;  %7345 = vrot.lane.b32.xlu0 %v7254_v25, %s12343_s27  ;;  %v8163_v20 = vsub.f32 %v15745_v22, %v16831_v7 }
 0x64f   : > { %17306 = vst [vmem:[#allocation80_spill] sm:$0xff] %v15754_v8  ;;  %7536 = vrot.lane.b32.xlu1 %v7446_v44, %s12342_s23  ;;  %v16833_v14 = vand.u32 4294901760, %v15754_v8 }
 0x650   : > { %v6947_v13 = vpop.permute.xlu0 %6946  ;;  %v8164_v53 = vand.u32 4294901760, %v8163_v20 }
 0x651   : > { %7022 = vst.msk [vmem:[#allocation5 + $0xa8] sm:$0xff] %vm7000_vm4, %v6947_v13  ;;  %v7139_v29 = vpop.permute.xlu1 %7138  ;;  %v8015_v48 = vsub.f32 %v15754_v8, %v16833_v14  ;;  %v7632_v37 = vld [vmem:[#allocation5 + $0x98] sm:$0xff] }
 0x652   : > { %7215 = vst.msk [vmem:[#allocation5 + $0xa0] sm:$0xff] %vm7194_vm5, %v7139_v29  ;;  %6192 = vrot.lane.b32.xlu0 %v7253_v39, %s12332_s30  ;;  %v7720_v7 = vsel %vm7661_vm8, %v7632_v37, 0  ;;  %v11614_v21 = vpack.c.bf16 %v8164_v53, %v8157_v35  ;;  %v7447_v37 = vld [vmem:[#allocation4 + $0x172] sm:$0xff] }
 0x653   : > { %6769 = vrot.lane.b32.xlu1 %v7254_v25, %s12339_s16  ;;  %v8016_v15 = vand.u32 4294901760, %v8015_v48  ;;  %v15774_v45 = vand.u32 4294901760, %v7720_v7 }
 0x654   : > { %v6372_v20 = vpop.permute.xlu0 %6371  ;;  %11615 = vmatprep.subr.bf16.mxu1 %v11614_v21 }
 0x655   : > { %17307 = vst [vmem:[#allocation82_spill] sm:$0xff] %v15774_v45  ;;  %6445 = vst.msk [vmem:[#allocation5 + $0xb8] sm:$0xff] %vm6421_vm1, %v6372_v20  ;;  %v6563_v13 = vpop.permute.xlu1 %6562  ;;  %11199 = vmatprep.mubr.f32.mxu1 %v8016_v15  ;;  %v15778_v14 = vsub.f32 %v7720_v7, %v15774_v45  ;;  %11617 = vmatpush3.bf16.msra.mxu1 %v11614_v21  ;;  %v12316_v7 = vld [vmem:[%s16490_s5 + $0x10] sm:$0xff]  ;;  %v17309_v21 = vld [vmem:[#allocation9_spill] sm:$0xff] }
 0x656   : > { %6637 = vst.msk [vmem:[#allocation5 + $0xb0] sm:$0xff] %vm6614_vm2, %v6563_v13  ;;  %6960 = vrot.lane.b32.xlu0 %v7446_v44, %s12341_s22  ;;  %v17310_v35 = vand.u32 4294901760, %v17309_v21  ;;  %v12317_v20 = vld [vmem:[%s16490_s5 + $0x18] sm:$0xff]  ;;  %v17312_v13 = vld [vmem:[#allocation6_spill] sm:$0xff] }
 0x657   : > { %17308 = vst [vmem:[#allocation81_spill] sm:$0xff] %v15778_v14  ;;  %7538 = vrot.lane.b32.xlu1 %v7447_v37, %s12342_s23  ;;  %v16834_v48 = vand.u32 4294901760, %v15778_v14  ;;  %v17313_v54 = vand.u32 4294901760, %v17312_v13 }
 0x658   : > { %v7141_v53 = vpop.permute.xlu0 %7140  ;;  %v15793_v29 = vsub.f32 %v12316_v7, %v17310_v35 }
 0x659   : > { %7216 = vst.msk [vmem:[#allocation5 + $0xa8] sm:$0xff] %vm7194_vm5, %v7141_v53  ;;  %v7332_v39 = vpop.permute.xlu1 %7331  ;;  %v8025_v15 = vsub.f32 %v15778_v14, %v16834_v48  ;;  %v15800_v53 = vsub.f32 %v12317_v20, %v17313_v54 }
 0x65a   : > { %17311 = vst [vmem:[#allocation14_spill] sm:$0xff] %v15793_v29  ;;  %7408 = vst.msk [vmem:[#allocation5 + $0xa0] sm:$0xff] %vm7387_vm6, %v7332_v39  ;;  %6194 = vrot.lane.b32.xlu0 %v7254_v25, %s12332_s30  ;;  %v16836_v57 = vand.u32 4294901760, %v15793_v29 }
 0x65b   : > { %17314 = vst [vmem:[#allocation22_spill] sm:$0xff] %v15800_v53  ;;  %6385 = vrot.lane.b32.xlu1 %v7446_v44, %s12335_s10  ;;  %v8026_v48 = vand.u32 4294901760, %v8025_v15  ;;  %v16835_v7 = vand.u32 4294901760, %v15800_v53  ;;  %v7062_v44 = vld [vmem:[#allocation4 + $0x180] sm:$0xff] }
 0x65c   : > { %v6565_v21 = vpop.permute.xlu0 %6564  ;;  %v8170_v54 = vsub.f32 %v15793_v29, %v16836_v57 }
 0x65d   : > { %6638 = vst.msk [vmem:[#allocation5 + $0xb8] sm:$0xff] %vm6614_vm2, %v6565_v21  ;;  %v6756_v35 = vpop.permute.xlu1 %6755  ;;  %11200 = vmatmul.mubr.f32.gmra.mrb[50].mxu1 %v8026_v48  ;;  %v8177_v25 = vsub.f32 %v15800_v53, %v16835_v7  ;;  %v7063_v7 = vld [vmem:[#allocation4 + $0x188] sm:$0xff] }
 0x65e   : > { %6830 = vst.msk [vmem:[#allocation5 + $0xb0] sm:$0xff] %vm6807_vm3, %v6756_v35  ;;  %6962 = vrot.lane.b32.xlu0 %v7447_v37, %s12341_s22  ;;  %v8171_v39 = vand.u32 4294901760, %v8170_v54  ;;  %v7255_v54 = vld [vmem:[#allocation4 + $0x181] sm:$0xff] }
 0x65f   : > { %7154 = vrot.lane.b32.xlu1 %v7062_v44, %s12344_s28  ;;  %v8178_v15 = vand.u32 4294901760, %v8177_v25  ;;  %v12318_v25 = vld [vmem:[%s16490_s5 + $0x20] sm:$0xff] }
 0x660   : > { %v7334_v20 = vpop.permute.xlu0 %7333 }
 0x661   : > { %7409 = vst.msk [vmem:[#allocation5 + $0xa8] sm:$0xff] %vm7387_vm6, %v7334_v20  ;;  %v7525_v48 = vpop.permute.xlu1 %7524  ;;  %v11618_v13 = vpack.c.bf16 %v8178_v15, %v8171_v39  ;;  %v17315_v39 = vld [vmem:[#allocation11_spill] sm:$0xff]  ;;  %v17318_v20 = vld [vmem:[#allocation13_spill] sm:$0xff] }
 0x662   : > { %7601 = vst.msk [vmem:[#allocation5 + $0xa0] sm:$0xff] %vm7580_vm7, %v7525_v48  ;;  %6387 = vrot.lane.b32.xlu0 %v7447_v37, %s12335_s10  ;;  %v17316_v37 = vand.u32 4294901760, %v17315_v39  ;;  %v17319_v48 = vand.u32 4294901760, %v17318_v20 }
 0x663   : > { %6578 = vrot.lane.b32.xlu1 %v7062_v44, %s12337_s12  ;;  %11619 = vmatprep.subr.bf16.mxu1 %v11618_v13  ;;  %v12319_v44 = vld [vmem:[%s16490_s5 + $0x28] sm:$0xff] }
 0x664   : > { %v6181_v21 = vpop.permute.xlu0 %6180  ;;  %11621 = vmatpush3.bf16.msra.mxu1 %v11618_v13  ;;  %v15829_v15 = vsub.f32 %v12318_v25, %v17316_v37  ;;  %v15836_v13 = vsub.f32 %v12319_v44, %v17319_v48 }
 0x665   : > { %6253 = vst.msk [vmem:[#allocation5 + $0xc0] sm:$0xff] %vm6228_vm0, %v6181_v21  ;;  %v6758_v35 = vpop.permute.xlu1 %6757 }
 0x666   : > { %6831 = vst.msk [vmem:[#allocation5 + $0xb8] sm:$0xff] %vm6807_vm3, %v6758_v35  ;;  %7156 = vrot.lane.b32.xlu0 %v7063_v7, %s12344_s28  ;;  %17317 = vst [vmem:[#allocation42_spill] sm:$0xff] %v15829_v15  ;;  %v16837_v35 = vand.u32 4294901760, %v15829_v15  ;;  %v16838_v57 = vand.u32 4294901760, %v15836_v13 }
 0x667   : > { %17320 = vst [vmem:[#allocation16_spill] sm:$0xff] %v15836_v13  ;;  %7347 = vrot.lane.b32.xlu1 %v7255_v54, %s12343_s27 }
 0x668   : > { %v6949_v21 = vpop.permute.xlu0 %6948  ;;  %v8184_v44 = vsub.f32 %v15829_v15, %v16837_v35  ;;  %v8191_v20 = vsub.f32 %v15836_v13, %v16838_v57  ;;  %v7448_v35 = vld [vmem:[#allocation4 + $0x182] sm:$0xff] }
 0x669   : > { %7023 = vst.msk [vmem:[#allocation5 + $0xb0] sm:$0xff] %vm7000_vm4, %v6949_v21  ;;  %v7527_v39 = vpop.permute.xlu1 %7526  ;;  %v7633_v25 = vld [vmem:[#allocation5 + $0xa0] sm:$0xff] }
 0x66a   : > { %7602 = vst.msk [vmem:[#allocation5 + $0xa8] sm:$0xff] %vm7580_vm7, %v7527_v39  ;;  %6580 = vrot.lane.b32.xlu0 %v7063_v7, %s12337_s12  ;;  %v7723_v37 = vsel %vm7661_vm8, %v7633_v25, 0  ;;  %v8185_v18 = vand.u32 4294901760, %v8184_v44  ;;  %v8192_v56 = vand.u32 4294901760, %v8191_v20  ;;  %v7256_v39 = vld [vmem:[#allocation4 + $0x189] sm:$0xff] }
 0x66b   : > { %6771 = vrot.lane.b32.xlu1 %v7255_v54, %s12339_s16  ;;  %v15852_v48 = vand.u32 4294901760, %v7723_v37 }
 0x66c   : > { %v6183_v21 = vpop.permute.xlu0 %6182  ;;  %v11622_v57 = vpack.c.bf16 %v8192_v56, %v8185_v18  ;;  %v12320_v18 = vld [vmem:[%s16490_s5 + $0x30] sm:$0xff] }
 0x66d   : > { %17321 = vst [vmem:[#allocation26_spill] sm:$0xff] %v15852_v48  ;;  %6254 = vst.msk [vmem:[#allocation5 + $0xc8] sm:$0xff] %vm6228_vm0, %v6183_v21  ;;  %v6374_v7 = vpop.permute.xlu1 %6373  ;;  %v15856_v25 = vsub.f32 %v7723_v37, %v15852_v48  ;;  %v17323_v21 = vld [vmem:[#allocation19_spill] sm:$0xff] }
 0x66e   : > { %6446 = vst.msk [vmem:[#allocation5 + $0xc0] sm:$0xff] %vm6421_vm1, %v6374_v7  ;;  %7349 = vrot.lane.b32.xlu0 %v7256_v39, %s12343_s27  ;;  %11623 = vmatprep.subr.bf16.mxu1 %v11622_v57  ;;  %v17324_v7 = vand.u32 4294901760, %v17323_v21 }
 0x66f   : > { %17322 = vst [vmem:[#allocation24_spill] sm:$0xff] %v15856_v25  ;;  %7540 = vrot.lane.b32.xlu1 %v7448_v35, %s12342_s23  ;;  %v16839_v54 = vand.u32 4294901760, %v15856_v25  ;;  %11625 = vmatpush3.bf16.msra.mxu1 %v11622_v57  ;;  %v17327_v57 = vand.u32 4294901760, %v17326_v10 }
 0x670   : > { %v6951_v23 = vpop.permute.xlu0 %6950 }
 0x671   : > { %7024 = vst.msk [vmem:[#allocation5 + $0xb8] sm:$0xff] %vm7000_vm4, %v6951_v23  ;;  %v7143_v44 = vpop.permute.xlu1 %7142  ;;  %v8035_v37 = vsub.f32 %v15856_v25, %v16839_v54  ;;  %v7634_v20 = vld [vmem:[#allocation5 + $0xa8] sm:$0xff]  ;;  %v15874_v23 = vsub.f32 %v12320_v18, %v17324_v7  ;;  %v12321_v54 = vld [vmem:[%s16490_s5 + $0x38] sm:$0xff] }
 0x672   : > { %7217 = vst.msk [vmem:[#allocation5 + $0xb0] sm:$0xff] %vm7194_vm5, %v7143_v44  ;;  %6773 = vrot.lane.b32.xlu0 %v7256_v39, %s12339_s16  ;;  %v7726_v56 = vsel %vm7661_vm8, %v7634_v20, 0  ;;  %v15881_v24 = vsub.f32 %v12321_v54, %v17327_v57  ;;  %v7449_v7 = vld [vmem:[#allocation4 + $0x18a] sm:$0xff]  ;;  %v7064_v54 = vld [vmem:[#allocation4 + $0x198] sm:$0xff] }
 0x673   : > { %17325 = vst [vmem:[#allocation32_spill] sm:$0xff] %v15874_v23  ;;  %6964 = vrot.lane.b32.xlu1 %v7448_v35, %s12341_s22  ;;  %v8036_v39 = vand.u32 4294901760, %v8035_v37  ;;  %v15884_v44 = vand.u32 4294901760, %v7726_v56  ;;  %v16840_v17 = vand.u32 4294901760, %v15874_v23 }
 0x674   : > { %17328 = vst [vmem:[#allocation48_spill] sm:$0xff] %v15881_v24  ;;  %v6376_v20 = vpop.permute.xlu0 %6375  ;;  %v16841_v21 = vand.u32 4294901760, %v15881_v24 }
 0x675   : > { %17329 = vst [vmem:[#allocation47_spill] sm:$0xff] %v15884_v44  ;;  %6447 = vst.msk [vmem:[#allocation5 + $0xc8] sm:$0xff] %vm6421_vm1, %v6376_v20  ;;  %v6567_v18 = vpop.permute.xlu1 %6566  ;;  %11202 = vmatprep.mubr.f32.mxu1 %v8036_v39  ;;  %v15890_v55 = vsub.f32 %v7726_v56, %v15884_v44  ;;  %v8198_v10 = vsub.f32 %v15874_v23, %v16840_v17  ;;  %v7065_v56 = vld [vmem:[#allocation4 + $0x1a0] sm:$0xff] }
 0x676   : > { %6639 = vst.msk [vmem:[#allocation5 + $0xc0] sm:$0xff] %vm6614_vm2, %v6567_v18  ;;  %7542 = vrot.lane.b32.xlu0 %v7449_v7, %s12342_s23  ;;  %v8205_v35 = vsub.f32 %v15881_v24, %v16841_v21 }
 0x677   : > { %17330 = vst [vmem:[#allocation74_spill] sm:$0xff] %v15890_v55  ;;  %6966 = vrot.lane.b32.xlu1 %v7449_v7, %s12341_s22  ;;  %v16842_v37 = vand.u32 4294901760, %v15890_v55  ;;  %v8199_v39 = vand.u32 4294901760, %v8198_v10  ;;  %v12322_v10 = vld [vmem:[%s16490_s5 + $0x40] sm:$0xff] }
 0x678   : > { %v7145_v57 = vpop.permute.xlu0 %7144  ;;  %v8206_v20 = vand.u32 4294901760, %v8205_v35  ;;  %v17331_v35 = vld [vmem:[#allocation25_spill] sm:$0xff] }
 0x679   : > { %7218 = vst.msk [vmem:[#allocation5 + $0xb8] sm:$0xff] %vm7194_vm5, %v7145_v57  ;;  %v7336_v18 = vpop.permute.xlu1 %7335  ;;  %v8045_v17 = vsub.f32 %v15890_v55, %v16842_v37  ;;  %v15913_v57 = vsub.f32 %v12322_v10, %v17331_v35 }
 0x67a   : > { %7410 = vst.msk [vmem:[#allocation5 + $0xb0] sm:$0xff] %vm7387_vm6, %v7336_v18  ;;  %7158 = vrot.lane.b32.xlu0 %v7064_v54, %s12344_s28  ;;  %v11626_v21 = vpack.c.bf16 %v8206_v20, %v8199_v39  ;;  %v7450_v54 = vld [vmem:[#allocation4 + $0x19a] sm:$0xff]  ;;  %v7451_v39 = vld [vmem:[#allocation4 + $0x1a2] sm:$0xff] }
 0x67b   : > { %7160 = vrot.lane.b32.xlu1 %v7065_v56, %s12344_s28  ;;  %v8046_v7 = vand.u32 4294901760, %v8045_v17  ;;  %v15919_v17 = vand.u32 4294901760, %v15913_v57 }
 0x67c   : > { %v6569_v33 = vpop.permute.xlu0 %6568  ;;  %11627 = vmatprep.subr.bf16.mxu1 %v11626_v21 }
 0x67d   : > { %6640 = vst.msk [vmem:[#allocation5 + $0xc8] sm:$0xff] %vm6614_vm2, %v6569_v33  ;;  %v6760_v18 = vpop.permute.xlu1 %6759  ;;  %11203 = vmatmul.mubr.f32.gmra.mrb[52].mxu1 %v8046_v7  ;;  %17332 = vst [vmem:[#allocation53_spill] sm:$0xff] %v15919_v17  ;;  %v8212_v20 = vsub.f32 %v15913_v57, %v15919_v17 }
 0x67e   : > { %6832 = vst.msk [vmem:[#allocation5 + $0xc0] sm:$0xff] %vm6807_vm3, %v6760_v18  ;;  %7351 = vrot.lane.b32.xlu0 %v7257_v28, %s12343_s27  ;;  %11629 = vmatpush3.bf16.msra.mxu1 %v11626_v21 }
 0x67f   : > { %7353 = vrot.lane.b32.xlu1 %v7258_v61, %s12343_s27  ;;  %v8213_v28 = vand.u32 4294901760, %v8212_v20 }
 0x680   : > { %v7338_v56 = vpop.permute.xlu0 %7337 }
 0x681   : > { %7411 = vst.msk [vmem:[#allocation5 + $0xb8] sm:$0xff] %vm7387_vm6, %v7338_v56  ;;  %v7529_v33 = vpop.permute.xlu1 %7528  ;;  %11236 = vmatprep.subr.mxu1 %v8213_v28  ;;  %v15935_v56 = vpack.c.bf16 %v15745_v22, %v15738_v36 }
 0x682   : > { %7603 = vst.msk [vmem:[#allocation5 + $0xb0] sm:$0xff] %vm7580_vm7, %v7529_v33  ;;  %7544 = vrot.lane.b32.xlu0 %v7450_v54, %s12342_s23  ;;  %11237 = vmatpush3.msra.mxu1 %v8213_v28 }
 0x683   : > { %7546 = vrot.lane.b32.xlu1 %v7451_v39, %s12342_s23  ;;  %11631 = vmatprep.subr.bf16.mxu1 %v15935_v56 }
 0x684   : > { %v6185_v21 = vpop.permute.xlu0 %6184 }
 0x685   : > { %6255 = vst.msk [vmem:[#allocation5 + $0xd0] sm:$0xff] %vm6228_vm0, %v6185_v21  ;;  %v6762_v61 = vpop.permute.xlu1 %6761 }
 0x686   : > { %6833 = vst.msk [vmem:[#allocation5 + $0xc8] sm:$0xff] %vm6807_vm3, %v6762_v61 }
 0x688   : > { %v6953_v7 = vpop.permute.xlu0 %6952 }
 0x689   : > { %7025 = vst.msk [vmem:[#allocation5 + $0xc0] sm:$0xff] %vm7000_vm4, %v6953_v7  ;;  %v7531_v10 = vpop.permute.xlu1 %7530  ;;  %v7635_v18 = vld [vmem:[#allocation5 + $0xb0] sm:$0xff] }
 0x68a   : > { %7604 = vst.msk [vmem:[#allocation5 + $0xb8] sm:$0xff] %vm7580_vm7, %v7531_v10  ;;  %v7729_v54 = vsel %vm7661_vm8, %v7635_v18, 0 }
 0x68b   : > { %v15937_v39 = vand.u32 4294901760, %v7729_v54 }
 0x68c   : > { %v6187_v20 = vpop.permute.xlu0 %6186 }
 0x68d   : > { %17333 = vst [vmem:[#allocation76_spill] sm:$0xff] %v15937_v39  ;;  %6256 = vst.msk [vmem:[#allocation5 + $0xd8] sm:$0xff] %vm6228_vm0, %v6187_v20  ;;  %v6378_v33 = vpop.permute.xlu1 %6377  ;;  %v15942_v28 = vsub.f32 %v7729_v54, %v15937_v39 }
 0x68e   : > { %6448 = vst.msk [vmem:[#allocation5 + $0xd0] sm:$0xff] %vm6421_vm1, %v6378_v33 }
 0x68f   : > { %17334 = vst [vmem:[#allocation75_spill] sm:$0xff] %v15942_v28  ;;  %v16845_v21 = vand.u32 4294901760, %v15942_v28 }
 0x690   : > { %v6955_v61 = vpop.permute.xlu0 %6954 }
 0x691   : > { %7026 = vst.msk [vmem:[#allocation5 + $0xc8] sm:$0xff] %vm7000_vm4, %v6955_v61  ;;  %v7147_v7 = vpop.permute.xlu1 %7146  ;;  %v8055_v10 = vsub.f32 %v15942_v28, %v16845_v21  ;;  %v7636_v18 = vld [vmem:[#allocation5 + $0xb8] sm:$0xff] }
 0x692   : > { %7219 = vst.msk [vmem:[#allocation5 + $0xc0] sm:$0xff] %vm7194_vm5, %v7147_v7  ;;  %v7732_v20 = vsel %vm7661_vm8, %v7636_v18, 0 }
 0x693   : > { %v8056_v37 = vand.u32 4294901760, %v8055_v10  ;;  %v15952_v54 = vand.u32 4294901760, %v7732_v20 }
 0x694   : > { %v6380_v17 = vpop.permute.xlu0 %6379 }
 0x695   : > { %17335 = vst [vmem:[#allocation78_spill] sm:$0xff] %v15952_v54  ;;  %6449 = vst.msk [vmem:[#allocation5 + $0xd8] sm:$0xff] %vm6421_vm1, %v6380_v17  ;;  %v6571_v33 = vpop.permute.xlu1 %6570  ;;  %11205 = vmatprep.mubr.f32.mxu1 %v8056_v37  ;;  %v15956_v61 = vsub.f32 %v7732_v20, %v15952_v54  ;;  %v15966_v17 = vpack.c.bf16 %v15800_v53, %v15793_v29 }
 0x696   : > { %6641 = vst.msk [vmem:[#allocation5 + $0xd0] sm:$0xff] %vm6614_vm2, %v6571_v33 }
 0x697   : > { %17336 = vst [vmem:[#allocation77_spill] sm:$0xff] %v15956_v61  ;;  %v16848_v21 = vand.u32 4294901760, %v15956_v61 }
 0x698   : > { %v7149_v28 = vpop.permute.xlu0 %7148 }
 0x699   : > { %7220 = vst.msk [vmem:[#allocation5 + $0xc8] sm:$0xff] %vm7194_vm5, %v7149_v28  ;;  %v7340_v7 = vpop.permute.xlu1 %7339  ;;  %v8065_v10 = vsub.f32 %v15956_v61, %v16848_v21 }
 0x69a   : > { %7412 = vst.msk [vmem:[#allocation5 + $0xc0] sm:$0xff] %vm7387_vm6, %v7340_v7  ;;  %v15977_v7 = vpack.c.bf16 %v15836_v13, %v15829_v15 }
 0x69b   : > { %v8066_v37 = vand.u32 4294901760, %v8065_v10 }
 0x69c   : > { %v6573_v18 = vpop.permute.xlu0 %6572 }
 0x69d   : > { %6642 = vst.msk [vmem:[#allocation5 + $0xd8] sm:$0xff] %vm6614_vm2, %v6573_v18  ;;  %v6764_v20 = vpop.permute.xlu1 %6763  ;;  %11206 = vmatmul.mubr.f32.gmra.mrb[54].mxu1 %v8066_v37 }
 0x69e   : > { %6834 = vst.msk [vmem:[#allocation5 + $0xd0] sm:$0xff] %vm6807_vm3, %v6764_v20 }
 0x6a0   : > { %v7342_v28 = vpop.permute.xlu0 %7341 }
 0x6a1   : > { %7413 = vst.msk [vmem:[#allocation5 + $0xc8] sm:$0xff] %vm7387_vm6, %v7342_v28  ;;  %v7533_v33 = vpop.permute.xlu1 %7532 }
 0x6a2   : > { %7605 = vst.msk [vmem:[#allocation5 + $0xc0] sm:$0xff] %vm7580_vm7, %v7533_v33 }
 0x6a4   : > { %v6189_v21 = vpop.permute.xlu0 %6188 }
 0x6a5   : > { %6257 = vst.msk [vmem:[#allocation5 + $0xe0] sm:$0xff] %vm6228_vm0, %v6189_v21  ;;  %v6766_v53 = vpop.permute.xlu1 %6765 }
 0x6a6   : > { %6835 = vst.msk [vmem:[#allocation5 + $0xd8] sm:$0xff] %vm6807_vm3, %v6766_v53 }
 0x6a8   : > { %v6957_v10 = vpop.permute.xlu0 %6956 }
 0x6a9   : > { %7027 = vst.msk [vmem:[#allocation5 + $0xd0] sm:$0xff] %vm7000_vm4, %v6957_v10  ;;  %v7535_v37 = vpop.permute.xlu1 %7534  ;;  %v7637_v18 = vld [vmem:[#allocation5 + $0xc0] sm:$0xff] }
 0x6aa   : > { %7606 = vst.msk [vmem:[#allocation5 + $0xc8] sm:$0xff] %vm7580_vm7, %v7535_v37  ;;  %v7735_v20 = vsel %vm7661_vm8, %v7637_v18, 0 }
 0x6ab   : > { %v15982_v28 = vand.u32 4294901760, %v7735_v20 }
 0x6ac   : > { %v6191_v33 = vpop.permute.xlu0 %6190 }
 0x6ad   : > { %17337 = vst [vmem:[#allocation79_spill] sm:$0xff] %v15982_v28  ;;  %6258 = vst.msk [vmem:[#allocation5 + $0xe8] sm:$0xff] %vm6228_vm0, %v6191_v33  ;;  %v6382_v21 = vpop.permute.xlu1 %6381  ;;  %v15986_v53 = vsub.f32 %v7735_v20, %v15982_v28  ;;  %v15998_v20 = vpack.c.bf16 %v15881_v24, %v15874_v23 }
 0x6ae   : > { %6450 = vst.msk [vmem:[#allocation5 + $0xe0] sm:$0xff] %vm6421_vm1, %v6382_v21 }
 0x6af   : > { %17338 = vst [vmem:[#allocation7_spill] sm:$0xff] %v15986_v53  ;;  %v16857_v13 = vand.u32 4294901760, %v15986_v53 }
 0x6b0   : > { %v6959_v10 = vpop.permute.xlu0 %6958 }
 0x6b1   : > { %7028 = vst.msk [vmem:[#allocation5 + $0xd8] sm:$0xff] %vm7000_vm4, %v6959_v10  ;;  %v7151_v15 = vpop.permute.xlu1 %7150  ;;  %v8075_v37 = vsub.f32 %v15986_v53, %v16857_v13  ;;  %v7638_v18 = vld [vmem:[#allocation5 + $0xc8] sm:$0xff] }
 0x6b2   : > { %7221 = vst.msk [vmem:[#allocation5 + $0xd0] sm:$0xff] %vm7194_vm5, %v7151_v15  ;;  %v7738_v33 = vsel %vm7661_vm8, %v7638_v18, 0 }
 0x6b3   : > { %v8076_v21 = vand.u32 4294901760, %v8075_v37  ;;  %v16000_v29 = vand.u32 4294901760, %v7738_v33 }
 0x6b4   : > { %v6384_v61 = vpop.permute.xlu0 %6383 }
 0x6b5   : > { %17339 = vst [vmem:[#allocation15_spill] sm:$0xff] %v16000_v29  ;;  %6451 = vst.msk [vmem:[#allocation5 + $0xe8] sm:$0xff] %vm6421_vm1, %v6384_v61  ;;  %v6575_v10 = vpop.permute.xlu1 %6574  ;;  %11208 = vmatprep.mubr.f32.mxu1 %v8076_v21  ;;  %v16004_v55 = vsub.f32 %v7738_v33, %v16000_v29 }
 0x6b6   : > { %6643 = vst.msk [vmem:[#allocation5 + $0xe0] sm:$0xff] %vm6614_vm2, %v6575_v10 }
 0x6b7   : > { %17340 = vst [vmem:[#allocation27_spill] sm:$0xff] %v16004_v55  ;;  %v16859_v15 = vand.u32 4294901760, %v16004_v55 }
 0x6b8   : > { %v7153_v18 = vpop.permute.xlu0 %7152 }
 0x6b9   : > { %7222 = vst.msk [vmem:[#allocation5 + $0xd8] sm:$0xff] %vm7194_vm5, %v7153_v18  ;;  %v7344_v13 = vpop.permute.xlu1 %7343  ;;  %v8085_v37 = vsub.f32 %v16004_v55, %v16859_v15 }
 0x6ba   : > { %7414 = vst.msk [vmem:[#allocation5 + $0xd0] sm:$0xff] %vm7387_vm6, %v7344_v13 }
 0x6bb   : > { %v8086_v61 = vand.u32 4294901760, %v8085_v37 }
 0x6bc   : > { %v6577_v24 = vpop.permute.xlu0 %6576 }
 0x6bd   : > { %6644 = vst.msk [vmem:[#allocation5 + $0xe8] sm:$0xff] %vm6614_vm2, %v6577_v24  ;;  %v6768_v33 = vpop.permute.xlu1 %6767  ;;  %11209 = vmatmul.mubr.f32.gmra.mrb[56].mxu1 %v8086_v61 }
 0x6be   : > { %6836 = vst.msk [vmem:[#allocation5 + $0xe0] sm:$0xff] %vm6807_vm3, %v6768_v33 }
 0x6c0   : > { %v7346_v21 = vpop.permute.xlu0 %7345 }
 0x6c1   : > { %7415 = vst.msk [vmem:[#allocation5 + $0xd8] sm:$0xff] %vm7387_vm6, %v7346_v21  ;;  %v7537_v10 = vpop.permute.xlu1 %7536 }
 0x6c2   : > { %7607 = vst.msk [vmem:[#allocation5 + $0xd0] sm:$0xff] %vm7580_vm7, %v7537_v10 }
 0x6c4   : > { %v6193_v18 = vpop.permute.xlu0 %6192 }
 0x6c5   : > { %6259 = vst.msk [vmem:[#allocation5 + $0xf0] sm:$0xff] %vm6228_vm0, %v6193_v18  ;;  %v6770_v15 = vpop.permute.xlu1 %6769 }
 0x6c6   : > { %6837 = vst.msk [vmem:[#allocation5 + $0xe8] sm:$0xff] %vm6807_vm3, %v6770_v15 }
 0x6c8   : > { %v6961_v13 = vpop.permute.xlu0 %6960 }
 0x6c9   : > { %7029 = vst.msk [vmem:[#allocation5 + $0xe0] sm:$0xff] %vm7000_vm4, %v6961_v13  ;;  %v7539_v24 = vpop.permute.xlu1 %7538  ;;  %v7639_v37 = vld [vmem:[#allocation5 + $0xd0] sm:$0xff] }
 0x6ca   : > { %7608 = vst.msk [vmem:[#allocation5 + $0xd8] sm:$0xff] %vm7580_vm7, %v7539_v24  ;;  %v7741_v61 = vsel %vm7661_vm8, %v7639_v37, 0 }
 0x6cb   : > { %v16022_v33 = vand.u32 4294901760, %v7741_v61 }
 0x6cc   : > { %v6195_v21 = vpop.permute.xlu0 %6194 }
 0x6cd   : > { %17341 = vst [vmem:[#allocation44_spill] sm:$0xff] %v16022_v33  ;;  %6260 = vst.msk [vmem:[#allocation5 + $0xf8] sm:$0xff] %vm6228_vm0, %v6195_v21  ;;  %v6386_v10 = vpop.permute.xlu1 %6385  ;;  %v16026_v18 = vsub.f32 %v7741_v61, %v16022_v33 }
 0x6ce   : > { %6452 = vst.msk [vmem:[#allocation5 + $0xf0] sm:$0xff] %vm6421_vm1, %v6386_v10 }
 0x6cf   : > { %17342 = vst [vmem:[#allocation8_spill] sm:$0xff] %v16026_v18  ;;  %v16865_v15 = vand.u32 4294901760, %v16026_v18 }
 0x6d0   : > { %v6963_v13 = vpop.permute.xlu0 %6962 }
 0x6d1   : > { %7030 = vst.msk [vmem:[#allocation5 + $0xe8] sm:$0xff] %vm7000_vm4, %v6963_v13  ;;  %v7155_v23 = vpop.permute.xlu1 %7154  ;;  %v8095_v24 = vsub.f32 %v16026_v18, %v16865_v15  ;;  %v7640_v37 = vld [vmem:[#allocation5 + $0xd8] sm:$0xff] }
 0x6d2   : > { %7223 = vst.msk [vmem:[#allocation5 + $0xe0] sm:$0xff] %vm7194_vm5, %v7155_v23  ;;  %v7744_v21 = vsel %vm7661_vm8, %v7640_v37, 0 }
 0x6d3   : > { %v8096_v55 = vand.u32 4294901760, %v8095_v24  ;;  %v16036_v61 = vand.u32 4294901760, %v7744_v21 }
 0x6d4   : > { %v6388_v53 = vpop.permute.xlu0 %6387 }
 0x6d5   : > { %17343 = vst [vmem:[#allocation9_spill] sm:$0xff] %v16036_v61  ;;  %6453 = vst.msk [vmem:[#allocation5 + $0xf8] sm:$0xff] %vm6421_vm1, %v6388_v53  ;;  %v6579_v10 = vpop.permute.xlu1 %6578  ;;  %11211 = vmatprep.mubr.f32.mxu1 %v8096_v55  ;;  %v16040_v13 = vsub.f32 %v7744_v21, %v16036_v61 }
 0x6d6   : > { %6645 = vst.msk [vmem:[#allocation5 + $0xf0] sm:$0xff] %vm6614_vm2, %v6579_v10 }
 0x6d7   : > { %17344 = vst [vmem:[#allocation6_spill] sm:$0xff] %v16040_v13  ;;  %v16868_v15 = vand.u32 4294901760, %v16040_v13 }
 0x6d8   : > { %v7157_v18 = vpop.permute.xlu0 %7156 }
 0x6d9   : > { %7224 = vst.msk [vmem:[#allocation5 + $0xe8] sm:$0xff] %vm7194_vm5, %v7157_v18  ;;  %v7348_v23 = vpop.permute.xlu1 %7347  ;;  %v8105_v24 = vsub.f32 %v16040_v13, %v16868_v15 }
 0x6da   : > { %7416 = vst.msk [vmem:[#allocation5 + $0xe0] sm:$0xff] %vm7387_vm6, %v7348_v23 }
 0x6db   : > { %v8106_v53 = vand.u32 4294901760, %v8105_v24 }
 0x6dc   : > { %v6581_v37 = vpop.permute.xlu0 %6580 }
 0x6dd   : > { %6646 = vst.msk [vmem:[#allocation5 + $0xf8] sm:$0xff] %vm6614_vm2, %v6581_v37  ;;  %v6772_v55 = vpop.permute.xlu1 %6771  ;;  %11212 = vmatmul.mubr.f32.gmra.mrb[58].mxu1 %v8106_v53 }
 0x6de   : > { %6838 = vst.msk [vmem:[#allocation5 + $0xf0] sm:$0xff] %vm6807_vm3, %v6772_v55 }
 0x6e0   : > { %v7350_v21 = vpop.permute.xlu0 %7349 }
 0x6e1   : > { %7417 = vst.msk [vmem:[#allocation5 + $0xe8] sm:$0xff] %vm7387_vm6, %v7350_v21  ;;  %v7541_v10 = vpop.permute.xlu1 %7540 }
 0x6e2   : > { %7609 = vst.msk [vmem:[#allocation5 + $0xe0] sm:$0xff] %vm7580_vm7, %v7541_v10 }
 0x6e4   : > { %v6774_v18 = vpop.permute.xlu0 %6773 }
 0x6e5   : > { %6839 = vst.msk [vmem:[#allocation5 + $0xf8] sm:$0xff] %vm6807_vm3, %v6774_v18  ;;  %v6965_v15 = vpop.permute.xlu1 %6964 }
 0x6e6   : > { %7031 = vst.msk [vmem:[#allocation5 + $0xf0] sm:$0xff] %vm7000_vm4, %v6965_v15 }
 0x6e8   : > { %v7543_v23 = vpop.permute.xlu0 %7542 }
 0x6e9   : > { %7610 = vst.msk [vmem:[#allocation5 + $0xe8] sm:$0xff] %vm7580_vm7, %v7543_v23  ;;  %v6967_v24 = vpop.permute.xlu1 %6966  ;;  %v7641_v37 = vld [vmem:[#allocation5 + $0xe0] sm:$0xff] }
 0x6ea   : > { %7032 = vst.msk [vmem:[#allocation5 + $0xf8] sm:$0xff] %vm7000_vm4, %v6967_v24  ;;  %v7747_v53 = vsel %vm7661_vm8, %v7641_v37, 0 }
 0x6eb   : > { %v16058_v55 = vand.u32 4294901760, %v7747_v53 }
 0x6ec   : > { %v7159_v21 = vpop.permute.xlu0 %7158 }
 0x6ed   : > { %17345 = vst [vmem:[#allocation11_spill] sm:$0xff] %v16058_v55  ;;  %7225 = vst.msk [vmem:[#allocation5 + $0xf0] sm:$0xff] %vm7194_vm5, %v7159_v21  ;;  %v7161_v10 = vpop.permute.xlu1 %7160  ;;  %v16062_v18 = vsub.f32 %v7747_v53, %v16058_v55 }
 0x6ee   : > { %7226 = vst.msk [vmem:[#allocation5 + $0xf8] sm:$0xff] %vm7194_vm5, %v7161_v10 }
 0x6ef   : > { %17346 = vst [vmem:[#allocation13_spill] sm:$0xff] %v16062_v18  ;;  %v16877_v15 = vand.u32 4294901760, %v16062_v18 }
 0x6f0   : > { %v7352_v23 = vpop.permute.xlu0 %7351  ;;  %v7642_v13 = vld [vmem:[#allocation5 + $0xe8] sm:$0xff] }
 0x6f1   : > { %7418 = vst.msk [vmem:[#allocation5 + $0xf0] sm:$0xff] %vm7387_vm6, %v7352_v23  ;;  %v7354_v24 = vpop.permute.xlu1 %7353  ;;  %v8115_v37 = vsub.f32 %v16062_v18, %v16877_v15  ;;  %v7750_v25 = vsel %vm7661_vm8, %v7642_v13, 0 }
 0x6f2   : > { %7419 = vst.msk [vmem:[#allocation5 + $0xf8] sm:$0xff] %vm7387_vm6, %v7354_v24  ;;  %v16072_v21 = vand.u32 4294901760, %v7750_v25 }
 0x6f3   : > { %v8116_v53 = vand.u32 4294901760, %v8115_v37 }
 0x6f4   : > { %17347 = vst [vmem:[#allocation19_spill] sm:$0xff] %v16072_v21  ;;  %v7545_v14 = vpop.permute.xlu0 %7544  ;;  %v16075_v10 = vsub.f32 %v7750_v25, %v16072_v21 }
 0x6f5   : > { %7611 = vst.msk [vmem:[#allocation5 + $0xf0] sm:$0xff] %vm7580_vm7, %v7545_v14  ;;  %v7547_v8 = vpop.permute.xlu1 %7546  ;;  %11214 = vmatprep.mubr.f32.mxu1 %v8116_v53 }
 0x6f6   : > { %17348 = vst [vmem:[#allocation21_spill] sm:$0xff] %v16075_v10  ;;  %7612 = vst.msk [vmem:[#allocation5 + $0xf8] sm:$0xff] %vm7580_vm7, %v7547_v8  ;;  %v16882_v23 = vand.u32 4294901760, %v16075_v10 }
 0x6f8   : > { %v8125_v13 = vsub.f32 %v16075_v10, %v16882_v23 }
 0x6fa   : > { %v8126_v24 = vand.u32 4294901760, %v8125_v13 }
 0x6fc   : > { %11215 = vmatmul.mubr.f32.gmra.mrb[60].mxu1 %v8126_v24  ;;  %v7643_v15 = vld [vmem:[#allocation5 + $0xf0] sm:$0xff] }
 0x6fd   : > { %v7753_v37 = vsel %vm7661_vm8, %v7643_v15, 0  ;;  %v7644_v18 = vld [vmem:[#allocation5 + $0xf8] sm:$0xff] }
 0x6fe   : > { %v16084_v25 = vand.u32 4294901760, %v7753_v37  ;;  %v7756_v14 = vsel %vm7661_vm8, %v7644_v18, 0 }
 0x6ff   : > { %v16087_v52 = vand.u32 4294901760, %v7756_v14 }
 0x700   : > { %17349 = vst [vmem:[#allocation25_spill] sm:$0xff] %v16084_v25  ;;  %v16090_v8 = vsub.f32 %v7753_v37, %v16084_v25  ;;  %v17351_v37 = vld [vmem:[#allocation29_spill] sm:$0xff] }
 0x701   : > { %17350 = vst [vmem:[#allocation83_spill] sm:$0xff] %v16087_v52  ;;  %v16093_v53 = vsub.f32 %v7756_v14, %v16087_v52  ;;  %v17352_v14 = vld [vmem:[#allocation31_spill] sm:$0xff] }
 0x702   : > { %v16886_v23 = vand.u32 4294901760, %v16090_v8 }
 0x703   : > { %v16885_v13 = vand.u32 4294901760, %v16093_v53 }
 0x704   : > { %v8135_v15 = vsub.f32 %v16090_v8, %v16886_v23  ;;  %v17366_v23 = vld [vmem:[#allocation77_spill] sm:$0xff] }
 0x705   : > { %v8145_v18 = vsub.f32 %v16093_v53, %v16885_v13  ;;  %v17365_v13 = vld [vmem:[#allocation75_spill] sm:$0xff] }
 0x706   : > { %v8136_v24 = vand.u32 4294901760, %v8135_v15  ;;  %v17359_v15 = vand.u32 4294901760, %v15745_v22  ;;  %v17361_v22 = vld [vmem:[#allocation80_spill] sm:$0xff] }
 0x707   : > { %v8146_v10 = vand.u32 4294901760, %v8145_v18 }
 0x708   : > { %11217 = vmatprep.mubr.f32.mxu1 %v8136_v24  ;;  %v17362_v24 = vld [vmem:[#allocation81_spill] sm:$0xff] }
 0x709   : > { %11218 = vmatmul.mubr.f32.gmra.mrb[62].mxu1 %v8146_v10  ;;  %v17358_v10 = vand.u32 4294901760, %v15738_v36  ;;  %v17360_v36 = vld [vmem:[#allocation71_spill] sm:$0xff] }
 0x70a   : > { %11238 = vmatprep.mubr.f32.mxu1 %v17351_v37 }
 0x70b   : > { %v11662_v18 = vpack.c.bf16 %v17359_v15, %v17358_v10  ;;  %v17363_v10 = vld [vmem:[#allocation24_spill] sm:$0xff]  ;;  %v17364_v15 = vld [vmem:[#allocation74_spill] sm:$0xff] }
 0x70d   : > { %11239 = vmatmul.mubr.f32.vlgmr.msra.gmra.mrb[32].mxu1 %v17352_v14 }
 0x70e   : > { %11633 = vmatpush3.bf16.msra.mxu1 %v15935_v56  ;;  %11241 = vmatprep.mubr.f32.mxu1 %v15203_v51  ;;  %v17353_v56 = vld [vmem:[#allocation55_spill] sm:$0xff] }
 0x70f   : > { %11635 = vmatprep.subr.bf16.mxu1 %v15966_v17 }
 0x711   : > { %11242 = vmatmul.mubr.f32.gmra.mrb[34].mxu1 %v15209_v30 }
 0x712   : > { %11244 = vmatprep.mubr.f32.mxu1 %v15327_v1  ;;  %11637 = vmatpush3.bf16.msra.mxu1 %v15966_v17  ;;  %v17355_v17 = vld [vmem:[#allocation52_spill] sm:$0xff] }
 0x713   : > { %11639 = vmatprep.subr.bf16.mxu1 %v15977_v7 }
 0x715   : > { %11245 = vmatmul.mubr.f32.gmra.mrb[36].mxu1 %v15333_v26 }
 0x716   : > { %11247 = vmatprep.mubr.f32.mxu1 %v15402_v50  ;;  %11641 = vmatpush3.bf16.msra.mxu1 %v15977_v7  ;;  %v17356_v7 = vld [vmem:[#allocation17_spill] sm:$0xff] }
 0x717   : > { %11643 = vmatprep.subr.bf16.mxu1 %v15998_v20 }
 0x719   : > { %11248 = vmatmul.mubr.f32.gmra.mrb[38].mxu1 %v15413_v27 }
 0x71a   : > { %11250 = vmatprep.mubr.f32.mxu1 %v15454_v6  ;;  %11645 = vmatpush3.bf16.msra.mxu1 %v15998_v20  ;;  %v17357_v20 = vld [vmem:[#allocation23_spill] sm:$0xff] }
 0x71b   : > { %11302 = vmatprep.subr.mxu1 %v15913_v57 }
 0x71d   : > { %11251 = vmatmul.mubr.f32.gmra.mrb[40].mxu1 %v15472_v42 }
 0x71e   : > { %11253 = vmatprep.mubr.f32.mxu1 %v15510_v58  ;;  %11303 = vmatpush3.msra.mxu1 %v15913_v57  ;;  %v17354_v57 = vld [vmem:[#allocation33_spill] sm:$0xff] }
 0x71f   : > { %11647 = vmatprep.subr.bf16.mxu1 %v17353_v56 }
 0x721   : > { %11254 = vmatmul.mubr.f32.gmra.mrb[42].mxu1 %v15528_v5 }
 0x722   : > { %11256 = vmatprep.mubr.f32.mxu1 %v15566_v12 }
 0x725   : > { %11257 = vmatmul.mubr.f32.gmra.mrb[44].mxu1 %v15584_v40 }
 0x726   : > { %11259 = vmatprep.mubr.f32.mxu1 %v15622_v19 }
 0x729   : > { %11260 = vmatmul.mubr.f32.gmra.mrb[46].mxu1 %v15640_v47  ;;  %v17382_v47 = vld [vmem:[#allocation16_spill] sm:$0xff] }
 0x72a   : > { %11262 = vmatprep.mubr.f32.mxu1 %v15678_v46  ;;  %v17383_v19 = vand.u32 4294901760, %v17382_v47  ;;  %v17394_v47 = vld [vmem:[#allocation53_spill] sm:$0xff] }
 0x72d   : > { %11263 = vmatmul.mubr.f32.gmra.mrb[48].mxu1 %v15696_v16  ;;  %v17380_v16 = vld [vmem:[#allocation42_spill] sm:$0xff] }
 0x72e   : > { %11265 = vmatprep.mubr.f32.mxu1 %v15748_v34  ;;  %v17379_v34 = vand.u32 4294901760, %v15218_v63  ;;  %v17381_v46 = vand.u32 4294901760, %v17380_v16  ;;  %v17391_v16 = vand.u32 4294901760, %v15406_v11 }
 0x730   : > { %v11670_v40 = vpack.c.bf16 %v17383_v19, %v17381_v46  ;;  %v17395_v19 = vand.u32 4294901760, %v15476_v31  ;;  %v17403_v46 = vand.u32 4294901760, %v17360_v36 }
 0x731   : > { %11266 = vmatmul.mubr.f32.gmra.mrb[50].mxu1 %v15774_v45  ;;  %v17378_v45 = vand.u32 4294901760, %v17354_v57 }
 0x732   : > { %11268 = vmatprep.mubr.f32.mxu1 %v15852_v48 }
 0x735   : > { %11269 = vmatmul.mubr.f32.gmra.mrb[52].mxu1 %v15884_v44 }
 0x736   : > { %11271 = vmatprep.mubr.f32.mxu1 %v15937_v39  ;;  %v17376_v39 = vld [vmem:[#allocation22_spill] sm:$0xff] }
 0x737   : > { %v17377_v44 = vand.u32 4294901760, %v17376_v39  ;;  %v17388_v39 = vld [vmem:[#allocation48_spill] sm:$0xff] }
 0x739   : > { %11272 = vmatmul.mubr.f32.gmra.mrb[54].mxu1 %v15952_v54 }
 0x73a   : > { %11274 = vmatprep.mubr.f32.mxu1 %v15982_v28  ;;  %v17374_v28 = vld [vmem:[#allocation14_spill] sm:$0xff] }
 0x73b   : > { %v17375_v54 = vand.u32 4294901760, %v17374_v28 }
 0x73d   : > { %11275 = vmatmul.mubr.f32.gmra.mrb[56].mxu1 %v16000_v29  ;;  %v17373_v29 = vand.u32 4294901760, %v15103_v4  ;;  %v11666_v48 = vpack.c.bf16 %v17377_v44, %v17375_v54  ;;  %v17386_v44 = vld [vmem:[#allocation32_spill] sm:$0xff]  ;;  %v17389_v54 = vand.u32 4294901760, %v17388_v39 }
 0x73e   : > { %11277 = vmatprep.mubr.f32.mxu1 %v16022_v33  ;;  %v17372_v33 = vld [vmem:[#allocation21_spill] sm:$0xff] }
 0x741   : > { %11278 = vmatmul.mubr.f32.gmra.mrb[58].mxu1 %v16036_v61  ;;  %v17371_v61 = vld [vmem:[#allocation13_spill] sm:$0xff] }
 0x742   : > { %11280 = vmatprep.mubr.f32.mxu1 %v16058_v55  ;;  %v17370_v55 = vld [vmem:[#allocation6_spill] sm:$0xff] }
 0x745   : > { %11281 = vmatmul.mubr.f32.gmra.mrb[60].mxu1 %v16072_v21  ;;  %v17369_v21 = vld [vmem:[#allocation8_spill] sm:$0xff] }
 0x746   : > { %11283 = vmatprep.mubr.f32.mxu1 %v16084_v25  ;;  %v17368_v25 = vld [vmem:[#allocation27_spill] sm:$0xff] }
 0x747   : > { %v17411_v28 = vand.u32 4294901760, %v17368_v25 }
 0x749   : > { %11284 = vmatmul.mubr.f32.gmra.mrb[62].mxu1 %v16087_v52  ;;  %v17367_v52 = vld [vmem:[#allocation7_spill] sm:$0xff] }
 0x74a   : > { %11304 = vmatprep.mubr.f32.mxu1 %v15103_v4  ;;  %v17384_v4 = vand.u32 4294901760, %v15223_v0 }
 0x74d   : > { %11305 = vmatmul.mubr.f32.vlgmr.msra.gmra.mrb[32].mxu1 %v17354_v57  ;;  %v17412_v57 = vand.u32 4294901760, %v17369_v21 }
 0x74e   : > { %11649 = vmatpush3.bf16.msra.mxu1 %v17353_v56  ;;  %11307 = vmatprep.mubr.f32.mxu1 %v15218_v63 }
 0x74f   : > { %11651 = vmatprep.subr.bf16.mxu1 %v17355_v17 }
 0x751   : > { %11308 = vmatmul.mubr.f32.gmra.mrb[34].mxu1 %v15223_v0  ;;  %v17392_v0 = vand.u32 4294901760, %v15420_v60 }
 0x752   : > { %11310 = vmatprep.mubr.f32.mxu1 %v15340_v3  ;;  %11653 = vmatpush3.bf16.msra.mxu1 %v17355_v17 }
 0x753   : > { %11655 = vmatprep.subr.bf16.mxu1 %v17356_v7 }
 0x755   : > { %11311 = vmatmul.mubr.f32.gmra.mrb[36].mxu1 %v15346_v32 }
 0x756   : > { %11313 = vmatprep.mubr.f32.mxu1 %v15406_v11  ;;  %11657 = vmatpush3.bf16.msra.mxu1 %v17356_v7  ;;  %v17397_v11 = vand.u32 4294901760, %v15532_v2 }
 0x757   : > { %11659 = vmatprep.subr.bf16.mxu1 %v17357_v20 }
 0x759   : > { %11314 = vmatmul.mubr.f32.gmra.mrb[38].mxu1 %v15420_v60  ;;  %v17398_v60 = vand.u32 4294901760, %v15570_v62 }
 0x75a   : > { %11316 = vmatprep.mubr.f32.mxu1 %v15458_v43  ;;  %11661 = vmatpush3.bf16.msra.mxu1 %v17357_v20 }
 0x75b   : > { %11368 = vmatprep.subr.mxu1 %v17331_v35 }
 0x75d   : > { %11317 = vmatmul.mubr.f32.gmra.mrb[40].mxu1 %v15476_v31  ;;  %v17401_v31 = vand.u32 4294901760, %v15644_v41 }
 0x75e   : > { %11319 = vmatprep.mubr.f32.mxu1 %v15514_v9  ;;  %11369 = vmatpush3.msra.mxu1 %v17331_v35 }
 0x75f   : > { %11663 = vmatprep.subr.bf16.mxu1 %v11662_v18 }
 0x761   : > { %11320 = vmatmul.mubr.f32.gmra.mrb[42].mxu1 %v15532_v2  ;;  %v17404_v2 = vand.u32 4294901760, %v17361_v22 }
 0x762   : > { %11322 = vmatprep.mubr.f32.mxu1 %v15570_v62  ;;  %v17405_v62 = vand.u32 4294901760, %v17362_v24 }
 0x765   : > { %11323 = vmatmul.mubr.f32.gmra.mrb[44].mxu1 %v15588_v49 }
 0x766   : > { %11325 = vmatprep.mubr.f32.mxu1 %v15626_v38 }
 0x769   : > { %11326 = vmatmul.mubr.f32.gmra.mrb[46].mxu1 %v15644_v41  ;;  %v17408_v41 = vand.u32 4294901760, %v17365_v13 }
 0x76a   : > { %11328 = vmatprep.mubr.f32.mxu1 %v15682_v59 }
 0x76d   : > { %11329 = vmatmul.mubr.f32.gmra.mrb[48].mxu1 %v17360_v36  ;;  %v17414_v36 = vand.u32 4294901760, %v17371_v61 }
 0x76e   : > { %11331 = vmatprep.mubr.f32.mxu1 %v17361_v22  ;;  %v17430_v22 = vld [vmem:[#allocation15_spill] sm:$0xff] }
 0x771   : > { %11332 = vmatmul.mubr.f32.gmra.mrb[50].mxu1 %v17362_v24  ;;  %v17431_v24 = vld [vmem:[#allocation44_spill] sm:$0xff] }
 0x772   : > { %11334 = vmatprep.mubr.f32.mxu1 %v17363_v10 }
 0x775   : > { %11335 = vmatmul.mubr.f32.gmra.mrb[52].mxu1 %v17364_v15 }
 0x776   : > { %11337 = vmatprep.mubr.f32.mxu1 %v17365_v13  ;;  %v17415_v13 = vand.u32 4294901760, %v17372_v33 }
 0x779   : > { %11338 = vmatmul.mubr.f32.gmra.mrb[54].mxu1 %v17366_v23 }
 0x77a   : > { %11340 = vmatprep.mubr.f32.mxu1 %v17367_v52 }
 0x77d   : > { %11341 = vmatmul.mubr.f32.gmra.mrb[56].mxu1 %v17368_v25  ;;  %v17422_v25 = vld [vmem:[#allocation63_spill] sm:$0xff] }
 0x77e   : > { %11343 = vmatprep.mubr.f32.mxu1 %v17369_v21  ;;  %v17421_v21 = vld [vmem:[#allocation65_spill] sm:$0xff] }
 0x781   : > { %11344 = vmatmul.mubr.f32.gmra.mrb[58].mxu1 %v17370_v55 }
 0x782   : > { %11346 = vmatprep.mubr.f32.mxu1 %v17371_v61  ;;  %v17419_v61 = vld [vmem:[#allocation61_spill] sm:$0xff] }
 0x785   : > { %11347 = vmatmul.mubr.f32.gmra.mrb[60].mxu1 %v17372_v33  ;;  %v17418_v33 = vld [vmem:[#allocation68_spill] sm:$0xff] }
 0x786   : > { %11349 = vmatprep.mubr.f32.mxu1 %v16090_v8 }
 0x789   : > { %11350 = vmatmul.mubr.f32.gmra.mrb[62].mxu1 %v16093_v53 }
 0x78a   : > { %11370 = vmatprep.mubr.f32.mxu1 %v17373_v29  ;;  %v17385_v29 = vand.u32 4294901760, %v15340_v3  ;;  %v17393_v3 = vand.u32 4294901760, %v15458_v43  ;;  %v17399_v43 = vand.u32 4294901760, %v15588_v49  ;;  %v17406_v49 = vand.u32 4294901760, %v17363_v10  ;;  %v17432_v10 = vld [vmem:[#allocation9_spill] sm:$0xff] }
 0x78d   : > { %11371 = vmatmul.mubr.f32.vlgmr.msra.gmra.mrb[32].mxu1 %v17378_v45  ;;  %v17387_v45 = vand.u32 4294901760, %v17386_v44  ;;  %v17436_v44 = vld [vmem:[#allocation83_spill] sm:$0xff] }
 0x78e   : > { %11665 = vmatpush3.bf16.msra.mxu1 %v11662_v18  ;;  %11373 = vmatprep.mubr.f32.mxu1 %v17379_v34  ;;  %v17390_v34 = vand.u32 4294901760, %v15346_v32  ;;  %v17396_v32 = vand.u32 4294901760, %v15514_v9  ;;  %v17402_v9 = vand.u32 4294901760, %v15682_v59  ;;  %v17409_v59 = vand.u32 4294901760, %v17366_v23 }
 0x78f   : > { %11667 = vmatprep.subr.bf16.mxu1 %v11666_v48  ;;  %v11674_v63 = vpack.c.bf16 %v17389_v54, %v17387_v45  ;;  %v17413_v18 = vand.u32 4294901760, %v17370_v55  ;;  %v17416_v23 = vand.u32 4294901760, %v16090_v8  ;;  %v17420_v55 = vld [vmem:[#allocation59_spill] sm:$0xff] }
 0x790   : > { %v17423_v8 = vld [vmem:[#allocation67_spill] sm:$0xff] }
 0x791   : > { %11374 = vmatmul.mubr.f32.gmra.mrb[34].mxu1 %v17384_v4  ;;  %v17434_v4 = vld [vmem:[#allocation19_spill] sm:$0xff] }
 0x792   : > { %11376 = vmatprep.mubr.f32.mxu1 %v17385_v29  ;;  %11669 = vmatpush3.bf16.msra.mxu1 %v11666_v48  ;;  %v17410_v48 = vand.u32 4294901760, %v17367_v52  ;;  %v17417_v52 = vand.u32 4294901760, %v16093_v53  ;;  %v17424_v53 = vld [vmem:[#allocation82_spill] sm:$0xff]  ;;  %v17435_v29 = vld [vmem:[#allocation25_spill] sm:$0xff] }
 0x793   : > { %11671 = vmatprep.subr.bf16.mxu1 %v11670_v40 }
 0x795   : > { %11377 = vmatmul.mubr.f32.gmra.mrb[36].mxu1 %v17390_v34 }
 0x796   : > { %11379 = vmatprep.mubr.f32.mxu1 %v17391_v16  ;;  %11673 = vmatpush3.bf16.msra.mxu1 %v11670_v40  ;;  %v17400_v40 = vand.u32 4294901760, %v15626_v38  ;;  %v17407_v38 = vand.u32 4294901760, %v17364_v15  ;;  %v17433_v15 = vld [vmem:[#allocation11_spill] sm:$0xff] }
 0x797   : > { %11675 = vmatprep.subr.bf16.mxu1 %v11674_v63 }
 0x799   : > { %11380 = vmatmul.mubr.f32.gmra.mrb[38].mxu1 %v17392_v0 }
 0x79a   : > { %11382 = vmatprep.mubr.f32.mxu1 %v17393_v3  ;;  %11677 = vmatpush3.bf16.msra.mxu1 %v11674_v63  ;;  %v17439_v3 = vld [vmem:[#allocation45_spill] sm:$0xff] }
 0x79b   : > { %11434 = vmatprep.subr.mxu1 %v17394_v47 }
 0x79d   : > { %11383 = vmatmul.mubr.f32.gmra.mrb[40].mxu1 %v17395_v19 }
 0x79e   : > { %11385 = vmatprep.mubr.f32.mxu1 %v17396_v32  ;;  %11435 = vmatpush3.msra.mxu1 %v17394_v47 }
 0x79f   : > { %11679 = vmatprep.subr.bf16.mxu1 %v17353_v56 }
 0x7a1   : > { %11386 = vmatmul.mubr.f32.gmra.mrb[42].mxu1 %v17397_v11  ;;  %v17440_v11 = vld [vmem:[#allocation49_spill] sm:$0xff] }
 0x7a2   : > { %11388 = vmatprep.mubr.f32.mxu1 %v17398_v60 }
 0x7a5   : > { %11389 = vmatmul.mubr.f32.gmra.mrb[44].mxu1 %v17399_v43 }
 0x7a6   : > { %11391 = vmatprep.mubr.f32.mxu1 %v17400_v40 }
 0x7a9   : > { %11392 = vmatmul.mubr.f32.gmra.mrb[46].mxu1 %v17401_v31 }
 0x7aa   : > { %11394 = vmatprep.mubr.f32.mxu1 %v17402_v9 }
 0x7ad   : > { %11395 = vmatmul.mubr.f32.gmra.mrb[48].mxu1 %v17403_v46 }
 0x7ae   : > { %11397 = vmatprep.mubr.f32.mxu1 %v17404_v2 }
 0x7b1   : > { %11398 = vmatmul.mubr.f32.gmra.mrb[50].mxu1 %v17405_v62  ;;  %v17441_v62 = vld [vmem:[#allocation51_spill] sm:$0xff] }
 0x7b2   : > { %11400 = vmatprep.mubr.f32.mxu1 %v17406_v49 }
 0x7b5   : > { %11401 = vmatmul.mubr.f32.gmra.mrb[52].mxu1 %v17407_v38 }
 0x7b6   : > { %11403 = vmatprep.mubr.f32.mxu1 %v17408_v41 }
 0x7b9   : > { %11404 = vmatmul.mubr.f32.gmra.mrb[54].mxu1 %v17409_v59  ;;  %v17442_v59 = vld [vmem:[#allocation10_spill] sm:$0xff] }
 0x7ba   : > { %11406 = vmatprep.mubr.f32.mxu1 %v17410_v48 }
 0x7bd   : > { %11407 = vmatmul.mubr.f32.gmra.mrb[56].mxu1 %v17411_v28 }
 0x7be   : > { %11409 = vmatprep.mubr.f32.mxu1 %v17412_v57 }
 0x7c1   : > { %11410 = vmatmul.mubr.f32.gmra.mrb[58].mxu1 %v17413_v18 }
 0x7c2   : > { %11412 = vmatprep.mubr.f32.mxu1 %v17414_v36 }
 0x7c5   : > { %11413 = vmatmul.mubr.f32.gmra.mrb[60].mxu1 %v17415_v13 }
 0x7c6   : > { %11415 = vmatprep.mubr.f32.mxu1 %v17416_v23 }
 0x7c9   : > { %11416 = vmatmul.mubr.f32.gmra.mrb[62].mxu1 %v17417_v52  ;;  %v17443_v52 = vld [vmem:[#allocation54_spill] sm:$0xff] }
 0x7ca   : > { %11436 = vmatprep.mubr.f32.mxu1 %v17351_v37 }
 0x7cd   : > { %11437 = vmatmul.mubr.f32.vlgmr.msra.gmra.mrb[32].mxu1 %v17352_v14 }
 0x7ce   : > { %11681 = vmatpush3.bf16.msra.mxu1 %v17353_v56  ;;  %11439 = vmatprep.mubr.f32.mxu1 %v15203_v51  ;;  %v17425_v56 = vld [vmem:[#allocation26_spill] sm:$0xff] }
 0x7cf   : > { %11683 = vmatprep.subr.bf16.mxu1 %v17355_v17 }
 0x7d1   : > { %11440 = vmatmul.mubr.f32.gmra.mrb[34].mxu1 %v15209_v30 }
 0x7d2   : > { %11442 = vmatprep.mubr.f32.mxu1 %v15327_v1  ;;  %11685 = vmatpush3.bf16.msra.mxu1 %v17355_v17  ;;  %v17427_v17 = vld [vmem:[#allocation76_spill] sm:$0xff] }
 0x7d3   : > { %11687 = vmatprep.subr.bf16.mxu1 %v17356_v7 }
 0x7d5   : > { %11443 = vmatmul.mubr.f32.gmra.mrb[36].mxu1 %v15333_v26 }
 0x7d6   : > { %11445 = vmatprep.mubr.f32.mxu1 %v15402_v50  ;;  %11689 = vmatpush3.bf16.msra.mxu1 %v17356_v7  ;;  %v17428_v7 = vld [vmem:[#allocation78_spill] sm:$0xff] }
 0x7d7   : > { %11691 = vmatprep.subr.bf16.mxu1 %v17357_v20 }
 0x7d9   : > { %11446 = vmatmul.mubr.f32.gmra.mrb[38].mxu1 %v15413_v27 }
 0x7da   : > { %11448 = vmatprep.mubr.f32.mxu1 %v15454_v6  ;;  %11693 = vmatpush3.bf16.msra.mxu1 %v17357_v20  ;;  %v17429_v20 = vld [vmem:[#allocation79_spill] sm:$0xff] }
 0x7db   : > { %11500 = vmatprep.subr.mxu1 %v17331_v35 }
 0x7dd   : > { %11449 = vmatmul.mubr.f32.gmra.mrb[40].mxu1 %v15472_v42 }
 0x7de   : > { %11451 = vmatprep.mubr.f32.mxu1 %v15510_v58  ;;  %11501 = vmatpush3.msra.mxu1 %v17331_v35  ;;  %v17426_v35 = vld [vmem:[#allocation47_spill] sm:$0xff] }
 0x7e1   : > { %11452 = vmatmul.mubr.f32.gmra.mrb[42].mxu1 %v15528_v5 }
 0x7e2   : > { %11454 = vmatprep.mubr.f32.mxu1 %v15566_v12 }
 0x7e5   : > { %11455 = vmatmul.mubr.f32.gmra.mrb[44].mxu1 %v17418_v33 }
 0x7e6   : > { %11457 = vmatprep.mubr.f32.mxu1 %v17419_v61 }
 0x7e9   : > { %11458 = vmatmul.mubr.f32.gmra.mrb[46].mxu1 %v17420_v55 }
 0x7ea   : > { %11460 = vmatprep.mubr.f32.mxu1 %v17421_v21 }
 0x7ed   : > { %11461 = vmatmul.mubr.f32.gmra.mrb[48].mxu1 %v17422_v25 }
 0x7ee   : > { %11463 = vmatprep.mubr.f32.mxu1 %v17423_v8 }
 0x7f1   : > { %11464 = vmatmul.mubr.f32.gmra.mrb[50].mxu1 %v17424_v53 }
 0x7f2   : > { %11466 = vmatprep.mubr.f32.mxu1 %v17425_v56 }
 0x7f5   : > { %11467 = vmatmul.mubr.f32.gmra.mrb[52].mxu1 %v17426_v35 }
 0x7f6   : > { %11469 = vmatprep.mubr.f32.mxu1 %v17427_v17 }
 0x7f9   : > { %11470 = vmatmul.mubr.f32.gmra.mrb[54].mxu1 %v17428_v7 }
 0x7fa   : > { %11472 = vmatprep.mubr.f32.mxu1 %v17429_v20 }
 0x7fd   : > { %11473 = vmatmul.mubr.f32.gmra.mrb[56].mxu1 %v17430_v22 }
 0x7fe   : > { %11475 = vmatprep.mubr.f32.mxu1 %v17431_v24 }
 0x801   : > { %11476 = vmatmul.mubr.f32.gmra.mrb[58].mxu1 %v17432_v10 }
 0x802   : > { %11478 = vmatprep.mubr.f32.mxu1 %v17433_v15 }
 0x805   : > { %11479 = vmatmul.mubr.f32.gmra.mrb[60].mxu1 %v17434_v4 }
 0x806   : > { %11481 = vmatprep.mubr.f32.mxu1 %v17435_v29 }
 0x809   : > { %11482 = vmatmul.mubr.f32.gmra.mrb[62].mxu1 %v17436_v44 }
 0x80a   : > { %11502 = vmatprep.mubr.f32.mxu1 %v17351_v37 }
 0x80d   : > { %11503 = vmatmul.mubr.f32.vlgmr.msra.gmra.mrb[32].mxu1 %v17352_v14  ;;  %v17438_v14 = vld [vmem:[#allocation43_spill] sm:$0xff] }
 0x80e   : > { %11505 = vmatprep.mubr.f32.mxu1 %v15203_v51  ;;  %v16345_v51 = vld [vmem:[%s16491_s6] ss:$0 sm:$0xff] }
 0x811   : > { %11506 = vmatmul.mubr.f32.gmra.mrb[34].mxu1 %v15209_v30 }
 0x812   : > { %11508 = vmatprep.mubr.f32.mxu1 %v15327_v1 }
 0x815   : > { %11509 = vmatmul.mubr.f32.gmra.mrb[36].mxu1 %v15333_v26 }
 0x816   : > { %11511 = vmatprep.mubr.f32.mxu1 %v15402_v50 }
 0x819   : > { %11512 = vmatmul.mubr.f32.gmra.mrb[38].mxu1 %v15413_v27 }
 0x81a   : > { %11514 = vmatprep.mubr.f32.mxu1 %v15454_v6 }
 0x81d   : > { %11515 = vmatmul.mubr.f32.gmra.mrb[40].mxu1 %v15472_v42  ;;  %v17437_v42 = vld [vmem:[#allocation39_spill] sm:$0xff] }
 0x81e   : > { %11517 = vmatprep.mubr.f32.mxu1 %v15510_v58 }
 0x821   : > { %11518 = vmatmul.mubr.f32.gmra.mrb[42].mxu1 %v15528_v5 }
 0x822   : > { %11520 = vmatprep.mubr.f32.mxu1 %v15566_v12 }
 0x825   : > { %11521 = vmatmul.mubr.f32.gmra.mrb[44].mxu1 %v17418_v33 }
 0x826   : > { %11523 = vmatprep.mubr.f32.mxu1 %v17419_v61 }
 0x829   : > { %11524 = vmatmul.mubr.f32.gmra.mrb[46].mxu1 %v17420_v55 }
 0x82a   : > { %11526 = vmatprep.mubr.f32.mxu1 %v17421_v21  ;;  %v17444_v21 = vld [vmem:[#allocation12_spill] sm:$0xff] }
 0x82d   : > { %11527 = vmatmul.mubr.f32.gmra.mrb[48].mxu1 %v17422_v25 }
 0x82e   : > { %11529 = vmatprep.mubr.f32.mxu1 %v17423_v8 }
 0x831   : > { %11530 = vmatmul.mubr.f32.gmra.mrb[50].mxu1 %v17424_v53 }
 0x832   : > { %11532 = vmatprep.mubr.f32.mxu1 %v17425_v56 }
 0x835   : > { %11533 = vmatmul.mubr.f32.gmra.mrb[52].mxu1 %v17426_v35 }
 0x836   : > { %11535 = vmatprep.mubr.f32.mxu1 %v17427_v17 }
 0x839   : > { %11536 = vmatmul.mubr.f32.gmra.mrb[54].mxu1 %v17428_v7 }
 0x83a   : > { %11538 = vmatprep.mubr.f32.mxu1 %v17429_v20  ;;  %v17445_v20 = vld [vmem:[#allocation56_spill] sm:$0xff] }
 0x83d   : > { %11539 = vmatmul.mubr.f32.gmra.mrb[56].mxu1 %v17430_v22 }
 0x83e   : > { %11541 = vmatprep.mubr.f32.mxu1 %v17431_v24 }
 0x841   : > { %11542 = vmatmul.mubr.f32.gmra.mrb[58].mxu1 %v17432_v10 }
 0x842   : > { %11544 = vmatprep.mubr.f32.mxu1 %v17433_v15  ;;  %v17446_v15 = vld [vmem:[#allocation58_spill] sm:$0xff] }
 0x845   : > { %11545 = vmatmul.mubr.f32.gmra.mrb[60].mxu1 %v17434_v4 }
 0x846   : > { %11547 = vmatprep.mubr.f32.mxu1 %v17435_v29 }
 0x849   : > { %11548 = vmatmul.mubr.f32.gmra.mrb[62].mxu1 %v17436_v44 }
 0x8e0   : > { %v11504_v30 = vpop.f32.mrb[32].mxu1 }
 0x8e1   : > { %v11792_v1 = vadd.f32 %v11504_v30, %v16345_v51  ;;  %v9451_v26 = vpop.f32.mrb[33].mxu1 }
 0x8e2   : > { %v11793_v50 = vadd.f32 %v16345_v51, %v9451_v26 }
 0x8e3   : > { %v9642_v27 = vmax.f32 %v11792_v1, 0.0 }
 0x8e4   : > { %v9641_v6 = vmax.f32 %v11793_v50, 0.0  ;;  %v11507_v5 = vpop.f32.mrb[34].mxu1 }
 0x8e5   : > { %v9674_v58 = vadd.f32 %v17437_v42, %v9642_v27  ;;  %v11794_v12 = vadd.f32 %v11507_v5, %v16345_v51  ;;  %v9463_v37 = vpop.f32.mrb[35].mxu1  ;;  %v17447_v27 = vld [vmem:[#allocation60_spill] sm:$0xff] }
 0x8e6   : > { %v9673_v45 = vadd.f32 %v17438_v14, %v9641_v6  ;;  %v11795_v39 = vadd.f32 %v16345_v51, %v9463_v37 }
 0x8e7   : > { %v9706_v54 = vmax.f32 %v9674_v58, 0.0  ;;  %v9644_v63 = vmax.f32 %v11794_v12, 0.0  ;;  %v17448_v58 = vld [vmem:[#allocation62_spill] sm:$0xff] }
 0x8e8   : > { %v9705_v34 = vmax.f32 %v9673_v45, 0.0  ;;  %v9643_v16 = vmax.f32 %v11795_v39, 0.0  ;;  %v11510_v0 = vpop.f32.mrb[36].mxu1 }
 0x8e9   : > { %9738 = vst.msk [vmem:[%s16356_s20 + $0x8] sm:$0xff] %vm5925_vm13, %v9706_v54  ;;  %v9676_v47 = vadd.f32 %v17439_v3, %v9644_v63  ;;  %v11796_v19 = vadd.f32 %v11510_v0, %v16345_v51  ;;  %v9475_v32 = vpop.f32.mrb[37].mxu1 }
 0x8ea   : > { %9737 = vst.msk [vmem:[%s16356_s20] sm:$0xff] %vm5925_vm13, %v9705_v34  ;;  %v9675_v60 = vadd.f32 %v17440_v11, %v9643_v16  ;;  %v11797_v43 = vadd.f32 %v16345_v51, %v9475_v32  ;;  %v17449_v34 = vld [vmem:[#allocation64_spill] sm:$0xff] }
 0x8eb   : > { %v9708_v40 = vmax.f32 %v9676_v47, 0.0  ;;  %v9646_v31 = vmax.f32 %v11796_v19, 0.0  ;;  %v17450_v47 = vld [vmem:[#allocation66_spill] sm:$0xff] }
 0x8ec   : > { %v9707_v9 = vmax.f32 %v9675_v60, 0.0  ;;  %v9645_v46 = vmax.f32 %v11797_v43, 0.0  ;;  %v11513_v2 = vpop.f32.mrb[38].mxu1 }
 0x8ed   : > { %9740 = vst.msk [vmem:[%s16356_s20 + $0x18] sm:$0xff] %vm5925_vm13, %v9708_v40  ;;  %v9678_v49 = vadd.f32 %v17441_v62, %v9646_v31  ;;  %v11798_v38 = vadd.f32 %v11513_v2, %v16345_v51  ;;  %v9487_v41 = vpop.f32.mrb[39].mxu1 }
 0x8ee   : > { %9739 = vst.msk [vmem:[%s16356_s20 + $0x10] sm:$0xff] %vm5925_vm13, %v9707_v9  ;;  %v9677_v48 = vadd.f32 %v17442_v59, %v9645_v46  ;;  %v11799_v28 = vadd.f32 %v16345_v51, %v9487_v41  ;;  %v17451_v9 = vld [vmem:[#allocation69_spill] sm:$0xff] }
 0x8ef   : > { %v9710_v57 = vmax.f32 %v9678_v49, 0.0  ;;  %v9648_v18 = vmax.f32 %v11798_v38, 0.0  ;;  %v17452_v49 = vld [vmem:[#allocation72_spill] sm:$0xff] }
 0x8f0   : > { %v9709_v36 = vmax.f32 %v9677_v48, 0.0  ;;  %v9647_v13 = vmax.f32 %v11799_v28, 0.0  ;;  %v11516_v23 = vpop.f32.mrb[40].mxu1 }
 0x8f1   : > { %9742 = vst.msk [vmem:[%s16356_s20 + $0x28] sm:$0xff] %vm5925_vm13, %v9710_v57  ;;  %v9680_v33 = vadd.f32 %v17443_v52, %v9648_v18  ;;  %v11800_v61 = vadd.f32 %v11516_v23, %v16345_v51  ;;  %v9499_v55 = vpop.f32.mrb[41].mxu1 }
 0x8f2   : > { %9741 = vst.msk [vmem:[%s16356_s20 + $0x20] sm:$0xff] %vm5925_vm13, %v9709_v36  ;;  %v9679_v25 = vadd.f32 %v17444_v21, %v9647_v13  ;;  %v11801_v8 = vadd.f32 %v16345_v51, %v9499_v55  ;;  %v17453_v36 = vld [vmem:[#allocation41_spill] sm:$0xff] }
 0x8f3   : > { %v9712_v53 = vmax.f32 %v9680_v33, 0.0  ;;  %v9650_v56 = vmax.f32 %v11800_v61, 0.0  ;;  %v17454_v33 = vld [vmem:[#allocation70_spill] sm:$0xff] }
 0x8f4   : > { %v9711_v35 = vmax.f32 %v9679_v25, 0.0  ;;  %v9649_v17 = vmax.f32 %v11801_v8, 0.0  ;;  %v11519_v7 = vpop.f32.mrb[42].mxu1 }
 0x8f5   : > { %9744 = vst.msk [vmem:[%s16356_s20 + $0x38] sm:$0xff] %vm5925_vm13, %v9712_v53  ;;  %v9682_v22 = vadd.f32 %v17445_v20, %v9650_v56  ;;  %v11802_v24 = vadd.f32 %v11519_v7, %v16345_v51  ;;  %v9511_v10 = vpop.f32.mrb[43].mxu1 }
 0x8f6   : > { %9743 = vst.msk [vmem:[%s16356_s20 + $0x30] sm:$0xff] %vm5925_vm13, %v9711_v35  ;;  %v9681_v4 = vadd.f32 %v17446_v15, %v9649_v17  ;;  %v11803_v29 = vadd.f32 %v16345_v51, %v9511_v10  ;;  %v17455_v35 = vld [vmem:[#allocation73_spill] sm:$0xff] }
 0x8f7   : > { %v9714_v44 = vmax.f32 %v9682_v22, 0.0  ;;  %v9652_v30 = vmax.f32 %v11802_v24, 0.0  ;;  %v17456_v22 = vld [vmem:[#allocation18_spill] sm:$0xff] }
 0x8f8   : > { %v9713_v1 = vmax.f32 %v9681_v4, 0.0  ;;  %v9651_v26 = vmax.f32 %v11803_v29, 0.0  ;;  %v11522_v50 = vpop.f32.mrb[44].mxu1 }
 0x8f9   : > { %9746 = vst.msk [vmem:[%s16356_s20 + $0x48] sm:$0xff] %vm5925_vm13, %v9714_v44  ;;  %v9684_v6 = vadd.f32 %v17447_v27, %v9652_v30  ;;  %v11804_v5 = vadd.f32 %v11522_v50, %v16345_v51  ;;  %v9523_v42 = vpop.f32.mrb[45].mxu1 }
 0x8fa   : > { %9745 = vst.msk [vmem:[%s16356_s20 + $0x40] sm:$0xff] %vm5925_vm13, %v9713_v1  ;;  %v9683_v12 = vadd.f32 %v17448_v58, %v9651_v26  ;;  %v11805_v37 = vadd.f32 %v16345_v51, %v9523_v42  ;;  %v17457_v1 = vld [vmem:[#allocation20_spill] sm:$0xff] }
 0x8fb   : > { %v9716_v14 = vmax.f32 %v9684_v6, 0.0  ;;  %v9654_v45 = vmax.f32 %v11804_v5, 0.0  ;;  %v17458_v6 = vld [vmem:[#allocation30_spill] sm:$0xff] }
 0x8fc   : > { %v9715_v39 = vmax.f32 %v9683_v12, 0.0  ;;  %v9653_v54 = vmax.f32 %v11805_v37, 0.0  ;;  %v11525_v63 = vpop.f32.mrb[46].mxu1 }
 0x8fd   : > { %9748 = vst.msk [vmem:[%s16356_s20 + $0x58] sm:$0xff] %vm5925_vm13, %v9716_v14  ;;  %v9686_v16 = vadd.f32 %v17449_v34, %v9654_v45  ;;  %v11806_v0 = vadd.f32 %v11525_v63, %v16345_v51  ;;  %v9535_v3 = vpop.f32.mrb[47].mxu1 }
 0x8fe   : > { %9747 = vst.msk [vmem:[%s16356_s20 + $0x50] sm:$0xff] %vm5925_vm13, %v9715_v39  ;;  %v9685_v19 = vadd.f32 %v17450_v47, %v9653_v54  ;;  %v11807_v32 = vadd.f32 %v16345_v51, %v9535_v3  ;;  %v17459_v39 = vld [vmem:[#allocation28_spill] sm:$0xff] }
 0x8ff   : > { %v9718_v11 = vmax.f32 %v9686_v16, 0.0  ;;  %v9656_v60 = vmax.f32 %v11806_v0, 0.0  ;;  %v17460_v16 = vld [vmem:[#allocation36_spill] sm:$0xff] }
 0x900   : > { %v9717_v43 = vmax.f32 %v9685_v19, 0.0  ;;  %v9655_v40 = vmax.f32 %v11807_v32, 0.0  ;;  %v11528_v31 = vpop.f32.mrb[48].mxu1 }
 0x901   : > { %9750 = vst.msk [vmem:[%s16356_s20 + $0x68] sm:$0xff] %vm5925_vm13, %v9718_v11  ;;  %v9688_v46 = vadd.f32 %v17451_v9, %v9656_v60  ;;  %v11808_v2 = vadd.f32 %v11528_v31, %v16345_v51  ;;  %v9547_v62 = vpop.f32.mrb[49].mxu1 }
 0x902   : > { %9749 = vst.msk [vmem:[%s16356_s20 + $0x60] sm:$0xff] %vm5925_vm13, %v9717_v43  ;;  %v9687_v38 = vadd.f32 %v17452_v49, %v9655_v40  ;;  %v11809_v41 = vadd.f32 %v16345_v51, %v9547_v62  ;;  %v17461_v43 = vld [vmem:[#allocation34_spill] sm:$0xff] }
 0x903   : > { %v9720_v59 = vmax.f32 %v9688_v46, 0.0  ;;  %v9658_v48 = vmax.f32 %v11808_v2, 0.0  ;;  %v17462_v46 = vld [vmem:[#allocation40_spill] sm:$0xff] }
 0x904   : > { %v9719_v28 = vmax.f32 %v9687_v38, 0.0  ;;  %v9657_v57 = vmax.f32 %v11809_v41, 0.0  ;;  %v11531_v18 = vpop.f32.mrb[50].mxu1 }
 0x905   : > { %9752 = vst.msk [vmem:[%s16356_s20 + $0x78] sm:$0xff] %vm5925_vm13, %v9720_v59  ;;  %v9690_v13 = vadd.f32 %v17453_v36, %v9658_v48  ;;  %v11810_v23 = vadd.f32 %v11531_v18, %v16345_v51  ;;  %v9559_v52 = vpop.f32.mrb[51].mxu1 }
 0x906   : > { %9751 = vst.msk [vmem:[%s16356_s20 + $0x70] sm:$0xff] %vm5925_vm13, %v9719_v28  ;;  %v9689_v61 = vadd.f32 %v17454_v33, %v9657_v57  ;;  %v11811_v55 = vadd.f32 %v16345_v51, %v9559_v52  ;;  %v17463_v28 = vld [vmem:[#allocation38_spill] sm:$0xff] }
 0x907   : > { %v9722_v21 = vmax.f32 %v9690_v13, 0.0  ;;  %v9660_v25 = vmax.f32 %v11810_v23, 0.0  ;;  %v17464_v13 = vld [vmem:[#allocation50_spill] sm:$0xff] }
 0x908   : > { %v9721_v8 = vmax.f32 %v9689_v61, 0.0  ;;  %v9659_v53 = vmax.f32 %v11811_v55, 0.0  ;;  %v11534_v56 = vpop.f32.mrb[52].mxu1 }
 0x909   : > { %9754 = vst.msk [vmem:[%s16356_s20 + $0x88] sm:$0xff] %vm5925_vm13, %v9722_v21  ;;  %v9692_v17 = vadd.f32 %v17455_v35, %v9660_v25  ;;  %v11812_v7 = vadd.f32 %v11534_v56, %v16345_v51  ;;  %v9571_v20 = vpop.f32.mrb[53].mxu1 }
 0x90a   : > { %9753 = vst.msk [vmem:[%s16356_s20 + $0x80] sm:$0xff] %vm5925_vm13, %v9721_v8  ;;  %v9691_v24 = vadd.f32 %v17456_v22, %v9659_v53  ;;  %v11813_v10 = vadd.f32 %v16345_v51, %v9571_v20  ;;  %v17465_v8 = vld [vmem:[#allocation46_spill] sm:$0xff] }
 0x90b   : > { %v9724_v15 = vmax.f32 %v9692_v17, 0.0  ;;  %v9662_v4 = vmax.f32 %v11812_v7, 0.0  ;;  %v17466_v17 = vld [vmem:[#allocation57_spill] sm:$0xff] }
 0x90c   : > { %v9723_v29 = vmax.f32 %v9691_v24, 0.0  ;;  %v9661_v44 = vmax.f32 %v11813_v10, 0.0  ;;  %v11537_v30 = vpop.f32.mrb[54].mxu1 }
 0x90d   : > { %9756 = vst.msk [vmem:[%s16356_s20 + $0x98] sm:$0xff] %vm5925_vm13, %v9724_v15  ;;  %v9694_v26 = vadd.f32 %v17457_v1, %v9662_v4  ;;  %v11814_v50 = vadd.f32 %v11537_v30, %v16345_v51  ;;  %v9583_v27 = vpop.f32.mrb[55].mxu1  ;;  %v17467_v4 = vld [vmem:[#allocation35_spill] sm:$0xff] }
 0x90e   : > { %9755 = vst.msk [vmem:[%s16356_s20 + $0x90] sm:$0xff] %vm5925_vm13, %v9723_v29  ;;  %v9693_v5 = vadd.f32 %v17458_v6, %v9661_v44  ;;  %v11815_v42 = vadd.f32 %v16345_v51, %v9583_v27  ;;  %v17468_v44 = vld [vmem:[#allocation37_spill] sm:$0xff] }
 0x90f   : > { %v9726_v58 = vmax.f32 %v9694_v26, 0.0  ;;  %v9664_v12 = vmax.f32 %v11814_v50, 0.0 }
 0x910   : > { %v9725_v37 = vmax.f32 %v9693_v5, 0.0  ;;  %v9663_v14 = vmax.f32 %v11815_v42, 0.0  ;;  %v11540_v45 = vpop.f32.mrb[56].mxu1 }
 0x911   : > { %9758 = vst.msk [vmem:[%s16356_s20 + $0xa8] sm:$0xff] %vm5925_vm13, %v9726_v58  ;;  %v9696_v54 = vadd.f32 %v17459_v39, %v9664_v12  ;;  %v11816_v63 = vadd.f32 %v11540_v45, %v16345_v51  ;;  %v9595_v34 = vpop.f32.mrb[57].mxu1 }
 0x912   : > { %9757 = vst.msk [vmem:[%s16356_s20 + $0xa0] sm:$0xff] %vm5925_vm13, %v9725_v37  ;;  %v9695_v0 = vadd.f32 %v17460_v16, %v9663_v14  ;;  %v11817_v3 = vadd.f32 %v16345_v51, %v9595_v34 }
 0x913   : > { %v9728_v47 = vmax.f32 %v9696_v54, 0.0  ;;  %v9666_v19 = vmax.f32 %v11816_v63, 0.0 }
 0x914   : > { %v9727_v32 = vmax.f32 %v9695_v0, 0.0  ;;  %v9665_v11 = vmax.f32 %v11817_v3, 0.0  ;;  %v11543_v60 = vpop.f32.mrb[58].mxu1 }
 0x915   : > { %9760 = vst.msk [vmem:[%s16356_s20 + $0xb8] sm:$0xff] %vm5925_vm13, %v9728_v47  ;;  %v9698_v40 = vadd.f32 %v17461_v43, %v9666_v19  ;;  %v11818_v31 = vadd.f32 %v11543_v60, %v16345_v51  ;;  %v9607_v9 = vpop.f32.mrb[59].mxu1 }
 0x916   : > { %9759 = vst.msk [vmem:[%s16356_s20 + $0xb0] sm:$0xff] %vm5925_vm13, %v9727_v32  ;;  %v9697_v2 = vadd.f32 %v17462_v46, %v9665_v11  ;;  %v11819_v62 = vadd.f32 %v16345_v51, %v9607_v9 }
 0x917   : > { %v9730_v49 = vmax.f32 %v9698_v40, 0.0  ;;  %v9668_v38 = vmax.f32 %v11818_v31, 0.0 }
 0x918   : > { %v9729_v41 = vmax.f32 %v9697_v2, 0.0  ;;  %v9667_v59 = vmax.f32 %v11819_v62, 0.0  ;;  %v11546_v48 = vpop.f32.mrb[60].mxu1 }
 0x919   : > { %9762 = vst.msk [vmem:[%s16356_s20 + $0xc8] sm:$0xff] %vm5925_vm13, %v9730_v49  ;;  %v9700_v57 = vadd.f32 %v17463_v28, %v9668_v38  ;;  %v11820_v18 = vadd.f32 %v11546_v48, %v16345_v51  ;;  %v9619_v36 = vpop.f32.mrb[61].mxu1 }
 0x91a   : > { %9761 = vst.msk [vmem:[%s16356_s20 + $0xc0] sm:$0xff] %vm5925_vm13, %v9729_v41  ;;  %v9699_v23 = vadd.f32 %v17464_v13, %v9667_v59  ;;  %v11821_v52 = vadd.f32 %v16345_v51, %v9619_v36 }
 0x91b   : > { %v9732_v33 = vmax.f32 %v9700_v57, 0.0  ;;  %v9670_v61 = vmax.f32 %v11820_v18, 0.0 }
 0x91c   : > { %v9731_v55 = vmax.f32 %v9699_v23, 0.0  ;;  %v9669_v21 = vmax.f32 %v11821_v52, 0.0  ;;  %v11549_v25 = vpop.f32.mrb[62].mxu1 }
 0x91d   : > { %9764 = vst.msk [vmem:[%s16356_s20 + $0xd8] sm:$0xff] %vm5925_vm13, %v9732_v33  ;;  %v9702_v53 = vadd.f32 %v17465_v8, %v9670_v61  ;;  %v11822_v56 = vadd.f32 %v11549_v25, %v16345_v51  ;;  %v9631_v35 = vpop.f32.mrb[63].mxu1 }
 0x91e   : > { %9763 = vst.msk [vmem:[%s16356_s20 + $0xd0] sm:$0xff] %vm5925_vm13, %v9731_v55  ;;  %v9701_v7 = vadd.f32 %v17466_v17, %v9669_v21  ;;  %v11823_v20 = vadd.f32 %v16345_v51, %v9631_v35 }
 0x91f   : > { %v9734_v22 = vmax.f32 %v9702_v53, 0.0  ;;  %v9672_v24 = vmax.f32 %v11822_v56, 0.0 }
 0x920   : > { %v9733_v10 = vmax.f32 %v9701_v7, 0.0  ;;  %v9671_v15 = vmax.f32 %v11823_v20, 0.0 }
 0x921   : > { %9766 = vst.msk [vmem:[%s16356_s20 + $0xe8] sm:$0xff] %vm5925_vm13, %v9734_v22  ;;  %v9704_v29 = vadd.f32 %v17467_v4, %v9672_v24 }
 0x922   : > { %9765 = vst.msk [vmem:[%s16356_s20 + $0xe0] sm:$0xff] %vm5925_vm13, %v9733_v10  ;;  %v9703_v30 = vadd.f32 %v17468_v44, %v9671_v15 }
 0x923   : > { %v9736_v1 = vmax.f32 %v9704_v29, 0.0 }
 0x924   : > { %v9735_v26 = vmax.f32 %v9703_v30, 0.0 }
 0x925   : > { %9768 = vst.msk [vmem:[%s16356_s20 + $0xf8] sm:$0xff] %vm5925_vm13, %v9736_v1 }
 0x926   : > { %9767 = vst.msk [vmem:[%s16356_s20 + $0xf0] sm:$0xff] %vm5925_vm13, %v9735_v26 }
 0x927 PF: > { %s17_s24 = sadd.s32 1, %s12329_s24  }
 0x928   : > { %p14_p4 = scmp.ge.s32.totalorder %s17_s24, 4  }
 0x92a   :  { %16 = sbr.rel (!%p14_p4) target bundleno = 1 (0x1), region = 84 }

</bundles_post_ra>
